<compile_context>
chip_gen: v5e
topology: v5e:2x2
jax: 0.10.0
libtpu: 0.0.40
codegen_flags: <defaults>
</compile_context>

<pallas_src>
import functools

import numpy as np

import jax
import jax.numpy as jnp
from jax.experimental import pallas as pl
from jax.experimental.pallas import tpu as pltpu


MM_DTYPE = jnp.bfloat16   # MXU operand dtype; accumulation & epilogues are f32


def _round_up(a, m):
    return (a + m - 1) // m * m


# ---------------------------------------------------------------------------
# The single fused Pallas kernel (one batch block of B images per grid step)
# ---------------------------------------------------------------------------
def _net_kernel(x1_ref, t1_ref, b1_ref, t2_ref, b2_ref,
                wf1_ref, bf1_ref, wf2_ref, bf2_ref, o_ref):
    f32 = jnp.float32
    bb = o_ref.shape[0]                       # images in this block

    # ---- conv1 (5x5, 1->20) + folded BN1 + ReLU : ONE MXU matmul ------------
    # x1 rows are ordered [oy parity | oy//2 | image]; T1 columns are ordered
    # [ox parity | ox//2 | channel] (each half padded to 256 lanes), so both
    # halves of the following 2x2 pool are contiguous, aligned slices.
    x1 = x1_ref[0]                                                  # (24B, 140) bf16
    y1 = jnp.dot(x1, t1_ref[...], preferred_element_type=f32) + b1_ref[...]
    y1 = jnp.maximum(y1, 0.0)                                       # (24B, 512)

    # ---- 2x2 max-pool #1: one lane-half max + one sublane-half max ----------
    c1 = jnp.maximum(y1[:, :256], y1[:, 256:])                      # (24B, 256)
    p1 = jnp.maximum(c1[:12 * bb, :], c1[12 * bb:, :]).astype(MM_DTYPE)
    # p1: (12B, 256), rows = [pooled_y | image], cols = [px*20 + c] (+ zero pad)

    # ---- conv2 (5x5, 20->50) + folded BN2 + ReLU : 5 accumulated matmuls ----
    # K-split over ky: each term is a contiguous sublane slice of p1, so no
    # im2col concat is needed.  Output rows become [oy2 | image].
    y2 = jnp.dot(p1[0:8 * bb, :], t2_ref[0], preferred_element_type=f32)
    for ky in range(1, 5):
        y2 = y2 + jnp.dot(p1[ky * bb:(ky + 8) * bb, :], t2_ref[ky],
                          preferred_element_type=f32)
    y2 = jnp.maximum(y2 + b2_ref[...], 0.0)                         # (8B, 512)

    # ---- 2x2 max-pool #2 columns; the 4 row-pairs feed fc1 directly ---------
    c2 = jnp.maximum(y2[:, :256], y2[:, 256:])                      # (8B, 256)

    # ---- flatten + fc1 + ReLU: 4 accumulated (B,256)@(256,500) matmuls ------
    # (the NCHW .view(-1,800) permutation is folded into wf1 on the host)
    pair0 = jnp.maximum(c2[0:bb, :], c2[bb:2 * bb, :]).astype(MM_DTYPE)
    h1 = jnp.dot(pair0, wf1_ref[0], preferred_element_type=f32)
    for py2 in range(1, 4):
        pair = jnp.maximum(c2[2 * py2 * bb:(2 * py2 + 1) * bb, :],
                           c2[(2 * py2 + 1) * bb:(2 * py2 + 2) * bb, :])
        h1 = h1 + jnp.dot(pair.astype(MM_DTYPE), wf1_ref[py2],
                          preferred_element_type=f32)
    h1 = jnp.maximum(h1 + bf1_ref[...], 0.0)                        # (B, 500)

    # ---- fc2 + log_softmax(dim=1) -------------------------------------------
    z = jnp.dot(h1.astype(MM_DTYPE), wf2_ref[...],
                preferred_element_type=f32) + bf2_ref[...]          # (B, 10)
    m = jnp.max(z, axis=-1, keepdims=True)
    lse = jnp.log(jnp.sum(jnp.exp(z - m), axis=-1, keepdims=True)) + m
    o_ref[...] = (z - lse).astype(o_ref.dtype)


# ---------------------------------------------------------------------------
# Host-side (jitted, XLA) input layout plumbing for conv1
# ---------------------------------------------------------------------------
def _build_conv1_input(x, bb):
    """x: (n_pad, 28, 28) f32 with n_pad % bb == 0.
    Returns (n_pad//bb, 24*bb, 140) bf16 where within a block
      row = (oy%2)*12*bb + (oy//2)*bb + image,  col = ky*28 + input_col,
      value = img[image, oy+ky, input_col].
    This is the fixed 5-row window gather (im2col rows) + bf16 cast; the
    parity-major row order makes pool #1's row step a single sublane slice."""
    n_pad = x.shape[0]
    g = n_pad // bb
    rows = jnp.arange(24)[:, None] + jnp.arange(5)[None, :]         # (24, 5): oy + ky
    slab = x[:, rows, :]                                            # (n_pad, 24, 5, 28)
    slab = slab.reshape(n_pad, 24, 140)                             # col = ky*28 + i
    oy_pm = jnp.concatenate([jnp.arange(0, 24, 2), jnp.arange(1, 24, 2)])
    slab = slab[:, oy_pm, :]                                        # parity-major oy
    slab = slab.reshape(g, bb, 24, 140).transpose(0, 2, 1, 3)       # (g, 24, bb, 140)
    return slab.reshape(g, 24 * bb, 140).astype(MM_DTYPE)


def net_forward(kp, x_nchw, block_b=64):
    """Fused forward pass. x_nchw: (N, 1, 28, 28) float32 -> (N, 10) log-probs.

    block_b: images per grid block.  64 is a v7x-safe default (64 MiB VMEM);
    raise to ~256 on v5e/v6e for maximal MXU residency."""
    n = x_nchw.shape[0]
    bb = min(max(16, (int(block_b) // 16) * 16), _round_up(n, 16))
    n_pad = _round_up(n, bb)
    g = n_pad // bb

    x = x_nchw.reshape(n, 28, 28).astype(jnp.float32)               # cin == 1
    if n_pad != n:
        x = jnp.pad(x, ((0, n_pad - n), (0, 0), (0, 0)))
    x1 = _build_conv1_input(x, bb)                                  # (g, 24*bb, 140) bf16

    out = pl.pallas_call(
        _net_kernel,
        out_shape=jax.ShapeDtypeStruct((n_pad, 10), jnp.float32),
        grid=(g,),
        in_specs=[
            pl.BlockSpec((1, 24 * bb, 140), lambda i: (i, 0, 0)),   # im2col'd images
            pl.BlockSpec((140, 512), lambda i: (0, 0)),             # conv1 Toeplitz (bf16)
            pl.BlockSpec((1, 512), lambda i: (0, 0)),               # conv1+bn1 bias
            pl.BlockSpec((5, 256, 512), lambda i: (0, 0, 0)),       # conv2 Toeplitz, ky-split
            pl.BlockSpec((1, 512), lambda i: (0, 0)),               # conv2+bn2 bias
            pl.BlockSpec((4, 256, 500), lambda i: (0, 0, 0)),       # fc1 weight, row-split
            pl.BlockSpec((1, 500), lambda i: (0, 0)),               # fc1 bias
            pl.BlockSpec((500, 10), lambda i: (0, 0)),              # fc2 weight
            pl.BlockSpec((1, 10), lambda i: (0, 0)),                # fc2 bias
        ],
        out_specs=pl.BlockSpec((bb, 10), lambda i: (i, 0)),
        compiler_params=pltpu.CompilerParams(
            dimension_semantics=("parallel",),                      # blocks across TCs (v7x)
            vmem_limit_bytes=48 * 1024 * 1024),
    )(x1, kp["t1"], kp["b1"], kp["t2"], kp["b2"],
      kp["wf1"], kp["bf1"], kp["wf2"], kp["bf2"])
    return out[:n]


# ---------------------------------------------------------------------------
# Host-side, one-time parameter preparation (BN folding, Toeplitz, permutation)
# ---------------------------------------------------------------------------
def prepare_kernel_params(tp, eps=1e-5, mm_dtype=MM_DTYPE):
    def fold_bn(conv_w, conv_b, g, beta, rm, rv):
        conv_w, conv_b, g, beta, rm, rv = (
            np.asarray(a, np.float32) for a in (conv_w, conv_b, g, beta, rm, rv))
        s = g / np.sqrt(rv + eps)
        return conv_w * s[:, None, None, None], (conv_b - rm) * s + beta

    w1, b1 = fold_bn(tp["conv1_w"], tp["conv1_b"], tp["bn1_g"], tp["bn1_b"],
                     tp["bn1_rm"], tp["bn1_rv"])          # (20,1,5,5), (20,)
    w2, b2 = fold_bn(tp["conv2_w"], tp["conv2_b"], tp["bn2_g"], tp["bn2_b"],
                     tp["bn2_rm"], tp["bn2_rv"])          # (50,20,5,5), (50,)

    # OIHW -> (KH, KW, CIN, COUT)
    w1_khwc = w1.transpose(2, 3, 1, 0)                    # (5,5,1,20)
    w2_khwc = w2.transpose(2, 3, 1, 0)                    # (5,5,20,50)

    # conv1 banded weight: rows = ky*28 + input_col, cols = [ox parity half
    # (256 lanes each, 240 used)] -> so the column pool is a lane-half max.
    t1 = np.zeros((140, 512), np.float32)
    for ky in range(5):
        for kx in range(5):
            for ox in range(24):
                c0 = (ox % 2) * 256 + (ox // 2) * 20
                t1[ky * 28 + ox + kx, c0:c0 + 20] = w1_khwc[ky, kx, 0]

    # conv2 banded weight, split by ky (5 accumulated matmuls in the kernel):
    # rows = px*20 + cin (256, padded), cols = [ox2 parity half (256 each)].
    t2 = np.zeros((5, 256, 512), np.float32)
    for ky in range(5):
        for kx in range(5):
            for ox in range(8):
                r0 = (ox + kx) * 20
                c0 = (ox % 2) * 256 + (ox // 2) * 50
                t2[ky, r0:r0 + 20, c0:c0 + 50] = w2_khwc[ky, kx]

    b1_half = np.zeros((256,), np.float32)
    b1_half[:240] = np.tile(b1, 12)
    b2_half = np.zeros((256,), np.float32)
    b2_half[:200] = np.tile(b2, 4)

    # fc1 weight split by pooled row h, with the PyTorch NCHW .view(-1, 800)
    # permutation (flat idx = c*16 + h*4 + w) folded in; lane = w*50 + c.
    wf1_t = np.asarray(tp["fc1_w"], np.float32).T         # (800, 500)
    wf1 = np.zeros((4, 256, 500), np.float32)
    lane = np.arange(200)
    w_, c_ = lane // 50, lane % 50
    for h in range(4):
        wf1[h, :200, :] = wf1_t[c_ * 16 + h * 4 + w_, :]

    return dict(
        t1=jnp.asarray(t1, dtype=mm_dtype),
        b1=jnp.asarray(np.concatenate([b1_half, b1_half])[None, :], jnp.float32),
        t2=jnp.asarray(t2, dtype=mm_dtype),
        b2=jnp.asarray(np.concatenate([b2_half, b2_half])[None, :], jnp.float32),
        wf1=jnp.asarray(wf1, dtype=mm_dtype),
        bf1=jnp.asarray(np.asarray(tp["fc1_b"], np.float32)[None, :], jnp.float32),
        wf2=jnp.asarray(np.asarray(tp["fc2_w"], np.float32).T, dtype=mm_dtype),
        bf2=jnp.asarray(np.asarray(tp["fc2_b"], np.float32)[None, :], jnp.float32),
    )


def init_torch_params(key):
    """Random parameters in PyTorch layout (OIHW convs, (out,in) linears)."""
    ks = jax.random.split(key, 16)
    f32 = jnp.float32
    p = {}
    p["conv1_w"] = 0.10 * jax.random.normal(ks[0], (20, 1, 5, 5), f32)
    p["conv1_b"] = 0.10 * jax.random.normal(ks[1], (20,), f32)
    p["conv2_w"] = 0.05 * jax.random.normal(ks[2], (50, 20, 5, 5), f32)
    p["conv2_b"] = 0.10 * jax.random.normal(ks[3], (50,), f32)
    p["fc1_w"] = 0.05 * jax.random.normal(ks[4], (500, 800), f32)
    p["fc1_b"] = 0.10 * jax.random.normal(ks[5], (500,), f32)
    p["fc2_w"] = 0.05 * jax.random.normal(ks[6], (10, 500), f32)
    p["fc2_b"] = 0.10 * jax.random.normal(ks[7], (10,), f32)
    p["bn1_g"] = 1.0 + 0.1 * jax.random.normal(ks[8], (20,), f32)
    p["bn1_b"] = 0.1 * jax.random.normal(ks[9], (20,), f32)
    p["bn1_rm"] = 0.1 * jax.random.normal(ks[10], (20,), f32)
    p["bn1_rv"] = jax.random.uniform(ks[11], (20,), f32, 0.5, 1.5)
    p["bn2_g"] = 1.0 + 0.1 * jax.random.normal(ks[12], (50,), f32)
    p["bn2_b"] = 0.1 * jax.random.normal(ks[13], (50,), f32)
    p["bn2_rm"] = 0.1 * jax.random.normal(ks[14], (50,), f32)
    p["bn2_rv"] = jax.random.uniform(ks[15], (50,), f32, 0.5, 1.5)
    return p


# ---------------------------------------------------------------------------
# Pure-JAX reference (PyTorch semantics; same bf16 rounding as the kernel)
# ---------------------------------------------------------------------------
def reference_forward(tp, x_nchw, eps=1e-5):
    f32, bf16 = jnp.float32, MM_DTYPE

    def fold(conv_w, conv_b, g, beta, rm, rv):
        s = g / jnp.sqrt(rv + eps)
        return (conv_w * s[:, None, None, None]).astype(bf16), (conv_b - rm) * s + beta

    w1f, b1f = fold(tp["conv1_w"], tp["conv1_b"], tp["bn1_g"], tp["bn1_b"],
                    tp["bn1_rm"], tp["bn1_rv"])
    w2f, b2f = fold(tp["conv2_w"], tp["conv2_b"], tp["bn2_g"], tp["bn2_b"],
                    tp["bn2_rm"], tp["bn2_rv"])

    def conv(x, w):
        return jax.lax.conv_general_dilated(
            x.astype(bf16), w, window_strides=(1, 1), padding="VALID",
            dimension_numbers=("NCHW", "OIHW", "NCHW"),
            preferred_element_type=f32)

    def pool(x):
        n, cc, hh, ww = x.shape
        return jnp.max(x.reshape(n, cc, hh // 2, 2, ww // 2, 2), axis=(3, 5))

    y = pool(jnp.maximum(conv(x_nchw, w1f) + b1f[None, :, None, None], 0.0))
    y = pool(jnp.maximum(conv(y, w2f) + b2f[None, :, None, None], 0.0))
    flat = y.reshape(y.shape[0], -1)                       # NCHW flatten (torch .view)
    h1 = jnp.maximum(jnp.dot(flat.astype(bf16), tp["fc1_w"].T.astype(bf16),
                             preferred_element_type=f32) + tp["fc1_b"], 0.0)
    z = jnp.dot(h1.astype(bf16), tp["fc2_w"].T.astype(bf16),
                preferred_element_type=f32) + tp["fc2_b"]
    return jax.nn.log_softmax(z, axis=-1)


if __name__ == "__main__":
    key = jax.random.PRNGKey(0)
    pkey, xkey, xkey2 = jax.random.split(key, 3)
    tp = init_torch_params(pkey)
    kp = prepare_kernel_params(tp)

    # Small batch (2 MNIST-sized images); block is padded to the 16-image min.
    x = jax.random.normal(xkey, (2, 1, 28, 28), jnp.float32)
    out = jax.block_until_ready(jax.jit(net_forward)(kp, x))
    assert out.shape == (2, 10), out.shape
    assert bool(jnp.all(jnp.isfinite(out)))
    assert bool(jnp.allclose(jnp.exp(out).sum(axis=1), 1.0, atol=1e-4))
    ref = reference_forward(tp, x)
    err = float(jnp.max(jnp.abs(out - ref)))
    assert err < 2e-2, f"kernel/reference mismatch (n=2): max |diff| = {err}"

    # Larger batch exercising a multi-block grid (+ batch padding): 40 images,
    # 16-image blocks -> grid of 3 blocks with 8 padded images.
    xb = jax.random.normal(xkey2, (40, 1, 28, 28), jnp.float32)
    fwd = jax.jit(functools.partial(net_forward, block_b=16))
    outb = jax.block_until_ready(fwd(kp, xb))
    refb = reference_forward(tp, xb)
    errb = float(jnp.max(jnp.abs(outb - refb)))
    assert outb.shape == (40, 10), outb.shape
    assert errb < 2e-2, f"kernel/reference mismatch (n=40): max |diff| = {errb}"

    print("KERNEL_OK")
</pallas_src>

<mosaic_0001>
module attributes {stable_mosaic.version = 11 : i64} {
  func.func @_net_kernel(%arg0: i32, %arg1: memref<1x384x140xbf16, #tpu.memory_space<vmem>>, %arg2: memref<140x512xbf16, #tpu.memory_space<vmem>>, %arg3: memref<1x512xf32, #tpu.memory_space<vmem>>, %arg4: memref<5x256x512xbf16, #tpu.memory_space<vmem>>, %arg5: memref<1x512xf32, #tpu.memory_space<vmem>>, %arg6: memref<4x256x500xbf16, #tpu.memory_space<vmem>>, %arg7: memref<1x500xf32, #tpu.memory_space<vmem>>, %arg8: memref<500x10xbf16, #tpu.memory_space<vmem>>, %arg9: memref<1x10xf32, #tpu.memory_space<vmem>>, %arg10: memref<16x10xf32, #tpu.memory_space<vmem>>) attributes {dimension_semantics = [#tpu.dimension_semantics<parallel>], iteration_bounds = array<i64: 1>, scalar_prefetch = 0 : i64, scratch_operands = 0 : i64, tpu.core_type = #tpu.core_type<tc>, window_params = [{transform_indices = @transform_0, window_bounds = array<i64: 1, 384, 140>}, {pipeline_mode = #tpu.pipeline_mode<synchronous>, transform_indices = @transform_1, window_bounds = array<i64: 140, 512>}, {pipeline_mode = #tpu.pipeline_mode<synchronous>, transform_indices = @transform_2, window_bounds = array<i64: 1, 512>}, {pipeline_mode = #tpu.pipeline_mode<synchronous>, transform_indices = @transform_3, window_bounds = array<i64: 5, 256, 512>}, {pipeline_mode = #tpu.pipeline_mode<synchronous>, transform_indices = @transform_4, window_bounds = array<i64: 1, 512>}, {pipeline_mode = #tpu.pipeline_mode<synchronous>, transform_indices = @transform_5, window_bounds = array<i64: 4, 256, 500>}, {pipeline_mode = #tpu.pipeline_mode<synchronous>, transform_indices = @transform_6, window_bounds = array<i64: 1, 500>}, {pipeline_mode = #tpu.pipeline_mode<synchronous>, transform_indices = @transform_7, window_bounds = array<i64: 500, 10>}, {pipeline_mode = #tpu.pipeline_mode<synchronous>, transform_indices = @transform_8, window_bounds = array<i64: 1, 10>}, {transform_indices = @transform_9, window_bounds = array<i64: 16, 10>}]} {
    %c0 = arith.constant 0 : index
    %c0_0 = arith.constant 0 : index
    %c0_1 = arith.constant 0 : index
    %0 = vector.load %arg1[%c0, %c0_0, %c0_1] : memref<1x384x140xbf16, #tpu.memory_space<vmem>>, vector<1x384x140xbf16>
    %1 = vector.shape_cast %0 : vector<1x384x140xbf16> to vector<384x140xbf16>
    %c0_2 = arith.constant 0 : index
    %c0_3 = arith.constant 0 : index
    %2 = vector.load %arg2[%c0_2, %c0_3] : memref<140x512xbf16, #tpu.memory_space<vmem>>, vector<140x512xbf16>
    %cst = arith.constant dense<0.000000e+00> : vector<384x512xf32>
    %3 = tpu.matmul %1, %2, %cst {dimension_numbers = #tpu.dot_dimension_numbers<[1], [0], [0], [1], [0, 0, 1, 1], [], []>} : vector<384x140xbf16>, vector<140x512xbf16>, vector<384x512xf32> -> vector<384x512xf32>
    %c0_4 = arith.constant 0 : index
    %c0_5 = arith.constant 0 : index
    %4 = vector.load %arg3[%c0_4, %c0_5] : memref<1x512xf32, #tpu.memory_space<vmem>>, vector<1x512xf32>
    %5 = vector.broadcast %4 : vector<1x512xf32> to vector<384x512xf32>
    %6 = arith.addf %3, %5 : vector<384x512xf32>
    %cst_6 = arith.constant 0.000000e+00 : f32
    %7 = vector.broadcast %cst_6 : f32 to vector<384x512xf32>
    %8 = arith.maximumf %6, %7 : vector<384x512xf32>
    %9 = vector.extract_strided_slice %8 {offsets = [0, 0], sizes = [384, 256], strides = [1, 1]} : vector<384x512xf32> to vector<384x256xf32>
    %10 = vector.extract_strided_slice %8 {offsets = [0, 256], sizes = [384, 256], strides = [1, 1]} : vector<384x512xf32> to vector<384x256xf32>
    %11 = arith.maximumf %9, %10 : vector<384x256xf32>
    %12 = vector.extract_strided_slice %11 {offsets = [0, 0], sizes = [192, 256], strides = [1, 1]} : vector<384x256xf32> to vector<192x256xf32>
    %13 = vector.extract_strided_slice %11 {offsets = [192, 0], sizes = [192, 256], strides = [1, 1]} : vector<384x256xf32> to vector<192x256xf32>
    %14 = arith.maximumf %12, %13 : vector<192x256xf32>
    %15 = arith.truncf %14 : vector<192x256xf32> to vector<192x256xbf16>
    %16 = vector.extract_strided_slice %15 {offsets = [0, 0], sizes = [128, 256], strides = [1, 1]} : vector<192x256xbf16> to vector<128x256xbf16>
    %c0_7 = arith.constant 0 : index
    %c0_8 = arith.constant 0 : index
    %c0_9 = arith.constant 0 : index
    %17 = vector.load %arg4[%c0_7, %c0_8, %c0_9] : memref<5x256x512xbf16, #tpu.memory_space<vmem>>, vector<1x256x512xbf16>
    %18 = vector.shape_cast %17 : vector<1x256x512xbf16> to vector<256x512xbf16>
    %cst_10 = arith.constant dense<0.000000e+00> : vector<128x512xf32>
    %19 = tpu.matmul %16, %18, %cst_10 {dimension_numbers = #tpu.dot_dimension_numbers<[1], [0], [0], [1], [0, 0, 1, 1], [], []>} : vector<128x256xbf16>, vector<256x512xbf16>, vector<128x512xf32> -> vector<128x512xf32>
    %20 = vector.extract_strided_slice %15 {offsets = [16, 0], sizes = [128, 256], strides = [1, 1]} : vector<192x256xbf16> to vector<128x256xbf16>
    %c1 = arith.constant 1 : index
    %c0_11 = arith.constant 0 : index
    %c0_12 = arith.constant 0 : index
    %21 = vector.load %arg4[%c1, %c0_11, %c0_12] : memref<5x256x512xbf16, #tpu.memory_space<vmem>>, vector<1x256x512xbf16>
    %22 = vector.shape_cast %21 : vector<1x256x512xbf16> to vector<256x512xbf16>
    %cst_13 = arith.constant dense<0.000000e+00> : vector<128x512xf32>
    %23 = tpu.matmul %20, %22, %cst_13 {dimension_numbers = #tpu.dot_dimension_numbers<[1], [0], [0], [1], [0, 0, 1, 1], [], []>} : vector<128x256xbf16>, vector<256x512xbf16>, vector<128x512xf32> -> vector<128x512xf32>
    %24 = arith.addf %19, %23 : vector<128x512xf32>
    %25 = vector.extract_strided_slice %15 {offsets = [32, 0], sizes = [128, 256], strides = [1, 1]} : vector<192x256xbf16> to vector<128x256xbf16>
    %c2 = arith.constant 2 : index
    %c0_14 = arith.constant 0 : index
    %c0_15 = arith.constant 0 : index
    %26 = vector.load %arg4[%c2, %c0_14, %c0_15] : memref<5x256x512xbf16, #tpu.memory_space<vmem>>, vector<1x256x512xbf16>
    %27 = vector.shape_cast %26 : vector<1x256x512xbf16> to vector<256x512xbf16>
    %cst_16 = arith.constant dense<0.000000e+00> : vector<128x512xf32>
    %28 = tpu.matmul %25, %27, %cst_16 {dimension_numbers = #tpu.dot_dimension_numbers<[1], [0], [0], [1], [0, 0, 1, 1], [], []>} : vector<128x256xbf16>, vector<256x512xbf16>, vector<128x512xf32> -> vector<128x512xf32>
    %29 = arith.addf %24, %28 : vector<128x512xf32>
    %30 = vector.extract_strided_slice %15 {offsets = [48, 0], sizes = [128, 256], strides = [1, 1]} : vector<192x256xbf16> to vector<128x256xbf16>
    %c3 = arith.constant 3 : index
    %c0_17 = arith.constant 0 : index
    %c0_18 = arith.constant 0 : index
    %31 = vector.load %arg4[%c3, %c0_17, %c0_18] : memref<5x256x512xbf16, #tpu.memory_space<vmem>>, vector<1x256x512xbf16>
    %32 = vector.shape_cast %31 : vector<1x256x512xbf16> to vector<256x512xbf16>
    %cst_19 = arith.constant dense<0.000000e+00> : vector<128x512xf32>
    %33 = tpu.matmul %30, %32, %cst_19 {dimension_numbers = #tpu.dot_dimension_numbers<[1], [0], [0], [1], [0, 0, 1, 1], [], []>} : vector<128x256xbf16>, vector<256x512xbf16>, vector<128x512xf32> -> vector<128x512xf32>
    %34 = arith.addf %29, %33 : vector<128x512xf32>
    %35 = vector.extract_strided_slice %15 {offsets = [64, 0], sizes = [128, 256], strides = [1, 1]} : vector<192x256xbf16> to vector<128x256xbf16>
    %c4 = arith.constant 4 : index
    %c0_20 = arith.constant 0 : index
    %c0_21 = arith.constant 0 : index
    %36 = vector.load %arg4[%c4, %c0_20, %c0_21] : memref<5x256x512xbf16, #tpu.memory_space<vmem>>, vector<1x256x512xbf16>
    %37 = vector.shape_cast %36 : vector<1x256x512xbf16> to vector<256x512xbf16>
    %cst_22 = arith.constant dense<0.000000e+00> : vector<128x512xf32>
    %38 = tpu.matmul %35, %37, %cst_22 {dimension_numbers = #tpu.dot_dimension_numbers<[1], [0], [0], [1], [0, 0, 1, 1], [], []>} : vector<128x256xbf16>, vector<256x512xbf16>, vector<128x512xf32> -> vector<128x512xf32>
    %39 = arith.addf %34, %38 : vector<128x512xf32>
    %c0_23 = arith.constant 0 : index
    %c0_24 = arith.constant 0 : index
    %40 = vector.load %arg5[%c0_23, %c0_24] : memref<1x512xf32, #tpu.memory_space<vmem>>, vector<1x512xf32>
    %41 = vector.broadcast %40 : vector<1x512xf32> to vector<128x512xf32>
    %42 = arith.addf %39, %41 : vector<128x512xf32>
    %cst_25 = arith.constant 0.000000e+00 : f32
    %43 = vector.broadcast %cst_25 : f32 to vector<128x512xf32>
    %44 = arith.maximumf %42, %43 : vector<128x512xf32>
    %45 = vector.extract_strided_slice %44 {offsets = [0, 0], sizes = [128, 256], strides = [1, 1]} : vector<128x512xf32> to vector<128x256xf32>
    %46 = vector.extract_strided_slice %44 {offsets = [0, 256], sizes = [128, 256], strides = [1, 1]} : vector<128x512xf32> to vector<128x256xf32>
    %47 = arith.maximumf %45, %46 : vector<128x256xf32>
    %48 = vector.extract_strided_slice %47 {offsets = [0, 0], sizes = [16, 256], strides = [1, 1]} : vector<128x256xf32> to vector<16x256xf32>
    %49 = vector.extract_strided_slice %47 {offsets = [16, 0], sizes = [16, 256], strides = [1, 1]} : vector<128x256xf32> to vector<16x256xf32>
    %50 = arith.maximumf %48, %49 : vector<16x256xf32>
    %51 = arith.truncf %50 : vector<16x256xf32> to vector<16x256xbf16>
    %c0_26 = arith.constant 0 : index
    %c0_27 = arith.constant 0 : index
    %c0_28 = arith.constant 0 : index
    %52 = vector.load %arg6[%c0_26, %c0_27, %c0_28] : memref<4x256x500xbf16, #tpu.memory_space<vmem>>, vector<1x256x500xbf16>
    %53 = vector.shape_cast %52 : vector<1x256x500xbf16> to vector<256x500xbf16>
    %cst_29 = arith.constant dense<0.000000e+00> : vector<16x500xf32>
    %54 = tpu.matmul %51, %53, %cst_29 {dimension_numbers = #tpu.dot_dimension_numbers<[1], [0], [0], [1], [0, 0, 1, 1], [], []>} : vector<16x256xbf16>, vector<256x500xbf16>, vector<16x500xf32> -> vector<16x500xf32>
    %55 = vector.extract_strided_slice %47 {offsets = [32, 0], sizes = [16, 256], strides = [1, 1]} : vector<128x256xf32> to vector<16x256xf32>
    %56 = vector.extract_strided_slice %47 {offsets = [48, 0], sizes = [16, 256], strides = [1, 1]} : vector<128x256xf32> to vector<16x256xf32>
    %57 = arith.maximumf %55, %56 : vector<16x256xf32>
    %58 = arith.truncf %57 : vector<16x256xf32> to vector<16x256xbf16>
    %c1_30 = arith.constant 1 : index
    %c0_31 = arith.constant 0 : index
    %c0_32 = arith.constant 0 : index
    %59 = vector.load %arg6[%c1_30, %c0_31, %c0_32] : memref<4x256x500xbf16, #tpu.memory_space<vmem>>, vector<1x256x500xbf16>
    %60 = vector.shape_cast %59 : vector<1x256x500xbf16> to vector<256x500xbf16>
    %cst_33 = arith.constant dense<0.000000e+00> : vector<16x500xf32>
    %61 = tpu.matmul %58, %60, %cst_33 {dimension_numbers = #tpu.dot_dimension_numbers<[1], [0], [0], [1], [0, 0, 1, 1], [], []>} : vector<16x256xbf16>, vector<256x500xbf16>, vector<16x500xf32> -> vector<16x500xf32>
    %62 = arith.addf %54, %61 : vector<16x500xf32>
    %63 = vector.extract_strided_slice %47 {offsets = [64, 0], sizes = [16, 256], strides = [1, 1]} : vector<128x256xf32> to vector<16x256xf32>
    %64 = vector.extract_strided_slice %47 {offsets = [80, 0], sizes = [16, 256], strides = [1, 1]} : vector<128x256xf32> to vector<16x256xf32>
    %65 = arith.maximumf %63, %64 : vector<16x256xf32>
    %66 = arith.truncf %65 : vector<16x256xf32> to vector<16x256xbf16>
    %c2_34 = arith.constant 2 : index
    %c0_35 = arith.constant 0 : index
    %c0_36 = arith.constant 0 : index
    %67 = vector.load %arg6[%c2_34, %c0_35, %c0_36] : memref<4x256x500xbf16, #tpu.memory_space<vmem>>, vector<1x256x500xbf16>
    %68 = vector.shape_cast %67 : vector<1x256x500xbf16> to vector<256x500xbf16>
    %cst_37 = arith.constant dense<0.000000e+00> : vector<16x500xf32>
    %69 = tpu.matmul %66, %68, %cst_37 {dimension_numbers = #tpu.dot_dimension_numbers<[1], [0], [0], [1], [0, 0, 1, 1], [], []>} : vector<16x256xbf16>, vector<256x500xbf16>, vector<16x500xf32> -> vector<16x500xf32>
    %70 = arith.addf %62, %69 : vector<16x500xf32>
    %71 = vector.extract_strided_slice %47 {offsets = [96, 0], sizes = [16, 256], strides = [1, 1]} : vector<128x256xf32> to vector<16x256xf32>
    %72 = vector.extract_strided_slice %47 {offsets = [112, 0], sizes = [16, 256], strides = [1, 1]} : vector<128x256xf32> to vector<16x256xf32>
    %73 = arith.maximumf %71, %72 : vector<16x256xf32>
    %74 = arith.truncf %73 : vector<16x256xf32> to vector<16x256xbf16>
    %c3_38 = arith.constant 3 : index
    %c0_39 = arith.constant 0 : index
    %c0_40 = arith.constant 0 : index
    %75 = vector.load %arg6[%c3_38, %c0_39, %c0_40] : memref<4x256x500xbf16, #tpu.memory_space<vmem>>, vector<1x256x500xbf16>
    %76 = vector.shape_cast %75 : vector<1x256x500xbf16> to vector<256x500xbf16>
    %cst_41 = arith.constant dense<0.000000e+00> : vector<16x500xf32>
    %77 = tpu.matmul %74, %76, %cst_41 {dimension_numbers = #tpu.dot_dimension_numbers<[1], [0], [0], [1], [0, 0, 1, 1], [], []>} : vector<16x256xbf16>, vector<256x500xbf16>, vector<16x500xf32> -> vector<16x500xf32>
    %78 = arith.addf %70, %77 : vector<16x500xf32>
    %c0_42 = arith.constant 0 : index
    %c0_43 = arith.constant 0 : index
    %79 = vector.load %arg7[%c0_42, %c0_43] : memref<1x500xf32, #tpu.memory_space<vmem>>, vector<1x500xf32>
    %80 = vector.broadcast %79 : vector<1x500xf32> to vector<16x500xf32>
    %81 = arith.addf %78, %80 : vector<16x500xf32>
    %cst_44 = arith.constant 0.000000e+00 : f32
    %82 = vector.broadcast %cst_44 : f32 to vector<16x500xf32>
    %83 = arith.maximumf %81, %82 : vector<16x500xf32>
    %84 = arith.truncf %83 : vector<16x500xf32> to vector<16x500xbf16>
    %c0_45 = arith.constant 0 : index
    %c0_46 = arith.constant 0 : index
    %85 = vector.load %arg8[%c0_45, %c0_46] : memref<500x10xbf16, #tpu.memory_space<vmem>>, vector<500x10xbf16>
    %cst_47 = arith.constant dense<0.000000e+00> : vector<16x10xf32>
    %86 = tpu.matmul %84, %85, %cst_47 {dimension_numbers = #tpu.dot_dimension_numbers<[1], [0], [0], [1], [0, 0, 1, 1], [], []>} : vector<16x500xbf16>, vector<500x10xbf16>, vector<16x10xf32> -> vector<16x10xf32>
    %c0_48 = arith.constant 0 : index
    %c0_49 = arith.constant 0 : index
    %87 = vector.load %arg9[%c0_48, %c0_49] : memref<1x10xf32, #tpu.memory_space<vmem>>, vector<1x10xf32>
    %88 = vector.broadcast %87 : vector<1x10xf32> to vector<16x10xf32>
    %89 = arith.addf %86, %88 : vector<16x10xf32>
    %cst_50 = arith.constant dense<0xFF800000> : vector<16xf32>
    %90 = vector.multi_reduction <maximumf>, %89, %cst_50 [1] : vector<16x10xf32> to vector<16xf32>
    %91 = vector.shape_cast %90 : vector<16xf32> to vector<16x1xf32>
    %92 = vector.broadcast %91 : vector<16x1xf32> to vector<16x10xf32>
    %93 = arith.subf %89, %92 : vector<16x10xf32>
    %94 = math.exp %93 : vector<16x10xf32>
    %cst_51 = arith.constant dense<0.000000e+00> : vector<16xf32>
    %95 = vector.multi_reduction <add>, %94, %cst_51 [1] : vector<16x10xf32> to vector<16xf32>
    %96 = vector.shape_cast %95 : vector<16xf32> to vector<16x1xf32>
    %97 = math.log %96 : vector<16x1xf32>
    %98 = arith.addf %97, %91 : vector<16x1xf32>
    %99 = vector.broadcast %98 : vector<16x1xf32> to vector<16x10xf32>
    %100 = arith.subf %89, %99 : vector<16x10xf32>
    %c0_52 = arith.constant 0 : index
    %c0_53 = arith.constant 0 : index
    %101 = vector.load %arg10[%c0_52, %c0_53] : memref<16x10xf32, #tpu.memory_space<vmem>>, vector<16x10xf32>
    tpu.vector_store %arg10[%c0_52, %c0_53], %100 {strides = array<i32>} : memref<16x10xf32, #tpu.memory_space<vmem>>, vector<16x10xf32>,
    return
  }
  func.func @transform_0(%arg0: i32) -> (i32, i32, i32) {
    %c0_i32 = arith.constant 0 : i32
    %c0_i32_0 = arith.constant 0 : i32
    %c0_i32_1 = arith.constant 0 : i32
    return %arg0, %c0_i32, %c0_i32_0 : i32, i32, i32
  }
  func.func @transform_1(%arg0: i32) -> (i32, i32) {
    %c0_i32 = arith.constant 0 : i32
    %c0_i32_0 = arith.constant 0 : i32
    %c0_i32_1 = arith.constant 0 : i32
    return %c0_i32, %c0_i32_0 : i32, i32
  }
  func.func @transform_2(%arg0: i32) -> (i32, i32) {
    %c0_i32 = arith.constant 0 : i32
    %c0_i32_0 = arith.constant 0 : i32
    %c0_i32_1 = arith.constant 0 : i32
    return %c0_i32, %c0_i32_0 : i32, i32
  }
  func.func @transform_3(%arg0: i32) -> (i32, i32, i32) {
    %c0_i32 = arith.constant 0 : i32
    %c0_i32_0 = arith.constant 0 : i32
    %c0_i32_1 = arith.constant 0 : i32
    %c0_i32_2 = arith.constant 0 : i32
    return %c0_i32, %c0_i32_0, %c0_i32_1 : i32, i32, i32
  }
  func.func @transform_4(%arg0: i32) -> (i32, i32) {
    %c0_i32 = arith.constant 0 : i32
    %c0_i32_0 = arith.constant 0 : i32
    %c0_i32_1 = arith.constant 0 : i32
    return %c0_i32, %c0_i32_0 : i32, i32
  }
  func.func @transform_5(%arg0: i32) -> (i32, i32, i32) {
    %c0_i32 = arith.constant 0 : i32
    %c0_i32_0 = arith.constant 0 : i32
    %c0_i32_1 = arith.constant 0 : i32
    %c0_i32_2 = arith.constant 0 : i32
    return %c0_i32, %c0_i32_0, %c0_i32_1 : i32, i32, i32
  }
  func.func @transform_6(%arg0: i32) -> (i32, i32) {
    %c0_i32 = arith.constant 0 : i32
    %c0_i32_0 = arith.constant 0 : i32
    %c0_i32_1 = arith.constant 0 : i32
    return %c0_i32, %c0_i32_0 : i32, i32
  }
  func.func @transform_7(%arg0: i32) -> (i32, i32) {
    %c0_i32 = arith.constant 0 : i32
    %c0_i32_0 = arith.constant 0 : i32
    %c0_i32_1 = arith.constant 0 : i32
    return %c0_i32, %c0_i32_0 : i32, i32
  }
  func.func @transform_8(%arg0: i32) -> (i32, i32) {
    %c0_i32 = arith.constant 0 : i32
    %c0_i32_0 = arith.constant 0 : i32
    %c0_i32_1 = arith.constant 0 : i32
    return %c0_i32, %c0_i32_0 : i32, i32
  }
  func.func @transform_9(%arg0: i32) -> (i32, i32) {
    %c0_i32 = arith.constant 0 : i32
    %c0_i32_0 = arith.constant 0 : i32
    return %arg0, %c0_i32 : i32, i32
  }
}

</mosaic_0001>

<bundles_post_ra>
// kernel: net_forward.1
= control target key start
LH: loop header
LB: loop body
LE: loop exit
PB: predicated region body
PF: predicated region fallthrough
CT: control target
= control target key end

     0   :  { %vm592_vm0 = vcmask 1045504   ;;  %vm519_vm1 = vcmask 97280   ;;  %vm8680_vm2 = vcmask 1041408   ;;  %vm8676_vm3 = vcmask 949248   ;;  %s19664_s1 = inlined_call_operand.vmem [shape: bf16[140,512], index: 1, kind: input, shape index: {}]   ;;  %s19665_s0 = inlined_call_operand.vmem [shape: bf16[1,384,140], index: 0, kind: input, shape index: {}]   ;;  %s19666_s2 = inlined_call_operand.vmem [shape: f32[1,512], index: 2, kind: input, shape index: {}]   ;;  %s19667_s3 = inlined_call_operand.vmem [shape: bf16[5,256,512], index: 3, kind: input, shape index: {}]   ;;  %s19668_s5 = inlined_call_operand.vmem [shape: bf16[4,256,500], index: 5, kind: input, shape index: {}]   ;;  %s19669_s4 = inlined_call_operand.vmem [shape: f32[1,512], index: 4, kind: input, shape index: {}]   ;;  %s19670_s8 = inlined_call_operand.vmem [shape: f32[1,10], index: 8, kind: input, shape index: {}]   ;;  %s19671_s7 = inlined_call_operand.vmem [shape: bf16[500,10], index: 7, kind: input, shape index: {}]   ;;  %s19672_s6 = inlined_call_operand.vmem [shape: f32[1,500], index: 6, kind: input, shape index: {}]   ;;  %s19673_s9 = inlined_call_operand.vmem [shape: f32[16,10], index: 9, kind: output, shape index: {}]  }
   0x1   :  { %v9079_v0 = vld [vmem:[%s19664_s1 + $0xe0] sm:$0xf]  ;;  %v12160_v1 = vld [vmem:[%s19664_s1 + $0xec] sm:$0xf0]  ;;  %v12158_v2 = vld [vmem:[%s19664_s1 + $0xe4] sm:$0xf] }
   0x2   :  { %v9080_v3 = vor.u32 %v12160_v1, %v9079_v0  ;;  %v9081_v4 = vld [vmem:[%s19664_s1 + $0xf0] sm:$0xf0]  ;;  %v12162_v5 = vld [vmem:[%s19664_s1 + $0x104] sm:$0xf]  ;;  %v9063_v9 = vld [vmem:[%s19664_s1 + $0xc0] sm:$0xf] }
   0x3   :  { %v9097_v6 = vld [vmem:[%s19664_s1 + $0x110] sm:$0x30]  ;;  %v9084_v7 = vor.u32 %v12158_v2, %v9081_v4  ;;  %v12156_v10 = vld [vmem:[%s19664_s1 + $0xcc] sm:$0xf0]  ;;  %v12154_v11 = vld [vmem:[%s19664_s1 + $0xc4] sm:$0xf] }
   0x4   :  { %v9100_v8 = vor.u32 %v12162_v5, %v9097_v6  ;;  %605 = vmatpush.bf16.msra.mxu0 %v9080_v3  ;;  %v9064_v12 = vor.u32 %v12156_v10, %v9063_v9  ;;  %v9065_v13 = vld [vmem:[%s19664_s1 + $0xd0] sm:$0xf0]  ;;  %v12082_v14 = vld [vmem:[%s19665_s0 + $0x4] sm:$0xf]  ;;  %v8777_v15 = vld [vmem:[%s19665_s0 + $0x8] sm:$0xf0] }
   0x5   :  { %863 = vmatpush.bf16.msra.mxu2 %v9084_v7  ;;  %v9068_v17 = vor.u32 %v12154_v11, %v9065_v13  ;;  %v12870_v18 = vor.u32 %v12082_v14, %v8777_v15  ;;  %v9095_v19 = vld [vmem:[%s19664_s1 + $0x100] sm:$0xf]  ;;  %v12164_v20 = vld [vmem:[%s19664_s1 + $0x10c] sm:$0x30]  ;;  %v12150_v24 = vld [vmem:[%s19664_s1 + $0xa4] sm:$0xf] }
   0x6   :  { %v597_v16 = vsel %vm592_vm0, %v9100_v8, 0  ;;  %v9096_v21 = vor.u32 %v12164_v20, %v9095_v19  ;;  %v9047_v22 = vld [vmem:[%s19664_s1 + $0xa0] sm:$0xf]  ;;  %v12152_v23 = vld [vmem:[%s19664_s1 + $0xac] sm:$0xf0]  ;;  %vm8740_vm4 = vcmask 80896  }
   0x7   :  { %999 = vmatpush.bf16.msra.mxu3 %v597_v16  ;;  %v9049_v25 = vld [vmem:[%s19664_s1 + $0xb0] sm:$0xf0]  ;;  %v9048_v27 = vor.u32 %v12152_v23, %v9047_v22  ;;  %v9031_v29 = vld [vmem:[%s19664_s1 + $0x80] sm:$0xf]  ;;  %v12148_v30 = vld [vmem:[%s19664_s1 + $0x8c] sm:$0xf0] }
   0x8   :  { %606 = vmatpush.bf16.msra.mxu0 %v9064_v12  ;;  %v594_v26 = vsel %vm592_vm0, %v9096_v21, 0  ;;  %v9052_v28 = vor.u32 %v12150_v24, %v9049_v25  ;;  %v12146_v31 = vld [vmem:[%s19664_s1 + $0x84] sm:$0xf]  ;;  %v9033_v32 = vld [vmem:[%s19664_s1 + $0x90] sm:$0xf0]  ;;  %v9032_v33 = vor.u32 %v12148_v30, %v9031_v29 }
   0x9   :  { %864 = vmatpush.bf16.msra.mxu2 %v9068_v17  ;;  %741 = vmatpush.bf16.msra.mxu1 %v594_v26  ;;  %v9036_v34 = vor.u32 %v12146_v31, %v9033_v32  ;;  %v9015_v35 = vld [vmem:[%s19664_s1 + $0x60] sm:$0xf]  ;;  %v12144_v36 = vld [vmem:[%s19664_s1 + $0x6c] sm:$0xf0]  ;;  %v12142_v37 = vld [vmem:[%s19664_s1 + $0x64] sm:$0xf] }
   0xa   :  { %9133 = vmatmul.msk.bf16.vlgmr.msra.gmra.mxu3 %vm519_vm1, %v12870_v18  ;;  %v9017_v38 = vld [vmem:[%s19664_s1 + $0x70] sm:$0xf0]  ;;  %v9016_v39 = vor.u32 %v12144_v36, %v9015_v35  ;;  %v8999_v41 = vld [vmem:[%s19664_s1 + $0x40] sm:$0xf]  ;;  %v12140_v42 = vld [vmem:[%s19664_s1 + $0x4c] sm:$0xf0] }
   0xb   :  { %v9020_v40 = vor.u32 %v12142_v37, %v9017_v38  ;;  %v12138_v43 = vld [vmem:[%s19664_s1 + $0x44] sm:$0xf]  ;;  %v9001_v44 = vld [vmem:[%s19664_s1 + $0x50] sm:$0xf0]  ;;  %v8785_v46 = vld [vmem:[%s19665_s0 + $0x18] sm:$0xf0]  ;;  %v9000_v47 = vor.u32 %v12140_v42, %v8999_v41 }
   0xc   :  { %607 = vmatpush.bf16.msra.mxu0 %v9048_v27  ;;  %9109 = vmatmul.msk.bf16.vlgmr.msra.gmra.mxu1 %vm519_vm1, %v12870_v18  ;;  %v12084_v45 = vld [vmem:[%s19665_s0 + $0x14] sm:$0xf]  ;;  %v9004_v48 = vor.u32 %v12138_v43, %v9001_v44  ;;  %v8983_v50 = vld [vmem:[%s19664_s1 + $0x20] sm:$0xf]  ;;  %v12136_v51 = vld [vmem:[%s19664_s1 + $0x2c] sm:$0xf0] }
   0xd   :  { %865 = vmatpush.bf16.msra.mxu2 %v9052_v28  ;;  %v12937_v49 = vor.u32 %v12084_v45, %v8785_v46  ;;  %v12134_v52 = vld [vmem:[%s19664_s1 + $0x24] sm:$0xf]  ;;  %v8985_v53 = vld [vmem:[%s19664_s1 + $0x30] sm:$0xf0]  ;;  %v8984_v54 = vor.u32 %v12136_v51, %v8983_v50  ;;  %v8967_v56 = vld [vmem:[%s19664_s1] sm:$0xf] }
   0xe   :  { %v8988_v55 = vor.u32 %v12134_v52, %v8985_v53  ;;  %v12132_v57 = vld [vmem:[%s19664_s1 + $0xc] sm:$0xf0]  ;;  %v12130_v58 = vld [vmem:[%s19664_s1 + $0x4] sm:$0xf]  ;;  %v8969_v59 = vld [vmem:[%s19664_s1 + $0x10] sm:$0xf0] }
   0xf   :  { %v8968_v60 = vor.u32 %v12132_v57, %v8967_v56  ;;  %v8775_v61 = vld [vmem:[%s19665_s0] sm:$0xf]  ;;  %v12083_v62 = vld [vmem:[%s19665_s0 + $0x4] sm:$0xf0]  ;;  %v8972_v63 = vor.u32 %v12130_v58, %v8969_v59  ;;  %v12086_v1 = vld [vmem:[%s19665_s0 + $0x24] sm:$0xf] }
  0x10   :  { %608 = vmatpush.bf16.msra.mxu0 %v9032_v33  ;;  %v12973_v0 = vor.u32 %v12083_v62, %v8775_v61  ;;  %v8793_v2 = vld [vmem:[%s19665_s0 + $0x28] sm:$0xf0]  ;;  %v8783_v4 = vld [vmem:[%s19665_s0 + $0x10] sm:$0xf]  ;;  %v12085_v5 = vld [vmem:[%s19665_s0 + $0x14] sm:$0xf0] }
  0x11   :  { %866 = vmatpush.bf16.msra.mxu2 %v9036_v34  ;;  %v12983_v3 = vor.u32 %v12086_v1, %v8793_v2  ;;  %v12995_v6 = vor.u32 %v12085_v5, %v8783_v4  ;;  %v12088_v7 = vld [vmem:[%s19665_s0 + $0x34] sm:$0xf]  ;;  %v8801_v8 = vld [vmem:[%s19665_s0 + $0x38] sm:$0xf0]  ;;  %v8791_v10 = vld [vmem:[%s19665_s0 + $0x20] sm:$0xf] }
  0x12   :  { %v13005_v9 = vor.u32 %v12088_v7, %v8801_v8  ;;  %v12087_v11 = vld [vmem:[%s19665_s0 + $0x24] sm:$0xf0]  ;;  %v12090_v13 = vld [vmem:[%s19665_s0 + $0x44] sm:$0xf]  ;;  %v8809_v14 = vld [vmem:[%s19665_s0 + $0x48] sm:$0xf0] }
  0x13   :  { %v13017_v12 = vor.u32 %v12087_v11, %v8791_v10  ;;  %v12163_v15 = vld [vmem:[%s19664_s1 + $0x10c] sm:$0xf]  ;;  %v9105_v16 = vld [vmem:[%s19664_s1 + $0x118] sm:$0x30]  ;;  %v13033_v17 = vor.u32 %v12090_v13, %v8809_v14  ;;  %v9103_v21 = vld [vmem:[%s19664_s1 + $0x108] sm:$0xf] }
  0x14   :  { %609 = vmatpush.bf16.msra.mxu0 %v9016_v39  ;;  %v9108_v19 = vor.u32 %v12163_v15, %v9105_v16  ;;  %v12165_v22 = vld [vmem:[%s19664_s1 + $0x114] sm:$0x30]  ;;  %v12159_v23 = vld [vmem:[%s19664_s1 + $0xec] sm:$0xf]  ;;  %v9089_v25 = vld [vmem:[%s19664_s1 + $0xf8] sm:$0xf0] }
  0x15   :  { %867 = vmatpush.bf16.msra.mxu2 %v9020_v40  ;;  %v9104_v24 = vor.u32 %v12165_v22, %v9103_v21  ;;  %v9092_v26 = vor.u32 %v12159_v23, %v9089_v25  ;;  %v8799_v27 = vld [vmem:[%s19665_s0 + $0x30] sm:$0xf]  ;;  %v12089_v28 = vld [vmem:[%s19665_s0 + $0x34] sm:$0xf0]  ;;  %v9087_v30 = vld [vmem:[%s19664_s1 + $0xe8] sm:$0xf] }
  0x16   :  { %v603_v20 = vsel %vm592_vm0, %v9108_v19, 0  ;;  %v12161_v31 = vld [vmem:[%s19664_s1 + $0xf4] sm:$0xf0]  ;;  %v13065_v33 = vor.u32 %v12089_v28, %v8799_v27  ;;  %v12092_v34 = vld [vmem:[%s19665_s0 + $0x54] sm:$0xf] }
  0x17   :  { %v600_v29 = vsel %vm592_vm0, %v9104_v24, 0  ;;  %v9088_v32 = vor.u32 %v12161_v31, %v9087_v30  ;;  %v8817_v35 = vld [vmem:[%s19665_s0 + $0x58] sm:$0xf0]  ;;  %v8807_v37 = vld [vmem:[%s19665_s0 + $0x40] sm:$0xf] }
  0x18   :  { %610 = vmatpush.bf16.msra.mxu0 %v9000_v47  ;;  %1257 = vmatpush.bf16.msrb.mxu3 %v600_v29  ;;  %v13075_v36 = vor.u32 %v12092_v34, %v8817_v35  ;;  %v12091_v38 = vld [vmem:[%s19665_s0 + $0x44] sm:$0xf0]  ;;  %v12094_v40 = vld [vmem:[%s19665_s0 + $0x64] sm:$0xf]  ;;  %v8825_v41 = vld [vmem:[%s19665_s0 + $0x68] sm:$0xf0] }
  0x19   :  { %868 = vmatpush.bf16.msra.mxu2 %v9004_v48  ;;  %1121 = vmatpush.bf16.msrb.mxu1 %v9088_v32  ;;  %v13087_v39 = vor.u32 %v12091_v38, %v8807_v37  ;;  %v13097_v42 = vor.u32 %v12094_v40, %v8825_v41  ;;  %v8815_v43 = vld [vmem:[%s19665_s0 + $0x50] sm:$0xf]  ;;  %v12093_v44 = vld [vmem:[%s19665_s0 + $0x54] sm:$0xf0]  ;;  %v12096_v46 = vld [vmem:[%s19665_s0 + $0x74] sm:$0xf] }
  0x1a   :  { %9134 = vmatmul.msk.bf16.gmra.mxu3 %vm519_vm1, %v12937_v49  ;;  %v13109_v45 = vor.u32 %v12093_v44, %v8815_v43  ;;  %v8833_v47 = vld [vmem:[%s19665_s0 + $0x78] sm:$0xf0]  ;;  %v12155_v50 = vld [vmem:[%s19664_s1 + $0xcc] sm:$0xf]  ;;  %v8823_v53 = vld [vmem:[%s19665_s0 + $0x60] sm:$0xf] }
  0x1b   :  { %v13119_v48 = vor.u32 %v12096_v46, %v8833_v47  ;;  %v9073_v51 = vld [vmem:[%s19664_s1 + $0xd8] sm:$0xf0]  ;;  %v12157_v56 = vld [vmem:[%s19664_s1 + $0xd4] sm:$0xf0]  ;;  %v12098_v59 = vld [vmem:[%s19665_s0 + $0x84] sm:$0xf] }
  0x1c   :  { %611 = vmatpush.bf16.msra.mxu0 %v8984_v54  ;;  %9110 = vmatmul.msk.bf16.gmra.mxu1 %vm519_vm1, %v12937_v49  ;;  %v9076_v52 = vor.u32 %v12155_v50, %v9073_v51  ;;  %v12095_v54 = vld [vmem:[%s19665_s0 + $0x64] sm:$0xf0]  ;;  %v8831_v1 = vld [vmem:[%s19665_s0 + $0x70] sm:$0xf]  ;;  %v12097_v2 = vld [vmem:[%s19665_s0 + $0x74] sm:$0xf0] }
  0x1d   :  { %869 = vmatpush.bf16.msra.mxu2 %v8988_v55  ;;  %v9071_v55 = vld [vmem:[%s19664_s1 + $0xc8] sm:$0xf]  ;;  %v13143_v58 = vor.u32 %v12095_v54, %v8823_v53  ;;  %v13165_v4 = vor.u32 %v12097_v2, %v8831_v1  ;;  %v12100_v7 = vld [vmem:[%s19665_s0 + $0x94] sm:$0xf]  ;;  %v8849_v8 = vld [vmem:[%s19665_s0 + $0x98] sm:$0xf0] }
  0x1e   :  { %v9072_v57 = vor.u32 %v12157_v56, %v9071_v55  ;;  %v13175_v11 = vor.u32 %v12100_v7, %v8849_v8  ;;  %v117_v14 = vld [vmem:[%s19666_s2] sm:$0xf]  ;;  %v12099_v19 = vld [vmem:[%s19665_s0 + $0x84] sm:$0xf0]  ;;  %v12102_v25 = vld [vmem:[%s19665_s0 + $0xa4] sm:$0xf] }
  0x1f   :  { %v8839_v16 = vld [vmem:[%s19665_s0 + $0x80] sm:$0xf]  ;;  %v13205_v29 = vperm.slane %v117_v14, 1  ;;  %v8847_v43 = vld [vmem:[%s19665_s0 + $0x90] sm:$0xf] }
  0x20   :  { %612 = vmatpush.bf16.msra.mxu0 %v8968_v60  ;;  %1122 = vmatpush.bf16.msrb.mxu1 %v9072_v57  ;;  %v8841_v60 = vld [vmem:[%s19665_s0 + $0x88] sm:$0xf0]  ;;  %v13192_v21 = vor.u32 %v12099_v19, %v8839_v16  ;;  %v12101_v44 = vld [vmem:[%s19665_s0 + $0x94] sm:$0xf0]  ;;  %v9057_v47 = vld [vmem:[%s19664_s1 + $0xb8] sm:$0xf0] }
  0x21   :  { %870 = vmatpush.bf16.msra.mxu2 %v8972_v63  ;;  %v13153_v61 = vor.u32 %v12098_v59, %v8841_v60  ;;  %v12151_v46 = vld [vmem:[%s19664_s1 + $0xac] sm:$0xf]  ;;  %v12104_v59 = vld [vmem:[%s19665_s0 + $0xb4] sm:$0xf]  ;;  %v8865_v60 = vld [vmem:[%s19665_s0 + $0xb8] sm:$0xf0] }
  0x22   :  { %v9060_v50 = vor.u32 %v12151_v46, %v9057_v47  ;;  %v9055_v1 = vld [vmem:[%s19664_s1 + $0xa8] sm:$0xf]  ;;  %v12153_v2 = vld [vmem:[%s19664_s1 + $0xb4] sm:$0xf0]  ;;  %v8873_v46 = vld [vmem:[%s19665_s0 + $0xc8] sm:$0xf0] }
  0x23   :  { %613 = vmatmul.bf16.vlgmr.msra.gmra.mxu0 %v12973_v0  ;;  %v9056_v7 = vor.u32 %v12153_v2, %v9055_v1  ;;  %v8863_v2 = vld [vmem:[%s19665_s0 + $0xb0] sm:$0xf] }
  0x24   :  { %871 = vmatmul.bf16.vlgmr.msra.gmra.mxu2 %v12973_v0  ;;  %1379 = vmatpush.bf16.msrb.mxu0 %v9092_v26  ;;  %v8857_v26 = vld [vmem:[%s19665_s0 + $0xa8] sm:$0xf0] }
  0x25   :  { %1515 = vmatpush.bf16.msrb.mxu2 %v603_v20  ;;  %v13190_v20 = vperm.slane %v117_v14, 0  ;;  %v13207_v30 = vor.u32 %v12102_v25, %v8857_v26  ;;  %1123 = vmatpush.bf16.msrb.mxu1 %v9056_v7  ;;  %v8855_v25 = vld [vmem:[%s19665_s0 + $0xa0] sm:$0xf]  ;;  %v12103_v26 = vld [vmem:[%s19665_s0 + $0xa4] sm:$0xf0] }
  0x26   :  { %v12105_v7 = vld [vmem:[%s19665_s0 + $0xb4] sm:$0xf0] }
  0x28   :  { %1380 = vmatpush.bf16.msrb.mxu0 %v9076_v52  ;;  %v13231_v52 = vor.u32 %v12101_v44, %v8847_v43  ;;  %v12106_v44 = vld [vmem:[%s19665_s0 + $0xc4] sm:$0xf] }
  0x2a   :  { %9135 = vmatmul.msk.bf16.gmra.mxu3 %vm519_vm1, %v12983_v3 }
  0x2c   :  { %9111 = vmatmul.msk.bf16.gmra.mxu1 %vm519_vm1, %v12983_v3  ;;  %1381 = vmatpush.bf16.msrb.mxu0 %v9060_v50 }
  0x33   :  { %618 = vmatmul.bf16.gmra.mxu0 %v12995_v6 }
  0x34   :  { %876 = vmatmul.bf16.gmra.mxu2 %v12995_v6 }
  0x3a   :  { %9136 = vmatmul.msk.bf16.gmra.mxu3 %vm519_vm1, %v13005_v9 }
  0x3c   :  { %9112 = vmatmul.msk.bf16.gmra.mxu1 %vm519_vm1, %v13005_v9 }
  0x43   :  { %623 = vmatmul.bf16.gmra.mxu0 %v13017_v12 }
  0x44   :  { %881 = vmatmul.bf16.gmra.mxu2 %v13017_v12 }
  0x4a   :  { %9137 = vmatmul.msk.bf16.gmra.mxu3 %vm519_vm1, %v13033_v17 }
  0x4c   :  { %9113 = vmatmul.msk.bf16.gmra.mxu1 %vm519_vm1, %v13033_v17 }
  0x53   :  { %628 = vmatmul.bf16.gmra.mxu0 %v13065_v33 }
  0x54   :  { %886 = vmatmul.bf16.gmra.mxu2 %v13065_v33 }
  0x5a   :  { %9138 = vmatmul.msk.bf16.gmra.mxu3 %vm519_vm1, %v13075_v36 }
  0x5c   :  { %9114 = vmatmul.msk.bf16.gmra.mxu1 %vm519_vm1, %v13075_v36 }
  0x63   :  { %633 = vmatmul.bf16.gmra.mxu0 %v13087_v39 }
  0x64   :  { %891 = vmatmul.bf16.gmra.mxu2 %v13087_v39 }
  0x6a   :  { %9139 = vmatmul.msk.bf16.gmra.mxu3 %vm519_vm1, %v13097_v42 }
  0x6c   :  { %9115 = vmatmul.msk.bf16.gmra.mxu1 %vm519_vm1, %v13097_v42 }
  0x73   :  { %638 = vmatmul.bf16.gmra.mxu0 %v13109_v45 }
  0x74   :  { %896 = vmatmul.bf16.gmra.mxu2 %v13109_v45 }
  0x7a   :  { %9140 = vmatmul.msk.bf16.gmra.mxu3 %vm519_vm1, %v13119_v48 }
  0x7c   :  { %9116 = vmatmul.msk.bf16.gmra.mxu1 %vm519_vm1, %v13119_v48 }
  0x83   :  { %643 = vmatmul.bf16.gmra.mxu0 %v13143_v58 }
  0x84   :  { %901 = vmatmul.bf16.gmra.mxu2 %v13143_v58 }
  0x89   :  { %v743_v62 = vpop.f32.mrf.mxu1 }
  0x8a   :  { %9141 = vmatmul.msk.bf16.gmra.mxu3 %vm519_vm1, %v13153_v61 }
  0x8c   :  { %9117 = vmatmul.msk.bf16.gmra.mxu1 %vm519_vm1, %v13153_v61 }
  0x8d   :  { %v1001_v63 = vpop.f32.mrf.mxu3 }
  0x91   :  { %v745_v5 = vpop.f32.mrf.mxu1 }
  0x93   :  { %648 = vmatmul.bf16.gmra.mxu0 %v13165_v4 }
  0x94   :  { %906 = vmatmul.bf16.gmra.mxu2 %v13165_v4 }
  0x95   :  { %v1003_v10 = vpop.f32.mrf.mxu3 }
  0x99   :  { %v748_v13 = vpop.f32.mrf.mxu1 }
  0x9a   :  { %9142 = vmatmul.msk.bf16.gmra.mxu3 %vm519_vm1, %v13175_v11 }
  0x9c   :  { %9118 = vmatmul.msk.bf16.gmra.mxu1 %vm519_vm1, %v13175_v11 }
  0x9d   :  { %v1006_v15 = vpop.f32.mrf.mxu3 }
  0xa0   :  { %v614_v22 = vpop.f32.mrf.mxu0 }
  0xa1   :  { %v615_v23 = vadd.f32 %v614_v22, %v13190_v20  ;;  %v750_v24 = vpop.f32.mrf.mxu1 }
  0xa3   :  { %v13201_v27 = vadd.f32 %v743_v62, %v615_v23  ;;  %653 = vmatmul.bf16.gmra.mxu0 %v13192_v21 }
  0xa4   :  { %911 = vmatmul.bf16.gmra.mxu2 %v13192_v21 }
  0xa5   :  { %v1008_v28 = vpop.f32.mrf.mxu3 }
  0xa7   :  { %v872_v31 = vpop.f32.mrf.mxu2 }
  0xa8   :  { %v873_v32 = vadd.f32 %v872_v31, %v13205_v29  ;;  %v616_v34 = vpop.f32.mrf.mxu0 }
  0xa9   :  { %v617_v35 = vadd.f32 %v616_v34, %v13190_v20  ;;  %v753_v38 = vpop.f32.mrf.mxu1 }
  0xaa   :  { %9143 = vmatmul.msk.bf16.gmra.mxu3 %vm519_vm1, %v13207_v30  ;;  %v13213_v37 = vadd.f32 %v1001_v63, %v873_v32  ;;  %v13271_v32 = vor.u32 %v12103_v26, %v8855_v25  ;;  %v12108_v26 = vld [vmem:[%s19665_s0 + $0xd4] sm:$0xf] }
  0xab   :  { %v13215_v40 = vadd.f32 %v745_v5, %v617_v35  ;;  %v13253_v5 = vor.u32 %v12104_v59, %v8865_v60 }
  0xac   :  { %9119 = vmatmul.msk.bf16.gmra.mxu1 %vm519_vm1, %v13207_v30 }
  0xad   :  { %v1011_v41 = vpop.f32.mrf.mxu3 }
  0xaf   :  { %v874_v51 = vpop.f32.mrf.mxu2 }
  0xb0   :  { %v875_v53 = vadd.f32 %v874_v51, %v13205_v29  ;;  %v619_v54 = vpop.f32.mrf.mxu0  ;;  %v13287_v51 = vor.u32 %v12106_v44, %v8873_v46 }
  0xb1   :  { %v620_v55 = vadd.f32 %v619_v54, %v13190_v20  ;;  %v755_v57 = vpop.f32.mrf.mxu1 }
  0xb2   :  { %v13235_v56 = vadd.f32 %v1003_v10, %v875_v53 }
  0xb3   :  { %v13243_v62 = vadd.f32 %v748_v13, %v620_v55  ;;  %658 = vmatmul.bf16.gmra.mxu0 %v13231_v52 }
  0xb4   :  { %916 = vmatmul.bf16.gmra.mxu2 %v13231_v52 }
  0xb5   :  { %v1013_v63 = vpop.f32.mrf.mxu3 }
  0xb7   :  { %v877_v8 = vpop.f32.mrf.mxu2 }
  0xb8   :  { %v878_v10 = vadd.f32 %v877_v8, %v13205_v29  ;;  %v621_v13 = vpop.f32.mrf.mxu0 }
  0xb9   :  { %v622_v14 = vadd.f32 %v621_v13, %v13190_v20  ;;  %v758_v19 = vpop.f32.mrf.mxu1 }
  0xba   :  { %9144 = vmatmul.msk.bf16.gmra.mxu3 %vm519_vm1, %v13253_v5  ;;  %v13259_v16 = vadd.f32 %v1006_v15, %v878_v10  ;;  %v13305_v10 = vor.u32 %v12105_v7, %v8863_v2  ;;  %v8871_v2 = vld [vmem:[%s19665_s0 + $0xc0] sm:$0xf]  ;;  %v12107_v7 = vld [vmem:[%s19665_s0 + $0xc4] sm:$0xf0] }
  0xbb   :  { %v13261_v22 = vadd.f32 %v750_v24, %v622_v14 }
  0xbc   :  { %9120 = vmatmul.msk.bf16.gmra.mxu1 %vm519_vm1, %v13253_v5 }
  0xbd   :  { %v1016_v23 = vpop.f32.mrf.mxu3 }
  0xbf   :  { %v879_v31 = vpop.f32.mrf.mxu2 }
  0xc0   :  { %v880_v15 = vadd.f32 %v879_v31, %v13205_v29  ;;  %v624_v34 = vpop.f32.mrf.mxu0  ;;  %v8881_v31 = vld [vmem:[%s19665_s0 + $0xd8] sm:$0xf0] }
  0xc1   :  { %v625_v24 = vadd.f32 %v624_v34, %v13190_v20  ;;  %v760_v43 = vpop.f32.mrf.mxu1 }
  0xc2   :  { %v13275_v35 = vadd.f32 %v1008_v28, %v880_v15 }
  0xc3   :  { %v13283_v47 = vadd.f32 %v753_v38, %v625_v24  ;;  %663 = vmatmul.bf16.gmra.mxu0 %v13271_v32  ;;  %v13321_v24 = vor.u32 %v12108_v26, %v8881_v31 }
  0xc4   :  { %921 = vmatmul.bf16.gmra.mxu2 %v13271_v32 }
  0xc5   :  { %v1018_v50 = vpop.f32.mrf.mxu3  ;;  %19735 = vst [vmem:[#allocation3_spill] sm:$0xff] %v13321_v24 }
  0xc7   :  { %v882_v28 = vpop.f32.mrf.mxu2 }
  0xc8   :  { %v883_v53 = vadd.f32 %v882_v28, %v13205_v29  ;;  %v626_v54 = vpop.f32.mrf.mxu0 }
  0xc9   :  { %v627_v55 = vadd.f32 %v626_v54, %v13190_v20  ;;  %v763_v38 = vpop.f32.mrf.mxu1 }
  0xca   :  { %9145 = vmatmul.msk.bf16.gmra.mxu3 %vm519_vm1, %v13287_v51  ;;  %v13293_v59 = vadd.f32 %v1011_v41, %v883_v53 }
  0xcb   :  { %v13295_v60 = vadd.f32 %v755_v57, %v627_v55 }
  0xcc   :  { %9121 = vmatmul.msk.bf16.gmra.mxu1 %vm519_vm1, %v13287_v51 }
  0xcd   :  { %v1021_v1 = vpop.f32.mrf.mxu3 }
  0xcf   :  { %v884_v8 = vpop.f32.mrf.mxu2 }
  0xd0   :  { %v885_v41 = vadd.f32 %v884_v8, %v13205_v29  ;;  %v629_v13 = vpop.f32.mrf.mxu0 }
  0xd1   :  { %v630_v57 = vadd.f32 %v629_v13, %v13190_v20  ;;  %v765_v25 = vpop.f32.mrf.mxu1  ;;  %v13345_v13 = vor.u32 %v12107_v7, %v8871_v2  ;;  %v12149_v7 = vld [vmem:[%s19664_s1 + $0x94] sm:$0xf0] }
  0xd2   :  { %v13309_v14 = vadd.f32 %v1013_v63, %v885_v41 }
  0xd3   :  { %v13317_v15 = vadd.f32 %v758_v19, %v630_v57  ;;  %668 = vmatmul.bf16.gmra.mxu0 %v13305_v10 }
  0xd4   :  { %19734 = vst [vmem:[#allocation2_spill] sm:$0xff] %v13309_v14  ;;  %926 = vmatmul.bf16.gmra.mxu2 %v13305_v10 }
  0xd5   :  { %v1023_v34 = vpop.f32.mrf.mxu3 }
  0xd7   :  { %v887_v63 = vpop.f32.mrf.mxu2 }
  0xd8   :  { %v888_v44 = vadd.f32 %v887_v63, %v13205_v29  ;;  %v631_v46 = vpop.f32.mrf.mxu0 }
  0xd9   :  { %v632_v28 = vadd.f32 %v631_v46, %v13190_v20  ;;  %v768_v19 = vpop.f32.mrf.mxu1  ;;  %v12110_v46 = vld [vmem:[%s19665_s0 + $0xe4] sm:$0xf] }
  0xda   :  { %9146 = vmatmul.msk.bf16.gmra.mxu3 %vm519_vm1, %v13321_v24  ;;  %v13327_v53 = vadd.f32 %v1016_v23, %v888_v44  ;;  %v12147_v23 = vld [vmem:[%s19664_s1 + $0x8c] sm:$0xf] }
  0xdb   :  { %v13329_v54 = vadd.f32 %v760_v43, %v632_v28  ;;  %v9041_v43 = vld [vmem:[%s19664_s1 + $0x98] sm:$0xf0]  ;;  %v8889_v28 = vld [vmem:[%s19665_s0 + $0xe8] sm:$0xf0] }
  0xdc   :  { %19736 = vst [vmem:[#allocation4_spill] sm:$0xff] %v13327_v53  ;;  %9122 = vmatmul.msk.bf16.gmra.mxu1 %vm519_vm1, %v13321_v24  ;;  %v9044_v8 = vor.u32 %v12147_v23, %v9041_v43  ;;  %v13367_v43 = vor.u32 %v12110_v46, %v8889_v28  ;;  %v8879_v46 = vld [vmem:[%s19665_s0 + $0xd0] sm:$0xf]  ;;  %v12109_v28 = vld [vmem:[%s19665_s0 + $0xd4] sm:$0xf0] }
  0xdd   :  { %v1026_v55 = vpop.f32.mrf.mxu3 }
  0xde   :  { %1382 = vmatpush.bf16.msrb.mxu0 %v9044_v8  ;;  %19738 = vst [vmem:[#allocation6_spill] sm:$0xff] %v13367_v43 }
  0xdf   :  { %v889_v41 = vpop.f32.mrf.mxu2 }
  0xe0   :  { %v890_v57 = vadd.f32 %v889_v41, %v13205_v29  ;;  %v634_v26 = vpop.f32.mrf.mxu0 }
  0xe1   :  { %v635_v31 = vadd.f32 %v634_v26, %v13190_v20  ;;  %v770_v44 = vpop.f32.mrf.mxu1 }
  0xe2   :  { %v13349_v63 = vadd.f32 %v1018_v50, %v890_v57  ;;  %v9039_v50 = vld [vmem:[%s19664_s1 + $0x88] sm:$0xf] }
  0xe3   :  { %v13357_v23 = vadd.f32 %v763_v38, %v635_v31  ;;  %673 = vmatmul.bf16.gmra.mxu0 %v13345_v13  ;;  %v9040_v8 = vor.u32 %v12149_v7, %v9039_v50  ;;  %v13385_v7 = vor.u32 %v12109_v28, %v8879_v46 }
  0xe4   :  { %19737 = vst [vmem:[#allocation5_spill] sm:$0xff] %v13349_v63  ;;  %931 = vmatmul.bf16.gmra.mxu2 %v13345_v13 }
  0xe5   :  { %v1028_v2 = vpop.f32.mrf.mxu3  ;;  %1124 = vmatpush.bf16.msrb.mxu1 %v9040_v8  ;;  %19741 = vst [vmem:[#allocation9_spill] sm:$0xff] %v13385_v7 }
  0xe7   :  { %v892_v41 = vpop.f32.mrf.mxu2 }
  0xe8   :  { %v893_v38 = vadd.f32 %v892_v41, %v13205_v29  ;;  %v636_v57 = vpop.f32.mrf.mxu0 }
  0xe9   :  { %v637_v26 = vadd.f32 %v636_v57, %v13190_v20  ;;  %v773_v63 = vpop.f32.mrf.mxu1  ;;  %v12112_v57 = vld [vmem:[%s19665_s0 + $0xf4] sm:$0xf] }
  0xea   :  { %9147 = vmatmul.msk.bf16.gmra.mxu3 %vm519_vm1, %v13367_v43  ;;  %v13373_v31 = vadd.f32 %v1021_v1, %v893_v38 }
  0xeb   :  { %v13375_v53 = vadd.f32 %v765_v25, %v637_v26  ;;  %v8897_v26 = vld [vmem:[%s19665_s0 + $0xf8] sm:$0xf0] }
  0xec   :  { %19739 = vst [vmem:[#allocation7_spill] sm:$0xff] %v13373_v31  ;;  %9123 = vmatmul.msk.bf16.gmra.mxu1 %vm519_vm1, %v13367_v43  ;;  %v13401_v28 = vor.u32 %v12112_v57, %v8897_v26  ;;  %v8887_v57 = vld [vmem:[%s19665_s0 + $0xe0] sm:$0xf]  ;;  %v12111_v26 = vld [vmem:[%s19665_s0 + $0xe4] sm:$0xf0] }
  0xed   :  { %19740 = vst [vmem:[#allocation8_spill] sm:$0xff] %v13375_v53  ;;  %v1031_v24 = vpop.f32.mrf.mxu3 }
  0xee   :  { %19744 = vst [vmem:[#allocation12_spill] sm:$0xff] %v13401_v28 }
  0xef   :  { %v894_v50 = vpop.f32.mrf.mxu2 }
  0xf0   :  { %v895_v1 = vadd.f32 %v894_v50, %v13205_v29  ;;  %v639_v8 = vpop.f32.mrf.mxu0 }
  0xf1   :  { %v640_v25 = vadd.f32 %v639_v8, %v13190_v20  ;;  %v775_v38 = vpop.f32.mrf.mxu1 }
  0xf2   :  { %v13389_v41 = vadd.f32 %v1023_v34, %v895_v1 }
  0xf3   :  { %v13397_v31 = vadd.f32 %v768_v19, %v640_v25  ;;  %678 = vmatmul.bf16.gmra.mxu0 %v13385_v7 }
  0xf4   :  { %19742 = vst [vmem:[#allocation10_spill] sm:$0xff] %v13389_v41  ;;  %936 = vmatmul.bf16.gmra.mxu2 %v13385_v7  ;;  %v12116_v7 = vld [vmem:[%s19665_s0 + $0x114] sm:$0xf] }
  0xf5   :  { %19743 = vst [vmem:[#allocation11_spill] sm:$0xff] %v13397_v31  ;;  %v1033_v46 = vpop.f32.mrf.mxu3  ;;  %v8905_v31 = vld [vmem:[%s19665_s0 + $0x108] sm:$0xf0] }
  0xf7   :  { %v897_v34 = vpop.f32.mrf.mxu2 }
  0xf8   :  { %v898_v50 = vadd.f32 %v897_v34, %v13205_v29  ;;  %v641_v1 = vpop.f32.mrf.mxu0 }
  0xf9   :  { %v642_v8 = vadd.f32 %v641_v1, %v13190_v20  ;;  %v778_v19 = vpop.f32.mrf.mxu1  ;;  %v13419_v1 = vor.u32 %v12111_v26, %v8887_v57 }
  0xfa   :  { %9148 = vmatmul.msk.bf16.gmra.mxu3 %vm519_vm1, %v13401_v28  ;;  %v13407_v41 = vadd.f32 %v1026_v55, %v898_v50 }
  0xfb   :  { %v13409_v25 = vadd.f32 %v770_v44, %v642_v8  ;;  %19747 = vst [vmem:[#allocation15_spill] sm:$0xff] %v13419_v1 }
  0xfc   :  { %19745 = vst [vmem:[#allocation13_spill] sm:$0xff] %v13407_v41  ;;  %9124 = vmatmul.msk.bf16.gmra.mxu1 %vm519_vm1, %v13401_v28 }
  0xfd   :  { %19746 = vst [vmem:[#allocation14_spill] sm:$0xff] %v13409_v25  ;;  %v1036_v43 = vpop.f32.mrf.mxu3  ;;  %v12114_v25 = vld [vmem:[%s19665_s0 + $0x104] sm:$0xf] }
  0xfe   :  { %v13435_v26 = vor.u32 %v12114_v25, %v8905_v31  ;;  %v8895_v31 = vld [vmem:[%s19665_s0 + $0xf0] sm:$0xf]  ;;  %v12113_v25 = vld [vmem:[%s19665_s0 + $0xf4] sm:$0xf0] }
  0xff   :  { %v899_v34 = vpop.f32.mrf.mxu2 }
 0x100   :  { %v900_v55 = vadd.f32 %v899_v34, %v13205_v29  ;;  %v644_v50 = vpop.f32.mrf.mxu0  ;;  %19750 = vst [vmem:[#allocation18_spill] sm:$0xff] %v13435_v26 }
 0x101   :  { %v645_v44 = vadd.f32 %v644_v50, %v13190_v20  ;;  %v780_v41 = vpop.f32.mrf.mxu1 }
 0x102   :  { %v13423_v8 = vadd.f32 %v1028_v2, %v900_v55 }
 0x103   :  { %v13431_v28 = vadd.f32 %v773_v63, %v645_v44  ;;  %683 = vmatmul.bf16.gmra.mxu0 %v13419_v1 }
 0x104   :  { %19748 = vst [vmem:[#allocation16_spill] sm:$0xff] %v13423_v8  ;;  %941 = vmatmul.bf16.gmra.mxu2 %v13419_v1 }
 0x105   :  { %19749 = vst [vmem:[#allocation17_spill] sm:$0xff] %v13431_v28  ;;  %v1038_v57 = vpop.f32.mrf.mxu3 }
 0x107   :  { %v902_v2 = vpop.f32.mrf.mxu2 }
 0x108   :  { %v903_v34 = vadd.f32 %v902_v2, %v13205_v29  ;;  %v646_v55 = vpop.f32.mrf.mxu0 }
 0x109   :  { %v647_v50 = vadd.f32 %v646_v55, %v13190_v20  ;;  %v783_v63 = vpop.f32.mrf.mxu1  ;;  %v13459_v55 = vor.u32 %v12113_v25, %v8895_v31 }
 0x10a   :  { %9149 = vmatmul.msk.bf16.gmra.mxu3 %vm519_vm1, %v13435_v26  ;;  %v13441_v8 = vadd.f32 %v1031_v24, %v903_v34  ;;  %v12143_v24 = vld [vmem:[%s19664_s1 + $0x6c] sm:$0xf] }
 0x10b   :  { %v13443_v44 = vadd.f32 %v775_v38, %v647_v50  ;;  %v9025_v38 = vld [vmem:[%s19664_s1 + $0x78] sm:$0xf0]  ;;  %19753 = vst [vmem:[#allocation21_spill] sm:$0xff] %v13459_v55 }
 0x10c   :  { %19751 = vst [vmem:[#allocation19_spill] sm:$0xff] %v13441_v8  ;;  %9125 = vmatmul.msk.bf16.gmra.mxu1 %vm519_vm1, %v13435_v26  ;;  %v9028_v2 = vor.u32 %v12143_v24, %v9025_v38  ;;  %v8913_v24 = vld [vmem:[%s19665_s0 + $0x118] sm:$0xf0] }
 0x10d   :  { %19752 = vst [vmem:[#allocation20_spill] sm:$0xff] %v13443_v44  ;;  %v1041_v28 = vpop.f32.mrf.mxu3  ;;  %v13481_v25 = vor.u32 %v12116_v7, %v8913_v24  ;;  %v8903_v7 = vld [vmem:[%s19665_s0 + $0x100] sm:$0xf]  ;;  %v12115_v24 = vld [vmem:[%s19665_s0 + $0x104] sm:$0xf0] }
 0x10e   :  { %1383 = vmatpush.bf16.msrb.mxu0 %v9028_v2 }
 0x10f   :  { %v904_v34 = vpop.f32.mrf.mxu2  ;;  %19756 = vst [vmem:[#allocation24_spill] sm:$0xff] %v13481_v25 }
 0x110   :  { %v905_v50 = vadd.f32 %v904_v34, %v13205_v29  ;;  %v649_v8 = vpop.f32.mrf.mxu0 }
 0x111   :  { %v650_v44 = vadd.f32 %v649_v8, %v13190_v20  ;;  %v785_v26 = vpop.f32.mrf.mxu1  ;;  %v12145_v8 = vld [vmem:[%s19664_s1 + $0x74] sm:$0xf0] }
 0x112   :  { %v13463_v1 = vadd.f32 %v1033_v46, %v905_v50  ;;  %v9023_v46 = vld [vmem:[%s19664_s1 + $0x68] sm:$0xf] }
 0x113   :  { %v13471_v38 = vadd.f32 %v778_v19, %v650_v44  ;;  %688 = vmatmul.bf16.gmra.mxu0 %v13459_v55  ;;  %v9024_v2 = vor.u32 %v12145_v8, %v9023_v46  ;;  %v13499_v8 = vor.u32 %v12115_v24, %v8903_v7 }
 0x114   :  { %19754 = vst [vmem:[#allocation22_spill] sm:$0xff] %v13463_v1  ;;  %946 = vmatmul.bf16.gmra.mxu2 %v13459_v55 }
 0x115   :  { %19755 = vst [vmem:[#allocation23_spill] sm:$0xff] %v13471_v38  ;;  %v1043_v31 = vpop.f32.mrf.mxu3  ;;  %1125 = vmatpush.bf16.msrb.mxu1 %v9024_v2 }
 0x116   :  { %19759 = vst [vmem:[#allocation27_spill] sm:$0xff] %v13499_v8 }
 0x117   :  { %v907_v34 = vpop.f32.mrf.mxu2 }
 0x118   :  { %v908_v19 = vadd.f32 %v907_v34, %v13205_v29  ;;  %v651_v44 = vpop.f32.mrf.mxu0 }
 0x119   :  { %v652_v50 = vadd.f32 %v651_v44, %v13190_v20  ;;  %v788_v38 = vpop.f32.mrf.mxu1  ;;  %v12118_v44 = vld [vmem:[%s19665_s0 + $0x124] sm:$0xf] }
 0x11a   :  { %9150 = vmatmul.msk.bf16.gmra.mxu3 %vm519_vm1, %v13481_v25  ;;  %v13487_v1 = vadd.f32 %v1036_v43, %v908_v19 }
 0x11b   :  { %v13489_v55 = vadd.f32 %v780_v41, %v652_v50  ;;  %v8921_v50 = vld [vmem:[%s19665_s0 + $0x128] sm:$0xf0] }
 0x11c   :  { %19757 = vst [vmem:[#allocation25_spill] sm:$0xff] %v13487_v1  ;;  %9126 = vmatmul.msk.bf16.gmra.mxu1 %vm519_vm1, %v13481_v25  ;;  %v13515_v24 = vor.u32 %v12118_v44, %v8921_v50  ;;  %v8911_v44 = vld [vmem:[%s19665_s0 + $0x110] sm:$0xf]  ;;  %v12117_v50 = vld [vmem:[%s19665_s0 + $0x114] sm:$0xf0] }
 0x11d   :  { %19758 = vst [vmem:[#allocation26_spill] sm:$0xff] %v13489_v55  ;;  %v1046_v53 = vpop.f32.mrf.mxu3 }
 0x11e   :  { %19762 = vst [vmem:[#allocation30_spill] sm:$0xff] %v13515_v24 }
 0x11f   :  { %v909_v46 = vpop.f32.mrf.mxu2 }
 0x120   :  { %v910_v43 = vadd.f32 %v909_v46, %v13205_v29  ;;  %v654_v2 = vpop.f32.mrf.mxu0 }
 0x121   :  { %v655_v41 = vadd.f32 %v654_v2, %v13190_v20  ;;  %v790_v19 = vpop.f32.mrf.mxu1 }
 0x122   :  { %v13503_v34 = vadd.f32 %v1038_v57, %v910_v43 }
 0x123   :  { %v13511_v1 = vadd.f32 %v783_v63, %v655_v41  ;;  %693 = vmatmul.bf16.gmra.mxu0 %v13499_v8 }
 0x124   :  { %19760 = vst [vmem:[#allocation28_spill] sm:$0xff] %v13503_v34  ;;  %951 = vmatmul.bf16.gmra.mxu2 %v13499_v8  ;;  %v12122_v8 = vld [vmem:[%s19665_s0 + $0x144] sm:$0xf] }
 0x125   :  { %19761 = vst [vmem:[#allocation29_spill] sm:$0xff] %v13511_v1  ;;  %v1048_v7 = vpop.f32.mrf.mxu3  ;;  %v8929_v1 = vld [vmem:[%s19665_s0 + $0x138] sm:$0xf0] }
 0x127   :  { %v912_v57 = vpop.f32.mrf.mxu2 }
 0x128   :  { %v913_v46 = vadd.f32 %v912_v57, %v13205_v29  ;;  %v656_v43 = vpop.f32.mrf.mxu0 }
 0x129   :  { %v657_v2 = vadd.f32 %v656_v43, %v13190_v20  ;;  %v793_v63 = vpop.f32.mrf.mxu1  ;;  %v13533_v43 = vor.u32 %v12117_v50, %v8911_v44 }
 0x12a   :  { %9151 = vmatmul.msk.bf16.gmra.mxu3 %vm519_vm1, %v13515_v24  ;;  %v13521_v34 = vadd.f32 %v1041_v28, %v913_v46 }
 0x12b   :  { %v13523_v41 = vadd.f32 %v785_v26, %v657_v2  ;;  %19765 = vst [vmem:[#allocation33_spill] sm:$0xff] %v13533_v43 }
 0x12c   :  { %19763 = vst [vmem:[#allocation31_spill] sm:$0xff] %v13521_v34  ;;  %9127 = vmatmul.msk.bf16.gmra.mxu1 %vm519_vm1, %v13515_v24 }
 0x12d   :  { %19764 = vst [vmem:[#allocation32_spill] sm:$0xff] %v13523_v41  ;;  %v1051_v25 = vpop.f32.mrf.mxu3  ;;  %v12120_v41 = vld [vmem:[%s19665_s0 + $0x134] sm:$0xf] }
 0x12e   :  { %v13549_v50 = vor.u32 %v12120_v41, %v8929_v1  ;;  %v8919_v1 = vld [vmem:[%s19665_s0 + $0x120] sm:$0xf]  ;;  %v12119_v41 = vld [vmem:[%s19665_s0 + $0x124] sm:$0xf0] }
 0x12f   :  { %v914_v57 = vpop.f32.mrf.mxu2 }
 0x130   :  { %v915_v28 = vadd.f32 %v914_v57, %v13205_v29  ;;  %v659_v46 = vpop.f32.mrf.mxu0  ;;  %19768 = vst [vmem:[#allocation36_spill] sm:$0xff] %v13549_v50 }
 0x131   :  { %v660_v26 = vadd.f32 %v659_v46, %v13190_v20  ;;  %v795_v34 = vpop.f32.mrf.mxu1 }
 0x132   :  { %v13537_v2 = vadd.f32 %v1043_v31, %v915_v28 }
 0x133   :  { %v13545_v24 = vadd.f32 %v788_v38, %v660_v26  ;;  %698 = vmatmul.bf16.gmra.mxu0 %v13533_v43 }
 0x134   :  { %19766 = vst [vmem:[#allocation34_spill] sm:$0xff] %v13537_v2  ;;  %956 = vmatmul.bf16.gmra.mxu2 %v13533_v43 }
 0x135   :  { %19767 = vst [vmem:[#allocation35_spill] sm:$0xff] %v13545_v24  ;;  %v1053_v44 = vpop.f32.mrf.mxu3 }
 0x137   :  { %v917_v31 = vpop.f32.mrf.mxu2 }
 0x138   :  { %v918_v57 = vadd.f32 %v917_v31, %v13205_v29  ;;  %v661_v28 = vpop.f32.mrf.mxu0 }
 0x139   :  { %v662_v46 = vadd.f32 %v661_v28, %v13190_v20  ;;  %v798_v38 = vpop.f32.mrf.mxu1  ;;  %v13573_v28 = vor.u32 %v12119_v41, %v8919_v1 }
 0x13a   :  { %9152 = vmatmul.msk.bf16.gmra.mxu3 %vm519_vm1, %v13549_v50  ;;  %v13555_v2 = vadd.f32 %v1046_v53, %v918_v57  ;;  %v12139_v53 = vld [vmem:[%s19664_s1 + $0x4c] sm:$0xf] }
 0x13b   :  { %v13557_v26 = vadd.f32 %v790_v19, %v662_v46  ;;  %v9009_v19 = vld [vmem:[%s19664_s1 + $0x58] sm:$0xf0]  ;;  %19771 = vst [vmem:[#allocation39_spill] sm:$0xff] %v13573_v28 }
 0x13c   :  { %19769 = vst [vmem:[#allocation37_spill] sm:$0xff] %v13555_v2  ;;  %9128 = vmatmul.msk.bf16.gmra.mxu1 %vm519_vm1, %v13549_v50  ;;  %v9012_v31 = vor.u32 %v12139_v53, %v9009_v19  ;;  %v8937_v53 = vld [vmem:[%s19665_s0 + $0x148] sm:$0xf0] }
 0x13d   :  { %19770 = vst [vmem:[#allocation38_spill] sm:$0xff] %v13557_v26  ;;  %v1056_v24 = vpop.f32.mrf.mxu3  ;;  %v13595_v41 = vor.u32 %v12122_v8, %v8937_v53  ;;  %v8927_v8 = vld [vmem:[%s19665_s0 + $0x130] sm:$0xf]  ;;  %v12121_v53 = vld [vmem:[%s19665_s0 + $0x134] sm:$0xf0] }
 0x13e   :  { %1384 = vmatpush.bf16.msrb.mxu0 %v9012_v31 }
 0x13f   :  { %v919_v57 = vpop.f32.mrf.mxu2  ;;  %19774 = vst [vmem:[#allocation42_spill] sm:$0xff] %v13595_v41 }
 0x140   :  { %v920_v46 = vadd.f32 %v919_v57, %v13205_v29  ;;  %v664_v2 = vpop.f32.mrf.mxu0 }
 0x141   :  { %v665_v26 = vadd.f32 %v664_v2, %v13190_v20  ;;  %v800_v50 = vpop.f32.mrf.mxu1  ;;  %v12141_v2 = vld [vmem:[%s19664_s1 + $0x54] sm:$0xf0] }
 0x142   :  { %v13577_v43 = vadd.f32 %v1048_v7, %v920_v46  ;;  %v9007_v7 = vld [vmem:[%s19664_s1 + $0x48] sm:$0xf] }
 0x143   :  { %v13585_v19 = vadd.f32 %v793_v63, %v665_v26  ;;  %703 = vmatmul.bf16.gmra.mxu0 %v13573_v28  ;;  %v9008_v31 = vor.u32 %v12141_v2, %v9007_v7  ;;  %v13613_v2 = vor.u32 %v12121_v53, %v8927_v8 }
 0x144   :  { %19772 = vst [vmem:[#allocation40_spill] sm:$0xff] %v13577_v43  ;;  %961 = vmatmul.bf16.gmra.mxu2 %v13573_v28 }
 0x145   :  { %19773 = vst [vmem:[#allocation41_spill] sm:$0xff] %v13585_v19  ;;  %v1058_v1 = vpop.f32.mrf.mxu3  ;;  %1126 = vmatpush.bf16.msrb.mxu1 %v9008_v31 }
 0x146   :  { %19777 = vst [vmem:[#allocation45_spill] sm:$0xff] %v13613_v2 }
 0x147   :  { %v922_v57 = vpop.f32.mrf.mxu2 }
 0x148   :  { %v923_v63 = vadd.f32 %v922_v57, %v13205_v29  ;;  %v666_v26 = vpop.f32.mrf.mxu0 }
 0x149   :  { %v667_v46 = vadd.f32 %v666_v26, %v13190_v20  ;;  %v803_v19 = vpop.f32.mrf.mxu1  ;;  %v12124_v26 = vld [vmem:[%s19665_s0 + $0x154] sm:$0xf] }
 0x14a   :  { %9153 = vmatmul.msk.bf16.gmra.mxu3 %vm519_vm1, %v13595_v41  ;;  %v13601_v43 = vadd.f32 %v1051_v25, %v923_v63 }
 0x14b   :  { %v13603_v28 = vadd.f32 %v795_v34, %v667_v46  ;;  %v8945_v46 = vld [vmem:[%s19665_s0 + $0x158] sm:$0xf0] }
 0x14c   :  { %19775 = vst [vmem:[#allocation43_spill] sm:$0xff] %v13601_v43  ;;  %9129 = vmatmul.msk.bf16.gmra.mxu1 %vm519_vm1, %v13595_v41  ;;  %v13629_v53 = vor.u32 %v12124_v26, %v8945_v46  ;;  %v8935_v26 = vld [vmem:[%s19665_s0 + $0x140] sm:$0xf]  ;;  %v12123_v46 = vld [vmem:[%s19665_s0 + $0x144] sm:$0xf0] }
 0x14d   :  { %19776 = vst [vmem:[#allocation44_spill] sm:$0xff] %v13603_v28  ;;  %v1061_v55 = vpop.f32.mrf.mxu3 }
 0x14e   :  { %19780 = vst [vmem:[#allocation48_spill] sm:$0xff] %v13629_v53 }
 0x14f   :  { %v924_v7 = vpop.f32.mrf.mxu2 }
 0x150   :  { %v925_v25 = vadd.f32 %v924_v7, %v13205_v29  ;;  %v669_v31 = vpop.f32.mrf.mxu0 }
 0x151   :  { %v670_v34 = vadd.f32 %v669_v31, %v13190_v20  ;;  %v805_v63 = vpop.f32.mrf.mxu1 }
 0x152   :  { %v13617_v57 = vadd.f32 %v1053_v44, %v925_v25 }
 0x153   :  { %v13625_v43 = vadd.f32 %v798_v38, %v670_v34  ;;  %708 = vmatmul.bf16.gmra.mxu0 %v13613_v2 }
 0x154   :  { %19778 = vst [vmem:[#allocation46_spill] sm:$0xff] %v13617_v57  ;;  %966 = vmatmul.bf16.gmra.mxu2 %v13613_v2 }
 0x155   :  { %19779 = vst [vmem:[#allocation47_spill] sm:$0xff] %v13625_v43  ;;  %v1063_v8 = vpop.f32.mrf.mxu3  ;;  %v8953_v43 = vld [vmem:[%s19665_s0 + $0x168] sm:$0xf0] }
 0x157   :  { %v927_v44 = vpop.f32.mrf.mxu2 }
 0x158   :  { %v928_v7 = vadd.f32 %v927_v44, %v13205_v29  ;;  %v671_v25 = vpop.f32.mrf.mxu0 }
 0x159   :  { %v672_v31 = vadd.f32 %v671_v25, %v13190_v20  ;;  %v808_v38 = vpop.f32.mrf.mxu1  ;;  %v13647_v25 = vor.u32 %v12123_v46, %v8935_v26  ;;  %v8991_v26 = vld [vmem:[%s19664_s1 + $0x28] sm:$0xf] }
 0x15a   :  { %9154 = vmatmul.msk.bf16.gmra.mxu3 %vm519_vm1, %v13629_v53  ;;  %v13635_v57 = vadd.f32 %v1056_v24, %v928_v7 }
 0x15b   :  { %v13637_v34 = vadd.f32 %v800_v50, %v672_v31  ;;  %19783 = vst [vmem:[#allocation51_spill] sm:$0xff] %v13647_v25 }
 0x15c   :  { %19781 = vst [vmem:[#allocation49_spill] sm:$0xff] %v13635_v57  ;;  %9130 = vmatmul.msk.bf16.gmra.mxu1 %vm519_vm1, %v13629_v53 }
 0x15d   :  { %19782 = vst [vmem:[#allocation50_spill] sm:$0xff] %v13637_v34  ;;  %v1066_v41 = vpop.f32.mrf.mxu3  ;;  %v12126_v34 = vld [vmem:[%s19665_s0 + $0x164] sm:$0xf] }
 0x15f   :  { %v929_v44 = vpop.f32.mrf.mxu2 }
 0x160   :  { %v930_v24 = vadd.f32 %v929_v44, %v13205_v29  ;;  %v674_v7 = vpop.f32.mrf.mxu0 }
 0x161   :  { %v675_v50 = vadd.f32 %v674_v7, %v13190_v20  ;;  %v810_v57 = vpop.f32.mrf.mxu1 }
 0x162   :  { %v13651_v31 = vadd.f32 %v1058_v1, %v930_v24  ;;  %v12137_v1 = vld [vmem:[%s19664_s1 + $0x34] sm:$0xf0]  ;;  %v13669_v24 = vor.u32 %v12126_v34, %v8953_v43 }
 0x163   :  { %v13659_v53 = vadd.f32 %v803_v19, %v675_v50  ;;  %713 = vmatmul.bf16.gmra.mxu0 %v13647_v25  ;;  %v8992_v44 = vor.u32 %v12137_v1, %v8991_v26  ;;  %v8975_v19 = vld [vmem:[%s19664_s1 + $0x8] sm:$0xf]  ;;  %v12133_v50 = vld [vmem:[%s19664_s1 + $0x14] sm:$0xf0] }
 0x164   :  { %19784 = vst [vmem:[#allocation52_spill] sm:$0xff] %v13651_v31  ;;  %971 = vmatmul.bf16.gmra.mxu2 %v13647_v25  ;;  %v8976_v2 = vor.u32 %v12133_v50, %v8975_v19 }
 0x165   :  { %19785 = vst [vmem:[#allocation53_spill] sm:$0xff] %v13659_v53  ;;  %v1068_v46 = vpop.f32.mrf.mxu3  ;;  %1127 = vmatpush.bf16.msrb.mxu1 %v8992_v44  ;;  %v8943_v44 = vld [vmem:[%s19665_s0 + $0x150] sm:$0xf] }
 0x166   :  { %19786 = vst [vmem:[#allocation54_spill] sm:$0xff] %v13669_v24 }
 0x167   :  { %v932_v7 = vpop.f32.mrf.mxu2 }
 0x168   :  { %v933_v31 = vadd.f32 %v932_v7, %v13205_v29  ;;  %v676_v53 = vpop.f32.mrf.mxu0  ;;  %v12125_v7 = vld [vmem:[%s19665_s0 + $0x154] sm:$0xf0] }
 0x169   :  { %v677_v25 = vadd.f32 %v676_v53, %v13190_v20  ;;  %v813_v34 = vpop.f32.mrf.mxu1  ;;  %1128 = vmatpush.bf16.msrb.mxu1 %v8976_v2  ;;  %v8993_v2 = vld [vmem:[%s19664_s1 + $0x38] sm:$0xf0] }
 0x16a   :  { %9155 = vmatmul.msk.bf16.gmra.mxu3 %vm519_vm1, %v13669_v24  ;;  %v13681_v43 = vadd.f32 %v1061_v55, %v933_v31  ;;  %v12135_v55 = vld [vmem:[%s19664_s1 + $0x2c] sm:$0xf] }
 0x16b   :  { %v13683_v26 = vadd.f32 %v805_v63, %v677_v25  ;;  %v8996_v63 = vor.u32 %v12135_v55, %v8993_v2  ;;  %v13699_v25 = vor.u32 %v12125_v7, %v8943_v44  ;;  %v8961_v55 = vld [vmem:[%s19665_s0 + $0x178] sm:$0xf0] }
 0x16c   :  { %19787 = vst [vmem:[#allocation55_spill] sm:$0xff] %v13681_v43  ;;  %9131 = vmatmul.msk.bf16.gmra.mxu1 %vm519_vm1, %v13669_v24 }
 0x16d   :  { %19788 = vst [vmem:[#allocation56_spill] sm:$0xff] %v13683_v26  ;;  %v1071_v1 = vpop.f32.mrf.mxu3  ;;  %1385 = vmatpush.bf16.msrb.mxu0 %v8996_v63  ;;  %v12128_v26 = vld [vmem:[%s19665_s0 + $0x174] sm:$0xf] }
 0x16e   :  { %19789 = vst [vmem:[#allocation57_spill] sm:$0xff] %v13699_v25  ;;  %v13715_v7 = vor.u32 %v12128_v26, %v8961_v55  ;;  %v8951_v26 = vld [vmem:[%s19665_s0 + $0x160] sm:$0xf]  ;;  %v12127_v55 = vld [vmem:[%s19665_s0 + $0x164] sm:$0xf0] }
 0x16f   :  { %v934_v53 = vpop.f32.mrf.mxu2 }
 0x170   :  { %v935_v31 = vadd.f32 %v934_v53, %v13205_v29  ;;  %v679_v19 = vpop.f32.mrf.mxu0  ;;  %19792 = vst [vmem:[#allocation60_spill] sm:$0xff] %v13715_v7 }
 0x171   :  { %v680_v50 = vadd.f32 %v679_v19, %v13190_v20  ;;  %v815_v24 = vpop.f32.mrf.mxu1 }
 0x172   :  { %v13703_v43 = vadd.f32 %v1063_v8, %v935_v31 }
 0x173   :  { %v13711_v2 = vadd.f32 %v808_v38, %v680_v50  ;;  %718 = vmatmul.bf16.gmra.mxu0 %v13699_v25 }
 0x174   :  { %19790 = vst [vmem:[#allocation58_spill] sm:$0xff] %v13703_v43  ;;  %976 = vmatmul.bf16.gmra.mxu2 %v13699_v25 }
 0x175   :  { %19791 = vst [vmem:[#allocation59_spill] sm:$0xff] %v13711_v2  ;;  %v1073_v44 = vpop.f32.mrf.mxu3 }
 0x177   :  { %v937_v8 = vpop.f32.mrf.mxu2 }
 0x178   :  { %v938_v63 = vadd.f32 %v937_v8, %v13205_v29  ;;  %v681_v53 = vpop.f32.mrf.mxu0 }
 0x179   :  { %v682_v31 = vadd.f32 %v681_v53, %v13190_v20  ;;  %v818_v38 = vpop.f32.mrf.mxu1 }
 0x17a   :  { %9156 = vmatmul.msk.bf16.gmra.mxu3 %vm519_vm1, %v13715_v7  ;;  %v13721_v19 = vadd.f32 %v1066_v41, %v938_v63  ;;  %v12131_v41 = vld [vmem:[%s19664_s1 + $0xc] sm:$0xf]  ;;  %v13739_v63 = vor.u32 %v12127_v55, %v8951_v26 }
 0x17b   :  { %v13723_v50 = vadd.f32 %v810_v57, %v682_v31  ;;  %v8977_v57 = vld [vmem:[%s19664_s1 + $0x18] sm:$0xf0] }
 0x17c   :  { %19793 = vst [vmem:[#allocation61_spill] sm:$0xff] %v13721_v19  ;;  %9132 = vmatmul.msk.bf16.gmra.mxu1 %vm519_vm1, %v13715_v7  ;;  %v8980_v53 = vor.u32 %v12131_v41, %v8977_v57 }
 0x17d   :  { %19794 = vst [vmem:[#allocation62_spill] sm:$0xff] %v13723_v50  ;;  %v1076_v43 = vpop.f32.mrf.mxu3 }
 0x17e   :  { %1386 = vmatpush.bf16.msrb.mxu0 %v8980_v53 }
 0x17f   :  { %v939_v8 = vpop.f32.mrf.mxu2 }
 0x180   :  { %v940_v31 = vadd.f32 %v939_v8, %v13205_v29  ;;  %v684_v19 = vpop.f32.mrf.mxu0 }
 0x181   :  { %v685_v50 = vadd.f32 %v684_v19, %v13190_v20  ;;  %v820_v7 = vpop.f32.mrf.mxu1 }
 0x182   :  { %v13743_v2 = vadd.f32 %v1068_v46, %v940_v31 }
 0x183   :  { %v13745_v25 = vadd.f32 %v813_v34, %v685_v50  ;;  %723 = vmatmul.bf16.gmra.mxu0 %v13739_v63  ;;  %v8959_v50 = vld [vmem:[%s19665_s0 + $0x170] sm:$0xf] }
 0x184   :  { %19795 = vst [vmem:[#allocation63_spill] sm:$0xff] %v13743_v2  ;;  %981 = vmatmul.bf16.gmra.mxu2 %v13739_v63 }
 0x185   :  { %v1078_v28 = vpop.f32.mrf.mxu3 }
 0x187   :  { %v942_v14 = vpop.f32.mrf.mxu2 }
 0x188   :  { %v943_v26 = vadd.f32 %v942_v14, %v13205_v29  ;;  %v686_v55 = vpop.f32.mrf.mxu0  ;;  %v12129_v14 = vld [vmem:[%s19665_s0 + $0x174] sm:$0xf0] }
 0x189   :  { %v687_v41 = vadd.f32 %v686_v55, %v13190_v20  ;;  %v823_v46 = vpop.f32.mrf.mxu1  ;;  %v13764_v53 = vor.u32 %v12129_v14, %v8959_v50 }
 0x18a   :  { %9157 = vmatmul.msk.bf16.vlgmr.msrb.gmra.mxu3 %vm519_vm1, %v12870_v18  ;;  %v13753_v19 = vadd.f32 %v1071_v1, %v943_v26 }
 0x18b   :  { %v13755_v57 = vadd.f32 %v815_v24, %v687_v41  ;;  %19798 = vst [vmem:[#allocation66_spill] sm:$0xff] %v13764_v53 }
 0x18c   :  { %19796 = vst [vmem:[#allocation64_spill] sm:$0xff] %v13753_v19  ;;  %1129 = vmatmul.bf16.vlgmr.msrb.gmra.mxu1 %v12973_v0 }
 0x18d   :  { %19797 = vst [vmem:[#allocation65_spill] sm:$0xff] %v13755_v57  ;;  %v1081_v34 = vpop.f32.mrf.mxu3 }
 0x18f   :  { %v944_v8 = vpop.f32.mrf.mxu2 }
 0x190   :  { %v945_v1 = vadd.f32 %v944_v8, %v13205_v29  ;;  %v689_v31 = vpop.f32.mrf.mxu0 }
 0x191   :  { %v690_v24 = vadd.f32 %v689_v31, %v13190_v20  ;;  %v825_v55 = vpop.f32.mrf.mxu1 }
 0x192   :  { %v13768_v26 = vadd.f32 %v1073_v44, %v945_v1 }
 0x193   :  { %v13770_v41 = vadd.f32 %v818_v38, %v690_v24  ;;  %728 = vmatmul.bf16.gmra.mxu0 %v13764_v53 }
 0x194   :  { %19799 = vst [vmem:[#allocation67_spill] sm:$0xff] %v13768_v26  ;;  %986 = vmatmul.bf16.gmra.mxu2 %v13764_v53 }
 0x195   :  { %19800 = vst [vmem:[#allocation68_spill] sm:$0xff] %v13770_v41  ;;  %v1083_v19 = vpop.f32.mrf.mxu3 }
 0x197   :  { %v947_v2 = vpop.f32.mrf.mxu2 }
 0x198   :  { %v948_v57 = vadd.f32 %v947_v2, %v13205_v29  ;;  %v691_v50 = vpop.f32.mrf.mxu0 }
 0x199   :  { %v692_v14 = vadd.f32 %v691_v50, %v13190_v20  ;;  %v828_v44 = vpop.f32.mrf.mxu1 }
 0x19a   :  { %9158 = vmatmul.msk.bf16.gmra.mxu3 %vm519_vm1, %v12937_v49  ;;  %v13778_v8 = vadd.f32 %v1076_v43, %v948_v57 }
 0x19b   :  { %v13780_v1 = vadd.f32 %v820_v7, %v692_v14 }
 0x19c   :  { %19801 = vst [vmem:[#allocation69_spill] sm:$0xff] %v13778_v8  ;;  %1134 = vmatmul.bf16.gmra.mxu1 %v12995_v6 }
 0x19d   :  { %v1086_v38 = vpop.f32.mrf.mxu3 }
 0x19f   :  { %v949_v31 = vpop.f32.mrf.mxu2 }
 0x1a0   :  { %v950_v24 = vadd.f32 %v949_v31, %v13205_v29  ;;  %v694_v26 = vpop.f32.mrf.mxu0 }
 0x1a1   :  { %v695_v2 = vadd.f32 %v694_v26, %v13190_v20  ;;  %v830_v50 = vpop.f32.mrf.mxu1 }
 0x1a2   :  { %v13785_v41 = vadd.f32 %v1078_v28, %v950_v24 }
 0x1a3   :  { %v13787_v53 = vadd.f32 %v823_v46, %v695_v2  ;;  %1387 = vmatmul.bf16.vlgmr.msrb.gmra.mxu0 %v12973_v0 }
 0x1a4   :  { %19802 = vst [vmem:[#allocation70_spill] sm:$0xff] %v13785_v41  ;;  %9181 = vmatmul.msk.bf16.vlgmr.msrb.gmra.mxu2 %vm519_vm1, %v12870_v18 }
 0x1a5   :  { %v1088_v43 = vpop.f32.mrf.mxu3 }
 0x1a7   :  { %v952_v7 = vpop.f32.mrf.mxu2 }
 0x1a8   :  { %v953_v57 = vadd.f32 %v952_v7, %v13205_v29  ;;  %v696_v14 = vpop.f32.mrf.mxu0 }
 0x1a9   :  { %v697_v31 = vadd.f32 %v696_v14, %v13190_v20  ;;  %v833_v26 = vpop.f32.mrf.mxu1 }
 0x1aa   :  { %9159 = vmatmul.msk.bf16.gmra.mxu3 %vm519_vm1, %v12983_v3  ;;  %v13796_v28 = vadd.f32 %v1081_v34, %v953_v57 }
 0x1ab   :  { %v13798_v46 = vadd.f32 %v825_v55, %v697_v31 }
 0x1ac   :  { %19803 = vst [vmem:[#allocation71_spill] sm:$0xff] %v13796_v28  ;;  %1139 = vmatmul.bf16.gmra.mxu1 %v13017_v12 }
 0x1ad   :  { %v1091_v24 = vpop.f32.mrf.mxu3 }
 0x1af   :  { %v954_v0 = vpop.f32.mrf.mxu2 }
 0x1b0   :  { %v955_v18 = vadd.f32 %v954_v0, %v13205_v29  ;;  %v699_v2 = vpop.f32.mrf.mxu0 }
 0x1b1   :  { %v700_v7 = vadd.f32 %v699_v2, %v13190_v20  ;;  %v835_v14 = vpop.f32.mrf.mxu1 }
 0x1b2   :  { %v13803_v41 = vadd.f32 %v1083_v19, %v955_v18 }
 0x1b3   :  { %v13805_v8 = vadd.f32 %v828_v44, %v700_v7  ;;  %1392 = vmatmul.bf16.gmra.mxu0 %v12995_v6 }
 0x1b4   :  { %19804 = vst [vmem:[#allocation72_spill] sm:$0xff] %v13803_v41  ;;  %9182 = vmatmul.msk.bf16.gmra.mxu2 %vm519_vm1, %v12937_v49 }
 0x1b5   :  { %v1093_v34 = vpop.f32.mrf.mxu3 }
 0x1b7   :  { %v957_v55 = vpop.f32.mrf.mxu2 }
 0x1b8   :  { %v958_v57 = vadd.f32 %v957_v55, %v13205_v29  ;;  %v701_v31 = vpop.f32.mrf.mxu0 }
 0x1b9   :  { %v702_v0 = vadd.f32 %v701_v31, %v13190_v20  ;;  %v838_v18 = vpop.f32.mrf.mxu1 }
 0x1ba   :  { %9160 = vmatmul.msk.bf16.gmra.mxu3 %vm519_vm1, %v13005_v9  ;;  %v13814_v19 = vadd.f32 %v1086_v38, %v958_v57  ;;  %v9513_v57 = vld [vmem:[%s19667_s3 + $0x3f0] sm:$0xf0] }
 0x1bb   :  { %v13816_v44 = vadd.f32 %v830_v50, %v702_v0  ;;  %v12290_v50 = vld [vmem:[%s19667_s3 + $0x3e4] sm:$0xf] }
 0x1bc   :  { %19805 = vst [vmem:[#allocation73_spill] sm:$0xff] %v13814_v19  ;;  %1144 = vmatmul.bf16.gmra.mxu1 %v13065_v33  ;;  %v9516_v0 = vor.u32 %v12290_v50, %v9513_v57  ;;  %v9511_v50 = vld [vmem:[%s19667_s3 + $0x3e0] sm:$0xf]  ;;  %v12292_v57 = vld [vmem:[%s19667_s3 + $0x3ec] sm:$0xf0] }
 0x1bd   :  { %v1096_v2 = vpop.f32.mrf.mxu3 }
 0x1be   :  { %2673 = vmatpush.bf16.msra.mxu2 %v9516_v0  ;;  %v9512_v0 = vor.u32 %v12292_v57, %v9511_v50 }
 0x1bf   :  { %v959_v6 = vpop.f32.mrf.mxu2 }
 0x1c0   :  { %v960_v49 = vadd.f32 %v959_v6, %v13205_v29  ;;  %v704_v7 = vpop.f32.mrf.mxu0  ;;  %2575 = vmatpush.bf16.msra.mxu3 %v9512_v0  ;;  %v12260_v0 = vld [vmem:[%s19667_s3 + $0x2ec] sm:$0xf0] }
 0x1c1   :  { %v705_v55 = vadd.f32 %v704_v7, %v13190_v20  ;;  %v840_v31 = vpop.f32.mrf.mxu1 }
 0x1c2   :  { %v13821_v41 = vadd.f32 %v1088_v43, %v960_v49 }
 0x1c3   :  { %v13823_v28 = vadd.f32 %v833_v26, %v705_v55  ;;  %1397 = vmatmul.bf16.gmra.mxu0 %v13017_v12 }
 0x1c4   :  { %19806 = vst [vmem:[#allocation74_spill] sm:$0xff] %v13821_v41  ;;  %9183 = vmatmul.msk.bf16.gmra.mxu2 %vm519_vm1, %v12983_v3 }
 0x1c5   :  { %v1098_v38 = vpop.f32.mrf.mxu3 }
 0x1c7   :  { %v962_v43 = vpop.f32.mrf.mxu2 }
 0x1c8   :  { %v963_v6 = vadd.f32 %v962_v43, %v13205_v29  ;;  %v706_v26 = vpop.f32.mrf.mxu0 }
 0x1c9   :  { %v707_v12 = vadd.f32 %v706_v26, %v13190_v20  ;;  %v843_v49 = vpop.f32.mrf.mxu1 }
 0x1ca   :  { %9161 = vmatmul.msk.bf16.gmra.mxu3 %vm519_vm1, %v13033_v17  ;;  %v13838_v3 = vadd.f32 %v1091_v24, %v963_v6  ;;  %v12258_v24 = vld [vmem:[%s19667_s3 + $0x2e4] sm:$0xf] }
 0x1cb   :  { %v13840_v7 = vadd.f32 %v835_v14, %v707_v12  ;;  %v9385_v14 = vld [vmem:[%s19667_s3 + $0x2f0] sm:$0xf0] }
 0x1cc   :  { %19807 = vst [vmem:[#allocation75_spill] sm:$0xff] %v13838_v3  ;;  %1149 = vmatmul.bf16.gmra.mxu1 %v13087_v39  ;;  %v9388_v6 = vor.u32 %v12258_v24, %v9385_v14  ;;  %v9383_v24 = vld [vmem:[%s19667_s3 + $0x2e0] sm:$0xf] }
 0x1cd   :  { %v1101_v55 = vpop.f32.mrf.mxu3  ;;  %v9384_v14 = vor.u32 %v12260_v0, %v9383_v24 }
 0x1ce   :  { %2624 = vmatpush.bf16.msra.mxu0 %v9388_v6 }
 0x1cf   :  { %v964_v43 = vpop.f32.mrf.mxu2  ;;  %2526 = vmatpush.bf16.msra.mxu1 %v9384_v14 }
 0x1d0   :  { %v965_v26 = vadd.f32 %v964_v43, %v13205_v29  ;;  %v709_v12 = vpop.f32.mrf.mxu0 }
 0x1d1   :  { %v710_v3 = vadd.f32 %v709_v12, %v13190_v20  ;;  %v845_v50 = vpop.f32.mrf.mxu1 }
 0x1d2   :  { %v13857_v41 = vadd.f32 %v1093_v34, %v965_v26 }
 0x1d3   :  { %v13859_v57 = vadd.f32 %v838_v18, %v710_v3  ;;  %1402 = vmatmul.bf16.gmra.mxu0 %v13065_v33 }
 0x1d4   :  { %19808 = vst [vmem:[#allocation76_spill] sm:$0xff] %v13857_v41  ;;  %9184 = vmatmul.msk.bf16.gmra.mxu2 %vm519_vm1, %v13005_v9 }
 0x1d5   :  { %v1103_v19 = vpop.f32.mrf.mxu3 }
 0x1d7   :  { %v967_v34 = vpop.f32.mrf.mxu2 }
 0x1d8   :  { %v968_v18 = vadd.f32 %v967_v34, %v13205_v29  ;;  %v711_v3 = vpop.f32.mrf.mxu0 }
 0x1d9   :  { %v712_v33 = vadd.f32 %v711_v3, %v13190_v20  ;;  %v848_v43 = vpop.f32.mrf.mxu1 }
 0x1da   :  { %9162 = vmatmul.msk.bf16.gmra.mxu3 %vm519_vm1, %v13075_v36  ;;  %v13874_v9 = vadd.f32 %v1096_v2, %v968_v18 }
 0x1db   :  { %v13876_v6 = vadd.f32 %v840_v31, %v712_v33 }
 0x1dc   :  { %19809 = vst [vmem:[#allocation77_spill] sm:$0xff] %v13874_v9  ;;  %1154 = vmatmul.bf16.gmra.mxu1 %v13109_v45 }
 0x1dd   :  { %19810 = vst [vmem:[#allocation78_spill] sm:$0xff] %v13876_v6  ;;  %v1106_v26 = vpop.f32.mrf.mxu3 }
 0x1df   :  { %v969_v12 = vpop.f32.mrf.mxu2 }
 0x1e0   :  { %v970_v24 = vadd.f32 %v969_v12, %v13205_v29  ;;  %v714_v0 = vpop.f32.mrf.mxu0 }
 0x1e1   :  { %v715_v14 = vadd.f32 %v714_v0, %v13190_v20  ;;  %v850_v3 = vpop.f32.mrf.mxu1 }
 0x1e2   :  { %v13881_v34 = vadd.f32 %v1098_v38, %v970_v24 }
 0x1e3   :  { %v13883_v41 = vadd.f32 %v843_v49, %v715_v14  ;;  %1407 = vmatmul.bf16.gmra.mxu0 %v13087_v39 }
 0x1e4   :  { %19811 = vst [vmem:[#allocation79_spill] sm:$0xff] %v13881_v34  ;;  %9185 = vmatmul.msk.bf16.gmra.mxu2 %vm519_vm1, %v13033_v17 }
 0x1e5   :  { %19812 = vst [vmem:[#allocation80_spill] sm:$0xff] %v13883_v41  ;;  %v1108_v2 = vpop.f32.mrf.mxu3 }
 0x1e7   :  { %v972_v31 = vpop.f32.mrf.mxu2 }
 0x1e8   :  { %v973_v18 = vadd.f32 %v972_v31, %v13205_v29  ;;  %v716_v33 = vpop.f32.mrf.mxu0 }
 0x1e9   :  { %v717_v12 = vadd.f32 %v716_v33, %v13190_v20  ;;  %v853_v24 = vpop.f32.mrf.mxu1 }
 0x1ea   :  { %9163 = vmatmul.msk.bf16.gmra.mxu3 %vm519_vm1, %v13097_v42  ;;  %v13892_v38 = vadd.f32 %v1101_v55, %v973_v18 }
 0x1eb   :  { %v13894_v49 = vadd.f32 %v845_v50, %v717_v12 }
 0x1ec   :  { %19813 = vst [vmem:[#allocation81_spill] sm:$0xff] %v13892_v38  ;;  %1159 = vmatmul.bf16.gmra.mxu1 %v13143_v58 }
 0x1ed   :  { %19814 = vst [vmem:[#allocation82_spill] sm:$0xff] %v13894_v49  ;;  %v1111_v0 = vpop.f32.mrf.mxu3 }
 0x1ef   :  { %v974_v39 = vpop.f32.mrf.mxu2 }
 0x1f0   :  { %v975_v17 = vadd.f32 %v974_v39, %v13205_v29  ;;  %v719_v14 = vpop.f32.mrf.mxu0 }
 0x1f1   :  { %v720_v31 = vadd.f32 %v719_v14, %v13190_v20  ;;  %v855_v33 = vpop.f32.mrf.mxu1 }
 0x1f2   :  { %v13899_v34 = vadd.f32 %v1103_v19, %v975_v17  ;;  %v12286_v19 = vld [vmem:[%s19667_s3 + $0x3c4] sm:$0xf] }
 0x1f3   :  { %v13901_v9 = vadd.f32 %v848_v43, %v720_v31  ;;  %1412 = vmatmul.bf16.gmra.mxu0 %v13109_v45  ;;  %v9497_v45 = vld [vmem:[%s19667_s3 + $0x3d0] sm:$0xf0] }
 0x1f4   :  { %19815 = vst [vmem:[#allocation83_spill] sm:$0xff] %v13899_v34  ;;  %9186 = vmatmul.msk.bf16.gmra.mxu2 %vm519_vm1, %v13075_v36  ;;  %v9500_v17 = vor.u32 %v12286_v19, %v9497_v45 }
 0x1f5   :  { %19816 = vst [vmem:[#allocation84_spill] sm:$0xff] %v13901_v9  ;;  %v1113_v55 = vpop.f32.mrf.mxu3 }
 0x1f6   :  { %2674 = vmatpush.bf16.msra.mxu2 %v9500_v17 }
 0x1f7   :  { %v977_v50 = vpop.f32.mrf.mxu2 }
 0x1f8   :  { %v978_v18 = vadd.f32 %v977_v50, %v13205_v29  ;;  %v721_v12 = vpop.f32.mrf.mxu0  ;;  %v9495_v50 = vld [vmem:[%s19667_s3 + $0x3c0] sm:$0xf] }
 0x1f9   :  { %v722_v39 = vadd.f32 %v721_v12, %v13190_v20  ;;  %v858_v36 = vpop.f32.mrf.mxu1  ;;  %v12288_v12 = vld [vmem:[%s19667_s3 + $0x3cc] sm:$0xf0] }
 0x1fa   :  { %9164 = vmatmul.msk.bf16.gmra.mxu3 %vm519_vm1, %v13119_v48  ;;  %v13916_v43 = vadd.f32 %v1106_v26, %v978_v18  ;;  %v9496_v34 = vor.u32 %v12288_v12, %v9495_v50  ;;  %v12254_v26 = vld [vmem:[%s19667_s3 + $0x2c4] sm:$0xf] }
 0x1fb   :  { %v13918_v14 = vadd.f32 %v850_v3, %v722_v39  ;;  %v9369_v3 = vld [vmem:[%s19667_s3 + $0x2d0] sm:$0xf0] }
 0x1fc   :  { %19817 = vst [vmem:[#allocation85_spill] sm:$0xff] %v13916_v43  ;;  %1164 = vmatmul.bf16.gmra.mxu1 %v13165_v4  ;;  %v9372_v39 = vor.u32 %v12254_v26, %v9369_v3  ;;  %2576 = vmatpush.bf16.msra.mxu3 %v9496_v34  ;;  %v9367_v26 = vld [vmem:[%s19667_s3 + $0x2c0] sm:$0xf]  ;;  %v12256_v34 = vld [vmem:[%s19667_s3 + $0x2cc] sm:$0xf0] }
 0x1fd   :  { %19818 = vst [vmem:[#allocation86_spill] sm:$0xff] %v13918_v14  ;;  %v1116_v31 = vpop.f32.mrf.mxu3  ;;  %v9368_v3 = vor.u32 %v12256_v34, %v9367_v26 }
 0x1fe   :  { %2625 = vmatpush.bf16.msra.mxu0 %v9372_v39 }
 0x1ff   :  { %v979_v18 = vpop.f32.mrf.mxu2  ;;  %2527 = vmatpush.bf16.msra.mxu1 %v9368_v3  ;;  %v1637_v3 = vmax.f32 %v13201_v27, 0.0 }
 0x200   :  { %v980_v19 = vadd.f32 %v979_v18, %v13205_v29  ;;  %v724_v45 = vpop.f32.mrf.mxu0 }
 0x201   :  { %v725_v17 = vadd.f32 %v724_v45, %v13190_v20  ;;  %v860_v50 = vpop.f32.mrf.mxu1 }
 0x202   :  { %v13935_v43 = vadd.f32 %v1108_v2, %v980_v19 }
 0x203   :  { %v13937_v12 = vadd.f32 %v853_v24, %v725_v17  ;;  %1417 = vmatmul.bf16.gmra.mxu0 %v13143_v58  ;;  %v12782_v24 = vld [vmem:[%s19666_s2] sm:$0xf] }
 0x204   :  { %19819 = vst [vmem:[#allocation87_spill] sm:$0xff] %v13935_v43  ;;  %9187 = vmatmul.msk.bf16.gmra.mxu2 %vm519_vm1, %v13097_v42  ;;  %v13951_v18 = vperm.slane %v12782_v24, 2 }
 0x205   :  { %19820 = vst [vmem:[#allocation88_spill] sm:$0xff] %v13937_v12  ;;  %v1118_v14 = vpop.f32.mrf.mxu3 }
 0x207   :  { %v982_v2 = vpop.f32.mrf.mxu2 }
 0x208   :  { %v983_v58 = vadd.f32 %v982_v2, %v13205_v29  ;;  %v726_v42 = vpop.f32.mrf.mxu0 }
 0x209   :  { %v727_v39 = vadd.f32 %v726_v42, %v13190_v20  ;;  %v1130_v45 = vpop.f32.mrf.mxu1 }
 0x20a   :  { %9165 = vmatmul.msk.bf16.gmra.mxu3 %vm519_vm1, %v13153_v61  ;;  %v13957_v19 = vadd.f32 %v1111_v0, %v983_v58  ;;  %v1131_v26 = vadd.f32 %v1130_v45, %v13951_v18 }
 0x20b   :  { %v13959_v17 = vadd.f32 %v855_v33, %v727_v39 }
 0x20c   :  { %19821 = vst [vmem:[#allocation89_spill] sm:$0xff] %v13957_v19  ;;  %1169 = vmatmul.bf16.gmra.mxu1 %v13192_v21 }
 0x20d   :  { %19822 = vst [vmem:[#allocation90_spill] sm:$0xff] %v13959_v17  ;;  %v1259_v34 = vpop.f32.mrf.mxu3 }
 0x20e   :  { %v1260_v43 = vadd.f32 %v1259_v34, %v1131_v26 }
 0x20f   :  { %v984_v12 = vpop.f32.mrf.mxu2 }
 0x210   :  { %v1639_v2 = vmax.f32 %v1260_v43, 0.0  ;;  %v985_v42 = vadd.f32 %v984_v12, %v13205_v29  ;;  %v729_v38 = vpop.f32.mrf.mxu0  ;;  %v1641_v43 = vmax.f32 %v13215_v40, 0.0 }
 0x211   :  { %v730_v0 = vadd.f32 %v729_v38, %v13190_v20  ;;  %v1132_v33 = vpop.f32.mrf.mxu1 }
 0x212   :  { %v13965_v9 = vmax.f32 %v1637_v3, %v1639_v2  ;;  %v13968_v58 = vadd.f32 %v1113_v55, %v985_v42  ;;  %v1133_v45 = vadd.f32 %v1132_v33, %v13951_v18  ;;  %v1645_v33 = vmax.f32 %v13243_v62, 0.0 }
 0x213   :  { %v13970_v39 = vadd.f32 %v858_v36, %v730_v0  ;;  %1422 = vmatmul.bf16.gmra.mxu0 %v13165_v4 }
 0x214   :  { %19823 = vst [vmem:[#allocation91_spill] sm:$0xff] %v13968_v58  ;;  %9188 = vmatmul.msk.bf16.gmra.mxu2 %vm519_vm1, %v13119_v48 }
 0x215   :  { %19824 = vst [vmem:[#allocation92_spill] sm:$0xff] %v13970_v39  ;;  %v1261_v26 = vpop.f32.mrf.mxu3 }
 0x216   :  { %v1262_v27 = vadd.f32 %v1261_v26, %v1133_v45 }
 0x217   :  { %v987_v34 = vpop.f32.mrf.mxu2 }
 0x218   :  { %v1643_v12 = vmax.f32 %v1262_v27, 0.0  ;;  %v988_v38 = vadd.f32 %v987_v34, %v13205_v29  ;;  %v731_v55 = vpop.f32.mrf.mxu0  ;;  %v13991_v27 = vperm.slane %v12782_v24, 3 }
 0x219   :  { %v732_v36 = vadd.f32 %v731_v55, %v13190_v20  ;;  %v1135_v2 = vpop.f32.mrf.mxu1 }
 0x21a   :  { %v13978_v3 = vmax.f32 %v1641_v43, %v1643_v12  ;;  %9166 = vmatmul.msk.bf16.gmra.mxu3 %vm519_vm1, %v13175_v11  ;;  %v13983_v4 = vadd.f32 %v1116_v31, %v988_v38  ;;  %v1136_v48 = vadd.f32 %v1135_v2, %v13951_v18 }
 0x21b   :  { %v13985_v42 = vadd.f32 %v860_v50, %v732_v36 }
 0x21c   :  { %19825 = vst [vmem:[#allocation93_spill] sm:$0xff] %v13983_v4  ;;  %1174 = vmatmul.bf16.gmra.mxu1 %v13231_v52 }
 0x21d   :  { %19826 = vst [vmem:[#allocation94_spill] sm:$0xff] %v13985_v42  ;;  %v1264_v40 = vpop.f32.mrf.mxu3 }
 0x21e   :  { %v1265_v0 = vadd.f32 %v1264_v40, %v1136_v48  ;;  %v1638_v40 = vmax.f32 %v13213_v37, 0.0  ;;  %v12250_v37 = vld [vmem:[%s19667_s3 + $0x2a4] sm:$0xf] }
 0x21f   :  { %v989_v26 = vpop.f32.mrf.mxu2 }
 0x220   :  { %v1647_v45 = vmax.f32 %v1265_v0, 0.0  ;;  %v990_v20 = vadd.f32 %v989_v26, %v13205_v29  ;;  %v1388_v43 = vpop.f32.mrf.mxu0  ;;  %v1649_v29 = vmax.f32 %v13261_v22, 0.0 }
 0x221   :  { %v1137_v50 = vpop.f32.mrf.mxu1  ;;  %v1389_v38 = vadd.f32 %v1388_v43, %v13991_v27  ;;  %v9479_v43 = vld [vmem:[%s19667_s3 + $0x3a0] sm:$0xf] }
 0x222   :  { %v13993_v31 = vmax.f32 %v1645_v33, %v1647_v45  ;;  %v13995_v12 = vadd.f32 %v1118_v14, %v990_v20  ;;  %v1138_v34 = vadd.f32 %v1137_v50, %v13951_v18  ;;  %v12284_v50 = vld [vmem:[%s19667_s3 + $0x3ac] sm:$0xf0] }
 0x223   :  { %1427 = vmatmul.bf16.gmra.mxu0 %v13192_v21  ;;  %v12282_v21 = vld [vmem:[%s19667_s3 + $0x3a4] sm:$0xf] }
 0x224   :  { %19827 = vst [vmem:[#allocation95_spill] sm:$0xff] %v13995_v12  ;;  %9189 = vmatmul.msk.bf16.gmra.mxu2 %vm519_vm1, %v13153_v61  ;;  %v9481_v61 = vld [vmem:[%s19667_s3 + $0x3b0] sm:$0xf0] }
 0x225   :  { %v1266_v55 = vpop.f32.mrf.mxu3  ;;  %v9484_v33 = vor.u32 %v12282_v21, %v9481_v61 }
 0x226   :  { %v1267_v62 = vadd.f32 %v1266_v55, %v1138_v34  ;;  %v9353_v55 = vld [vmem:[%s19667_s3 + $0x2b0] sm:$0xf0] }
 0x227   :  { %v1517_v36 = vpop.f32.mrf.mxu2  ;;  %2675 = vmatpush.bf16.msra.mxu2 %v9484_v33 }
 0x228   :  { %v1651_v24 = vmax.f32 %v1267_v62, 0.0  ;;  %v1518_v2 = vadd.f32 %v1517_v36, %v1389_v38  ;;  %v1390_v48 = vpop.f32.mrf.mxu0  ;;  %v9480_v38 = vor.u32 %v12284_v50, %v9479_v43  ;;  %v9351_v43 = vld [vmem:[%s19667_s3 + $0x2a0] sm:$0xf] }
 0x229   :  { %v1140_v0 = vpop.f32.mrf.mxu1  ;;  %v1391_v62 = vadd.f32 %v1390_v48, %v13991_v27 }
 0x22a   :  { %v14003_v14 = vmax.f32 %v1649_v29, %v1651_v24  ;;  %9167 = vmatmul.msk.bf16.gmra.mxu3 %vm519_vm1, %v13207_v30  ;;  %v1640_v22 = vmax.f32 %v1518_v2, 0.0  ;;  %v1141_v45 = vadd.f32 %v1140_v0, %v13951_v18  ;;  %v9356_v29 = vor.u32 %v12250_v37, %v9353_v55 }
 0x22b   :  { %v1653_v24 = vmax.f32 %v13283_v47, 0.0  ;;  %2577 = vmatpush.bf16.msra.mxu3 %v9480_v38 }
 0x22c   :  { %v14015_v26 = vmax.f32 %v1638_v40, %v1640_v22  ;;  %1179 = vmatmul.bf16.gmra.mxu1 %v13271_v32  ;;  %2626 = vmatpush.bf16.msra.mxu0 %v9356_v29  ;;  %v1642_v22 = vmax.f32 %v13235_v56, 0.0  ;;  %v12252_v56 = vld [vmem:[%s19667_s3 + $0x2ac] sm:$0xf0] }
 0x22d   :  { %v1269_v20 = vpop.f32.mrf.mxu3  ;;  %v9352_v37 = vor.u32 %v12252_v56, %v9351_v43 }
 0x22e   :  { %v1270_v34 = vadd.f32 %v1269_v20, %v1141_v45 }
 0x22f   :  { %v1519_v2 = vpop.f32.mrf.mxu2  ;;  %2528 = vmatpush.bf16.msra.mxu1 %v9352_v37 }
 0x230   :  { %v1655_v36 = vmax.f32 %v1270_v34, 0.0  ;;  %v1520_v21 = vadd.f32 %v1519_v2, %v1391_v62  ;;  %v1393_v61 = vpop.f32.mrf.mxu0 }
 0x231   :  { %v1142_v33 = vpop.f32.mrf.mxu1  ;;  %v1394_v47 = vadd.f32 %v1393_v61, %v13991_v27 }
 0x232   :  { %v14032_v40 = vmax.f32 %v1653_v24, %v1655_v36  ;;  %v1644_v0 = vmax.f32 %v1520_v21, 0.0  ;;  %v1143_v45 = vadd.f32 %v1142_v33, %v13951_v18 }
 0x233   :  { %1432 = vmatmul.bf16.gmra.mxu0 %v13231_v52  ;;  %v1657_v52 = vmax.f32 %v13295_v60, 0.0 }
 0x234   :  { %v14037_v48 = vmax.f32 %v1642_v22, %v1644_v0  ;;  %9190 = vmatmul.msk.bf16.gmra.mxu2 %vm519_vm1, %v13175_v11  ;;  %v1646_v11 = vmax.f32 %v13259_v16, 0.0  ;;  %v1661_v0 = vmax.f32 %v13317_v15, 0.0  ;;  %v1650_v16 = vmax.f32 %v13275_v35, 0.0 }
 0x235   :  { %v1271_v20 = vpop.f32.mrf.mxu3 }
 0x236   :  { %v1272_v50 = vadd.f32 %v1271_v20, %v1143_v45 }
 0x237   :  { %v1522_v38 = vpop.f32.mrf.mxu2 }
 0x238   :  { %v1659_v34 = vmax.f32 %v1272_v50, 0.0  ;;  %v1523_v55 = vadd.f32 %v1522_v38, %v1394_v47  ;;  %v1395_v62 = vpop.f32.mrf.mxu0 }
 0x239   :  { %v1145_v36 = vpop.f32.mrf.mxu1  ;;  %v1396_v22 = vadd.f32 %v1395_v62, %v13991_v27 }
 0x23a   :  { %v14049_v29 = vmax.f32 %v1657_v52, %v1659_v34  ;;  %9168 = vmatmul.msk.bf16.gmra.mxu3 %vm519_vm1, %v13253_v5  ;;  %v1648_v24 = vmax.f32 %v1523_v55, 0.0  ;;  %v1146_v2 = vadd.f32 %v1145_v36, %v13951_v18  ;;  %v1665_v55 = vmax.f32 %v13329_v54, 0.0 }
 0x23c   :  { %v14055_v21 = vmax.f32 %v1646_v11, %v1648_v24  ;;  %1184 = vmatmul.bf16.gmra.mxu1 %v13305_v10 }
 0x23d   :  { %v1274_v61 = vpop.f32.mrf.mxu3 }
 0x23e   :  { %v1275_v60 = vadd.f32 %v1274_v61, %v1146_v2 }
 0x23f   :  { %v1524_v45 = vpop.f32.mrf.mxu2 }
 0x240   :  { %v1663_v33 = vmax.f32 %v1275_v60, 0.0  ;;  %v1525_v47 = vadd.f32 %v1524_v45, %v1396_v22  ;;  %v1398_v20 = vpop.f32.mrf.mxu0 }
 0x241   :  { %v1147_v50 = vpop.f32.mrf.mxu1  ;;  %v1399_v34 = vadd.f32 %v1398_v20, %v13991_v27 }
 0x242   :  { %v14060_v43 = vmax.f32 %v1661_v0, %v1663_v33  ;;  %v1652_v56 = vmax.f32 %v1525_v47, 0.0  ;;  %v1148_v37 = vadd.f32 %v1147_v50, %v13951_v18  ;;  %v1669_v33 = vmax.f32 %v13357_v23, 0.0 }
 0x243   :  { %1437 = vmatmul.bf16.gmra.mxu0 %v13271_v32  ;;  %v1654_v32 = vmax.f32 %v13293_v59, 0.0  ;;  %v19828_v59 = vld [vmem:[#allocation2_spill] sm:$0xff] }
 0x244   :  { %v14065_v52 = vmax.f32 %v1650_v16, %v1652_v56  ;;  %9191 = vmatmul.msk.bf16.gmra.mxu2 %vm519_vm1, %v13207_v30  ;;  %v1658_v50 = vmax.f32 %v19828_v59, 0.0 }
 0x245   :  { %v1276_v38 = vpop.f32.mrf.mxu3 }
 0x246   :  { %v1277_v15 = vadd.f32 %v1276_v38, %v1148_v37 }
 0x247   :  { %v1527_v11 = vpop.f32.mrf.mxu2 }
 0x248   :  { %v1667_v62 = vmax.f32 %v1277_v15, 0.0  ;;  %v1528_v35 = vadd.f32 %v1527_v11, %v1399_v34  ;;  %v1400_v24 = vpop.f32.mrf.mxu0  ;;  %v19829_v11 = vld [vmem:[#allocation8_spill] sm:$0xff] }
 0x249   :  { %v1150_v61 = vpop.f32.mrf.mxu1  ;;  %v1401_v54 = vadd.f32 %v1400_v24, %v13991_v27 }
 0x24a   :  { %v14071_v36 = vmax.f32 %v1665_v55, %v1667_v62  ;;  %9169 = vmatmul.msk.bf16.gmra.mxu3 %vm519_vm1, %v13287_v51  ;;  %v1656_v2 = vmax.f32 %v1528_v35, 0.0  ;;  %v1151_v60 = vadd.f32 %v1150_v61, %v13951_v18  ;;  %v1673_v35 = vmax.f32 %v19829_v11, 0.0 }
 0x24c   :  { %v14077_v22 = vmax.f32 %v1654_v32, %v1656_v2  ;;  %1189 = vmatmul.bf16.gmra.mxu1 %v13345_v13 }
 0x24d   :  { %v1279_v30 = vpop.f32.mrf.mxu3 }
 0x24e   :  { %v1280_v0 = vadd.f32 %v1279_v30, %v1151_v60  ;;  %v19830_v30 = vld [vmem:[#allocation3_spill] sm:$0xff] }
 0x24f   :  { %v1529_v47 = vpop.f32.mrf.mxu2 }
 0x250   :  { %v1671_v45 = vmax.f32 %v1280_v0, 0.0  ;;  %v1530_v20 = vadd.f32 %v1529_v47, %v1401_v54  ;;  %v1403_v16 = vpop.f32.mrf.mxu0  ;;  %v19831_v0 = vld [vmem:[#allocation4_spill] sm:$0xff] }
 0x251   :  { %v1152_v34 = vpop.f32.mrf.mxu1  ;;  %v1404_v55 = vadd.f32 %v1403_v16, %v13991_v27  ;;  %v1662_v54 = vmax.f32 %v19831_v0, 0.0 }
 0x252   :  { %v14082_v56 = vmax.f32 %v1669_v33, %v1671_v45  ;;  %v1660_v37 = vmax.f32 %v1530_v20, 0.0  ;;  %v1153_v38 = vadd.f32 %v1152_v34, %v13951_v18  ;;  %v12246_v34 = vld [vmem:[%s19667_s3 + $0x284] sm:$0xf] }
 0x253   :  { %1442 = vmatmul.bf16.gmra.mxu0 %v13305_v10  ;;  %v12278_v10 = vld [vmem:[%s19667_s3 + $0x384] sm:$0xf] }
 0x254   :  { %v14087_v15 = vmax.f32 %v1658_v50, %v1660_v37  ;;  %9192 = vmatmul.msk.bf16.gmra.mxu2 %vm519_vm1, %v13253_v5  ;;  %v9465_v5 = vld [vmem:[%s19667_s3 + $0x390] sm:$0xf0]  ;;  %v9463_v50 = vld [vmem:[%s19667_s3 + $0x380] sm:$0xf]  ;;  %v12280_v37 = vld [vmem:[%s19667_s3 + $0x38c] sm:$0xf0] }
 0x255   :  { %v1281_v62 = vpop.f32.mrf.mxu3  ;;  %v9468_v47 = vor.u32 %v12278_v10, %v9465_v5 }
 0x256   :  { %v1282_v23 = vadd.f32 %v1281_v62, %v1153_v38  ;;  %v9464_v62 = vor.u32 %v12280_v37, %v9463_v50 }
 0x257   :  { %v1532_v32 = vpop.f32.mrf.mxu2  ;;  %2676 = vmatpush.bf16.msra.mxu2 %v9468_v47 }
 0x258   :  { %v1675_v24 = vmax.f32 %v1282_v23, 0.0  ;;  %v1533_v2 = vadd.f32 %v1532_v32, %v1404_v55  ;;  %v1405_v61 = vpop.f32.mrf.mxu0  ;;  %v19832_v55 = vld [vmem:[#allocation9_spill] sm:$0xff]  ;;  %v9337_v23 = vld [vmem:[%s19667_s3 + $0x290] sm:$0xf0]  ;;  %2578 = vmatpush.bf16.msra.mxu3 %v9464_v62 }
 0x259   :  { %v1155_v45 = vpop.f32.mrf.mxu1  ;;  %v1406_v11 = vadd.f32 %v1405_v61, %v13991_v27 }
 0x25a   :  { %v14093_v60 = vmax.f32 %v1673_v35, %v1675_v24  ;;  %9170 = vmatmul.msk.bf16.gmra.mxu3 %vm519_vm1, %v19830_v30  ;;  %v1664_v33 = vmax.f32 %v1533_v2, 0.0  ;;  %v1156_v20 = vadd.f32 %v1155_v45, %v13951_v18  ;;  %v9340_v35 = vor.u32 %v12246_v34, %v9337_v23  ;;  %v19833_v24 = vld [vmem:[#allocation11_spill] sm:$0xff]  ;;  %v9335_v34 = vld [vmem:[%s19667_s3 + $0x280] sm:$0xf] }
 0x25b   :  { %v1677_v32 = vmax.f32 %v19833_v24, 0.0 }
 0x25c   :  { %v14105_v16 = vmax.f32 %v1662_v54, %v1664_v33  ;;  %1194 = vmatmul.bf16.gmra.mxu1 %v19832_v55  ;;  %2627 = vmatpush.bf16.msra.mxu0 %v9340_v35  ;;  %v19834_v33 = vld [vmem:[#allocation5_spill] sm:$0xff] }
 0x25d   :  { %v1284_v59 = vpop.f32.mrf.mxu3  ;;  %v1666_v45 = vmax.f32 %v19834_v33, 0.0 }
 0x25e   :  { %v1285_v38 = vadd.f32 %v1284_v59, %v1156_v20 }
 0x25f   :  { %v1534_v10 = vpop.f32.mrf.mxu2 }
 0x260   :  { %v1679_v2 = vmax.f32 %v1285_v38, 0.0  ;;  %v1535_v5 = vadd.f32 %v1534_v10, %v1406_v11  ;;  %v1408_v0 = vpop.f32.mrf.mxu0  ;;  %v12248_v38 = vld [vmem:[%s19667_s3 + $0x28c] sm:$0xf0]  ;;  %v19835_v11 = vld [vmem:[#allocation14_spill] sm:$0xff] }
 0x261   :  { %v1157_v20 = vpop.f32.mrf.mxu1  ;;  %v1409_v50 = vadd.f32 %v1408_v0, %v13991_v27  ;;  %v9336_v23 = vor.u32 %v12248_v38, %v9335_v34  ;;  %v19838_v34 = vld [vmem:[#allocation15_spill] sm:$0xff]  ;;  %v19839_v38 = vld [vmem:[#allocation17_spill] sm:$0xff] }
 0x262   :  { %v14122_v54 = vmax.f32 %v1677_v32, %v1679_v2  ;;  %v1668_v47 = vmax.f32 %v1535_v5, 0.0  ;;  %v1158_v59 = vadd.f32 %v1157_v20, %v13951_v18  ;;  %v19837_v5 = vld [vmem:[#allocation7_spill] sm:$0xff] }
 0x263   :  { %1447 = vmatmul.bf16.gmra.mxu0 %v13345_v13  ;;  %v1681_v13 = vmax.f32 %v19835_v11, 0.0  ;;  %2529 = vmatpush.bf16.msra.mxu1 %v9336_v23  ;;  %v1670_v0 = vmax.f32 %v19837_v5, 0.0 }
 0x264   :  { %v14127_v61 = vmax.f32 %v1666_v45, %v1668_v47  ;;  %9193 = vmatmul.msk.bf16.gmra.mxu2 %vm519_vm1, %v13287_v51  ;;  %v19836_v51 = vld [vmem:[#allocation6_spill] sm:$0xff] }
 0x265   :  { %v1286_v37 = vpop.f32.mrf.mxu3 }
 0x266   :  { %v1287_v62 = vadd.f32 %v1286_v37, %v1158_v59 }
 0x267   :  { %v1537_v24 = vpop.f32.mrf.mxu2 }
 0x268   :  { %v1683_v35 = vmax.f32 %v1287_v62, 0.0  ;;  %v1538_v32 = vadd.f32 %v1537_v24, %v1409_v50  ;;  %v1410_v2 = vpop.f32.mrf.mxu0  ;;  %v1685_v62 = vmax.f32 %v19839_v38, 0.0 }
 0x269   :  { %v1160_v45 = vpop.f32.mrf.mxu1  ;;  %v1411_v50 = vadd.f32 %v1410_v2, %v13991_v27 }
 0x26a   :  { %v14139_v10 = vmax.f32 %v1681_v13, %v1683_v35  ;;  %9171 = vmatmul.msk.bf16.gmra.mxu3 %vm519_vm1, %v19836_v51  ;;  %v1672_v33 = vmax.f32 %v1538_v32, 0.0  ;;  %v1161_v47 = vadd.f32 %v1160_v45, %v13951_v18  ;;  %v19840_v32 = vld [vmem:[#allocation10_spill] sm:$0xff] }
 0x26b   :  { %v1674_v5 = vmax.f32 %v19840_v32, 0.0  ;;  %v19842_v32 = vld [vmem:[#allocation12_spill] sm:$0xff] }
 0x26c   :  { %v14145_v20 = vmax.f32 %v1670_v0, %v1672_v33  ;;  %1199 = vmatmul.bf16.gmra.mxu1 %v19838_v34 }
 0x26d   :  { %v1289_v59 = vpop.f32.mrf.mxu3 }
 0x26e   :  { %v1290_v37 = vadd.f32 %v1289_v59, %v1161_v47 }
 0x26f   :  { %v1539_v11 = vpop.f32.mrf.mxu2 }
 0x270   :  { %v1687_v23 = vmax.f32 %v1290_v37, 0.0  ;;  %v1540_v13 = vadd.f32 %v1539_v11, %v1411_v50  ;;  %v1413_v35 = vpop.f32.mrf.mxu0  ;;  %v19841_v37 = vld [vmem:[#allocation20_spill] sm:$0xff] }
 0x271   :  { %v1162_v45 = vpop.f32.mrf.mxu1  ;;  %v1414_v2 = vadd.f32 %v1413_v35, %v13991_v27  ;;  %v1689_v50 = vmax.f32 %v19841_v37, 0.0 }
 0x272   :  { %v14150_v24 = vmax.f32 %v1685_v62, %v1687_v23  ;;  %v1676_v12 = vmax.f32 %v1540_v13, 0.0  ;;  %v1163_v0 = vadd.f32 %v1162_v45, %v13951_v18 }
 0x273   :  { %1452 = vmatmul.bf16.gmra.mxu0 %v19832_v55 }
 0x274   :  { %v14155_v33 = vmax.f32 %v1674_v5, %v1676_v12  ;;  %9194 = vmatmul.msk.bf16.gmra.mxu2 %vm519_vm1, %v19830_v30  ;;  %v19843_v12 = vld [vmem:[#allocation13_spill] sm:$0xff] }
 0x275   :  { %v1291_v47 = vpop.f32.mrf.mxu3  ;;  %v1678_v55 = vmax.f32 %v19843_v12, 0.0 }
 0x276   :  { %v1292_v59 = vadd.f32 %v1291_v47, %v1163_v0  ;;  %v19844_v47 = vld [vmem:[#allocation21_spill] sm:$0xff] }
 0x277   :  { %v1542_v62 = vpop.f32.mrf.mxu2 }
 0x278   :  { %v1691_v38 = vmax.f32 %v1292_v59, 0.0  ;;  %v1543_v23 = vadd.f32 %v1542_v62, %v1414_v2  ;;  %v1415_v11 = vpop.f32.mrf.mxu0  ;;  %v19845_v59 = vld [vmem:[#allocation23_spill] sm:$0xff] }
 0x279   :  { %v1165_v35 = vpop.f32.mrf.mxu1  ;;  %v1416_v2 = vadd.f32 %v1415_v11, %v13991_v27  ;;  %v1693_v37 = vmax.f32 %v19845_v59, 0.0 }
 0x27a   :  { %v14161_v13 = vmax.f32 %v1689_v50, %v1691_v38  ;;  %9172 = vmatmul.msk.bf16.gmra.mxu3 %vm519_vm1, %v19842_v32  ;;  %v1680_v5 = vmax.f32 %v1543_v23, 0.0  ;;  %v1166_v45 = vadd.f32 %v1165_v35, %v13951_v18  ;;  %v19846_v23 = vld [vmem:[#allocation16_spill] sm:$0xff] }
 0x27b   :  { %v1682_v12 = vmax.f32 %v19846_v23, 0.0  ;;  %v19849_v23 = vld [vmem:[#allocation18_spill] sm:$0xff] }
 0x27c   :  { %v14167_v4 = vmax.f32 %v1678_v55, %v1680_v5  ;;  %1204 = vmatmul.bf16.gmra.mxu1 %v19844_v47 }
 0x27d   :  { %v1294_v30 = vpop.f32.mrf.mxu3 }
 0x27e   :  { %v1295_v0 = vadd.f32 %v1294_v30, %v1166_v45 }
 0x27f   :  { %v1544_v38 = vpop.f32.mrf.mxu2 }
 0x280   :  { %v1695_v50 = vmax.f32 %v1295_v0, 0.0  ;;  %v1545_v62 = vadd.f32 %v1544_v38, %v1416_v2  ;;  %v1418_v58 = vpop.f32.mrf.mxu0  ;;  %v19847_v0 = vld [vmem:[#allocation26_spill] sm:$0xff] }
 0x281   :  { %v1167_v35 = vpop.f32.mrf.mxu1  ;;  %v1419_v11 = vadd.f32 %v1418_v58, %v13991_v27  ;;  %v1697_v2 = vmax.f32 %v19847_v0, 0.0  ;;  %v12274_v58 = vld [vmem:[%s19667_s3 + $0x364] sm:$0xf]  ;;  %v9447_v0 = vld [vmem:[%s19667_s3 + $0x360] sm:$0xf] }
 0x282   :  { %v14172_v19 = vmax.f32 %v1693_v37, %v1695_v50  ;;  %v1684_v42 = vmax.f32 %v1545_v62, 0.0  ;;  %v1168_v55 = vadd.f32 %v1167_v35, %v13951_v18 }
 0x283   :  { %1457 = vmatmul.bf16.gmra.mxu0 %v19838_v34 }
 0x284   :  { %v14177_v5 = vmax.f32 %v1682_v12, %v1684_v42  ;;  %9195 = vmatmul.msk.bf16.gmra.mxu2 %vm519_vm1, %v19836_v51  ;;  %v9449_v42 = vld [vmem:[%s19667_s3 + $0x370] sm:$0xf0]  ;;  %v19850_v51 = vld [vmem:[#allocation19_spill] sm:$0xff] }
 0x285   :  { %v1296_v45 = vpop.f32.mrf.mxu3  ;;  %v1686_v34 = vmax.f32 %v19850_v51, 0.0 }
 0x286   :  { %v1297_v30 = vadd.f32 %v1296_v45, %v1168_v55  ;;  %v9452_v55 = vor.u32 %v12274_v58, %v9449_v42  ;;  %v9321_v42 = vld [vmem:[%s19667_s3 + $0x270] sm:$0xf0] }
 0x287   :  { %v1547_v37 = vpop.f32.mrf.mxu2 }
 0x288   :  { %v1699_v59 = vmax.f32 %v1297_v30, 0.0  ;;  %v1548_v50 = vadd.f32 %v1547_v37, %v1419_v11  ;;  %v1420_v38 = vpop.f32.mrf.mxu0  ;;  %2677 = vmatpush.bf16.msra.mxu2 %v9452_v55 }
 0x289   :  { %v1170_v35 = vpop.f32.mrf.mxu1  ;;  %v1421_v51 = vadd.f32 %v1420_v38, %v13991_v27 }
 0x28a   :  { %v14183_v62 = vmax.f32 %v1697_v2, %v1699_v59  ;;  %9173 = vmatmul.msk.bf16.gmra.mxu3 %vm519_vm1, %v19849_v23  ;;  %v1688_v12 = vmax.f32 %v1548_v50, 0.0  ;;  %v1171_v11 = vadd.f32 %v1170_v35, %v13951_v18  ;;  %v12276_v2 = vld [vmem:[%s19667_s3 + $0x36c] sm:$0xf0]  ;;  %v12242_v59 = vld [vmem:[%s19667_s3 + $0x264] sm:$0xf]  ;;  %v19852_v50 = vld [vmem:[#allocation27_spill] sm:$0xff] }
 0x28b   :  { %v9448_v58 = vor.u32 %v12276_v2, %v9447_v0 }
 0x28c   :  { %19848 = vst [vmem:[#allocation2_spill] sm:$0xff] %v14183_v62  ;;  %v14195_v45 = vmax.f32 %v1686_v34, %v1688_v12  ;;  %1209 = vmatmul.bf16.gmra.mxu1 %v19852_v50  ;;  %v9324_v34 = vor.u32 %v12242_v59, %v9321_v42  ;;  %v19853_v12 = vld [vmem:[#allocation29_spill] sm:$0xff] }
 0x28d   :  { %v1299_v30 = vpop.f32.mrf.mxu3  ;;  %v1701_v35 = vmax.f32 %v19853_v12, 0.0  ;;  %2579 = vmatpush.bf16.msra.mxu3 %v9448_v58 }
 0x28e   :  { %19851 = vst [vmem:[#allocation8_spill] sm:$0xff] %v14195_v45  ;;  %v1300_v37 = vadd.f32 %v1299_v30, %v1171_v11  ;;  %2628 = vmatpush.bf16.msra.mxu0 %v9324_v34  ;;  %v19855_v11 = vld [vmem:[#allocation22_spill] sm:$0xff] }
 0x28f   :  { %v1549_v39 = vpop.f32.mrf.mxu2  ;;  %v1690_v30 = vmax.f32 %v19855_v11, 0.0  ;;  %v19860_v11 = vld [vmem:[#allocation25_spill] sm:$0xff] }
 0x290   :  { %v1703_v55 = vmax.f32 %v1300_v37, 0.0  ;;  %v1550_v17 = vadd.f32 %v1549_v39, %v1421_v51  ;;  %v1423_v49 = vpop.f32.mrf.mxu0  ;;  %v9319_v39 = vld [vmem:[%s19667_s3 + $0x260] sm:$0xf]  ;;  %v19857_v51 = vld [vmem:[#allocation32_spill] sm:$0xff] }
 0x291   :  { %v1172_v2 = vpop.f32.mrf.mxu1  ;;  %v1424_v59 = vadd.f32 %v1423_v49, %v13991_v27 }
 0x292   :  { %v14212_v41 = vmax.f32 %v1701_v35, %v1703_v55  ;;  %v1692_v0 = vmax.f32 %v1550_v17, 0.0  ;;  %v1173_v45 = vadd.f32 %v1172_v2, %v13951_v18  ;;  %v12244_v17 = vld [vmem:[%s19667_s3 + $0x26c] sm:$0xf0] }
 0x293   :  { %1462 = vmatmul.bf16.gmra.mxu0 %v19844_v47  ;;  %v9320_v42 = vor.u32 %v12244_v17, %v9319_v39  ;;  %v1705_v47 = vmax.f32 %v19857_v51, 0.0  ;;  %v19862_v17 = vld [vmem:[#allocation33_spill] sm:$0xff] }
 0x294   :  { %19854 = vst [vmem:[#allocation3_spill] sm:$0xff] %v14212_v41  ;;  %v14217_v38 = vmax.f32 %v1690_v30, %v1692_v0  ;;  %9196 = vmatmul.msk.bf16.gmra.mxu2 %vm519_vm1, %v19842_v32  ;;  %v19859_v32 = vld [vmem:[#allocation24_spill] sm:$0xff]  ;;  %v1694_v30 = vmax.f32 %v19860_v11, 0.0 }
 0x295   :  { %v1301_v37 = vpop.f32.mrf.mxu3  ;;  %2530 = vmatpush.bf16.msra.mxu1 %v9320_v42 }
 0x296   :  { %19856 = vst [vmem:[#allocation4_spill] sm:$0xff] %v14217_v38  ;;  %v1302_v58 = vadd.f32 %v1301_v37, %v1173_v45 }
 0x297   :  { %v1552_v12 = vpop.f32.mrf.mxu2 }
 0x298   :  { %v1707_v34 = vmax.f32 %v1302_v58, 0.0  ;;  %v1553_v49 = vadd.f32 %v1552_v12, %v1424_v59  ;;  %v1425_v35 = vpop.f32.mrf.mxu0  ;;  %v19863_v58 = vld [vmem:[#allocation35_spill] sm:$0xff] }
 0x299   :  { %v1175_v2 = vpop.f32.mrf.mxu1  ;;  %v1426_v59 = vadd.f32 %v1425_v35, %v13991_v27  ;;  %v1709_v42 = vmax.f32 %v19863_v58, 0.0 }
 0x29a   :  { %v14229_v55 = vmax.f32 %v1705_v47, %v1707_v34  ;;  %9174 = vmatmul.msk.bf16.gmra.mxu3 %vm519_vm1, %v19859_v32  ;;  %v1696_v0 = vmax.f32 %v1553_v49, 0.0  ;;  %v1176_v38 = vadd.f32 %v1175_v2, %v13951_v18  ;;  %v19865_v49 = vld [vmem:[#allocation28_spill] sm:$0xff] }
 0x29b   :  { %v1698_v11 = vmax.f32 %v19865_v49, 0.0  ;;  %v19869_v49 = vld [vmem:[#allocation30_spill] sm:$0xff] }
 0x29c   :  { %19858 = vst [vmem:[#allocation9_spill] sm:$0xff] %v14229_v55  ;;  %v14235_v45 = vmax.f32 %v1694_v30, %v1696_v0  ;;  %1214 = vmatmul.bf16.gmra.mxu1 %v19862_v17 }
 0x29d   :  { %v1304_v37 = vpop.f32.mrf.mxu3 }
 0x29e   :  { %19861 = vst [vmem:[#allocation11_spill] sm:$0xff] %v14235_v45  ;;  %v1305_v39 = vadd.f32 %v1304_v37, %v1176_v38 }
 0x29f   :  { %v1554_v47 = vpop.f32.mrf.mxu2 }
 0x2a0   :  { %v1711_v51 = vmax.f32 %v1305_v39, 0.0  ;;  %v1555_v34 = vadd.f32 %v1554_v47, %v1426_v59  ;;  %v1428_v12 = vpop.f32.mrf.mxu0  ;;  %v19867_v39 = vld [vmem:[#allocation38_spill] sm:$0xff] }
 0x2a1   :  { %v1177_v2 = vpop.f32.mrf.mxu1  ;;  %v1429_v35 = vadd.f32 %v1428_v12, %v13991_v27  ;;  %v1713_v59 = vmax.f32 %v19867_v39, 0.0 }
 0x2a2   :  { %v14240_v55 = vmax.f32 %v1709_v42, %v1711_v51  ;;  %v1700_v41 = vmax.f32 %v1555_v34, 0.0  ;;  %v1178_v30 = vadd.f32 %v1177_v2, %v13951_v18 }
 0x2a3   :  { %1467 = vmatmul.bf16.gmra.mxu0 %v19852_v50 }
 0x2a4   :  { %19864 = vst [vmem:[#allocation5_spill] sm:$0xff] %v14240_v55  ;;  %v14245_v38 = vmax.f32 %v1698_v11, %v1700_v41  ;;  %9197 = vmatmul.msk.bf16.gmra.mxu2 %vm519_vm1, %v19849_v23  ;;  %v19870_v41 = vld [vmem:[#allocation31_spill] sm:$0xff] }
 0x2a5   :  { %v1306_v0 = vpop.f32.mrf.mxu3  ;;  %v1702_v50 = vmax.f32 %v19870_v41, 0.0 }
 0x2a6   :  { %19866 = vst [vmem:[#allocation14_spill] sm:$0xff] %v14245_v38  ;;  %v1307_v37 = vadd.f32 %v1306_v0, %v1178_v30  ;;  %v19872_v0 = vld [vmem:[#allocation39_spill] sm:$0xff] }
 0x2a7   :  { %v1557_v42 = vpop.f32.mrf.mxu2 }
 0x2a8   :  { %v1715_v58 = vmax.f32 %v1307_v37, 0.0  ;;  %v1558_v51 = vadd.f32 %v1557_v42, %v1429_v35  ;;  %v1430_v47 = vpop.f32.mrf.mxu0  ;;  %v19873_v37 = vld [vmem:[#allocation41_spill] sm:$0xff] }
 0x2a9   :  { %v1180_v12 = vpop.f32.mrf.mxu1  ;;  %v1431_v35 = vadd.f32 %v1430_v47, %v13991_v27  ;;  %v1717_v39 = vmax.f32 %v19873_v37, 0.0 }
 0x2aa   :  { %v14251_v34 = vmax.f32 %v1713_v59, %v1715_v58  ;;  %9175 = vmatmul.msk.bf16.gmra.mxu3 %vm519_vm1, %v19869_v49  ;;  %v1704_v11 = vmax.f32 %v1558_v51, 0.0  ;;  %v1181_v2 = vadd.f32 %v1180_v12, %v13951_v18  ;;  %v19875_v51 = vld [vmem:[#allocation34_spill] sm:$0xff] }
 0x2ab   :  { %v1706_v41 = vmax.f32 %v19875_v51, 0.0  ;;  %v19879_v51 = vld [vmem:[#allocation36_spill] sm:$0xff] }
 0x2ac   :  { %19868 = vst [vmem:[#allocation6_spill] sm:$0xff] %v14251_v34  ;;  %v14257_v38 = vmax.f32 %v1702_v50, %v1704_v11  ;;  %1219 = vmatmul.bf16.gmra.mxu1 %v19872_v0 }
 0x2ad   :  { %v1309_v23 = vpop.f32.mrf.mxu3 }
 0x2ae   :  { %19871 = vst [vmem:[#allocation7_spill] sm:$0xff] %v14257_v38  ;;  %v1310_v30 = vadd.f32 %v1309_v23, %v1181_v2 }
 0x2af   :  { %v1559_v58 = vpop.f32.mrf.mxu2 }
 0x2b0   :  { %v1719_v59 = vmax.f32 %v1310_v30, 0.0  ;;  %v1560_v42 = vadd.f32 %v1559_v58, %v1431_v35  ;;  %v1433_v34 = vpop.f32.mrf.mxu0  ;;  %v19877_v30 = vld [vmem:[#allocation44_spill] sm:$0xff] }
 0x2b1   :  { %v1182_v12 = vpop.f32.mrf.mxu1  ;;  %v1434_v47 = vadd.f32 %v1433_v34, %v13991_v27  ;;  %v1721_v35 = vmax.f32 %v19877_v30, 0.0  ;;  %v9431_v30 = vld [vmem:[%s19667_s3 + $0x340] sm:$0xf] }
 0x2b2   :  { %v14262_v55 = vmax.f32 %v1717_v39, %v1719_v59  ;;  %v1708_v45 = vmax.f32 %v1560_v42, 0.0  ;;  %v1183_v50 = vadd.f32 %v1182_v12, %v13951_v18 }
 0x2b3   :  { %1472 = vmatmul.bf16.gmra.mxu0 %v19862_v17 }
 0x2b4   :  { %19874 = vst [vmem:[#allocation15_spill] sm:$0xff] %v14262_v55  ;;  %v14267_v11 = vmax.f32 %v1706_v41, %v1708_v45  ;;  %9198 = vmatmul.msk.bf16.gmra.mxu2 %vm519_vm1, %v19859_v32  ;;  %v19880_v45 = vld [vmem:[#allocation37_spill] sm:$0xff]  ;;  %v12270_v32 = vld [vmem:[%s19667_s3 + $0x344] sm:$0xf] }
 0x2b5   :  { %v1311_v2 = vpop.f32.mrf.mxu3  ;;  %v1710_v17 = vmax.f32 %v19880_v45, 0.0 }
 0x2b6   :  { %19876 = vst [vmem:[#allocation17_spill] sm:$0xff] %v14267_v11  ;;  %v1312_v23 = vadd.f32 %v1311_v2, %v1183_v50  ;;  %v9433_v50 = vld [vmem:[%s19667_s3 + $0x350] sm:$0xf0] }
 0x2b7   :  { %v1562_v39 = vpop.f32.mrf.mxu2 }
 0x2b8   :  { %v1723_v37 = vmax.f32 %v1312_v23, 0.0  ;;  %v1563_v59 = vadd.f32 %v1562_v39, %v1434_v47  ;;  %v1435_v58 = vpop.f32.mrf.mxu0  ;;  %v9436_v23 = vor.u32 %v12270_v32, %v9433_v50  ;;  %v19883_v32 = vld [vmem:[#allocation47_spill] sm:$0xff] }
 0x2b9   :  { %v1185_v34 = vpop.f32.mrf.mxu1  ;;  %v1725_v50 = vmax.f32 %v19883_v32, 0.0  ;;  %v19890_v32 = vld [vmem:[#allocation43_spill] sm:$0xff] }
 0x2ba   :  { %v14273_v42 = vmax.f32 %v1721_v35, %v1723_v37  ;;  %9176 = vmatmul.msk.bf16.gmra.mxu3 %vm519_vm1, %v19879_v51  ;;  %v1712_v41 = vmax.f32 %v1563_v59, 0.0  ;;  %v1186_v12 = vadd.f32 %v1185_v34, %v13951_v18  ;;  %v12272_v35 = vld [vmem:[%s19667_s3 + $0x34c] sm:$0xf0]  ;;  %v12238_v37 = vld [vmem:[%s19667_s3 + $0x244] sm:$0xf]  ;;  %v19882_v59 = vld [vmem:[#allocation45_spill] sm:$0xff]  ;;  %2678 = vmatpush.bf16.msra.mxu2 %v9436_v23 }
 0x2bb   :  { %v9432_v45 = vor.u32 %v12272_v35, %v9431_v30 }
 0x2bc   :  { %19878 = vst [vmem:[#allocation10_spill] sm:$0xff] %v14273_v42  ;;  %v14285_v47 = vmax.f32 %v1710_v17, %v1712_v41  ;;  %1224 = vmatmul.bf16.gmra.mxu1 %v19882_v59  ;;  %v9305_v17 = vld [vmem:[%s19667_s3 + $0x250] sm:$0xf0]  ;;  %v1436_v41 = vadd.f32 %v1435_v58, %v13991_v27 }
 0x2bd   :  { %v1314_v2 = vpop.f32.mrf.mxu3  ;;  %v9308_v34 = vor.u32 %v12238_v37, %v9305_v17  ;;  %2580 = vmatpush.bf16.msra.mxu3 %v9432_v45 }
 0x2be   :  { %19881 = vst [vmem:[#allocation20_spill] sm:$0xff] %v14285_v47  ;;  %v1315_v39 = vadd.f32 %v1314_v2, %v1186_v12  ;;  %v19885_v2 = vld [vmem:[#allocation40_spill] sm:$0xff] }
 0x2bf   :  { %v1564_v42 = vpop.f32.mrf.mxu2  ;;  %2629 = vmatpush.bf16.msra.mxu0 %v9308_v34  ;;  %v1714_v30 = vmax.f32 %v19885_v2, 0.0 }
 0x2c0   :  { %v1727_v47 = vmax.f32 %v1315_v39, 0.0  ;;  %v1565_v11 = vadd.f32 %v1564_v42, %v1436_v41  ;;  %v1438_v55 = vpop.f32.mrf.mxu0  ;;  %v9303_v42 = vld [vmem:[%s19667_s3 + $0x240] sm:$0xf] }
 0x2c1   :  { %v1187_v38 = vpop.f32.mrf.mxu1  ;;  %v1439_v23 = vadd.f32 %v1438_v55, %v13991_v27  ;;  %v19887_v39 = vld [vmem:[#allocation50_spill] sm:$0xff] }
 0x2c2   :  { %v14302_v12 = vmax.f32 %v1725_v50, %v1727_v47  ;;  %v1716_v35 = vmax.f32 %v1565_v11, 0.0  ;;  %v1188_v62 = vadd.f32 %v1187_v38, %v13951_v18  ;;  %v12240_v11 = vld [vmem:[%s19667_s3 + $0x24c] sm:$0xf0]  ;;  %v1718_v50 = vmax.f32 %v19890_v32, 0.0 }
 0x2c3   :  { %1477 = vmatmul.bf16.gmra.mxu0 %v19872_v0  ;;  %v9304_v38 = vor.u32 %v12240_v11, %v9303_v42  ;;  %v1729_v0 = vmax.f32 %v19887_v39, 0.0  ;;  %v19892_v11 = vld [vmem:[#allocation51_spill] sm:$0xff] }
 0x2c4   :  { %19884 = vst [vmem:[#allocation12_spill] sm:$0xff] %v14302_v12  ;;  %v14307_v58 = vmax.f32 %v1714_v30, %v1716_v35  ;;  %9199 = vmatmul.msk.bf16.gmra.mxu2 %vm519_vm1, %v19869_v49  ;;  %v19889_v49 = vld [vmem:[#allocation42_spill] sm:$0xff]  ;;  %v19902_v12 = vld [vmem:[#allocation52_spill] sm:$0xff] }
 0x2c5   :  { %v1316_v37 = vpop.f32.mrf.mxu3  ;;  %2531 = vmatpush.bf16.msra.mxu1 %v9304_v38 }
 0x2c6   :  { %19886 = vst [vmem:[#allocation13_spill] sm:$0xff] %v14307_v58  ;;  %v1317_v47 = vadd.f32 %v1316_v37, %v1188_v62 }
 0x2c7   :  { %v1567_v17 = vpop.f32.mrf.mxu2 }
 0x2c8   :  { %v1731_v45 = vmax.f32 %v1317_v47, 0.0  ;;  %v1568_v55 = vadd.f32 %v1567_v17, %v1439_v23  ;;  %v1440_v41 = vpop.f32.mrf.mxu0  ;;  %v19893_v47 = vld [vmem:[#allocation53_spill] sm:$0xff] }
 0x2c9   :  { %v1190_v30 = vpop.f32.mrf.mxu1  ;;  %v1441_v23 = vadd.f32 %v1440_v41, %v13991_v27  ;;  %v1733_v38 = vmax.f32 %v19893_v47, 0.0 }
 0x2ca   :  { %v14319_v34 = vmax.f32 %v1729_v0, %v1731_v45  ;;  %9177 = vmatmul.msk.bf16.gmra.mxu3 %vm519_vm1, %v19889_v49  ;;  %v1720_v2 = vmax.f32 %v1568_v55, 0.0  ;;  %v1191_v35 = vadd.f32 %v1190_v30, %v13951_v18  ;;  %v19894_v55 = vld [vmem:[#allocation46_spill] sm:$0xff] }
 0x2cb   :  { %v1722_v32 = vmax.f32 %v19894_v55, 0.0 }
 0x2cc   :  { %19888 = vst [vmem:[#allocation21_spill] sm:$0xff] %v14319_v34  ;;  %v14325_v62 = vmax.f32 %v1718_v50, %v1720_v2  ;;  %1229 = vmatmul.bf16.gmra.mxu1 %v19892_v11  ;;  %v1730_v50 = vmax.f32 %v19902_v12, 0.0  ;;  %v9287_v12 = vld [vmem:[%s19667_s3 + $0x220] sm:$0xf] }
 0x2cd   :  { %v1319_v37 = vpop.f32.mrf.mxu3 }
 0x2ce   :  { %19891 = vst [vmem:[#allocation23_spill] sm:$0xff] %v14325_v62  ;;  %v1320_v42 = vadd.f32 %v1319_v37, %v1191_v35 }
 0x2cf   :  { %v1569_v0 = vpop.f32.mrf.mxu2 }
 0x2d0   :  { %v1735_v39 = vmax.f32 %v1320_v42, 0.0  ;;  %v1570_v45 = vadd.f32 %v1569_v0, %v1441_v23  ;;  %v1443_v17 = vpop.f32.mrf.mxu0  ;;  %v19896_v23 = vld [vmem:[#allocation56_spill] sm:$0xff] }
 0x2d1   :  { %v1192_v30 = vpop.f32.mrf.mxu1  ;;  %v1444_v35 = vadd.f32 %v1443_v17, %v13991_v27  ;;  %v1737_v47 = vmax.f32 %v19896_v23, 0.0 }
 0x2d2   :  { %v14330_v34 = vmax.f32 %v1733_v38, %v1735_v39  ;;  %v1724_v58 = vmax.f32 %v1570_v45, 0.0  ;;  %v1193_v2 = vadd.f32 %v1192_v30, %v13951_v18  ;;  %v19897_v30 = vld [vmem:[#allocation48_spill] sm:$0xff] }
 0x2d3   :  { %1482 = vmatmul.bf16.gmra.mxu0 %v19882_v59  ;;  %v19898_v59 = vld [vmem:[#allocation49_spill] sm:$0xff] }
 0x2d4   :  { %v14337_v41 = vmax.f32 %v1722_v32, %v1724_v58  ;;  %9200 = vmatmul.msk.bf16.gmra.mxu2 %vm519_vm1, %v19879_v51  ;;  %v1726_v58 = vmax.f32 %v19898_v59, 0.0 }
 0x2d5   :  { %v1321_v37 = vpop.f32.mrf.mxu3 }
 0x2d6   :  { %19895 = vst [vmem:[#allocation16_spill] sm:$0xff] %v14337_v41  ;;  %v1322_v42 = vadd.f32 %v1321_v37, %v1193_v2 }
 0x2d7   :  { %v1572_v39 = vpop.f32.mrf.mxu2 }
 0x2d8   :  { %v1739_v38 = vmax.f32 %v1322_v42, 0.0  ;;  %v1573_v0 = vadd.f32 %v1572_v39, %v1444_v35  ;;  %v1445_v45 = vpop.f32.mrf.mxu0  ;;  %v19900_v35 = vld [vmem:[#allocation57_spill] sm:$0xff] }
 0x2d9   :  { %v1195_v17 = vpop.f32.mrf.mxu1  ;;  %v1446_v23 = vadd.f32 %v1445_v45, %v13991_v27 }
 0x2da   :  { %v14343_v55 = vmax.f32 %v1737_v47, %v1739_v38  ;;  %9178 = vmatmul.msk.bf16.gmra.mxu3 %vm519_vm1, %v19897_v30  ;;  %v1728_v32 = vmax.f32 %v1573_v0, 0.0  ;;  %v1196_v51 = vadd.f32 %v1195_v17, %v13951_v18  ;;  %v19901_v47 = vld [vmem:[#allocation59_spill] sm:$0xff] }
 0x2db   :  { %v1741_v38 = vmax.f32 %v19901_v47, 0.0 }
 0x2dc   :  { %v14351_v2 = vmax.f32 %v1726_v58, %v1728_v32  ;;  %1234 = vmatmul.bf16.gmra.mxu1 %v19900_v35 }
 0x2dd   :  { %v1324_v37 = vpop.f32.mrf.mxu3 }
 0x2de   :  { %19899 = vst [vmem:[#allocation26_spill] sm:$0xff] %v14351_v2  ;;  %v1325_v42 = vadd.f32 %v1324_v37, %v1196_v51 }
 0x2df   :  { %v1574_v41 = vpop.f32.mrf.mxu2 }
 0x2e0   :  { %v1743_v39 = vmax.f32 %v1325_v42, 0.0  ;;  %v1575_v59 = vadd.f32 %v1574_v41, %v1446_v23  ;;  %v1448_v0 = vpop.f32.mrf.mxu0  ;;  %v12236_v41 = vld [vmem:[%s19667_s3 + $0x22c] sm:$0xf0] }
 0x2e1   :  { %v1197_v17 = vpop.f32.mrf.mxu1  ;;  %v1449_v51 = vadd.f32 %v1448_v0, %v13991_v27  ;;  %v12268_v42 = vld [vmem:[%s19667_s3 + $0x32c] sm:$0xf0] }
 0x2e2   :  { %v14356_v62 = vmax.f32 %v1741_v38, %v1743_v39  ;;  %v1732_v6 = vmax.f32 %v1575_v59, 0.0  ;;  %v1198_v32 = vadd.f32 %v1197_v17, %v13951_v18  ;;  %v9271_v17 = vld [vmem:[%s19667_s3 + $0x200] sm:$0xf] }
 0x2e3   :  { %1487 = vmatmul.bf16.gmra.mxu0 %v19892_v11  ;;  %v9415_v11 = vld [vmem:[%s19667_s3 + $0x320] sm:$0xf] }
 0x2e4   :  { %v14363_v45 = vmax.f32 %v1730_v50, %v1732_v6  ;;  %9201 = vmatmul.msk.bf16.gmra.mxu2 %vm519_vm1, %v19889_v49  ;;  %v9288_v50 = vor.u32 %v12236_v41, %v9287_v12  ;;  %v9416_v23 = vor.u32 %v12268_v42, %v9415_v11  ;;  %v19904_v49 = vld [vmem:[#allocation62_spill] sm:$0xff]  ;;  %v12264_v11 = vld [vmem:[%s19667_s3 + $0x30c] sm:$0xf0] }
 0x2e5   :  { %v1326_v37 = vpop.f32.mrf.mxu3  ;;  %v1745_v47 = vmax.f32 %v19904_v49, 0.0  ;;  %v19905_v41 = vld [vmem:[#allocation54_spill] sm:$0xff] }
 0x2e6   :  { %19903 = vst [vmem:[#allocation18_spill] sm:$0xff] %v14363_v45  ;;  %v1327_v6 = vadd.f32 %v1326_v37, %v1198_v32  ;;  %2532 = vmatpush.bf16.msra.mxu1 %v9288_v50  ;;  %2581 = vmatpush.bf16.msra.mxu3 %v9416_v23  ;;  %v12232_v32 = vld [vmem:[%s19667_s3 + $0x20c] sm:$0xf0]  ;;  %v9399_v37 = vld [vmem:[%s19667_s3 + $0x300] sm:$0xf] }
 0x2e7   :  { %v1577_v39 = vpop.f32.mrf.mxu2  ;;  %v9400_v49 = vor.u32 %v12264_v11, %v9399_v37 }
 0x2e8   :  { %v1747_v38 = vmax.f32 %v1327_v6, 0.0  ;;  %v1578_v59 = vadd.f32 %v1577_v39, %v1449_v51  ;;  %v1450_v0 = vpop.f32.mrf.mxu0  ;;  %v9272_v51 = vor.u32 %v12232_v32, %v9271_v17  ;;  %v19906_v6 = vld [vmem:[#allocation55_spill] sm:$0xff]  ;;  %v12266_v17 = vld [vmem:[%s19667_s3 + $0x324] sm:$0xf]  ;;  %v9417_v32 = vld [vmem:[%s19667_s3 + $0x330] sm:$0xf0] }
 0x2e9   :  { %v1734_v50 = vmax.f32 %v19906_v6, 0.0  ;;  %v1200_v23 = vpop.f32.mrf.mxu1  ;;  %v9420_v37 = vor.u32 %v12266_v17, %v9417_v32  ;;  %v1451_v6 = vadd.f32 %v1450_v0, %v13991_v27 }
 0x2ea   :  { %v14390_v12 = vmax.f32 %v1745_v47, %v1747_v38  ;;  %9179 = vmatmul.msk.bf16.gmra.mxu3 %vm519_vm1, %v19905_v41  ;;  %v1736_v42 = vmax.f32 %v1578_v59, 0.0  ;;  %v1201_v58 = vadd.f32 %v1200_v23, %v13951_v18  ;;  %2533 = vmatpush.bf16.msra.mxu1 %v9272_v51  ;;  %v1749_v51 = vmax.f32 %v13745_v25, 0.0  ;;  %v9289_v25 = vld [vmem:[%s19667_s3 + $0x230] sm:$0xf0] }
 0x2eb   :  { %2582 = vmatpush.bf16.msra.mxu3 %v9400_v49  ;;  %2679 = vmatpush.bf16.msra.mxu2 %v9420_v37  ;;  %v19907_v23 = vmax.f32 %v13965_v9, %v14330_v34 }
 0x2ec   :  { %v1878_v47 = vmax.f32 %v1734_v50, %v1736_v42  ;;  %1239 = vmatmul.bf16.gmra.mxu1 %v13739_v63 }
 0x2ed   :  { %v1329_v38 = vpop.f32.mrf.mxu3 }
 0x2ee   :  { %v1330_v59 = vadd.f32 %v1329_v38, %v1201_v58  ;;  %v1926_v11 = vmax.f32 %v14015_v26, %v1878_v47  ;;  %v19908_v58 = vld [vmem:[#allocation58_spill] sm:$0xff] }
 0x2ef   :  { %v1579_v42 = vpop.f32.mrf.mxu2  ;;  %v1738_v38 = vmax.f32 %v19908_v58, 0.0  ;;  %v12234_v26 = vld [vmem:[%s19667_s3 + $0x224] sm:$0xf] }
 0x2f0   :  { %v1751_v50 = vmax.f32 %v1330_v59, 0.0  ;;  %v1973_v39 = vpack.c.bf16 %v1926_v11, %v19907_v23  ;;  %v1580_v45 = vadd.f32 %v1579_v42, %v1451_v6  ;;  %v1453_v2 = vpop.f32.mrf.mxu0  ;;  %v9292_v0 = vor.u32 %v12234_v26, %v9289_v25  ;;  %v19909_v6 = vld [vmem:[#allocation65_spill] sm:$0xff] }
 0x2f1   :  { %v1202_v32 = vpop.f32.mrf.mxu1  ;;  %v19910_v23 = vmax.f32 %v13978_v3, %v14343_v55 }
 0x2f2   :  { %v14414_v49 = vmax.f32 %v1749_v51, %v1751_v50  ;;  %v1740_v17 = vmax.f32 %v1580_v45, 0.0  ;;  %v1203_v34 = vadd.f32 %v1202_v32, %v13951_v18  ;;  %v1454_v45 = vadd.f32 %v1453_v2, %v13991_v27  ;;  %2630 = vmatpush.bf16.msra.mxu0 %v9292_v0 }
 0x2f3   :  { %1492 = vmatmul.bf16.gmra.mxu0 %v19900_v35  ;;  %v1753_v51 = vmax.f32 %v19909_v6, 0.0  ;;  %v2920_v32 = vunpack.c.l.b16 %v1973_v39  ;;  %v2921_v25 = vunpack.c.h.b16 %v1973_v39 }
 0x2f4   :  { %v1933_v9 = vmax.f32 %v14032_v40, %v14414_v49  ;;  %v1880_v47 = vmax.f32 %v1738_v38, %v1740_v17  ;;  %9202 = vmatmul.msk.bf16.gmra.mxu2 %vm519_vm1, %v19897_v30  ;;  %v19911_v17 = vld [vmem:[#allocation61_spill] sm:$0xff]  ;;  %v19912_v30 = vld [vmem:[#allocation60_spill] sm:$0xff] }
 0x2f5   :  { %v1331_v59 = vpop.f32.mrf.mxu3  ;;  %v1742_v2 = vmax.f32 %v19911_v17, 0.0 }
 0x2f6   :  { %v1332_v37 = vadd.f32 %v1331_v59, %v1203_v34  ;;  %v1928_v11 = vmax.f32 %v14037_v48, %v1880_v47 }
 0x2f7   :  { %v1582_v42 = vpop.f32.mrf.mxu2 }
 0x2f8   :  { %v1755_v50 = vmax.f32 %v1332_v37, 0.0  ;;  %v1974_v35 = vpack.c.bf16 %v1928_v11, %v19910_v23  ;;  %v1583_v58 = vadd.f32 %v1582_v42, %v1454_v45  ;;  %v1455_v38 = vpop.f32.mrf.mxu0  ;;  %v12230_v42 = vld [vmem:[%s19667_s3 + $0x204] sm:$0xf]  ;;  %v9273_v23 = vld [vmem:[%s19667_s3 + $0x210] sm:$0xf0] }
 0x2f9   :  { %v1205_v47 = vpop.f32.mrf.mxu1 }
 0x2fa   :  { %v14436_v26 = vmax.f32 %v1753_v51, %v1755_v50  ;;  %9180 = vmatmul.msk.bf16.gmra.mxu3 %vm519_vm1, %v19912_v30  ;;  %v2922_v48 = vunpack.c.l.b16 %v1974_v35  ;;  %v2923_v34 = vunpack.c.h.b16 %v1974_v35  ;;  %v1744_v0 = vmax.f32 %v1583_v58, 0.0  ;;  %v19913_v51 = vld [vmem:[#allocation66_spill] sm:$0xff]  ;;  %v19914_v58 = vld [vmem:[#allocation68_spill] sm:$0xff] }
 0x2fb   :  { %v1206_v3 = vadd.f32 %v1205_v47, %v13951_v18  ;;  %v1456_v50 = vadd.f32 %v1455_v38, %v13991_v27  ;;  %v12262_v35 = vld [vmem:[%s19667_s3 + $0x304] sm:$0xf]  ;;  %v1757_v17 = vmax.f32 %v19914_v58, 0.0  ;;  %v19915_v38 = vmax.f32 %v13993_v31, %v14356_v62 }
 0x2fc   :  { %v1935_v59 = vmax.f32 %v14049_v29, %v14436_v26  ;;  %v1882_v55 = vmax.f32 %v1742_v2, %v1744_v0  ;;  %v14443_v37 = vpack.c.b16 %v2922_v48, %v2920_v32  ;;  %v14445_v11 = vpack.c.b16 %v2923_v34, %v2921_v25  ;;  %1244 = vmatmul.bf16.gmra.mxu1 %v19913_v51 }
 0x2fd   :  { %v1334_v45 = vpop.f32.mrf.mxu3  ;;  %v9276_v25 = vor.u32 %v12230_v42, %v9273_v23 }
 0x2fe   :  { %v1335_v6 = vadd.f32 %v1334_v45, %v1206_v3  ;;  %v1930_v39 = vmax.f32 %v14055_v21, %v1882_v55  ;;  %v9401_v21 = vld [vmem:[%s19667_s3 + $0x310] sm:$0xf0]  ;;  %v19916_v55 = vld [vmem:[#allocation63_spill] sm:$0xff] }
 0x2ff   :  { %v1584_v32 = vpop.f32.mrf.mxu2  ;;  %v9404_v47 = vor.u32 %v12262_v35, %v9401_v21  ;;  %2631 = vmatpush.bf16.msra.mxu0 %v9276_v25  ;;  %v1746_v45 = vmax.f32 %v19916_v55, 0.0  ;;  %v19917_v25 = vmax.f32 %v14003_v14, %v14390_v12 }
 0x300   :  { %v1759_v2 = vmax.f32 %v1335_v6, 0.0  ;;  %v1975_v48 = vpack.c.bf16 %v1930_v39, %v19915_v38  ;;  %v1585_v34 = vadd.f32 %v1584_v32, %v1456_v50  ;;  %v1458_v0 = vpop.f32.mrf.mxu0 }
 0x301   :  { %v1207_v6 = vpop.f32.mrf.mxu1  ;;  %2680 = vmatpush.bf16.msra.mxu2 %v9404_v47  ;;  %v1459_v62 = vadd.f32 %v1458_v0, %v13991_v27 }
 0x302   :  { %v14466_v3 = vmax.f32 %v1757_v17, %v1759_v2  ;;  %v1748_v58 = vmax.f32 %v1585_v34, 0.0  ;;  %v1208_v23 = vadd.f32 %v1207_v6, %v13951_v18  ;;  %v1761_v17 = vmax.f32 %v13780_v1, 0.0  ;;  %v19918_v34 = vld [vmem:[#allocation64_spill] sm:$0xff] }
 0x303   :  { %1497 = vmatmul.bf16.gmra.mxu0 %v13739_v63  ;;  %v1750_v47 = vmax.f32 %v19918_v34, 0.0  ;;  %v2142_v0 = vunpack.c.l.b16 %v1975_v48  ;;  %v19919_v34 = vld [vmem:[#allocation67_spill] sm:$0xff] }
 0x304   :  { %v1937_v42 = vmax.f32 %v14060_v43, %v14466_v3  ;;  %v1884_v31 = vmax.f32 %v1746_v45, %v1748_v58  ;;  %9203 = vmatmul.msk.bf16.gmra.mxu2 %vm519_vm1, %v19905_v41  ;;  %v2143_v45 = vunpack.c.h.b16 %v1975_v48 }
 0x305   :  { %v1336_v39 = vpop.f32.mrf.mxu3 }
 0x306   :  { %v1337_v50 = vadd.f32 %v1336_v39, %v1208_v23  ;;  %v1932_v35 = vmax.f32 %v14065_v52, %v1884_v31 }
 0x307   :  { %v1587_v32 = vpop.f32.mrf.mxu2 }
 0x308   :  { %v1763_v2 = vmax.f32 %v1337_v50, 0.0  ;;  %v1976_v21 = vpack.c.bf16 %v1932_v35, %v19917_v25  ;;  %v1588_v38 = vadd.f32 %v1587_v32, %v1459_v62  ;;  %v1460_v63 = vpop.f32.mrf.mxu0  ;;  %v1765_v35 = vmax.f32 %v13787_v53, 0.0 }
 0x309   :  { %v1210_v52 = vpop.f32.mrf.mxu1  ;;  %v1461_v48 = vadd.f32 %v1460_v63, %v13991_v27 }
 0x30a   :  { %v14482_v55 = vmax.f32 %v1761_v17, %v1763_v2  ;;  %v2144_v41 = vunpack.c.l.b16 %v1976_v21  ;;  %v2145_v58 = vunpack.c.h.b16 %v1976_v21  ;;  %v1752_v6 = vmax.f32 %v1588_v38, 0.0 }
 0x30b   :  { %v1211_v23 = vadd.f32 %v1210_v52, %v13951_v18 }
 0x30c   :  { %v1939_v1 = vmax.f32 %v14071_v36, %v14482_v55  ;;  %v14487_v31 = vpack.c.b16 %v2144_v41, %v2142_v0  ;;  %v14489_v14 = vpack.c.b16 %v2145_v58, %v2143_v45  ;;  %v1886_v12 = vmax.f32 %v1750_v47, %v1752_v6 }
 0x30d   :  { %v1339_v62 = vpop.f32.mrf.mxu3  ;;  %v1769_v58 = vmax.f32 %v13798_v46, 0.0 }
 0x30e   :  { %v1340_v39 = vadd.f32 %v1339_v62, %v1211_v23  ;;  %v1934_v50 = vmax.f32 %v14077_v22, %v1886_v12  ;;  %2534 = vmatmul.bf16.vlgmr.msra.gmra.mxu1 %v14487_v31  ;;  %2583 = vmatmul.bf16.vlgmr.msra.gmra.mxu3 %v14489_v14  ;;  %v1754_v22 = vmax.f32 %v19919_v34, 0.0  ;;  %v19920_v62 = vld [vmem:[#allocation69_spill] sm:$0xff] }
 0x30f   :  { %v1589_v2 = vpop.f32.mrf.mxu2 }
 0x310   :  { %v1767_v17 = vmax.f32 %v1340_v39, 0.0  ;;  %v1977_v32 = vpack.c.bf16 %v1934_v50, %v1933_v9  ;;  %v1590_v25 = vadd.f32 %v1589_v2, %v1461_v48  ;;  %v1463_v21 = vpop.f32.mrf.mxu0  ;;  %v1758_v39 = vmax.f32 %v19920_v62, 0.0 }
 0x311   :  { %v1212_v63 = vpop.f32.mrf.mxu1  ;;  %v1464_v41 = vadd.f32 %v1463_v21, %v13991_v27 }
 0x312   :  { %v14499_v38 = vmax.f32 %v1765_v35, %v1767_v17  ;;  %v1756_v47 = vmax.f32 %v1590_v25, 0.0  ;;  %v1213_v45 = vadd.f32 %v1212_v63, %v13951_v18  ;;  %v2146_v50 = vunpack.c.l.b16 %v1977_v32 }
 0x313   :  { %1502 = vmatmul.bf16.gmra.mxu0 %v19913_v51  ;;  %v2147_v35 = vunpack.c.h.b16 %v1977_v32 }
 0x314   :  { %v1941_v0 = vmax.f32 %v14082_v56, %v14499_v38  ;;  %v1888_v53 = vmax.f32 %v1754_v22, %v1756_v47  ;;  %9204 = vmatmul.msk.bf16.gmra.mxu2 %vm519_vm1, %v19912_v30  ;;  %v1773_v47 = vmax.f32 %v13805_v8, 0.0 }
 0x315   :  { %v1341_v40 = vpop.f32.mrf.mxu3 }
 0x316   :  { %v1342_v49 = vadd.f32 %v1341_v40, %v1213_v45  ;;  %v1936_v9 = vmax.f32 %v14087_v15, %v1888_v53 }
 0x317   :  { %v1592_v52 = vpop.f32.mrf.mxu2 }
 0x318   :  { %v1771_v6 = vmax.f32 %v1342_v49, 0.0  ;;  %v1978_v23 = vpack.c.bf16 %v1936_v9, %v1935_v59  ;;  %v1593_v12 = vadd.f32 %v1592_v52, %v1464_v41  ;;  %v1465_v51 = vpop.f32.mrf.mxu0  ;;  %v19921_v9 = vld [vmem:[#allocation70_spill] sm:$0xff] }
 0x319   :  { %v1215_v15 = vpop.f32.mrf.mxu1  ;;  %v1466_v32 = vadd.f32 %v1465_v51, %v13991_v27  ;;  %v1777_v51 = vmax.f32 %v13816_v44, 0.0 }
 0x31a   :  { %v14515_v48 = vmax.f32 %v1769_v58, %v1771_v6  ;;  %v2148_v30 = vunpack.c.l.b16 %v1978_v23  ;;  %v2149_v17 = vunpack.c.h.b16 %v1978_v23  ;;  %v1760_v2 = vmax.f32 %v1593_v12, 0.0 }
 0x31b   :  { %v1216_v25 = vadd.f32 %v1215_v15, %v13951_v18 }
 0x31c   :  { %v1943_v46 = vmax.f32 %v14093_v60, %v14515_v48  ;;  %v14520_v21 = vpack.c.b16 %v2148_v30, %v2146_v50  ;;  %v14522_v29 = vpack.c.b16 %v2149_v17, %v2147_v35  ;;  %v1890_v26 = vmax.f32 %v1758_v39, %v1760_v2  ;;  %v19922_v17 = vld [vmem:[#allocation71_spill] sm:$0xff] }
 0x31d   :  { %v1344_v59 = vpop.f32.mrf.mxu3  ;;  %v1766_v2 = vmax.f32 %v19922_v17, 0.0 }
 0x31e   :  { %v1345_v34 = vadd.f32 %v1344_v59, %v1216_v25  ;;  %v1938_v22 = vmax.f32 %v14105_v16, %v1890_v26  ;;  %2539 = vmatmul.bf16.gmra.mxu1 %v14520_v21  ;;  %2588 = vmatmul.bf16.gmra.mxu3 %v14522_v29  ;;  %v1762_v16 = vmax.f32 %v19921_v9, 0.0 }
 0x31f   :  { %v1594_v45 = vpop.f32.mrf.mxu2 }
 0x320   :  { %v1775_v63 = vmax.f32 %v1345_v34, 0.0  ;;  %v1979_v53 = vpack.c.bf16 %v1938_v22, %v1937_v42  ;;  %v1595_v41 = vadd.f32 %v1594_v45, %v1466_v32  ;;  %v1468_v40 = vpop.f32.mrf.mxu0 }
 0x321   :  { %v1217_v6 = vpop.f32.mrf.mxu1  ;;  %v1469_v12 = vadd.f32 %v1468_v40, %v13991_v27 }
 0x322   :  { %v14532_v49 = vmax.f32 %v1773_v47, %v1775_v63  ;;  %v1764_v58 = vmax.f32 %v1595_v41, 0.0  ;;  %v1218_v23 = vadd.f32 %v1217_v6, %v13951_v18  ;;  %v2150_v15 = vunpack.c.l.b16 %v1979_v53 }
 0x323   :  { %2632 = vmatmul.bf16.vlgmr.msra.gmra.mxu0 %v14487_v31  ;;  %v2151_v26 = vunpack.c.h.b16 %v1979_v53  ;;  %v1781_v41 = vmax.f32 %v13823_v28, 0.0 }
 0x324   :  { %v1945_v52 = vmax.f32 %v14122_v54, %v14532_v49  ;;  %v1892_v8 = vmax.f32 %v1762_v16, %v1764_v58  ;;  %2681 = vmatmul.bf16.vlgmr.msra.gmra.mxu2 %v14489_v14 }
 0x325   :  { %v1346_v43 = vpop.f32.mrf.mxu3 }
 0x326   :  { %v1347_v3 = vadd.f32 %v1346_v43, %v1218_v23  ;;  %v1940_v42 = vmax.f32 %v14127_v61, %v1892_v8  ;;  %v19923_v8 = vld [vmem:[#allocation72_spill] sm:$0xff] }
 0x327   :  { %v1597_v39 = vpop.f32.mrf.mxu2 }
 0x328   :  { %v1779_v62 = vmax.f32 %v1347_v3, 0.0  ;;  %v1980_v50 = vpack.c.bf16 %v1940_v42, %v1939_v1  ;;  %v1598_v35 = vadd.f32 %v1597_v39, %v1469_v12  ;;  %v1470_v30 = vpop.f32.mrf.mxu0 }
 0x329   :  { %v1220_v61 = vpop.f32.mrf.mxu1  ;;  %v1471_v53 = vadd.f32 %v1470_v30, %v13991_v27 }
 0x32a   :  { %v14547_v25 = vmax.f32 %v1777_v51, %v1779_v62  ;;  %v2152_v59 = vunpack.c.l.b16 %v1980_v50  ;;  %v2153_v34 = vunpack.c.h.b16 %v1980_v50  ;;  %v1768_v22 = vmax.f32 %v1598_v35, 0.0 }
 0x32b   :  { %v1221_v32 = vadd.f32 %v1220_v61, %v13951_v18  ;;  %v1785_v62 = vmax.f32 %v13840_v7, 0.0 }
 0x32c   :  { %v1947_v44 = vmax.f32 %v14139_v10, %v14547_v25  ;;  %v14552_v47 = vpack.c.b16 %v2152_v59, %v2150_v15  ;;  %v14554_v36 = vpack.c.b16 %v2153_v34, %v2151_v26  ;;  %v1894_v55 = vmax.f32 %v1766_v2, %v1768_v22  ;;  %v19924_v2 = vld [vmem:[#allocation73_spill] sm:$0xff] }
 0x32d   :  { %v1349_v1 = vpop.f32.mrf.mxu3  ;;  %v1774_v15 = vmax.f32 %v19924_v2, 0.0 }
 0x32e   :  { %v1350_v63 = vadd.f32 %v1349_v1, %v1221_v32  ;;  %v1942_v45 = vmax.f32 %v14145_v20, %v1894_v55  ;;  %2544 = vmatmul.bf16.gmra.mxu1 %v14552_v47  ;;  %2593 = vmatmul.bf16.gmra.mxu3 %v14554_v36  ;;  %v1770_v20 = vmax.f32 %v19923_v8, 0.0 }
 0x32f   :  { %v1599_v9 = vpop.f32.mrf.mxu2 }
 0x330   :  { %v1783_v40 = vmax.f32 %v1350_v63, 0.0  ;;  %v1981_v16 = vpack.c.bf16 %v1942_v45, %v1941_v0  ;;  %v1600_v58 = vadd.f32 %v1599_v9, %v1471_v53  ;;  %v1473_v6 = vpop.f32.mrf.mxu0 }
 0x331   :  { %v1222_v43 = vpop.f32.mrf.mxu1  ;;  %v1474_v51 = vadd.f32 %v1473_v6, %v13991_v27 }
 0x332   :  { %v14564_v23 = vmax.f32 %v1781_v41, %v1783_v40  ;;  %v1772_v12 = vmax.f32 %v1600_v58, 0.0  ;;  %v1223_v42 = vadd.f32 %v1222_v43, %v13951_v18  ;;  %v2154_v26 = vunpack.c.l.b16 %v1981_v16 }
 0x333   :  { %2637 = vmatmul.bf16.gmra.mxu0 %v14520_v21  ;;  %v2155_v34 = vunpack.c.h.b16 %v1981_v16  ;;  %v1789_v41 = vmax.f32 %v13859_v57, 0.0 }
 0x334   :  { %v1949_v3 = vmax.f32 %v14150_v24, %v14564_v23  ;;  %v1896_v28 = vmax.f32 %v1770_v20, %v1772_v12  ;;  %2686 = vmatmul.bf16.gmra.mxu2 %v14522_v29  ;;  %v19925_v20 = vld [vmem:[#allocation74_spill] sm:$0xff]  ;;  %v12289_v23 = vld [vmem:[%s19667_s3 + $0x3d4] sm:$0xf0] }
 0x335   :  { %v1351_v56 = vpop.f32.mrf.mxu3 }
 0x336   :  { %v1352_v38 = vadd.f32 %v1351_v56, %v1223_v42  ;;  %v1944_v0 = vmax.f32 %v14155_v33, %v1896_v28  ;;  %v19926_v56 = vld [vmem:[#allocation78_spill] sm:$0xff] }
 0x337   :  { %v1602_v50 = vpop.f32.mrf.mxu2 }
 0x338   :  { %v1787_v39 = vmax.f32 %v1352_v38, 0.0  ;;  %v1982_v35 = vpack.c.bf16 %v1944_v0, %v1943_v46  ;;  %v1603_v30 = vadd.f32 %v1602_v50, %v1474_v51  ;;  %v1475_v17 = vpop.f32.mrf.mxu0  ;;  %v1793_v38 = vmax.f32 %v19926_v56, 0.0  ;;  %v9375_v56 = vld [vmem:[%s19667_s3 + $0x2c8] sm:$0xf] }
 0x339   :  { %v1225_v33 = vpop.f32.mrf.mxu1  ;;  %v1476_v53 = vadd.f32 %v1475_v17, %v13991_v27 }
 0x33a   :  { %v14579_v59 = vmax.f32 %v1785_v62, %v1787_v39  ;;  %v2156_v22 = vunpack.c.l.b16 %v1982_v35  ;;  %v2157_v61 = vunpack.c.h.b16 %v1982_v35  ;;  %v1776_v32 = vmax.f32 %v1603_v30, 0.0  ;;  %v19927_v30 = vld [vmem:[#allocation75_spill] sm:$0xff] }
 0x33b   :  { %v1226_v55 = vadd.f32 %v1225_v33, %v13951_v18  ;;  %v1782_v17 = vmax.f32 %v19927_v30, 0.0  ;;  %v12259_v30 = vld [vmem:[%s19667_s3 + $0x2ec] sm:$0xf] }
 0x33c   :  { %v1951_v7 = vmax.f32 %v14161_v13, %v14579_v59  ;;  %v14584_v1 = vpack.c.b16 %v2156_v22, %v2154_v26  ;;  %v14586_v60 = vpack.c.b16 %v2157_v61, %v2155_v34  ;;  %v1898_v48 = vmax.f32 %v1774_v15, %v1776_v32  ;;  %v19928_v32 = vld [vmem:[#allocation2_spill] sm:$0xff]  ;;  %v12281_v59 = vld [vmem:[%s19667_s3 + $0x394] sm:$0xf0] }
 0x33d   :  { %v1354_v46 = vpop.f32.mrf.mxu3 }
 0x33e   :  { %v1355_v63 = vadd.f32 %v1354_v46, %v1226_v55  ;;  %v1946_v45 = vmax.f32 %v14167_v4, %v1898_v48  ;;  %2549 = vmatmul.bf16.gmra.mxu1 %v14584_v1  ;;  %2598 = vmatmul.bf16.gmra.mxu3 %v14586_v60  ;;  %v1778_v4 = vmax.f32 %v19925_v20, 0.0  ;;  %v12291_v46 = vld [vmem:[%s19667_s3 + $0x3ec] sm:$0xf] }
 0x33f   :  { %v1604_v9 = vpop.f32.mrf.mxu2 }
 0x340   :  { %v1791_v40 = vmax.f32 %v1355_v63, 0.0  ;;  %v1983_v16 = vpack.c.bf16 %v1946_v45, %v1945_v52  ;;  %v1605_v58 = vadd.f32 %v1604_v9, %v1476_v53  ;;  %v1478_v6 = vpop.f32.mrf.mxu0  ;;  %v9521_v63 = vld [vmem:[%s19667_s3 + $0x3f8] sm:$0xf0]  ;;  %v9519_v45 = vld [vmem:[%s19667_s3 + $0x3e8] sm:$0xf] }
 0x341   :  { %v1227_v43 = vpop.f32.mrf.mxu1  ;;  %v1479_v51 = vadd.f32 %v1478_v6, %v13991_v27  ;;  %v12293_v9 = vld [vmem:[%s19667_s3 + $0x3f4] sm:$0xf0]  ;;  %v19929_v6 = vld [vmem:[#allocation8_spill] sm:$0xff] }
 0x342   :  { %v14596_v8 = vmax.f32 %v1789_v41, %v1791_v40  ;;  %v1780_v12 = vmax.f32 %v1605_v58, 0.0  ;;  %v1228_v28 = vadd.f32 %v1227_v43, %v13951_v18  ;;  %v2158_v2 = vunpack.c.l.b16 %v1983_v16  ;;  %v12261_v58 = vld [vmem:[%s19667_s3 + $0x2f4] sm:$0xf0]  ;;  %v19930_v43 = vld [vmem:[#allocation80_spill] sm:$0xff] }
 0x343   :  { %2642 = vmatmul.bf16.gmra.mxu0 %v14552_v47  ;;  %v2159_v26 = vunpack.c.h.b16 %v1983_v16  ;;  %v9524_v40 = vor.u32 %v12291_v46, %v9521_v63  ;;  %v9391_v16 = vld [vmem:[%s19667_s3 + $0x2e8] sm:$0xf]  ;;  %v12253_v46 = vld [vmem:[%s19667_s3 + $0x2b4] sm:$0xf0] }
 0x344   :  { %v1953_v42 = vmax.f32 %v14172_v19, %v14596_v8  ;;  %v1900_v57 = vmax.f32 %v1778_v4, %v1780_v12  ;;  %2691 = vmatmul.bf16.gmra.mxu2 %v14554_v36  ;;  %v9520_v4 = vor.u32 %v12293_v9, %v9519_v45  ;;  %v9392_v12 = vor.u32 %v12261_v58, %v9391_v16  ;;  %v9487_v63 = vld [vmem:[%s19667_s3 + $0x3a8] sm:$0xf]  ;;  %v19934_v58 = vld [vmem:[#allocation77_spill] sm:$0xff] }
 0x345   :  { %v1356_v54 = vpop.f32.mrf.mxu3  ;;  %2869 = vmatpush.bf16.msrb.mxu2 %v9524_v40  ;;  %v19933_v40 = vld [vmem:[#allocation4_spill] sm:$0xff]  ;;  %v12273_v8 = vld [vmem:[%s19667_s3 + $0x354] sm:$0xf0] }
 0x346   :  { %v1357_v49 = vadd.f32 %v1356_v54, %v1228_v28  ;;  %v1948_v52 = vmax.f32 %v14177_v5, %v1900_v57  ;;  %v1797_v28 = vmax.f32 %v19930_v43, 0.0  ;;  %2771 = vmatpush.bf16.msrb.mxu3 %v9520_v4  ;;  %2722 = vmatpush.bf16.msrb.mxu1 %v9392_v12 }
 0x347   :  { %v1607_v62 = vpop.f32.mrf.mxu2 }
 0x348   :  { %v1795_v0 = vmax.f32 %v1357_v49, 0.0  ;;  %v1984_v39 = vpack.c.bf16 %v1948_v52, %v1947_v44  ;;  %v1608_v50 = vadd.f32 %v1607_v62, %v1479_v51  ;;  %v1480_v35 = vpop.f32.mrf.mxu0 }
 0x349   :  { %v1230_v5 = vpop.f32.mrf.mxu1  ;;  %v1481_v53 = vadd.f32 %v1480_v35, %v13991_v27 }
 0x34a   :  { %v14611_v15 = vmax.f32 %v1793_v38, %v1795_v0  ;;  %v2160_v34 = vunpack.c.l.b16 %v1984_v39  ;;  %v2161_v22 = vunpack.c.h.b16 %v1984_v39  ;;  %v1784_v61 = vmax.f32 %v1608_v50, 0.0  ;;  %v12257_v38 = vld [vmem:[%s19667_s3 + $0x2d4] sm:$0xf0]  ;;  %v9503_v0 = vld [vmem:[%s19667_s3 + $0x3c8] sm:$0xf] }
 0x34b   :  { %v1231_v55 = vadd.f32 %v1230_v5, %v13951_v18  ;;  %v9376_v24 = vor.u32 %v12257_v38, %v9375_v56  ;;  %v9471_v56 = vld [vmem:[%s19667_s3 + $0x388] sm:$0xf] }
 0x34c   :  { %v1955_v33 = vmax.f32 %v19928_v32, %v14611_v15  ;;  %v14616_v48 = vpack.c.b16 %v2160_v34, %v2158_v2  ;;  %v14618_v10 = vpack.c.b16 %v2161_v22, %v2159_v26  ;;  %v1902_v25 = vmax.f32 %v1782_v17, %v1784_v61  ;;  %v9393_v17 = vld [vmem:[%s19667_s3 + $0x2f8] sm:$0xf0]  ;;  %v19932_v26 = vld [vmem:[#allocation3_spill] sm:$0xff] }
 0x34d   :  { %v1359_v44 = vpop.f32.mrf.mxu3  ;;  %v9504_v2 = vor.u32 %v12289_v23, %v9503_v0  ;;  %v9396_v61 = vor.u32 %v12259_v30, %v9393_v17  ;;  %2723 = vmatpush.bf16.msrb.mxu1 %v9376_v24 }
 0x34e   :  { %v1360_v41 = vadd.f32 %v1359_v44, %v1231_v55  ;;  %v1950_v20 = vmax.f32 %v19929_v6, %v1902_v25  ;;  %2554 = vmatmul.bf16.gmra.mxu1 %v14616_v48  ;;  %2603 = vmatmul.bf16.gmra.mxu3 %v14618_v10  ;;  %v9359_v44 = vld [vmem:[%s19667_s3 + $0x2a8] sm:$0xf]  ;;  %v1790_v6 = vmax.f32 %v19934_v58, 0.0 }
 0x34f   :  { %v1609_v51 = vpop.f32.mrf.mxu2  ;;  %2820 = vmatpush.bf16.msrb.mxu0 %v9396_v61  ;;  %2772 = vmatpush.bf16.msrb.mxu3 %v9504_v2 }
 0x350   :  { %v1799_v57 = vmax.f32 %v1360_v41, 0.0  ;;  %v1985_v54 = vpack.c.bf16 %v1950_v20, %v1949_v3  ;;  %v1610_v49 = vadd.f32 %v1609_v51, %v1481_v53  ;;  %v1483_v52 = vpop.f32.mrf.mxu0  ;;  %v19931_v3 = vld [vmem:[#allocation76_spill] sm:$0xff]  ;;  %v9360_v53 = vor.u32 %v12253_v46, %v9359_v44  ;;  %v12285_v41 = vld [vmem:[%s19667_s3 + $0x3b4] sm:$0xf0]  ;;  %v19935_v20 = vld [vmem:[#allocation82_spill] sm:$0xff] }
 0x351   :  { %v1786_v39 = vmax.f32 %v19931_v3, 0.0  ;;  %v1232_v35 = vpop.f32.mrf.mxu1  ;;  %v1484_v55 = vadd.f32 %v1483_v52, %v13991_v27  ;;  %v9488_v16 = vor.u32 %v12285_v41, %v9487_v63  ;;  %v1801_v4 = vmax.f32 %v19935_v20, 0.0  ;;  %v12249_v52 = vld [vmem:[%s19667_s3 + $0x294] sm:$0xf0] }
 0x352   :  { %v14655_v62 = vmax.f32 %v1797_v28, %v1799_v57  ;;  %v1788_v50 = vmax.f32 %v1610_v49, 0.0  ;;  %v1233_v22 = vadd.f32 %v1232_v35, %v13951_v18  ;;  %2724 = vmatpush.bf16.msrb.mxu1 %v9360_v53  ;;  %v9343_v49 = vld [vmem:[%s19667_s3 + $0x288] sm:$0xf]  ;;  %v2162_v38 = vunpack.c.l.b16 %v1985_v54  ;;  %v19936_v35 = vld [vmem:[#allocation9_spill] sm:$0xff] }
 0x353   :  { %2647 = vmatmul.bf16.gmra.mxu0 %v14584_v1  ;;  %v2163_v0 = vunpack.c.h.b16 %v1985_v54  ;;  %2773 = vmatpush.bf16.msrb.mxu3 %v9488_v16  ;;  %v9344_v13 = vor.u32 %v12249_v52, %v9343_v49  ;;  %v9455_v53 = vld [vmem:[%s19667_s3 + $0x368] sm:$0xf]  ;;  %v12277_v41 = vld [vmem:[%s19667_s3 + $0x374] sm:$0xf0] }
 0x354   :  { %v1957_v34 = vmax.f32 %v19932_v26, %v14655_v62  ;;  %v1904_v5 = vmax.f32 %v1786_v39, %v1788_v50  ;;  %2696 = vmatmul.bf16.gmra.mxu2 %v14586_v60  ;;  %v9472_v50 = vor.u32 %v12281_v59, %v9471_v56  ;;  %v9456_v58 = vor.u32 %v12277_v41, %v9455_v53  ;;  %v12241_v49 = vld [vmem:[%s19667_s3 + $0x254] sm:$0xf0]  ;;  %v9439_v52 = vld [vmem:[%s19667_s3 + $0x348] sm:$0xf]  ;;  %v12255_v59 = vld [vmem:[%s19667_s3 + $0x2cc] sm:$0xf] }
 0x355   :  { %v1361_v25 = vpop.f32.mrf.mxu3  ;;  %v19941_v53 = vld [vmem:[#allocation14_spill] sm:$0xff]  ;;  %v9329_v62 = vld [vmem:[%s19667_s3 + $0x278] sm:$0xf0]  ;;  %v19948_v26 = vld [vmem:[#allocation15_spill] sm:$0xff] }
 0x356   :  { %v1362_v45 = vadd.f32 %v1361_v25, %v1233_v22  ;;  %v1952_v9 = vmax.f32 %v19933_v40, %v1904_v5  ;;  %v12287_v5 = vld [vmem:[%s19667_s3 + $0x3cc] sm:$0xf]  ;;  %2725 = vmatpush.bf16.msrb.mxu1 %v9344_v13  ;;  %v9327_v25 = vld [vmem:[%s19667_s3 + $0x268] sm:$0xf] }
 0x357   :  { %v1612_v43 = vpop.f32.mrf.mxu2  ;;  %2774 = vmatpush.bf16.msrb.mxu3 %v9472_v50  ;;  %v19937_v40 = vld [vmem:[#allocation11_spill] sm:$0xff] }
 0x358   :  { %v1803_v12 = vmax.f32 %v1362_v45, 0.0  ;;  %v1986_v28 = vpack.c.bf16 %v1952_v9, %v1951_v7  ;;  %v1613_v57 = vadd.f32 %v1612_v43, %v1484_v55  ;;  %v1485_v51 = vpop.f32.mrf.mxu0  ;;  %v9505_v55 = vld [vmem:[%s19667_s3 + $0x3d8] sm:$0xf0]  ;;  %v12245_v45 = vld [vmem:[%s19667_s3 + $0x274] sm:$0xf0] }
 0x359   :  { %v1235_v39 = vpop.f32.mrf.mxu1  ;;  %v1486_v44 = vadd.f32 %v1485_v51, %v13991_v27  ;;  %v9508_v63 = vor.u32 %v12287_v5, %v9505_v55  ;;  %v9328_v16 = vor.u32 %v12245_v45, %v9327_v25  ;;  %v9311_v51 = vld [vmem:[%s19667_s3 + $0x248] sm:$0xf]  ;;  %v12237_v25 = vld [vmem:[%s19667_s3 + $0x234] sm:$0xf0] }
 0x35a   :  { %v14700_v24 = vmax.f32 %v1801_v4, %v1803_v12  ;;  %v2164_v7 = vunpack.c.l.b16 %v1986_v28  ;;  %v2165_v23 = vunpack.c.h.b16 %v1986_v28  ;;  %v1792_v3 = vmax.f32 %v1613_v57, 0.0  ;;  %v9295_v55 = vld [vmem:[%s19667_s3 + $0x228] sm:$0xf]  ;;  %v12269_v45 = vld [vmem:[%s19667_s3 + $0x334] sm:$0xf0] }
 0x35b   :  { %v1236_v17 = vadd.f32 %v1235_v39, %v13951_v18  ;;  %2870 = vmatpush.bf16.msrb.mxu2 %v9508_v63  ;;  %2726 = vmatpush.bf16.msrb.mxu1 %v9328_v16  ;;  %v9312_v19 = vor.u32 %v12241_v49, %v9311_v51  ;;  %v9296_v63 = vor.u32 %v12237_v25, %v9295_v55  ;;  %v9279_v51 = vld [vmem:[%s19667_s3 + $0x208] sm:$0xf]  ;;  %v12233_v49 = vld [vmem:[%s19667_s3 + $0x214] sm:$0xf0] }
 0x35c   :  { %v1959_v30 = vmax.f32 %v19936_v35, %v14700_v24  ;;  %v14708_v2 = vpack.c.b16 %v2164_v7, %v2162_v38  ;;  %v14710_v54 = vpack.c.b16 %v2165_v23, %v2163_v0  ;;  %v1906_v22 = vmax.f32 %v1790_v6, %v1792_v3  ;;  %v19938_v6 = vld [vmem:[#allocation84_spill] sm:$0xff]  ;;  %2775 = vmatpush.bf16.msrb.mxu3 %v9456_v58  ;;  %v9377_v7 = vld [vmem:[%s19667_s3 + $0x2d8] sm:$0xf0]  ;;  %v19943_v58 = vld [vmem:[#allocation86_spill] sm:$0xff] }
 0x35d   :  { %v1364_v61 = vpop.f32.mrf.mxu3  ;;  %v1805_v20 = vmax.f32 %v19938_v6, 0.0  ;;  %v9440_v23 = vor.u32 %v12273_v8, %v9439_v52  ;;  %v19940_v3 = vld [vmem:[#allocation5_spill] sm:$0xff]  ;;  %v1809_v6 = vmax.f32 %v19943_v58, 0.0  ;;  %v9407_v52 = vld [vmem:[%s19667_s3 + $0x308] sm:$0xf] }
 0x35e   :  { %v1365_v46 = vadd.f32 %v1364_v61, %v1236_v17  ;;  %v1954_v9 = vmax.f32 %v19937_v40, %v1906_v22  ;;  %2559 = vmatmul.bf16.gmra.mxu1 %v14708_v2  ;;  %2608 = vmatmul.bf16.gmra.mxu3 %v14710_v54  ;;  %v9380_v17 = vor.u32 %v12255_v59, %v9377_v7  ;;  %v12265_v8 = vld [vmem:[%s19667_s3 + $0x314] sm:$0xf0]  ;;  %v12283_v59 = vld [vmem:[%s19667_s3 + $0x3ac] sm:$0xf]  ;;  %v9297_v35 = vld [vmem:[%s19667_s3 + $0x238] sm:$0xf0] }
 0x35f   :  { %v1614_v12 = vpop.f32.mrf.mxu2  ;;  %2727 = vmatpush.bf16.msrb.mxu1 %v9312_v19  ;;  %v9408_v7 = vor.u32 %v12265_v8, %v9407_v52  ;;  %v12279_v58 = vld [vmem:[%s19667_s3 + $0x38c] sm:$0xf] }
 0x360   :  { %v1807_v4 = vmax.f32 %v1365_v46, 0.0  ;;  %v14738_v43 = vpack.c.bf16 %v1954_v9, %v1953_v42  ;;  %v1615_v28 = vadd.f32 %v1614_v12, %v1486_v44  ;;  %v1488_v57 = vpop.f32.mrf.mxu0  ;;  %v19939_v42 = vld [vmem:[#allocation79_spill] sm:$0xff]  ;;  %2821 = vmatpush.bf16.msrb.mxu0 %v9380_v17  ;;  %2776 = vmatpush.bf16.msrb.mxu3 %v9440_v23  ;;  %v19942_v9 = vld [vmem:[#allocation81_spill] sm:$0xff]  ;;  %v19944_v23 = vld [vmem:[#allocation6_spill] sm:$0xff] }
 0x361   :  { %v1794_v38 = vmax.f32 %v19939_v42, 0.0  ;;  %v1237_v13 = vpop.f32.mrf.mxu1  ;;  %v1489_v61 = vadd.f32 %v1488_v57, %v13991_v27  ;;  %v9423_v44 = vld [vmem:[%s19667_s3 + $0x328] sm:$0xf]  ;;  %v1798_v16 = vmax.f32 %v19942_v9, 0.0  ;;  %v12247_v9 = vld [vmem:[%s19667_s3 + $0x28c] sm:$0xf] }
 0x362   :  { %v14749_v56 = vmax.f32 %v1805_v20, %v1807_v4  ;;  %v1796_v0 = vmax.f32 %v1615_v28, 0.0  ;;  %v1238_v50 = vadd.f32 %v1237_v13, %v13951_v18  ;;  %v9424_v40 = vor.u32 %v12269_v45, %v9423_v44  ;;  %v12235_v24 = vld [vmem:[%s19667_s3 + $0x22c] sm:$0xf] }
 0x363   :  { %2652 = vmatmul.bf16.gmra.mxu0 %v14616_v48  ;;  %2728 = vmatpush.bf16.msrb.mxu1 %v9296_v63  ;;  %v2166_v19 = vunpack.c.l.b16 %v14738_v43  ;;  %v2167_v15 = vunpack.c.h.b16 %v14738_v43  ;;  %v9489_v43 = vld [vmem:[%s19667_s3 + $0x3b8] sm:$0xf0] }
 0x364   :  { %v1961_v39 = vmax.f32 %v19940_v3, %v14749_v56  ;;  %v1908_v22 = vmax.f32 %v1794_v38, %v1796_v0  ;;  %2701 = vmatmul.bf16.gmra.mxu2 %v14618_v10  ;;  %2777 = vmatpush.bf16.msrb.mxu3 %v9424_v40 }
 0x365   :  { %v1366_v5 = vpop.f32.mrf.mxu3 }
 0x366   :  { %v1367_v46 = vadd.f32 %v1366_v5, %v1238_v50  ;;  %v1956_v41 = vmax.f32 %v19941_v53, %v1908_v22  ;;  %v9492_v22 = vor.u32 %v12283_v59, %v9489_v43  ;;  %v9361_v5 = vld [vmem:[%s19667_s3 + $0x2b8] sm:$0xf0]  ;;  %v19945_v53 = vld [vmem:[#allocation7_spill] sm:$0xff] }
 0x367   :  { %v1617_v4 = vpop.f32.mrf.mxu2  ;;  %v12275_v43 = vld [vmem:[%s19667_s3 + $0x36c] sm:$0xf] }
 0x368   :  { %v1811_v20 = vmax.f32 %v1367_v46, 0.0  ;;  %v1988_v12 = vpack.c.bf16 %v1956_v41, %v1955_v33  ;;  %v1618_v28 = vadd.f32 %v1617_v4, %v1489_v61  ;;  %v1490_v57 = vpop.f32.mrf.mxu0  ;;  %v9280_v33 = vor.u32 %v12233_v49, %v9279_v51  ;;  %v12251_v61 = vld [vmem:[%s19667_s3 + $0x2ac] sm:$0xf]  ;;  %2871 = vmatpush.bf16.msrb.mxu2 %v9492_v22  ;;  %2778 = vmatpush.bf16.msrb.mxu3 %v9408_v7  ;;  %v9457_v7 = vld [vmem:[%s19667_s3 + $0x378] sm:$0xf0] }
 0x369   :  { %v1240_v13 = vpop.f32.mrf.mxu1  ;;  %v9364_v63 = vor.u32 %v12251_v61, %v9361_v5  ;;  %v1491_v40 = vadd.f32 %v1490_v57, %v13991_v27  ;;  %v9460_v5 = vor.u32 %v12275_v43, %v9457_v7  ;;  %v9300_v43 = vor.u32 %v12235_v24, %v9297_v35  ;;  %v9425_v7 = vld [vmem:[%s19667_s3 + $0x338] sm:$0xf0] }
 0x36a   :  { %v14796_v32 = vmax.f32 %v1809_v6, %v1811_v20  ;;  %v2168_v42 = vunpack.c.l.b16 %v1988_v12  ;;  %v2169_v38 = vunpack.c.h.b16 %v1988_v12  ;;  %v1800_v0 = vmax.f32 %v1618_v28, 0.0  ;;  %2729 = vmatpush.bf16.msrb.mxu1 %v9280_v33  ;;  %v19946_v6 = vld [vmem:[#allocation88_spill] sm:$0xff]  ;;  %v9473_v28 = vld [vmem:[%s19667_s3 + $0x398] sm:$0xf0]  ;;  %v19947_v33 = vld [vmem:[#allocation83_spill] sm:$0xff] }
 0x36b   :  { %v1241_v17 = vadd.f32 %v1240_v13, %v13951_v18  ;;  %v1813_v20 = vmax.f32 %v19946_v6, 0.0  ;;  %2822 = vmatpush.bf16.msrb.mxu0 %v9364_v63  ;;  %v1802_v8 = vmax.f32 %v19947_v33, 0.0  ;;  %v9441_v6 = vld [vmem:[%s19667_s3 + $0x358] sm:$0xf0] }
 0x36c   :  { %v1963_v50 = vmax.f32 %v19944_v23, %v14796_v32  ;;  %v14816_v55 = vpack.c.b16 %v2168_v42, %v2166_v19  ;;  %v14818_v25 = vpack.c.b16 %v2169_v38, %v2167_v15  ;;  %v1910_v44 = vmax.f32 %v1798_v16, %v1800_v0  ;;  %v9345_v16 = vld [vmem:[%s19667_s3 + $0x298] sm:$0xf0]  ;;  %v12243_v0 = vld [vmem:[%s19667_s3 + $0x26c] sm:$0xf] }
 0x36d   :  { %v1369_v46 = vpop.f32.mrf.mxu3  ;;  %v9348_v52 = vor.u32 %v12247_v9, %v9345_v16  ;;  %v9476_v19 = vor.u32 %v12279_v58, %v9473_v28  ;;  %v9332_v61 = vor.u32 %v12243_v0, %v9329_v62  ;;  %v19965_v23 = vld [vmem:[#allocation23_spill] sm:$0xff] }
 0x36e   :  { %v1370_v45 = vadd.f32 %v1369_v46, %v1241_v17  ;;  %v1958_v41 = vmax.f32 %v19945_v53, %v1910_v44  ;;  %2564 = vmatmul.bf16.gmra.mxu1 %v14816_v55  ;;  %2613 = vmatmul.bf16.gmra.mxu3 %v14818_v25  ;;  %v19949_v46 = vld [vmem:[#allocation17_spill] sm:$0xff] }
 0x36f   :  { %v1619_v12 = vpop.f32.mrf.mxu2  ;;  %2872 = vmatpush.bf16.msrb.mxu2 %v9476_v19  ;;  %2823 = vmatpush.bf16.msrb.mxu0 %v9348_v52  ;;  %v9313_v53 = vld [vmem:[%s19667_s3 + $0x258] sm:$0xf0] }
 0x370   :  { %v1815_v4 = vmax.f32 %v1370_v45, 0.0  ;;  %v1989_v57 = vpack.c.bf16 %v1958_v41, %v1957_v34  ;;  %v1620_v51 = vadd.f32 %v1619_v12, %v1491_v40  ;;  %v1493_v49 = vpop.f32.mrf.mxu0  ;;  %v12239_v45 = vld [vmem:[%s19667_s3 + $0x24c] sm:$0xf]  ;;  %v19950_v40 = vld [vmem:[#allocation90_spill] sm:$0xff] }
 0x371   :  { %v1242_v38 = vpop.f32.mrf.mxu1  ;;  %v1494_v13 = vadd.f32 %v1493_v49, %v13991_v27  ;;  %v12271_v41 = vld [vmem:[%s19667_s3 + $0x34c] sm:$0xf]  ;;  %v1817_v9 = vmax.f32 %v19950_v40, 0.0  ;;  %v9316_v28 = vor.u32 %v12239_v45, %v9313_v53  ;;  %v19951_v49 = vld [vmem:[#allocation85_spill] sm:$0xff] }
 0x372   :  { %v14840_v15 = vmax.f32 %v1813_v20, %v1815_v4  ;;  %v1804_v42 = vmax.f32 %v1620_v51, 0.0  ;;  %v1243_v59 = vadd.f32 %v1242_v38, %v13951_v18  ;;  %v9444_v51 = vor.u32 %v12271_v41, %v9441_v6  ;;  %v12231_v41 = vld [vmem:[%s19667_s3 + $0x20c] sm:$0xf]  ;;  %v9281_v40 = vld [vmem:[%s19667_s3 + $0x218] sm:$0xf0] }
 0x373   :  { %2657 = vmatmul.bf16.gmra.mxu0 %v14708_v2  ;;  %2873 = vmatpush.bf16.msrb.mxu2 %v9460_v5  ;;  %v1806_v52 = vmax.f32 %v19951_v49, 0.0  ;;  %v2170_v19 = vunpack.c.l.b16 %v1989_v57  ;;  %v9284_v49 = vor.u32 %v12231_v41, %v9281_v40 }
 0x374   :  { %v1965_v34 = vmax.f32 %v19948_v26, %v14840_v15  ;;  %v1912_v17 = vmax.f32 %v1802_v8, %v1804_v42  ;;  %2706 = vmatmul.bf16.gmra.mxu2 %v14710_v54  ;;  %2824 = vmatpush.bf16.msrb.mxu0 %v9332_v61  ;;  %v2171_v8 = vunpack.c.h.b16 %v1989_v57  ;;  %v12267_v57 = vld [vmem:[%s19667_s3 + $0x32c] sm:$0xf] }
 0x375   :  { %v1371_v22 = vpop.f32.mrf.mxu3 }
 0x376   :  { %v1372_v44 = vadd.f32 %v1371_v22, %v1243_v59  ;;  %v1960_v63 = vmax.f32 %v19949_v46, %v1912_v17 }
 0x377   :  { %v1622_v58 = vpop.f32.mrf.mxu2  ;;  %2874 = vmatpush.bf16.msrb.mxu2 %v9444_v51 }
 0x378   :  { %v1819_v16 = vmax.f32 %v1372_v44, 0.0  ;;  %v1990_v20 = vpack.c.bf16 %v1960_v63, %v1959_v30  ;;  %v1623_v4 = vadd.f32 %v1622_v58, %v1494_v13  ;;  %v1495_v12 = vpop.f32.mrf.mxu0  ;;  %v19952_v30 = vld [vmem:[#allocation10_spill] sm:$0xff]  ;;  %2825 = vmatpush.bf16.msrb.mxu0 %v9316_v28  ;;  %v9428_v44 = vor.u32 %v12267_v57, %v9425_v7  ;;  %v19955_v63 = vld [vmem:[#allocation20_spill] sm:$0xff] }
 0x379   :  { %v1245_v62 = vpop.f32.mrf.mxu1  ;;  %v1496_v53 = vadd.f32 %v1495_v12, %v13991_v27  ;;  %v19960_v7 = vld [vmem:[#allocation94_spill] sm:$0xff] }
 0x37a   :  { %v14879_v33 = vmax.f32 %v1817_v9, %v1819_v16  ;;  %v2172_v42 = vunpack.c.l.b16 %v1990_v20  ;;  %v2173_v38 = vunpack.c.h.b16 %v1990_v20  ;;  %v1808_v0 = vmax.f32 %v1623_v4, 0.0  ;;  %v12263_v9 = vld [vmem:[%s19667_s3 + $0x30c] sm:$0xf]  ;;  %v19956_v16 = vld [vmem:[#allocation92_spill] sm:$0xff]  ;;  %v9409_v4 = vld [vmem:[%s19667_s3 + $0x318] sm:$0xf0] }
 0x37b   :  { %v1246_v59 = vadd.f32 %v1245_v62, %v13951_v18  ;;  %v1821_v58 = vmax.f32 %v19956_v16, 0.0  ;;  %2875 = vmatpush.bf16.msrb.mxu2 %v9428_v44  ;;  %v19958_v62 = vld [vmem:[#allocation12_spill] sm:$0xff] }
 0x37c   :  { %v1967_v13 = vmax.f32 %v19952_v30, %v14879_v33  ;;  %v14896_v17 = vpack.c.b16 %v2172_v42, %v2170_v19  ;;  %v14898_v22 = vpack.c.b16 %v2173_v38, %v2171_v8  ;;  %v1914_v61 = vmax.f32 %v1806_v52, %v1808_v0  ;;  %2826 = vmatpush.bf16.msrb.mxu0 %v9300_v43  ;;  %v19957_v8 = vld [vmem:[#allocation87_spill] sm:$0xff]  ;;  %v19959_v43 = vld [vmem:[#allocation13_spill] sm:$0xff]  ;;  %v19971_v33 = vld [vmem:[#allocation26_spill] sm:$0xff] }
 0x37d   :  { %v1374_v5 = vpop.f32.mrf.mxu3  ;;  %v9412_v52 = vor.u32 %v12263_v9, %v9409_v4  ;;  %v1810_v42 = vmax.f32 %v19957_v8, 0.0 }
 0x37e   :  { %19953 = vst [vmem:[#allocation19_spill] sm:$0xff] %v14896_v17  ;;  %v1375_v46 = vadd.f32 %v1374_v5, %v1246_v59  ;;  %v1962_v45 = vmax.f32 %v19955_v63, %v1914_v61  ;;  %2569 = vmatmul.bf16.gmra.mxu1 %v14896_v17  ;;  %2618 = vmatmul.bf16.gmra.mxu3 %v14898_v22  ;;  %v1825_v61 = vmax.f32 %v19960_v7, 0.0  ;;  %v19967_v7 = vld [vmem:[#allocation16_spill] sm:$0xff] }
 0x37f   :  { %19954 = vst [vmem:[#allocation27_spill] sm:$0xff] %v14898_v22  ;;  %v1624_v20 = vpop.f32.mrf.mxu2  ;;  %2876 = vmatpush.bf16.msrb.mxu2 %v9412_v52 }
 0x380   :  { %v1823_v6 = vmax.f32 %v1375_v46, 0.0  ;;  %v1991_v12 = vpack.c.bf16 %v1962_v45, %v1961_v39  ;;  %v1625_v28 = vadd.f32 %v1624_v20, %v1496_v53  ;;  %v1498_v51 = vpop.f32.mrf.mxu0  ;;  %2827 = vmatpush.bf16.msrb.mxu0 %v9284_v49  ;;  %v19961_v45 = vld [vmem:[#allocation89_spill] sm:$0xff] }
 0x381   :  { %v1247_v0 = vpop.f32.mrf.mxu1  ;;  %v1499_v3 = vadd.f32 %v1498_v51, %v13991_v27  ;;  %v1814_v53 = vmax.f32 %v19961_v45, 0.0  ;;  %v19962_v20 = vld [vmem:[#allocation21_spill] sm:$0xff] }
 0x382   :  { %v14920_v19 = vmax.f32 %v1821_v58, %v1823_v6  ;;  %v1812_v38 = vmax.f32 %v1625_v28, 0.0  ;;  %v1248_v35 = vadd.f32 %v1247_v0, %v13951_v18  ;;  %v3707_v41 = vunpack.c.l.b16 %v1991_v12 }
 0x383   :  { %2662 = vmatmul.bf16.gmra.mxu0 %v14816_v55  ;;  %v3708_v9 = vunpack.c.h.b16 %v1991_v12 }
 0x384   :  { %v1969_v24 = vmax.f32 %v19958_v62, %v14920_v19  ;;  %v1916_v56 = vmax.f32 %v1810_v42, %v1812_v38  ;;  %2711 = vmatmul.bf16.gmra.mxu2 %v14818_v25 }
 0x385   :  { %v1376_v39 = vpop.f32.mrf.mxu3 }
 0x386   :  { %v1377_v59 = vadd.f32 %v1376_v39, %v1248_v35  ;;  %v1964_v57 = vmax.f32 %v19959_v43, %v1916_v56  ;;  %v19966_v35 = vld [vmem:[#allocation91_spill] sm:$0xff] }
 0x387   :  { %v1627_v44 = vpop.f32.mrf.mxu2  ;;  %v1818_v56 = vmax.f32 %v19966_v35, 0.0  ;;  %v19973_v35 = vld [vmem:[#allocation18_spill] sm:$0xff] }
 0x388   :  { %v1827_v5 = vmax.f32 %v1377_v59, 0.0  ;;  %v1992_v18 = vpack.c.bf16 %v1964_v57, %v1963_v50  ;;  %v1628_v46 = vadd.f32 %v1627_v44, %v1499_v3  ;;  %v1500_v63 = vpop.f32.mrf.mxu0  ;;  %v19968_v44 = vld [vmem:[#allocation93_spill] sm:$0xff] }
 0x389   :  { %v1501_v52 = vadd.f32 %v1500_v63, %v13991_v27 }
 0x38a   :  { %v14935_v40 = vmax.f32 %v1825_v61, %v1827_v5  ;;  %v3709_v16 = vunpack.c.l.b16 %v1992_v18  ;;  %v3710_v58 = vunpack.c.h.b16 %v1992_v18  ;;  %v1816_v6 = vmax.f32 %v1628_v46, 0.0 }
 0x38b   :  { %v2535_v28 = vpop.f32.mrf.mxu1  ;;  %v1822_v18 = vmax.f32 %v19968_v44, 0.0 }
 0x38c   :  { %v1971_v4 = vmax.f32 %v19962_v20, %v14935_v40  ;;  %v14939_v51 = vpack.c.b16 %v3709_v16, %v3707_v41  ;;  %v14941_v49 = vpack.c.b16 %v3710_v58, %v3708_v9  ;;  %v1918_v32 = vmax.f32 %v1814_v53, %v1816_v6 }
 0x38e   :  { %19963 = vst [vmem:[#allocation29_spill] sm:$0xff] %v14939_v51  ;;  %v1966_v50 = vmax.f32 %v19965_v23, %v1918_v32  ;;  %2730 = vmatmul.bf16.vlgmr.msrb.gmra.mxu1 %v14487_v31  ;;  %2779 = vmatmul.bf16.vlgmr.msrb.gmra.mxu3 %v14489_v14 }
 0x38f   :  { %19964 = vst [vmem:[#allocation22_spill] sm:$0xff] %v14941_v49  ;;  %v1629_v12 = vpop.f32.mrf.mxu2 }
 0x390   :  { %v1993_v8 = vpack.c.bf16 %v1966_v50, %v1965_v34  ;;  %v1630_v42 = vadd.f32 %v1629_v12, %v1501_v52  ;;  %v1503_v38 = vpop.f32.mrf.mxu0  ;;  %v19972_v12 = vld [vmem:[#allocation95_spill] sm:$0xff] }
 0x391   :  { %v2584_v0 = vpop.f32.mrf.mxu3  ;;  %v1504_v57 = vadd.f32 %v1503_v38, %v13991_v27 }
 0x392   :  { %v1820_v3 = vmax.f32 %v1630_v42, 0.0  ;;  %v14951_v39 = vadd.f32 %v2584_v0, %v2535_v28  ;;  %v4558_v46 = vunpack.c.l.b16 %v1993_v8  ;;  %v4559_v63 = vunpack.c.h.b16 %v1993_v8 }
 0x393   :  { %v2537_v59 = vpop.f32.mrf.mxu1  ;;  %2667 = vmatmul.bf16.gmra.mxu0 %v14896_v17  ;;  %v1826_v8 = vmax.f32 %v19972_v12, 0.0  ;;  %v9769_v12 = vld [vmem:[%s19667_s3 + $0x1f0] sm:$0xf0] }
 0x394   :  { %v1920_v43 = vmax.f32 %v1818_v56, %v1820_v3  ;;  %2716 = vmatmul.bf16.gmra.mxu2 %v14898_v22 }
 0x396   :  { %v1968_v61 = vmax.f32 %v19967_v7, %v1920_v43 }
 0x397   :  { %v1632_v15 = vpop.f32.mrf.mxu2 }
 0x398   :  { %v1994_v26 = vpack.c.bf16 %v1968_v61, %v1967_v13  ;;  %v1633_v34 = vadd.f32 %v1632_v15, %v1504_v57  ;;  %v1505_v5 = vpop.f32.mrf.mxu0 }
 0x399   :  { %v2586_v45 = vpop.f32.mrf.mxu3  ;;  %v1506_v13 = vadd.f32 %v1505_v5, %v13991_v27 }
 0x39a   :  { %v4560_v53 = vunpack.c.l.b16 %v1994_v26  ;;  %v4561_v41 = vunpack.c.h.b16 %v1994_v26  ;;  %v1824_v40 = vmax.f32 %v1633_v34, 0.0  ;;  %v14961_v9 = vadd.f32 %v2586_v45, %v2537_v59 }
 0x39b   :  { %v2540_v16 = vpop.f32.mrf.mxu1 }
 0x39c   :  { %v14963_v58 = vpack.c.b16 %v4560_v53, %v4558_v46  ;;  %v14965_v6 = vpack.c.b16 %v4561_v41, %v4559_v63  ;;  %v1922_v20 = vmax.f32 %v1822_v18, %v1824_v40 }
 0x39e   :  { %19969 = vst [vmem:[#allocation32_spill] sm:$0xff] %v14963_v58  ;;  %v1970_v30 = vmax.f32 %v19971_v33, %v1922_v20  ;;  %2735 = vmatmul.bf16.gmra.mxu1 %v14520_v21  ;;  %2784 = vmatmul.bf16.gmra.mxu3 %v14522_v29 }
 0x39f   :  { %19970 = vst [vmem:[#allocation24_spill] sm:$0xff] %v14965_v6  ;;  %v1634_v28 = vpop.f32.mrf.mxu2 }
 0x3a0   :  { %v1995_v32 = vpack.c.bf16 %v1970_v30, %v1969_v24  ;;  %v1635_v23 = vadd.f32 %v1634_v28, %v1506_v13  ;;  %v2633_v50 = vpop.f32.mrf.mxu0 }
 0x3a1   :  { %v2589_v52 = vpop.f32.mrf.mxu3 }
 0x3a2   :  { %v1828_v42 = vmax.f32 %v1635_v23, 0.0  ;;  %v14975_v38 = vadd.f32 %v2589_v52, %v2540_v16  ;;  %v5409_v24 = vunpack.c.l.b16 %v1995_v32  ;;  %v5410_v57 = vunpack.c.h.b16 %v1995_v32  ;;  %v12226_v52 = vld [vmem:[%s19667_s3 + $0x1e4] sm:$0xf] }
 0x3a3   :  { %v2542_v0 = vpop.f32.mrf.mxu1  ;;  %2828 = vmatmul.bf16.vlgmr.msrb.gmra.mxu0 %v14487_v31 }
 0x3a4   :  { %v1924_v27 = vmax.f32 %v1826_v8, %v1828_v42  ;;  %2877 = vmatmul.bf16.vlgmr.msrb.gmra.mxu2 %v14489_v14  ;;  %v9772_v8 = vor.u32 %v12226_v52, %v9769_v12  ;;  %v12222_v12 = vld [vmem:[%s19667_s3 + $0x1c4] sm:$0xf] }
 0x3a6   :  { %v1972_v56 = vmax.f32 %v19973_v35, %v1924_v27  ;;  %3395 = vmatpush.bf16.msra.mxu2 %v9772_v8  ;;  %v9753_v8 = vld [vmem:[%s19667_s3 + $0x1d0] sm:$0xf0] }
 0x3a7   :  { %v2682_v3 = vpop.f32.mrf.mxu2 }
 0x3a8   :  { %v1996_v59 = vpack.c.bf16 %v1972_v56, %v1971_v4  ;;  %v14980_v19 = vadd.f32 %v2682_v3, %v2633_v50  ;;  %v2635_v62 = vpop.f32.mrf.mxu0  ;;  %v9767_v3 = vld [vmem:[%s19667_s3 + $0x1e0] sm:$0xf] }
 0x3a9   :  { %v2591_v43 = vpop.f32.mrf.mxu3 }
 0x3aa   :  { %v14982_v7 = vadd.f32 %v2591_v43, %v2542_v0  ;;  %v5411_v61 = vunpack.c.l.b16 %v1996_v59  ;;  %v5412_v15 = vunpack.c.h.b16 %v1996_v59  ;;  %v12228_v59 = vld [vmem:[%s19667_s3 + $0x1ec] sm:$0xf0] }
 0x3ab   :  { %v2545_v26 = vpop.f32.mrf.mxu1  ;;  %v9768_v43 = vor.u32 %v12228_v59, %v9767_v3  ;;  %v9735_v3 = vld [vmem:[%s19667_s3 + $0x1a0] sm:$0xf]  ;;  %v12220_v59 = vld [vmem:[%s19667_s3 + $0x1ac] sm:$0xf0] }
 0x3ac   :  { %v14984_v34 = vpack.c.b16 %v5411_v61, %v5409_v24  ;;  %v14986_v5 = vpack.c.b16 %v5412_v15, %v5410_v57  ;;  %v9641_v57 = vld [vmem:[%s19667_s3 + $0xf0] sm:$0xf0]  ;;  %v9639_v15 = vld [vmem:[%s19667_s3 + $0xe0] sm:$0xf] }
 0x3ad   :  { %3297 = vmatpush.bf16.msra.mxu3 %v9768_v43 }
 0x3ae   :  { %19974 = vst [vmem:[#allocation25_spill] sm:$0xff] %v14984_v34  ;;  %2740 = vmatmul.bf16.gmra.mxu1 %v14552_v47  ;;  %2789 = vmatmul.bf16.gmra.mxu3 %v14554_v36 }
 0x3af   :  { %19975 = vst [vmem:[#allocation33_spill] sm:$0xff] %v14986_v5  ;;  %v2684_v4 = vpop.f32.mrf.mxu2 }
 0x3b0   :  { %v14990_v44 = vadd.f32 %v2684_v4, %v2635_v62  ;;  %v2638_v18 = vpop.f32.mrf.mxu0  ;;  %v12194_v62 = vld [vmem:[%s19667_s3 + $0xe4] sm:$0xf] }
 0x3b1   :  { %v2594_v46 = vpop.f32.mrf.mxu3  ;;  %v9644_v61 = vor.u32 %v12194_v62, %v9641_v57 }
 0x3b2   :  { %v14992_v63 = vadd.f32 %v2594_v46, %v2545_v26  ;;  %v12196_v26 = vld [vmem:[%s19667_s3 + $0xec] sm:$0xf0] }
 0x3b3   :  { %v2547_v45 = vpop.f32.mrf.mxu1  ;;  %2833 = vmatmul.bf16.gmra.mxu0 %v14520_v21  ;;  %v9640_v4 = vor.u32 %v12196_v26, %v9639_v15  ;;  %v9591_v15 = vld [vmem:[%s19667_s3 + $0x80] sm:$0xf]  ;;  %v12184_v26 = vld [vmem:[%s19667_s3 + $0x8c] sm:$0xf0] }
 0x3b4   :  { %2882 = vmatmul.bf16.gmra.mxu2 %v14522_v29  ;;  %3346 = vmatpush.bf16.msra.mxu0 %v9644_v61 }
 0x3b5   :  { %3248 = vmatpush.bf16.msra.mxu1 %v9640_v4  ;;  %v9719_v4 = vld [vmem:[%s19667_s3 + $0x180] sm:$0xf] }
 0x3b7   :  { %v2687_v53 = vpop.f32.mrf.mxu2 }
 0x3b8   :  { %v14996_v41 = vadd.f32 %v2687_v53, %v2638_v18  ;;  %v2640_v40 = vpop.f32.mrf.mxu0  ;;  %v9623_v53 = vld [vmem:[%s19667_s3 + $0xc0] sm:$0xf] }
 0x3b9   :  { %v2596_v16 = vpop.f32.mrf.mxu3 }
 0x3ba   :  { %v14998_v20 = vadd.f32 %v2596_v16, %v2547_v45  ;;  %v9751_v16 = vld [vmem:[%s19667_s3 + $0x1c0] sm:$0xf] }
 0x3bb   :  { %v2550_v33 = vpop.f32.mrf.mxu1 }
 0x3be   :  { %2745 = vmatmul.bf16.gmra.mxu1 %v14584_v1  ;;  %2794 = vmatmul.bf16.gmra.mxu3 %v14586_v60 }
 0x3bf   :  { %v2689_v30 = vpop.f32.mrf.mxu2 }
 0x3c0   :  { %v15002_v13 = vadd.f32 %v2689_v30, %v2640_v40  ;;  %v2643_v28 = vpop.f32.mrf.mxu0  ;;  %v12192_v40 = vld [vmem:[%s19667_s3 + $0xcc] sm:$0xf0] }
 0x3c1   :  { %v2599_v32 = vpop.f32.mrf.mxu3  ;;  %v9624_v30 = vor.u32 %v12192_v40, %v9623_v53  ;;  %v9592_v53 = vor.u32 %v12184_v26, %v9591_v15  ;;  %v9687_v15 = vld [vmem:[%s19667_s3 + $0x140] sm:$0xf] }
 0x3c2   :  { %v15004_v23 = vadd.f32 %v2599_v32, %v2550_v33 }
 0x3c3   :  { %v2552_v50 = vpop.f32.mrf.mxu1  ;;  %2838 = vmatmul.bf16.gmra.mxu0 %v14552_v47  ;;  %3249 = vmatpush.bf16.msra.mxu1 %v9624_v30 }
 0x3c4   :  { %2887 = vmatmul.bf16.gmra.mxu2 %v14554_v36 }
 0x3c7   :  { %v2692_v42 = vpop.f32.mrf.mxu2 }
 0x3c8   :  { %v15014_v0 = vadd.f32 %v2692_v42, %v2643_v28  ;;  %v2645_v27 = vpop.f32.mrf.mxu0  ;;  %v12224_v28 = vld [vmem:[%s19667_s3 + $0x1cc] sm:$0xf0]  ;;  %v9607_v42 = vld [vmem:[%s19667_s3 + $0xa0] sm:$0xf] }
 0x3c9   :  { %v2601_v35 = vpop.f32.mrf.mxu3 }
 0x3ca   :  { %v15016_v56 = vadd.f32 %v2601_v35, %v2552_v50  ;;  %v9752_v50 = vor.u32 %v12224_v28, %v9751_v16  ;;  %v12188_v35 = vld [vmem:[%s19667_s3 + $0xac] sm:$0xf0]  ;;  %v12190_v16 = vld [vmem:[%s19667_s3 + $0xc4] sm:$0xf] }
 0x3cb   :  { %v2555_v24 = vpop.f32.mrf.mxu1  ;;  %v9608_v62 = vor.u32 %v12188_v35, %v9607_v42 }
 0x3cc   :  { %3298 = vmatpush.bf16.msra.mxu3 %v9752_v50 }
 0x3cd   :  { %3250 = vmatpush.bf16.msra.mxu1 %v9608_v62 }
 0x3ce   :  { %2750 = vmatmul.bf16.gmra.mxu1 %v14616_v48  ;;  %2799 = vmatmul.bf16.gmra.mxu3 %v14618_v10 }
 0x3cf   :  { %v2694_v18 = vpop.f32.mrf.mxu2 }
 0x3d0   :  { %v15038_v46 = vadd.f32 %v2694_v18, %v2645_v27  ;;  %v2648_v45 = vpop.f32.mrf.mxu0  ;;  %v9756_v27 = vor.u32 %v12222_v12, %v9753_v8  ;;  %v9575_v12 = vld [vmem:[%s19667_s3 + $0x60] sm:$0xf] }
 0x3d1   :  { %v2604_v33 = vpop.f32.mrf.mxu3  ;;  %3251 = vmatpush.bf16.msra.mxu1 %v9592_v53  ;;  %v9703_v8 = vld [vmem:[%s19667_s3 + $0x160] sm:$0xf] }
 0x3d2   :  { %v15052_v32 = vadd.f32 %v2604_v33, %v2555_v24  ;;  %v9736_v24 = vor.u32 %v12220_v59, %v9735_v3  ;;  %3396 = vmatpush.bf16.msra.mxu2 %v9756_v27  ;;  %v9625_v33 = vld [vmem:[%s19667_s3 + $0xd0] sm:$0xf0]  ;;  %v12212_v27 = vld [vmem:[%s19667_s3 + $0x16c] sm:$0xf0] }
 0x3d3   :  { %v2557_v52 = vpop.f32.mrf.mxu1  ;;  %2843 = vmatmul.bf16.gmra.mxu0 %v14584_v1  ;;  %v9628_v50 = vor.u32 %v12190_v16, %v9625_v33  ;;  %v9704_v35 = vor.u32 %v12212_v27, %v9703_v8  ;;  %v12218_v16 = vld [vmem:[%s19667_s3 + $0x1a4] sm:$0xf]  ;;  %v9737_v33 = vld [vmem:[%s19667_s3 + $0x1b0] sm:$0xf0] }
 0x3d4   :  { %2892 = vmatmul.bf16.gmra.mxu2 %v14586_v60  ;;  %3299 = vmatpush.bf16.msra.mxu3 %v9736_v24  ;;  %v9559_v24 = vld [vmem:[%s19667_s3 + $0x40] sm:$0xf] }
 0x3d5   :  { %3347 = vmatpush.bf16.msra.mxu0 %v9628_v50  ;;  %v12172_v50 = vld [vmem:[%s19667_s3 + $0x2c] sm:$0xf0] }
 0x3d7   :  { %v2697_v43 = vpop.f32.mrf.mxu2 }
 0x3d8   :  { %v15074_v57 = vadd.f32 %v2697_v43, %v2648_v45  ;;  %v2650_v61 = vpop.f32.mrf.mxu0  ;;  %v12216_v45 = vld [vmem:[%s19667_s3 + $0x18c] sm:$0xf0] }
 0x3d9   :  { %v2606_v18 = vpop.f32.mrf.mxu3  ;;  %v9720_v30 = vor.u32 %v12216_v45, %v9719_v4  ;;  %v12176_v43 = vld [vmem:[%s19667_s3 + $0x4c] sm:$0xf0] }
 0x3da   :  { %v15088_v40 = vadd.f32 %v2606_v18, %v2557_v52  ;;  %v12180_v52 = vld [vmem:[%s19667_s3 + $0x6c] sm:$0xf0]  ;;  %v9560_v4 = vor.u32 %v12176_v43, %v9559_v24  ;;  %v9527_v24 = vld [vmem:[%s19667_s3] sm:$0xf] }
 0x3db   :  { %v2560_v28 = vpop.f32.mrf.mxu1  ;;  %3300 = vmatpush.bf16.msra.mxu3 %v9720_v30  ;;  %v9576_v42 = vor.u32 %v12180_v52, %v9575_v12  ;;  %v9543_v30 = vld [vmem:[%s19667_s3 + $0x20] sm:$0xf]  ;;  %v12204_v52 = vld [vmem:[%s19667_s3 + $0x12c] sm:$0xf0] }
 0x3dc   :  { %v9671_v12 = vld [vmem:[%s19667_s3 + $0x120] sm:$0xf]  ;;  %v9544_v8 = vor.u32 %v12172_v50, %v9543_v30  ;;  %v12168_v43 = vld [vmem:[%s19667_s3 + $0xc] sm:$0xf0]  ;;  %v9593_v50 = vld [vmem:[%s19667_s3 + $0x90] sm:$0xf0] }
 0x3dd   :  { %3252 = vmatpush.bf16.msra.mxu1 %v9576_v42  ;;  %v9672_v42 = vor.u32 %v12204_v52, %v9671_v12  ;;  %v12214_v12 = vld [vmem:[%s19667_s3 + $0x184] sm:$0xf] }
 0x3de   :  { %2755 = vmatmul.bf16.gmra.mxu1 %v14708_v2  ;;  %2804 = vmatmul.bf16.gmra.mxu3 %v14710_v54 }
 0x3df   :  { %v2699_v3 = vpop.f32.mrf.mxu2  ;;  %3301 = vmatpush.bf16.msra.mxu3 %v9704_v35 }
 0x3e0   :  { %v15110_v59 = vadd.f32 %v2699_v3, %v2650_v61  ;;  %v2653_v62 = vpop.f32.mrf.mxu0  ;;  %v12208_v61 = vld [vmem:[%s19667_s3 + $0x14c] sm:$0xf0] }
 0x3e1   :  { %v2609_v26 = vpop.f32.mrf.mxu3  ;;  %v9688_v53 = vor.u32 %v12208_v61, %v9687_v15  ;;  %3253 = vmatpush.bf16.msra.mxu1 %v9560_v4  ;;  %v9655_v15 = vld [vmem:[%s19667_s3 + $0x100] sm:$0xf]  ;;  %v9528_v4 = vor.u32 %v12168_v43, %v9527_v24 }
 0x3e2   :  { %v15124_v18 = vadd.f32 %v2609_v26, %v2560_v28  ;;  %v9740_v28 = vor.u32 %v12218_v16, %v9737_v33  ;;  %v9609_v16 = vld [vmem:[%s19667_s3 + $0xb0] sm:$0xf0] }
 0x3e3   :  { %v2562_v45 = vpop.f32.mrf.mxu1  ;;  %2848 = vmatmul.bf16.gmra.mxu0 %v14616_v48  ;;  %3302 = vmatpush.bf16.msra.mxu3 %v9688_v53  ;;  %v12186_v53 = vld [vmem:[%s19667_s3 + $0xa4] sm:$0xf] }
 0x3e4   :  { %2897 = vmatmul.bf16.gmra.mxu2 %v14618_v10 }
 0x3e5   :  { %3397 = vmatpush.bf16.msra.mxu2 %v9740_v28  ;;  %3254 = vmatpush.bf16.msra.mxu1 %v9544_v8  ;;  %v9612_v28 = vor.u32 %v12186_v53, %v9609_v16 }
 0x3e7   :  { %v2702_v27 = vpop.f32.mrf.mxu2  ;;  %3303 = vmatpush.bf16.msra.mxu3 %v9672_v42  ;;  %3348 = vmatpush.bf16.msra.mxu0 %v9612_v28  ;;  %v9721_v42 = vld [vmem:[%s19667_s3 + $0x190] sm:$0xf0]  ;;  %v12174_v28 = vld [vmem:[%s19667_s3 + $0x44] sm:$0xf] }
 0x3e8   :  { %v15146_v35 = vadd.f32 %v2702_v27, %v2653_v62  ;;  %v2655_v3 = vpop.f32.mrf.mxu0  ;;  %v12200_v62 = vld [vmem:[%s19667_s3 + $0x10c] sm:$0xf0]  ;;  %v9724_v43 = vor.u32 %v12214_v12, %v9721_v42 }
 0x3e9   :  { %v2611_v26 = vpop.f32.mrf.mxu3  ;;  %v9656_v33 = vor.u32 %v12200_v62, %v9655_v15  ;;  %3255 = vmatpush.bf16.msra.mxu1 %v9528_v4  ;;  %v12178_v4 = vld [vmem:[%s19667_s3 + $0x64] sm:$0xf]  ;;  %v9577_v62 = vld [vmem:[%s19667_s3 + $0x70] sm:$0xf0] }
 0x3ea   :  { %v15160_v61 = vadd.f32 %v2611_v26, %v2562_v45  ;;  %v12182_v45 = vld [vmem:[%s19667_s3 + $0x84] sm:$0xf]  ;;  %3398 = vmatpush.bf16.msra.mxu2 %v9724_v43  ;;  %v9580_v16 = vor.u32 %v12178_v4, %v9577_v62 }
 0x3eb   :  { %v2565_v30 = vpop.f32.mrf.mxu1  ;;  %3304 = vmatpush.bf16.msra.mxu3 %v9656_v33  ;;  %v9596_v8 = vor.u32 %v12182_v45, %v9593_v50  ;;  %v9705_v33 = vld [vmem:[%s19667_s3 + $0x170] sm:$0xf0]  ;;  %v12206_v50 = vld [vmem:[%s19667_s3 + $0x144] sm:$0xf] }
 0x3ec   :  { %v9561_v45 = vld [vmem:[%s19667_s3 + $0x50] sm:$0xf0] }
 0x3ed   :  { %3349 = vmatpush.bf16.msra.mxu0 %v9596_v8  ;;  %v9689_v8 = vld [vmem:[%s19667_s3 + $0x150] sm:$0xf0] }
 0x3ee   :  { %2760 = vmatmul.bf16.gmra.mxu1 %v14816_v55  ;;  %2809 = vmatmul.bf16.gmra.mxu3 %v14818_v25 }
 0x3ef   :  { %v2704_v52 = vpop.f32.mrf.mxu2 }
 0x3f0   :  { %v15182_v27 = vadd.f32 %v2704_v52, %v2655_v3  ;;  %v2658_v24 = vpop.f32.mrf.mxu0  ;;  %v12210_v3 = vld [vmem:[%s19667_s3 + $0x164] sm:$0xf]  ;;  %v9564_v52 = vor.u32 %v12174_v28, %v9561_v45 }
 0x3f1   :  { %v2614_v15 = vpop.f32.mrf.mxu3  ;;  %3350 = vmatpush.bf16.msra.mxu0 %v9580_v16  ;;  %v9545_v16 = vld [vmem:[%s19667_s3 + $0x30] sm:$0xf0]  ;;  %v12166_v45 = vld [vmem:[%s19667_s3 + $0x4] sm:$0xf] }
 0x3f2   :  { %v15184_v26 = vadd.f32 %v2614_v15, %v2565_v30  ;;  %v9708_v30 = vor.u32 %v12210_v3, %v9705_v33  ;;  %v9692_v15 = vor.u32 %v12206_v50, %v9689_v8  ;;  %v12170_v3 = vld [vmem:[%s19667_s3 + $0x24] sm:$0xf]  ;;  %v9529_v50 = vld [vmem:[%s19667_s3 + $0x10] sm:$0xf0] }
 0x3f3   :  { %v2567_v53 = vpop.f32.mrf.mxu1  ;;  %2853 = vmatmul.bf16.gmra.mxu0 %v14708_v2  ;;  %v9532_v8 = vor.u32 %v12166_v45, %v9529_v50 }
 0x3f4   :  { %2902 = vmatmul.bf16.gmra.mxu2 %v14710_v54 }
 0x3f5   :  { %3399 = vmatpush.bf16.msra.mxu2 %v9708_v30  ;;  %3351 = vmatpush.bf16.msra.mxu0 %v9564_v52  ;;  %v9548_v30 = vor.u32 %v12170_v3, %v9545_v16 }
 0x3f7   :  { %v2707_v12 = vpop.f32.mrf.mxu2 }
 0x3f8   :  { %v15212_v42 = vadd.f32 %v2707_v12, %v2658_v24  ;;  %v2660_v43 = vpop.f32.mrf.mxu0  ;;  %v12202_v24 = vld [vmem:[%s19667_s3 + $0x124] sm:$0xf] }
 0x3f9   :  { %v2616_v4 = vpop.f32.mrf.mxu3  ;;  %3400 = vmatpush.bf16.msra.mxu2 %v9692_v15  ;;  %3352 = vmatpush.bf16.msra.mxu0 %v9548_v30  ;;  %v12198_v12 = vld [vmem:[%s19667_s3 + $0x104] sm:$0xf]  ;;  %v9657_v15 = vld [vmem:[%s19667_s3 + $0x110] sm:$0xf0] }
 0x3fa   :  { %v15214_v62 = vadd.f32 %v2616_v4, %v2567_v53  ;;  %v9673_v53 = vld [vmem:[%s19667_s3 + $0x130] sm:$0xf0]  ;;  %v9660_v16 = vor.u32 %v12198_v12, %v9657_v15 }
 0x3fb   :  { %v2570_v33 = vpop.f32.mrf.mxu1  ;;  %v9676_v28 = vor.u32 %v12202_v24, %v9673_v53 }
 0x3fd   :  { %3401 = vmatpush.bf16.msra.mxu2 %v9676_v28  ;;  %3353 = vmatpush.bf16.msra.mxu0 %v9532_v8 }
 0x3fe   :  { %2765 = vmatmul.bf16.gmra.mxu1 %v14896_v17  ;;  %2814 = vmatmul.bf16.gmra.mxu3 %v14898_v22 }
 0x3ff   :  { %v2709_v52 = vpop.f32.mrf.mxu2 }
 0x400   :  { %v15242_v4 = vadd.f32 %v2709_v52, %v2660_v43  ;;  %v2663_v3 = vpop.f32.mrf.mxu0 }
 0x401   :  { %v2619_v24 = vpop.f32.mrf.mxu3  ;;  %3402 = vmatpush.bf16.msra.mxu2 %v9660_v16 }
 0x402   :  { %v15244_v30 = vadd.f32 %v2619_v24, %v2570_v33 }
 0x403   :  { %v2572_v53 = vpop.f32.mrf.mxu1  ;;  %2858 = vmatmul.bf16.gmra.mxu0 %v14816_v55 }
 0x404   :  { %2907 = vmatmul.bf16.gmra.mxu2 %v14818_v25 }
 0x407   :  { %v2712_v28 = vpop.f32.mrf.mxu2 }
 0x408   :  { %v15248_v45 = vadd.f32 %v2712_v28, %v2663_v3  ;;  %v2665_v50 = vpop.f32.mrf.mxu0 }
 0x409   :  { %v2621_v5 = vpop.f32.mrf.mxu3 }
 0x40a   :  { %v15250_v34 = vadd.f32 %v2621_v5, %v2572_v53 }
 0x40b   :  { %v2731_v43 = vpop.f32.mrf.mxu1 }
 0x40e   :  { %3256 = vmatmul.bf16.vlgmr.msra.gmra.mxu1 %v14443_v37  ;;  %3305 = vmatmul.bf16.vlgmr.msra.gmra.mxu3 %v14445_v11 }
 0x40f   :  { %v2714_v33 = vpop.f32.mrf.mxu2 }
 0x410   :  { %v15254_v12 = vadd.f32 %v2714_v33, %v2665_v50  ;;  %v2668_v52 = vpop.f32.mrf.mxu0 }
 0x411   :  { %v2780_v8 = vpop.f32.mrf.mxu3 }
 0x412   :  { %v15256_v15 = vadd.f32 %v2780_v8, %v2731_v43 }
 0x413   :  { %v2733_v16 = vpop.f32.mrf.mxu1  ;;  %2863 = vmatmul.bf16.gmra.mxu0 %v14896_v17 }
 0x414   :  { %2912 = vmatmul.bf16.gmra.mxu2 %v14898_v22 }
 0x417   :  { %v2717_v3 = vpop.f32.mrf.mxu2 }
 0x418   :  { %v15260_v5 = vadd.f32 %v2717_v3, %v2668_v52  ;;  %v2670_v24 = vpop.f32.mrf.mxu0 }
 0x419   :  { %v2782_v53 = vpop.f32.mrf.mxu3 }
 0x41a   :  { %19976 = vst [vmem:[#allocation35_spill] sm:$0xff] %v15260_v5  ;;  %v15262_v28 = vadd.f32 %v2782_v53, %v2733_v16 }
 0x41b   :  { %v2736_v6 = vpop.f32.mrf.mxu1 }
 0x41c   :  { %19977 = vst [vmem:[#allocation28_spill] sm:$0xff] %v15262_v28 }
 0x41e   :  { %3261 = vmatmul.bf16.gmra.mxu1 %v14487_v31  ;;  %3310 = vmatmul.bf16.gmra.mxu3 %v14489_v14 }
 0x41f   :  { %v2719_v50 = vpop.f32.mrf.mxu2 }
 0x420   :  { %v15266_v43 = vadd.f32 %v2719_v50, %v2670_v24  ;;  %v2829_v33 = vpop.f32.mrf.mxu0 }
 0x421   :  { %v2785_v8 = vpop.f32.mrf.mxu3 }
 0x422   :  { %19978 = vst [vmem:[#allocation38_spill] sm:$0xff] %v15266_v43  ;;  %v15268_v58 = vadd.f32 %v2785_v8, %v2736_v6  ;;  %v9663_v43 = vld [vmem:[%s19667_s3 + $0x108] sm:$0xf] }
 0x423   :  { %v2738_v49 = vpop.f32.mrf.mxu1  ;;  %3354 = vmatmul.bf16.vlgmr.msra.gmra.mxu0 %v14443_v37 }
 0x424   :  { %19979 = vst [vmem:[#allocation30_spill] sm:$0xff] %v15268_v58  ;;  %3403 = vmatmul.bf16.vlgmr.msra.gmra.mxu2 %v14445_v11 }
 0x427   :  { %v2878_v52 = vpop.f32.mrf.mxu2 }
 0x428   :  { %v15272_v16 = vadd.f32 %v2878_v52, %v2829_v33  ;;  %v2831_v3 = vpop.f32.mrf.mxu0 }
 0x429   :  { %v2787_v53 = vpop.f32.mrf.mxu3 }
 0x42a   :  { %19980 = vst [vmem:[#allocation31_spill] sm:$0xff] %v15272_v16  ;;  %v15274_v51 = vadd.f32 %v2787_v53, %v2738_v49 }
 0x42b   :  { %v2741_v22 = vpop.f32.mrf.mxu1 }
 0x42c   :  { %19981 = vst [vmem:[#allocation39_spill] sm:$0xff] %v15274_v51 }
 0x42e   :  { %3266 = vmatmul.bf16.gmra.mxu1 %v14520_v21  ;;  %3315 = vmatmul.bf16.gmra.mxu3 %v14522_v29 }
 0x42f   :  { %v2880_v24 = vpop.f32.mrf.mxu2 }
 0x430   :  { %v15278_v6 = vadd.f32 %v2880_v24, %v2831_v3  ;;  %v2834_v50 = vpop.f32.mrf.mxu0 }
 0x431   :  { %v2790_v8 = vpop.f32.mrf.mxu3 }
 0x432   :  { %19982 = vst [vmem:[#allocation41_spill] sm:$0xff] %v15278_v6  ;;  %v15280_v17 = vadd.f32 %v2790_v8, %v2741_v22 }
 0x433   :  { %v2743_v58 = vpop.f32.mrf.mxu1  ;;  %3359 = vmatmul.bf16.gmra.mxu0 %v14487_v31 }
 0x434   :  { %19983 = vst [vmem:[#allocation34_spill] sm:$0xff] %v15280_v17  ;;  %3408 = vmatmul.bf16.gmra.mxu2 %v14489_v14 }
 0x437   :  { %v2883_v33 = vpop.f32.mrf.mxu2 }
 0x438   :  { %v15284_v49 = vadd.f32 %v2883_v33, %v2834_v50  ;;  %v2836_v52 = vpop.f32.mrf.mxu0  ;;  %v9777_v50 = vld [vmem:[%s19667_s3 + $0x1f8] sm:$0xf0] }
 0x439   :  { %v2792_v53 = vpop.f32.mrf.mxu3 }
 0x43a   :  { %19984 = vst [vmem:[#allocation44_spill] sm:$0xff] %v15284_v49  ;;  %v15286_v51 = vadd.f32 %v2792_v53, %v2743_v58  ;;  %v12227_v58 = vld [vmem:[%s19667_s3 + $0x1ec] sm:$0xf] }
 0x43b   :  { %v2746_v16 = vpop.f32.mrf.mxu1  ;;  %v9780_v33 = vor.u32 %v12227_v58, %v9777_v50  ;;  %v12195_v58 = vld [vmem:[%s19667_s3 + $0xec] sm:$0xf] }
 0x43c   :  { %19985 = vst [vmem:[#allocation36_spill] sm:$0xff] %v15286_v51 }
 0x43d   :  { %3591 = vmatpush.bf16.msrb.mxu2 %v9780_v33 }
 0x43e   :  { %3271 = vmatmul.bf16.gmra.mxu1 %v14552_v47  ;;  %3320 = vmatmul.bf16.gmra.mxu3 %v14554_v36 }
 0x43f   :  { %v2885_v3 = vpop.f32.mrf.mxu2 }
 0x440   :  { %v15290_v22 = vadd.f32 %v2885_v3, %v2836_v52  ;;  %v2839_v24 = vpop.f32.mrf.mxu0 }
 0x441   :  { %v2795_v8 = vpop.f32.mrf.mxu3 }
 0x442   :  { %19986 = vst [vmem:[#allocation37_spill] sm:$0xff] %v15290_v22  ;;  %v15292_v17 = vadd.f32 %v2795_v8, %v2746_v16  ;;  %v12229_v22 = vld [vmem:[%s19667_s3 + $0x1f4] sm:$0xf0] }
 0x443   :  { %v2748_v6 = vpop.f32.mrf.mxu1  ;;  %3364 = vmatmul.bf16.gmra.mxu0 %v14520_v21 }
 0x444   :  { %19987 = vst [vmem:[#allocation45_spill] sm:$0xff] %v15292_v17  ;;  %3413 = vmatmul.bf16.gmra.mxu2 %v14522_v29  ;;  %v9775_v17 = vld [vmem:[%s19667_s3 + $0x1e8] sm:$0xf] }
 0x445   :  { %v9776_v33 = vor.u32 %v12229_v22, %v9775_v17 }
 0x447   :  { %v2888_v52 = vpop.f32.mrf.mxu2  ;;  %3493 = vmatpush.bf16.msrb.mxu3 %v9776_v33  ;;  %v9759_v33 = vld [vmem:[%s19667_s3 + $0x1c8] sm:$0xf] }
 0x448   :  { %v15302_v53 = vadd.f32 %v2888_v52, %v2839_v24  ;;  %v2841_v16 = vpop.f32.mrf.mxu0  ;;  %v9649_v24 = vld [vmem:[%s19667_s3 + $0xf8] sm:$0xf0]  ;;  %v9647_v52 = vld [vmem:[%s19667_s3 + $0xe8] sm:$0xf] }
 0x449   :  { %v2797_v3 = vpop.f32.mrf.mxu3 }
 0x44a   :  { %19988 = vst [vmem:[#allocation47_spill] sm:$0xff] %v15302_v53  ;;  %v15304_v8 = vadd.f32 %v2797_v3, %v2748_v6  ;;  %v9652_v6 = vor.u32 %v12195_v58, %v9649_v24  ;;  %v12197_v3 = vld [vmem:[%s19667_s3 + $0xf4] sm:$0xf0]  ;;  %v9631_v24 = vld [vmem:[%s19667_s3 + $0xc8] sm:$0xf] }
 0x44b   :  { %v2751_v50 = vpop.f32.mrf.mxu1  ;;  %v12193_v53 = vld [vmem:[%s19667_s3 + $0xd4] sm:$0xf0] }
 0x44c   :  { %19989 = vst [vmem:[#allocation40_spill] sm:$0xff] %v15304_v8  ;;  %v9648_v8 = vor.u32 %v12197_v3, %v9647_v52  ;;  %3542 = vmatpush.bf16.msrb.mxu0 %v9652_v6  ;;  %v9632_v3 = vor.u32 %v12193_v53, %v9631_v24  ;;  %v9761_v53 = vld [vmem:[%s19667_s3 + $0x1d8] sm:$0xf0] }
 0x44e   :  { %3276 = vmatmul.bf16.gmra.mxu1 %v14584_v1  ;;  %3325 = vmatmul.bf16.gmra.mxu3 %v14586_v60 }
 0x44f   :  { %v2890_v17 = vpop.f32.mrf.mxu2  ;;  %3444 = vmatpush.bf16.msrb.mxu1 %v9648_v8 }
 0x450   :  { %v15326_v22 = vadd.f32 %v2890_v17, %v2841_v16  ;;  %v2844_v58 = vpop.f32.mrf.mxu0  ;;  %v12225_v16 = vld [vmem:[%s19667_s3 + $0x1d4] sm:$0xf0] }
 0x451   :  { %v2800_v52 = vpop.f32.mrf.mxu3  ;;  %v9760_v6 = vor.u32 %v12225_v16, %v9759_v33  ;;  %v12189_v33 = vld [vmem:[%s19667_s3 + $0xb4] sm:$0xf0] }
 0x452   :  { %19990 = vst [vmem:[#allocation50_spill] sm:$0xff] %v15326_v22  ;;  %v15340_v8 = vadd.f32 %v2800_v52, %v2751_v50  ;;  %v12223_v22 = vld [vmem:[%s19667_s3 + $0x1cc] sm:$0xf]  ;;  %v9615_v50 = vld [vmem:[%s19667_s3 + $0xa8] sm:$0xf] }
 0x453   :  { %v2753_v17 = vpop.f32.mrf.mxu1  ;;  %3369 = vmatmul.bf16.gmra.mxu0 %v14552_v47  ;;  %3445 = vmatpush.bf16.msrb.mxu1 %v9632_v3  ;;  %v9764_v24 = vor.u32 %v12223_v22, %v9761_v53  ;;  %v9743_v52 = vld [vmem:[%s19667_s3 + $0x1a8] sm:$0xf]  ;;  %v12221_v3 = vld [vmem:[%s19667_s3 + $0x1b4] sm:$0xf0]  ;;  %v9616_v16 = vor.u32 %v12189_v33, %v9615_v50 }
 0x454   :  { %19991 = vst [vmem:[#allocation42_spill] sm:$0xff] %v15340_v8  ;;  %3418 = vmatmul.bf16.gmra.mxu2 %v14554_v36  ;;  %3494 = vmatpush.bf16.msrb.mxu3 %v9760_v6  ;;  %v9744_v6 = vor.u32 %v12221_v3, %v9743_v52  ;;  %v9599_v22 = vld [vmem:[%s19667_s3 + $0x88] sm:$0xf]  ;;  %v12185_v53 = vld [vmem:[%s19667_s3 + $0x94] sm:$0xf0] }
 0x455   :  { %3592 = vmatpush.bf16.msrb.mxu2 %v9764_v24  ;;  %v9727_v50 = vld [vmem:[%s19667_s3 + $0x188] sm:$0xf]  ;;  %v9600_v52 = vor.u32 %v12185_v53, %v9599_v22  ;;  %v12191_v24 = vld [vmem:[%s19667_s3 + $0xcc] sm:$0xf]  ;;  %v9633_v3 = vld [vmem:[%s19667_s3 + $0xd8] sm:$0xf0] }
 0x456   :  { %v9583_v22 = vld [vmem:[%s19667_s3 + $0x68] sm:$0xf] }
 0x457   :  { %v2893_v8 = vpop.f32.mrf.mxu2  ;;  %3446 = vmatpush.bf16.msrb.mxu1 %v9616_v16  ;;  %v9711_v53 = vld [vmem:[%s19667_s3 + $0x168] sm:$0xf] }
 0x458   :  { %v15362_v51 = vadd.f32 %v2893_v8, %v2844_v58  ;;  %v2846_v49 = vpop.f32.mrf.mxu0  ;;  %3495 = vmatpush.bf16.msrb.mxu3 %v9744_v6  ;;  %v12217_v58 = vld [vmem:[%s19667_s3 + $0x194] sm:$0xf0] }
 0x459   :  { %v2802_v33 = vpop.f32.mrf.mxu3  ;;  %v9728_v16 = vor.u32 %v12217_v58, %v9727_v50  ;;  %v12213_v50 = vld [vmem:[%s19667_s3 + $0x174] sm:$0xf0] }
 0x45a   :  { %19992 = vst [vmem:[#allocation43_spill] sm:$0xff] %v15362_v51  ;;  %v15376_v8 = vadd.f32 %v2802_v33, %v2753_v17  ;;  %v9636_v51 = vor.u32 %v12191_v24, %v9633_v3  ;;  %v12181_v17 = vld [vmem:[%s19667_s3 + $0x74] sm:$0xf0] }
 0x45b   :  { %v2756_v6 = vpop.f32.mrf.mxu1  ;;  %3447 = vmatpush.bf16.msrb.mxu1 %v9600_v52  ;;  %v9584_v33 = vor.u32 %v12181_v17, %v9583_v22  ;;  %v9712_v52 = vor.u32 %v12213_v50, %v9711_v53  ;;  %v9695_v22 = vld [vmem:[%s19667_s3 + $0x148] sm:$0xf] }
 0x45c   :  { %19993 = vst [vmem:[#allocation51_spill] sm:$0xff] %v15376_v8  ;;  %3496 = vmatpush.bf16.msrb.mxu3 %v9728_v16  ;;  %3543 = vmatpush.bf16.msrb.mxu0 %v9636_v51  ;;  %v9567_v51 = vld [vmem:[%s19667_s3 + $0x48] sm:$0xf]  ;;  %v12177_v16 = vld [vmem:[%s19667_s3 + $0x54] sm:$0xf0] }
 0x45d   :  { %v9568_v53 = vor.u32 %v12177_v16, %v9567_v51  ;;  %v9745_v51 = vld [vmem:[%s19667_s3 + $0x1b8] sm:$0xf0] }
 0x45e   :  { %3281 = vmatmul.bf16.gmra.mxu1 %v14616_v48  ;;  %3330 = vmatmul.bf16.gmra.mxu3 %v14618_v10 }
 0x45f   :  { %v2895_v58 = vpop.f32.mrf.mxu2  ;;  %3448 = vmatpush.bf16.msrb.mxu1 %v9584_v33 }
 0x460   :  { %v15398_v24 = vadd.f32 %v2895_v58, %v2846_v49  ;;  %v2849_v3 = vpop.f32.mrf.mxu0  ;;  %3497 = vmatpush.bf16.msrb.mxu3 %v9712_v52  ;;  %v12209_v49 = vld [vmem:[%s19667_s3 + $0x154] sm:$0xf0]  ;;  %v12219_v58 = vld [vmem:[%s19667_s3 + $0x1ac] sm:$0xf] }
 0x461   :  { %v2805_v17 = vpop.f32.mrf.mxu3  ;;  %v9696_v50 = vor.u32 %v12209_v49, %v9695_v22  ;;  %v9748_v16 = vor.u32 %v12219_v58, %v9745_v51  ;;  %v12173_v22 = vld [vmem:[%s19667_s3 + $0x34] sm:$0xf0]  ;;  %v9535_v58 = vld [vmem:[%s19667_s3 + $0x8] sm:$0xf] }
 0x462   :  { %19994 = vst [vmem:[#allocation53_spill] sm:$0xff] %v15398_v24  ;;  %v15412_v33 = vadd.f32 %v2805_v17, %v2756_v6  ;;  %v9551_v6 = vld [vmem:[%s19667_s3 + $0x28] sm:$0xf]  ;;  %v12169_v51 = vld [vmem:[%s19667_s3 + $0x14] sm:$0xf0] }
 0x463   :  { %v2758_v52 = vpop.f32.mrf.mxu1  ;;  %3374 = vmatmul.bf16.gmra.mxu0 %v14584_v1  ;;  %3449 = vmatpush.bf16.msrb.mxu1 %v9568_v53  ;;  %v9679_v17 = vld [vmem:[%s19667_s3 + $0x128] sm:$0xf]  ;;  %v12205_v53 = vld [vmem:[%s19667_s3 + $0x134] sm:$0xf0]  ;;  %v9552_v49 = vor.u32 %v12173_v22, %v9551_v6  ;;  %v9536_v22 = vor.u32 %v12169_v51, %v9535_v58 }
 0x464   :  { %19995 = vst [vmem:[#allocation46_spill] sm:$0xff] %v15412_v33  ;;  %3423 = vmatmul.bf16.gmra.mxu2 %v14586_v60  ;;  %3498 = vmatpush.bf16.msrb.mxu3 %v9696_v50  ;;  %v9680_v33 = vor.u32 %v12205_v53, %v9679_v17  ;;  %v9617_v17 = vld [vmem:[%s19667_s3 + $0xb8] sm:$0xf0] }
 0x465   :  { %3593 = vmatpush.bf16.msrb.mxu2 %v9748_v16  ;;  %v12187_v16 = vld [vmem:[%s19667_s3 + $0xac] sm:$0xf] }
 0x467   :  { %v2898_v24 = vpop.f32.mrf.mxu2  ;;  %3450 = vmatpush.bf16.msrb.mxu1 %v9552_v49 }
 0x468   :  { %v15434_v8 = vadd.f32 %v2898_v24, %v2849_v3  ;;  %v2851_v50 = vpop.f32.mrf.mxu0  ;;  %3499 = vmatpush.bf16.msrb.mxu3 %v9680_v33  ;;  %v12201_v24 = vld [vmem:[%s19667_s3 + $0x114] sm:$0xf0]  ;;  %v12183_v33 = vld [vmem:[%s19667_s3 + $0x8c] sm:$0xf] }
 0x469   :  { %v2807_v6 = vpop.f32.mrf.mxu3  ;;  %v9664_v53 = vor.u32 %v12201_v24, %v9663_v43  ;;  %v12215_v43 = vld [vmem:[%s19667_s3 + $0x18c] sm:$0xf] }
 0x46a   :  { %19996 = vst [vmem:[#allocation56_spill] sm:$0xff] %v15434_v8  ;;  %v15448_v3 = vadd.f32 %v2807_v6, %v2758_v52  ;;  %v9620_v8 = vor.u32 %v12187_v16, %v9617_v17  ;;  %v9601_v52 = vld [vmem:[%s19667_s3 + $0x98] sm:$0xf0] }
 0x46b   :  { %v2761_v49 = vpop.f32.mrf.mxu1  ;;  %3451 = vmatpush.bf16.msrb.mxu1 %v9536_v22  ;;  %v9604_v51 = vor.u32 %v12183_v33, %v9601_v52  ;;  %v9585_v33 = vld [vmem:[%s19667_s3 + $0x78] sm:$0xf0] }
 0x46c   :  { %19997 = vst [vmem:[#allocation48_spill] sm:$0xff] %v15448_v3  ;;  %3544 = vmatpush.bf16.msrb.mxu0 %v9620_v8  ;;  %3500 = vmatpush.bf16.msrb.mxu3 %v9664_v53  ;;  %v9729_v8 = vld [vmem:[%s19667_s3 + $0x198] sm:$0xf0]  ;;  %v12179_v53 = vld [vmem:[%s19667_s3 + $0x6c] sm:$0xf] }
 0x46d   :  { %v9732_v24 = vor.u32 %v12215_v43, %v9729_v8  ;;  %v9588_v43 = vor.u32 %v12179_v53, %v9585_v33  ;;  %v9569_v8 = vld [vmem:[%s19667_s3 + $0x58] sm:$0xf0] }
 0x46e   :  { %3286 = vmatmul.bf16.gmra.mxu1 %v14708_v2  ;;  %3335 = vmatmul.bf16.gmra.mxu3 %v14710_v54  ;;  %v9697_v33 = vld [vmem:[%s19667_s3 + $0x158] sm:$0xf0] }
 0x46f   :  { %v2900_v58 = vpop.f32.mrf.mxu2  ;;  %3594 = vmatpush.bf16.msrb.mxu2 %v9732_v24  ;;  %v12207_v24 = vld [vmem:[%s19667_s3 + $0x14c] sm:$0xf] }
 0x470   :  { %v15470_v6 = vadd.f32 %v2900_v58, %v2851_v50  ;;  %v2854_v22 = vpop.f32.mrf.mxu0  ;;  %3545 = vmatpush.bf16.msrb.mxu0 %v9604_v51  ;;  %v12211_v50 = vld [vmem:[%s19667_s3 + $0x16c] sm:$0xf] }
 0x471   :  { %v2810_v16 = vpop.f32.mrf.mxu3  ;;  %v12175_v51 = vld [vmem:[%s19667_s3 + $0x4c] sm:$0xf] }
 0x472   :  { %19998 = vst [vmem:[#allocation49_spill] sm:$0xff] %v15470_v6  ;;  %v15472_v17 = vadd.f32 %v2810_v16, %v2761_v49  ;;  %v9713_v49 = vld [vmem:[%s19667_s3 + $0x178] sm:$0xf0]  ;;  %v9572_v53 = vor.u32 %v12175_v51, %v9569_v8  ;;  %v12171_v6 = vld [vmem:[%s19667_s3 + $0x2c] sm:$0xf] }
 0x473   :  { %v2763_v52 = vpop.f32.mrf.mxu1  ;;  %3379 = vmatmul.bf16.gmra.mxu0 %v14616_v48  ;;  %v9716_v58 = vor.u32 %v12211_v50, %v9713_v49  ;;  %v9700_v49 = vor.u32 %v12207_v24, %v9697_v33  ;;  %v9553_v51 = vld [vmem:[%s19667_s3 + $0x38] sm:$0xf0] }
 0x474   :  { %19999 = vst [vmem:[#allocation57_spill] sm:$0xff] %v15472_v17  ;;  %3428 = vmatmul.bf16.gmra.mxu2 %v14618_v10  ;;  %3546 = vmatpush.bf16.msrb.mxu0 %v9588_v43  ;;  %v9537_v33 = vld [vmem:[%s19667_s3 + $0x18] sm:$0xf0] }
 0x475   :  { %3595 = vmatpush.bf16.msrb.mxu2 %v9716_v58 }
 0x477   :  { %v2903_v16 = vpop.f32.mrf.mxu2 }
 0x478   :  { %v15500_v50 = vadd.f32 %v2903_v16, %v2854_v22  ;;  %v2856_v43 = vpop.f32.mrf.mxu0  ;;  %3547 = vmatpush.bf16.msrb.mxu0 %v9572_v53  ;;  %v12203_v22 = vld [vmem:[%s19667_s3 + $0x12c] sm:$0xf]  ;;  %v9556_v16 = vor.u32 %v12171_v6, %v9553_v51  ;;  %v9665_v51 = vld [vmem:[%s19667_s3 + $0x118] sm:$0xf0] }
 0x479   :  { %v2812_v58 = vpop.f32.mrf.mxu3  ;;  %3596 = vmatpush.bf16.msrb.mxu2 %v9700_v49  ;;  %v12167_v53 = vld [vmem:[%s19667_s3 + $0xc] sm:$0xf] }
 0x47a   :  { %20000 = vst [vmem:[#allocation59_spill] sm:$0xff] %v15500_v50  ;;  %v15502_v17 = vadd.f32 %v2812_v58, %v2763_v52  ;;  %v9681_v52 = vld [vmem:[%s19667_s3 + $0x138] sm:$0xf0]  ;;  %v12199_v6 = vld [vmem:[%s19667_s3 + $0x10c] sm:$0xf]  ;;  %v9540_v58 = vor.u32 %v12167_v53, %v9537_v33 }
 0x47b   :  { %v2766_v8 = vpop.f32.mrf.mxu1  ;;  %v9684_v24 = vor.u32 %v12203_v22, %v9681_v52  ;;  %v9668_v52 = vor.u32 %v12199_v6, %v9665_v51 }
 0x47c   :  { %20001 = vst [vmem:[#allocation52_spill] sm:$0xff] %v15502_v17  ;;  %3548 = vmatpush.bf16.msrb.mxu0 %v9556_v16 }
 0x47d   :  { %3597 = vmatpush.bf16.msrb.mxu2 %v9684_v24 }
 0x47e   :  { %3291 = vmatmul.bf16.gmra.mxu1 %v14816_v55  ;;  %3340 = vmatmul.bf16.gmra.mxu3 %v14818_v25 }
 0x47f   :  { %v2905_v49 = vpop.f32.mrf.mxu2 }
 0x480   :  { %v15530_v22 = vadd.f32 %v2905_v49, %v2856_v43  ;;  %v2859_v16 = vpop.f32.mrf.mxu0  ;;  %3549 = vmatpush.bf16.msrb.mxu0 %v9540_v58 }
 0x481   :  { %v2815_v17 = vpop.f32.mrf.mxu3  ;;  %3598 = vmatpush.bf16.msrb.mxu2 %v9668_v52 }
 0x482   :  { %v15532_v50 = vadd.f32 %v2815_v17, %v2766_v8 }
 0x483   :  { %v2768_v3 = vpop.f32.mrf.mxu1  ;;  %3384 = vmatmul.bf16.gmra.mxu0 %v14708_v2 }
 0x484   :  { %3433 = vmatmul.bf16.gmra.mxu2 %v14710_v54 }
 0x487   :  { %v2908_v24 = vpop.f32.mrf.mxu2 }
 0x488   :  { %v15536_v53 = vadd.f32 %v2908_v24, %v2859_v16  ;;  %v2861_v33 = vpop.f32.mrf.mxu0 }
 0x489   :  { %v2817_v28 = vpop.f32.mrf.mxu3 }
 0x48a   :  { %v15538_v5 = vadd.f32 %v2817_v28, %v2768_v3 }
 0x48b   :  { %v3257_v43 = vpop.f32.mrf.mxu1 }
 0x48c   :  { %v3258_v6 = vadd.f32 %v3257_v43, %v14951_v39 }
 0x48e   :  { %3452 = vmatmul.bf16.vlgmr.msrb.gmra.mxu1 %v14443_v37  ;;  %3501 = vmatmul.bf16.vlgmr.msrb.gmra.mxu3 %v14445_v11 }
 0x48f   :  { %v2910_v17 = vpop.f32.mrf.mxu2 }
 0x490   :  { %v15543_v8 = vadd.f32 %v2910_v17, %v2861_v33  ;;  %v2864_v49 = vpop.f32.mrf.mxu0 }
 0x491   :  { %v3306_v58 = vpop.f32.mrf.mxu3 }
 0x492   :  { %v15545_v51 = vadd.f32 %v3306_v58, %v3258_v6 }
 0x493   :  { %v3259_v16 = vpop.f32.mrf.mxu1  ;;  %3389 = vmatmul.bf16.gmra.mxu0 %v14816_v55 }
 0x494   :  { %20002 = vst [vmem:[#allocation62_spill] sm:$0xff] %v15545_v51  ;;  %v3260_v28 = vadd.f32 %v3259_v16, %v14961_v9  ;;  %3438 = vmatmul.bf16.gmra.mxu2 %v14818_v25 }
 0x497   :  { %v2913_v3 = vpop.f32.mrf.mxu2 }
 0x498   :  { %v15550_v39 = vadd.f32 %v2913_v3, %v2864_v49  ;;  %v2866_v52 = vpop.f32.mrf.mxu0 }
 0x499   :  { %v3308_v24 = vpop.f32.mrf.mxu3 }
 0x49a   :  { %v15552_v43 = vadd.f32 %v3308_v24, %v3260_v28 }
 0x49b   :  { %v3262_v33 = vpop.f32.mrf.mxu1 }
 0x49c   :  { %20003 = vst [vmem:[#allocation54_spill] sm:$0xff] %v15552_v43  ;;  %v3263_v17 = vadd.f32 %v3262_v33, %v14975_v38 }
 0x49e   :  { %3457 = vmatmul.bf16.gmra.mxu1 %v14487_v31  ;;  %3506 = vmatmul.bf16.gmra.mxu3 %v14489_v14 }
 0x49f   :  { %v2915_v6 = vpop.f32.mrf.mxu2 }
 0x4a0   :  { %v15557_v58 = vadd.f32 %v2915_v6, %v2866_v52  ;;  %v3355_v9 = vpop.f32.mrf.mxu0 }
 0x4a1   :  { %v3311_v16 = vpop.f32.mrf.mxu3  ;;  %v3356_v51 = vadd.f32 %v3355_v9, %v14980_v19 }
 0x4a2   :  { %20004 = vst [vmem:[#allocation55_spill] sm:$0xff] %v15557_v58  ;;  %v15560_v49 = vadd.f32 %v3311_v16, %v3263_v17 }
 0x4a3   :  { %v3264_v3 = vpop.f32.mrf.mxu1  ;;  %3550 = vmatmul.bf16.vlgmr.msrb.gmra.mxu0 %v14443_v37 }
 0x4a4   :  { %v3265_v28 = vadd.f32 %v3264_v3, %v14982_v7  ;;  %3599 = vmatmul.bf16.vlgmr.msrb.gmra.mxu2 %v14445_v11 }
 0x4a7   :  { %v3404_v38 = vpop.f32.mrf.mxu2 }
 0x4a8   :  { %v15565_v24 = vadd.f32 %v3404_v38, %v3356_v51  ;;  %v3357_v33 = vpop.f32.mrf.mxu0 }
 0x4a9   :  { %v3313_v43 = vpop.f32.mrf.mxu3  ;;  %v3358_v52 = vadd.f32 %v3357_v33, %v14990_v44 }
 0x4aa   :  { %v15568_v6 = vadd.f32 %v3313_v43, %v3265_v28 }
 0x4ab   :  { %v3267_v58 = vpop.f32.mrf.mxu1 }
 0x4ac   :  { %v3268_v19 = vadd.f32 %v3267_v58, %v14992_v63 }
 0x4ae   :  { %3462 = vmatmul.bf16.gmra.mxu1 %v14520_v21  ;;  %3511 = vmatmul.bf16.gmra.mxu3 %v14522_v29 }
 0x4af   :  { %v3406_v37 = vpop.f32.mrf.mxu2 }
 0x4b0   :  { %v15573_v7 = vadd.f32 %v3406_v37, %v3358_v52  ;;  %v3360_v11 = vpop.f32.mrf.mxu0 }
 0x4b1   :  { %v3316_v17 = vpop.f32.mrf.mxu3  ;;  %v3361_v51 = vadd.f32 %v3360_v11, %v14996_v41 }
 0x4b2   :  { %v15576_v9 = vadd.f32 %v3316_v17, %v3268_v19  ;;  %v10089_v17 = vld [vmem:[%s19667_s3 + $0x5f0] sm:$0xf0] }
 0x4b3   :  { %v3269_v16 = vpop.f32.mrf.mxu1  ;;  %3555 = vmatmul.bf16.gmra.mxu0 %v14487_v31 }
 0x4b4   :  { %v3270_v44 = vadd.f32 %v3269_v16, %v14998_v20  ;;  %3604 = vmatmul.bf16.gmra.mxu2 %v14489_v14 }
 0x4b7   :  { %v3409_v63 = vpop.f32.mrf.mxu2 }
 0x4b8   :  { %v15581_v43 = vadd.f32 %v3409_v63, %v3361_v51  ;;  %v3362_v58 = vpop.f32.mrf.mxu0 }
 0x4b9   :  { %v3318_v3 = vpop.f32.mrf.mxu3  ;;  %v3363_v28 = vadd.f32 %v3362_v58, %v15002_v13 }
 0x4ba   :  { %v15584_v38 = vadd.f32 %v3318_v3, %v3270_v44  ;;  %v10087_v3 = vld [vmem:[%s19667_s3 + $0x5e0] sm:$0xf] }
 0x4bb   :  { %v3272_v33 = vpop.f32.mrf.mxu1 }
 0x4bc   :  { %v3273_v41 = vadd.f32 %v3272_v33, %v15004_v23  ;;  %v12354_v23 = vld [vmem:[%s19667_s3 + $0x5e4] sm:$0xf] }
 0x4bd   :  { %v10092_v51 = vor.u32 %v12354_v23, %v10089_v17  ;;  %v12322_v33 = vld [vmem:[%s19667_s3 + $0x4e4] sm:$0xf] }
 0x4be   :  { %3467 = vmatmul.bf16.gmra.mxu1 %v14552_v47  ;;  %3516 = vmatmul.bf16.gmra.mxu3 %v14554_v36 }
 0x4bf   :  { %v3411_v31 = vpop.f32.mrf.mxu2  ;;  %4182 = vmatpush.bf16.msra.mxu2 %v10092_v51  ;;  %v9943_v51 = vld [vmem:[%s19667_s3 + $0x4c0] sm:$0xf] }
 0x4c0   :  { %v15589_v20 = vadd.f32 %v3411_v31, %v3363_v28  ;;  %v3365_v14 = vpop.f32.mrf.mxu0  ;;  %v12356_v28 = vld [vmem:[%s19667_s3 + $0x5ec] sm:$0xf0] }
 0x4c1   :  { %v3321_v52 = vpop.f32.mrf.mxu3  ;;  %v3366_v19 = vadd.f32 %v3365_v14, %v15014_v0  ;;  %v10088_v31 = vor.u32 %v12356_v28, %v10087_v3 }
 0x4c2   :  { %v15592_v37 = vadd.f32 %v3321_v52, %v3273_v41 }
 0x4c3   :  { %v3274_v11 = vpop.f32.mrf.mxu1  ;;  %3560 = vmatmul.bf16.gmra.mxu0 %v14520_v21  ;;  %4084 = vmatpush.bf16.msra.mxu3 %v10088_v31 }
 0x4c4   :  { %v3275_v13 = vadd.f32 %v3274_v11, %v15016_v56  ;;  %3609 = vmatmul.bf16.gmra.mxu2 %v14522_v29  ;;  %v12324_v11 = vld [vmem:[%s19667_s3 + $0x4ec] sm:$0xf0] }
 0x4c7   :  { %v3414_v16 = vpop.f32.mrf.mxu2 }
 0x4c8   :  { %v15603_v0 = vadd.f32 %v3414_v16, %v3366_v19  ;;  %v3367_v44 = vpop.f32.mrf.mxu0  ;;  %v9959_v19 = vld [vmem:[%s19667_s3 + $0x4e0] sm:$0xf]  ;;  %v12320_v16 = vld [vmem:[%s19667_s3 + $0x4cc] sm:$0xf0] }
 0x4c9   :  { %v3323_v63 = vpop.f32.mrf.mxu3  ;;  %v3368_v58 = vadd.f32 %v3367_v44, %v15038_v46  ;;  %v9961_v46 = vld [vmem:[%s19667_s3 + $0x4f0] sm:$0xf0]  ;;  %v10071_v44 = vld [vmem:[%s19667_s3 + $0x5c0] sm:$0xf]  ;;  %v9944_v28 = vor.u32 %v12320_v16, %v9943_v51 }
 0x4ca   :  { %v15606_v56 = vadd.f32 %v3323_v63, %v3275_v13  ;;  %v9964_v52 = vor.u32 %v12322_v33, %v9961_v46  ;;  %v9960_v13 = vor.u32 %v12324_v11, %v9959_v19  ;;  %v10055_v11 = vld [vmem:[%s19667_s3 + $0x5a0] sm:$0xf] }
 0x4cb   :  { %v3277_v41 = vpop.f32.mrf.mxu1 }
 0x4cc   :  { %v3278_v14 = vadd.f32 %v3277_v41, %v15052_v32  ;;  %4133 = vmatpush.bf16.msra.mxu0 %v9964_v52  ;;  %4035 = vmatpush.bf16.msra.mxu1 %v9960_v13  ;;  %v10073_v52 = vld [vmem:[%s19667_s3 + $0x5d0] sm:$0xf0]  ;;  %v12348_v13 = vld [vmem:[%s19667_s3 + $0x5ac] sm:$0xf0] }
 0x4ce   :  { %3472 = vmatmul.bf16.gmra.mxu1 %v14584_v1  ;;  %3521 = vmatmul.bf16.gmra.mxu3 %v14586_v60 }
 0x4cf   :  { %v3416_v23 = vpop.f32.mrf.mxu2 }
 0x4d0   :  { %v15629_v17 = vadd.f32 %v3416_v23, %v3368_v58  ;;  %v3370_v32 = vpop.f32.mrf.mxu0  ;;  %v12352_v58 = vld [vmem:[%s19667_s3 + $0x5cc] sm:$0xf0]  ;;  %4036 = vmatpush.bf16.msra.mxu1 %v9944_v28 }
 0x4d1   :  { %v3326_v63 = vpop.f32.mrf.mxu3  ;;  %v3371_v3 = vadd.f32 %v3370_v32, %v15074_v57  ;;  %v10072_v41 = vor.u32 %v12352_v58, %v10071_v44  ;;  %v12350_v57 = vld [vmem:[%s19667_s3 + $0x5c4] sm:$0xf]  ;;  %v10056_v32 = vor.u32 %v12348_v13, %v10055_v11  ;;  %v12312_v28 = vld [vmem:[%s19667_s3 + $0x48c] sm:$0xf0]  ;;  %v10039_v58 = vld [vmem:[%s19667_s3 + $0x580] sm:$0xf] }
 0x4d2   :  { %v15644_v33 = vadd.f32 %v3326_v63, %v3278_v14  ;;  %v9927_v14 = vld [vmem:[%s19667_s3 + $0x4a0] sm:$0xf]  ;;  %v10076_v19 = vor.u32 %v12350_v57, %v10073_v52  ;;  %v12344_v57 = vld [vmem:[%s19667_s3 + $0x58c] sm:$0xf0] }
 0x4d3   :  { %v3279_v31 = vpop.f32.mrf.mxu1  ;;  %3565 = vmatmul.bf16.gmra.mxu0 %v14552_v47  ;;  %4085 = vmatpush.bf16.msra.mxu3 %v10072_v41  ;;  %v9911_v63 = vld [vmem:[%s19667_s3 + $0x480] sm:$0xf] }
 0x4d4   :  { %v3280_v46 = vadd.f32 %v3279_v31, %v15088_v40  ;;  %3614 = vmatmul.bf16.gmra.mxu2 %v14554_v36  ;;  %v12316_v40 = vld [vmem:[%s19667_s3 + $0x4ac] sm:$0xf0] }
 0x4d5   :  { %v9928_v23 = vor.u32 %v12316_v40, %v9927_v14  ;;  %4183 = vmatpush.bf16.msra.mxu2 %v10076_v19  ;;  %v12318_v14 = vld [vmem:[%s19667_s3 + $0x4c4] sm:$0xf]  ;;  %v9945_v19 = vld [vmem:[%s19667_s3 + $0x4d0] sm:$0xf0]  ;;  %v10040_v40 = vor.u32 %v12344_v57, %v10039_v58  ;;  %v10007_v57 = vld [vmem:[%s19667_s3 + $0x540] sm:$0xf] }
 0x4d6   :  { %v9948_v13 = vor.u32 %v12318_v14, %v9945_v19 }
 0x4d7   :  { %v3419_v51 = vpop.f32.mrf.mxu2  ;;  %4037 = vmatpush.bf16.msra.mxu1 %v9928_v23  ;;  %4086 = vmatpush.bf16.msra.mxu3 %v10056_v32  ;;  %v12308_v23 = vld [vmem:[%s19667_s3 + $0x46c] sm:$0xf0]  ;;  %v10023_v32 = vld [vmem:[%s19667_s3 + $0x560] sm:$0xf] }
 0x4d8   :  { %v15667_v16 = vadd.f32 %v3419_v51, %v3371_v3  ;;  %v3372_v44 = vpop.f32.mrf.mxu0  ;;  %v9912_v3 = vor.u32 %v12312_v28, %v9911_v63  ;;  %4134 = vmatpush.bf16.msra.mxu0 %v9948_v13 }
 0x4d9   :  { %v3328_v41 = vpop.f32.mrf.mxu3  ;;  %v3373_v31 = vadd.f32 %v3372_v44, %v15110_v59 }
 0x4da   :  { %v15682_v52 = vadd.f32 %v3328_v41, %v3280_v46  ;;  %v9895_v46 = vld [vmem:[%s19667_s3 + $0x460] sm:$0xf] }
 0x4db   :  { %v3282_v11 = vpop.f32.mrf.mxu1  ;;  %4038 = vmatpush.bf16.msra.mxu1 %v9912_v3  ;;  %4087 = vmatpush.bf16.msra.mxu3 %v10040_v40  ;;  %v9896_v51 = vor.u32 %v12308_v23, %v9895_v46  ;;  %v9879_v41 = vld [vmem:[%s19667_s3 + $0x440] sm:$0xf]  ;;  %v12304_v3 = vld [vmem:[%s19667_s3 + $0x44c] sm:$0xf0] }
 0x4dc   :  { %v3283_v59 = vadd.f32 %v3282_v11, %v15124_v18  ;;  %v12340_v18 = vld [vmem:[%s19667_s3 + $0x56c] sm:$0xf0] }
 0x4dd   :  { %v10024_v44 = vor.u32 %v12340_v18, %v10023_v32  ;;  %v12336_v40 = vld [vmem:[%s19667_s3 + $0x54c] sm:$0xf0]  ;;  %v10057_v32 = vld [vmem:[%s19667_s3 + $0x5b0] sm:$0xf0]  ;;  %v9991_v18 = vld [vmem:[%s19667_s3 + $0x520] sm:$0xf] }
 0x4de   :  { %3477 = vmatmul.bf16.gmra.mxu1 %v14616_v48  ;;  %3526 = vmatmul.bf16.gmra.mxu3 %v14618_v10  ;;  %v10008_v13 = vor.u32 %v12336_v40, %v10007_v57  ;;  %v9975_v40 = vld [vmem:[%s19667_s3 + $0x500] sm:$0xf] }
 0x4df   :  { %v3421_v63 = vpop.f32.mrf.mxu2  ;;  %4039 = vmatpush.bf16.msra.mxu1 %v9896_v51  ;;  %4088 = vmatpush.bf16.msra.mxu3 %v10024_v44  ;;  %v12332_v44 = vld [vmem:[%s19667_s3 + $0x52c] sm:$0xf0] }
 0x4e0   :  { %v15705_v28 = vadd.f32 %v3421_v63, %v3373_v31  ;;  %v3375_v58 = vpop.f32.mrf.mxu0  ;;  %v9880_v31 = vor.u32 %v12304_v3, %v9879_v41 }
 0x4e1   :  { %v3331_v14 = vpop.f32.mrf.mxu3  ;;  %v3376_v19 = vadd.f32 %v3375_v58, %v15146_v35  ;;  %v12346_v35 = vld [vmem:[%s19667_s3 + $0x5a4] sm:$0xf]  ;;  %v9992_v58 = vor.u32 %v12332_v44, %v9991_v18 }
 0x4e2   :  { %v15720_v11 = vadd.f32 %v3331_v14, %v3283_v59  ;;  %v9863_v59 = vld [vmem:[%s19667_s3 + $0x420] sm:$0xf]  ;;  %v10060_v51 = vor.u32 %v12346_v35, %v10057_v32  ;;  %v12328_v35 = vld [vmem:[%s19667_s3 + $0x50c] sm:$0xf0] }
 0x4e3   :  { %v3284_v46 = vpop.f32.mrf.mxu1  ;;  %3570 = vmatmul.bf16.gmra.mxu0 %v14584_v1  ;;  %4040 = vmatpush.bf16.msra.mxu1 %v9880_v31  ;;  %v9847_v14 = vld [vmem:[%s19667_s3 + $0x400] sm:$0xf]  ;;  %v12296_v31 = vld [vmem:[%s19667_s3 + $0x40c] sm:$0xf0] }
 0x4e4   :  { %v3285_v23 = vadd.f32 %v3284_v46, %v15160_v61  ;;  %3619 = vmatmul.bf16.gmra.mxu2 %v14586_v60  ;;  %4089 = vmatpush.bf16.msra.mxu3 %v10008_v13  ;;  %v12300_v61 = vld [vmem:[%s19667_s3 + $0x42c] sm:$0xf0] }
 0x4e5   :  { %v9864_v63 = vor.u32 %v12300_v61, %v9863_v59  ;;  %4184 = vmatpush.bf16.msra.mxu2 %v10060_v51  ;;  %v12314_v59 = vld [vmem:[%s19667_s3 + $0x4a4] sm:$0xf]  ;;  %v9929_v51 = vld [vmem:[%s19667_s3 + $0x4b0] sm:$0xf0]  ;;  %v9976_v61 = vor.u32 %v12328_v35, %v9975_v40 }
 0x4e6   :  { %v9932_v44 = vor.u32 %v12314_v59, %v9929_v51  ;;  %v12306_v59 = vld [vmem:[%s19667_s3 + $0x464] sm:$0xf]  ;;  %v9897_v51 = vld [vmem:[%s19667_s3 + $0x470] sm:$0xf0] }
 0x4e7   :  { %v3424_v41 = vpop.f32.mrf.mxu2  ;;  %4041 = vmatpush.bf16.msra.mxu1 %v9864_v63  ;;  %v9913_v63 = vld [vmem:[%s19667_s3 + $0x490] sm:$0xf0] }
 0x4e8   :  { %v15743_v3 = vadd.f32 %v3424_v41, %v3376_v19  ;;  %v3377_v57 = vpop.f32.mrf.mxu0  ;;  %4090 = vmatpush.bf16.msra.mxu3 %v9992_v58  ;;  %v9848_v19 = vor.u32 %v12296_v31, %v9847_v14  ;;  %4135 = vmatpush.bf16.msra.mxu0 %v9932_v44  ;;  %v12342_v58 = vld [vmem:[%s19667_s3 + $0x584] sm:$0xf] }
 0x4e9   :  { %v3333_v13 = vpop.f32.mrf.mxu3  ;;  %v3378_v46 = vadd.f32 %v3377_v57, %v15182_v27  ;;  %v10041_v57 = vld [vmem:[%s19667_s3 + $0x590] sm:$0xf0] }
 0x4ea   :  { %v15758_v32 = vadd.f32 %v3333_v13, %v3285_v23  ;;  %v12310_v23 = vld [vmem:[%s19667_s3 + $0x484] sm:$0xf]  ;;  %v10044_v40 = vor.u32 %v12342_v58, %v10041_v57 }
 0x4eb   :  { %v3287_v18 = vpop.f32.mrf.mxu1  ;;  %4042 = vmatpush.bf16.msra.mxu1 %v9848_v19  ;;  %v9916_v41 = vor.u32 %v12310_v23, %v9913_v63  ;;  %v12302_v23 = vld [vmem:[%s19667_s3 + $0x444] sm:$0xf]  ;;  %v9881_v63 = vld [vmem:[%s19667_s3 + $0x450] sm:$0xf0] }
 0x4ec   :  { %v3288_v27 = vadd.f32 %v3287_v18, %v15184_v26  ;;  %4091 = vmatpush.bf16.msra.mxu3 %v9976_v61  ;;  %4185 = vmatpush.bf16.msra.mxu2 %v10044_v40  ;;  %v10025_v18 = vld [vmem:[%s19667_s3 + $0x570] sm:$0xf0]  ;;  %v12334_v58 = vld [vmem:[%s19667_s3 + $0x544] sm:$0xf] }
 0x4ed   :  { %4136 = vmatpush.bf16.msra.mxu0 %v9916_v41  ;;  %v9884_v41 = vor.u32 %v12302_v23, %v9881_v63  ;;  %v12294_v23 = vld [vmem:[%s19667_s3 + $0x404] sm:$0xf]  ;;  %v9849_v63 = vld [vmem:[%s19667_s3 + $0x410] sm:$0xf0] }
 0x4ee   :  { %3482 = vmatmul.bf16.gmra.mxu1 %v14708_v2  ;;  %3531 = vmatmul.bf16.gmra.mxu3 %v14710_v54 }
 0x4ef   :  { %v3426_v26 = vpop.f32.mrf.mxu2 }
 0x4f0   :  { %v15781_v14 = vadd.f32 %v3426_v26, %v3378_v46  ;;  %v3380_v31 = vpop.f32.mrf.mxu0  ;;  %v12338_v46 = vld [vmem:[%s19667_s3 + $0x564] sm:$0xf] }
 0x4f1   :  { %v3336_v13 = vpop.f32.mrf.mxu3  ;;  %v3381_v19 = vadd.f32 %v3380_v31, %v15212_v42  ;;  %v9900_v42 = vor.u32 %v12306_v59, %v9897_v51 }
 0x4f2   :  { %v15784_v35 = vadd.f32 %v3336_v13, %v3288_v27  ;;  %v10028_v27 = vor.u32 %v12338_v46, %v10025_v18  ;;  %v12298_v46 = vld [vmem:[%s19667_s3 + $0x424] sm:$0xf] }
 0x4f3   :  { %v3289_v61 = vpop.f32.mrf.mxu1  ;;  %3575 = vmatmul.bf16.gmra.mxu0 %v14616_v48 }
 0x4f4   :  { %v3290_v44 = vadd.f32 %v3289_v61, %v15214_v62  ;;  %3624 = vmatmul.bf16.gmra.mxu2 %v14618_v10  ;;  %4137 = vmatpush.bf16.msra.mxu0 %v9900_v42  ;;  %v10009_v62 = vld [vmem:[%s19667_s3 + $0x550] sm:$0xf0] }
 0x4f5   :  { %4186 = vmatpush.bf16.msra.mxu2 %v10028_v27  ;;  %v10012_v40 = vor.u32 %v12334_v58, %v10009_v62  ;;  %v9865_v61 = vld [vmem:[%s19667_s3 + $0x430] sm:$0xf0]  ;;  %v12326_v58 = vld [vmem:[%s19667_s3 + $0x504] sm:$0xf] }
 0x4f6   :  { %v9868_v18 = vor.u32 %v12298_v46, %v9865_v61 }
 0x4f7   :  { %v3429_v26 = vpop.f32.mrf.mxu2 }
 0x4f8   :  { %v15813_v57 = vadd.f32 %v3429_v26, %v3381_v19  ;;  %v3382_v31 = vpop.f32.mrf.mxu0  ;;  %4138 = vmatpush.bf16.msra.mxu0 %v9884_v41  ;;  %v12330_v19 = vld [vmem:[%s19667_s3 + $0x524] sm:$0xf]  ;;  %v9977_v41 = vld [vmem:[%s19667_s3 + $0x510] sm:$0xf0] }
 0x4f9   :  { %v3338_v13 = vpop.f32.mrf.mxu3  ;;  %v3383_v59 = vadd.f32 %v3382_v31, %v15242_v4  ;;  %4187 = vmatpush.bf16.msra.mxu2 %v10012_v40  ;;  %v9993_v4 = vld [vmem:[%s19667_s3 + $0x530] sm:$0xf0]  ;;  %v9980_v40 = vor.u32 %v12326_v58, %v9977_v41 }
 0x4fa   :  { %v15816_v51 = vadd.f32 %v3338_v13, %v3290_v44  ;;  %v9996_v27 = vor.u32 %v12330_v19, %v9993_v4 }
 0x4fb   :  { %v3292_v42 = vpop.f32.mrf.mxu1 }
 0x4fc   :  { %v3293_v44 = vadd.f32 %v3292_v42, %v15244_v30  ;;  %4139 = vmatpush.bf16.msra.mxu0 %v9868_v18  ;;  %v9852_v30 = vor.u32 %v12294_v23, %v9849_v63 }
 0x4fd   :  { %4188 = vmatpush.bf16.msra.mxu2 %v9996_v27 }
 0x4fe   :  { %3487 = vmatmul.bf16.gmra.mxu1 %v14816_v55  ;;  %3536 = vmatmul.bf16.gmra.mxu3 %v14818_v25 }
 0x4ff   :  { %v3431_v26 = vpop.f32.mrf.mxu2 }
 0x500   :  { %v15845_v62 = vadd.f32 %v3431_v26, %v3383_v59  ;;  %v3385_v31 = vpop.f32.mrf.mxu0  ;;  %4140 = vmatpush.bf16.msra.mxu0 %v9852_v30  ;;  %v20005_v30 = vld [vmem:[#allocation35_spill] sm:$0xff] }
 0x501   :  { %v3341_v13 = vpop.f32.mrf.mxu3  ;;  %v3386_v46 = vadd.f32 %v3385_v31, %v15248_v45  ;;  %4189 = vmatpush.bf16.msra.mxu2 %v9980_v40 }
 0x502   :  { %v15848_v61 = vadd.f32 %v3341_v13, %v3293_v44 }
 0x503   :  { %v3294_v19 = vpop.f32.mrf.mxu1  ;;  %3580 = vmatmul.bf16.gmra.mxu0 %v14708_v2 }
 0x504   :  { %v3295_v42 = vadd.f32 %v3294_v19, %v15250_v34  ;;  %3629 = vmatmul.bf16.gmra.mxu2 %v14710_v54 }
 0x507   :  { %v3434_v18 = vpop.f32.mrf.mxu2 }
 0x508   :  { %v15853_v4 = vadd.f32 %v3434_v18, %v3386_v46  ;;  %v3387_v59 = vpop.f32.mrf.mxu0  ;;  %v20009_v18 = vld [vmem:[#allocation38_spill] sm:$0xff] }
 0x509   :  { %v3343_v27 = vpop.f32.mrf.mxu3  ;;  %v3388_v23 = vadd.f32 %v3387_v59, %v15254_v12  ;;  %v20007_v12 = vld [vmem:[#allocation28_spill] sm:$0xff] }
 0x50a   :  { %v15856_v63 = vadd.f32 %v3343_v27, %v3295_v42 }
 0x50b   :  { %v3453_v45 = vpop.f32.mrf.mxu1 }
 0x50c   :  { %v3454_v44 = vadd.f32 %v3453_v45, %v15256_v15 }
 0x50e   :  { %4043 = vmatmul.bf16.vlgmr.msra.gmra.mxu1 %v14520_v21  ;;  %4092 = vmatmul.bf16.vlgmr.msra.gmra.mxu3 %v14522_v29 }
 0x50f   :  { %v3436_v58 = vpop.f32.mrf.mxu2 }
 0x510   :  { %v15861_v34 = vadd.f32 %v3436_v58, %v3388_v23  ;;  %v3390_v26 = vpop.f32.mrf.mxu0  ;;  %v20011_v58 = vld [vmem:[#allocation30_spill] sm:$0xff] }
 0x511   :  { %v3391_v41 = vadd.f32 %v3390_v26, %v20005_v30  ;;  %v3502_v31 = vpop.f32.mrf.mxu3 }
 0x512   :  { %v15864_v40 = vadd.f32 %v3502_v31, %v3454_v44 }
 0x513   :  { %v3455_v13 = vpop.f32.mrf.mxu1  ;;  %3585 = vmatmul.bf16.gmra.mxu0 %v14816_v55 }
 0x514   :  { %20006 = vst [vmem:[#allocation58_spill] sm:$0xff] %v15864_v40  ;;  %v3456_v46 = vadd.f32 %v3455_v13, %v20007_v12  ;;  %3634 = vmatmul.bf16.gmra.mxu2 %v14818_v25  ;;  %v12307_v40 = vld [vmem:[%s19667_s3 + $0x46c] sm:$0xf] }
 0x517   :  { %v3439_v15 = vpop.f32.mrf.mxu2 }
 0x518   :  { %v15869_v19 = vadd.f32 %v3439_v15, %v3391_v41  ;;  %v3392_v42 = vpop.f32.mrf.mxu0  ;;  %v20013_v41 = vld [vmem:[#allocation31_spill] sm:$0xff] }
 0x519   :  { %v3393_v59 = vadd.f32 %v3392_v42, %v20009_v18  ;;  %v3504_v27 = vpop.f32.mrf.mxu3 }
 0x51a   :  { %20008 = vst [vmem:[#allocation65_spill] sm:$0xff] %v15869_v19  ;;  %v15872_v23 = vadd.f32 %v3504_v27, %v3456_v46  ;;  %v20015_v46 = vld [vmem:[#allocation39_spill] sm:$0xff] }
 0x51b   :  { %v3458_v45 = vpop.f32.mrf.mxu1 }
 0x51c   :  { %20010 = vst [vmem:[#allocation61_spill] sm:$0xff] %v15872_v23  ;;  %v3459_v44 = vadd.f32 %v3458_v45, %v20011_v58 }
 0x51e   :  { %4048 = vmatmul.bf16.gmra.mxu1 %v14552_v47  ;;  %4097 = vmatmul.bf16.gmra.mxu3 %v14554_v36 }
 0x51f   :  { %v3441_v26 = vpop.f32.mrf.mxu2 }
 0x520   :  { %v15877_v30 = vadd.f32 %v3441_v26, %v3393_v59  ;;  %v3551_v31 = vpop.f32.mrf.mxu0  ;;  %v20017_v59 = vld [vmem:[#allocation41_spill] sm:$0xff] }
 0x521   :  { %v3507_v13 = vpop.f32.mrf.mxu3  ;;  %v3552_v12 = vadd.f32 %v3551_v31, %v20013_v41  ;;  %v20019_v31 = vld [vmem:[#allocation34_spill] sm:$0xff] }
 0x522   :  { %20012 = vst [vmem:[#allocation60_spill] sm:$0xff] %v15877_v30  ;;  %v15880_v15 = vadd.f32 %v3507_v13, %v3459_v44 }
 0x523   :  { %v3460_v42 = vpop.f32.mrf.mxu1  ;;  %4141 = vmatmul.bf16.vlgmr.msra.gmra.mxu0 %v14520_v21 }
 0x524   :  { %20014 = vst [vmem:[#allocation66_spill] sm:$0xff] %v15880_v15  ;;  %v3461_v18 = vadd.f32 %v3460_v42, %v20015_v46  ;;  %4190 = vmatmul.bf16.vlgmr.msra.gmra.mxu2 %v14522_v29 }
 0x527   :  { %v3600_v27 = vpop.f32.mrf.mxu2 }
 0x528   :  { %v15885_v45 = vadd.f32 %v3600_v27, %v3552_v12  ;;  %v3553_v58 = vpop.f32.mrf.mxu0  ;;  %v20021_v12 = vld [vmem:[#allocation44_spill] sm:$0xff] }
 0x529   :  { %v3509_v23 = vpop.f32.mrf.mxu3  ;;  %v3554_v26 = vadd.f32 %v3553_v58, %v20017_v59 }
 0x52a   :  { %20016 = vst [vmem:[#allocation68_spill] sm:$0xff] %v15885_v45  ;;  %v15888_v30 = vadd.f32 %v3509_v23, %v3461_v18  ;;  %v20023_v23 = vld [vmem:[#allocation36_spill] sm:$0xff] }
 0x52b   :  { %v3463_v19 = vpop.f32.mrf.mxu1 }
 0x52c   :  { %20018 = vst [vmem:[#allocation63_spill] sm:$0xff] %v15888_v30  ;;  %v3464_v44 = vadd.f32 %v3463_v19, %v20019_v31 }
 0x52e   :  { %4053 = vmatmul.bf16.gmra.mxu1 %v14584_v1  ;;  %4102 = vmatmul.bf16.gmra.mxu3 %v14586_v60 }
 0x52f   :  { %v3602_v13 = vpop.f32.mrf.mxu2 }
 0x530   :  { %v15893_v41 = vadd.f32 %v3602_v13, %v3554_v26  ;;  %v3556_v42 = vpop.f32.mrf.mxu0  ;;  %v20025_v26 = vld [vmem:[#allocation37_spill] sm:$0xff] }
 0x531   :  { %v3512_v46 = vpop.f32.mrf.mxu3  ;;  %v3557_v27 = vadd.f32 %v3556_v42, %v20021_v12  ;;  %v20027_v42 = vld [vmem:[#allocation45_spill] sm:$0xff] }
 0x532   :  { %20020 = vst [vmem:[#allocation64_spill] sm:$0xff] %v15893_v41  ;;  %v15896_v45 = vadd.f32 %v3512_v46, %v3464_v44 }
 0x533   :  { %v3465_v15 = vpop.f32.mrf.mxu1  ;;  %4146 = vmatmul.bf16.gmra.mxu0 %v14552_v47 }
 0x534   :  { %20022 = vst [vmem:[#allocation67_spill] sm:$0xff] %v15896_v45  ;;  %v3466_v18 = vadd.f32 %v3465_v15, %v20023_v23  ;;  %4195 = vmatmul.bf16.gmra.mxu2 %v14554_v36 }
 0x537   :  { %v3605_v19 = vpop.f32.mrf.mxu2 }
 0x538   :  { %v15901_v58 = vadd.f32 %v3605_v19, %v3557_v27  ;;  %v3558_v59 = vpop.f32.mrf.mxu0  ;;  %v20029_v27 = vld [vmem:[#allocation47_spill] sm:$0xff] }
 0x539   :  { %v3514_v31 = vpop.f32.mrf.mxu3  ;;  %v3559_v13 = vadd.f32 %v3558_v59, %v20025_v26 }
 0x53a   :  { %20024 = vst [vmem:[#allocation69_spill] sm:$0xff] %v15901_v58  ;;  %v15904_v41 = vadd.f32 %v3514_v31, %v3466_v18  ;;  %v20031_v18 = vld [vmem:[#allocation40_spill] sm:$0xff]  ;;  %v10097_v31 = vld [vmem:[%s19667_s3 + $0x5f8] sm:$0xf0] }
 0x53b   :  { %v3468_v30 = vpop.f32.mrf.mxu1 }
 0x53c   :  { %20026 = vst [vmem:[#allocation70_spill] sm:$0xff] %v15904_v41  ;;  %v3469_v44 = vadd.f32 %v3468_v30, %v20027_v42  ;;  %v12355_v30 = vld [vmem:[%s19667_s3 + $0x5ec] sm:$0xf]  ;;  %v20043_v41 = vld [vmem:[#allocation46_spill] sm:$0xff] }
 0x53d   :  { %v10100_v26 = vor.u32 %v12355_v30, %v10097_v31  ;;  %v12323_v30 = vld [vmem:[%s19667_s3 + $0x4ec] sm:$0xf] }
 0x53e   :  { %4058 = vmatmul.bf16.gmra.mxu1 %v14616_v48  ;;  %4107 = vmatmul.bf16.gmra.mxu3 %v14618_v10 }
 0x53f   :  { %v3607_v46 = vpop.f32.mrf.mxu2  ;;  %4378 = vmatpush.bf16.msrb.mxu2 %v10100_v26  ;;  %v9969_v26 = vld [vmem:[%s19667_s3 + $0x4f8] sm:$0xf0] }
 0x540   :  { %v15909_v15 = vadd.f32 %v3607_v46, %v3559_v13  ;;  %v3561_v12 = vpop.f32.mrf.mxu0 }
 0x541   :  { %v3517_v23 = vpop.f32.mrf.mxu3  ;;  %v3562_v19 = vadd.f32 %v3561_v12, %v20029_v27  ;;  %v20033_v12 = vld [vmem:[#allocation50_spill] sm:$0xff]  ;;  %v10095_v27 = vld [vmem:[%s19667_s3 + $0x5e8] sm:$0xf] }
 0x542   :  { %20028 = vst [vmem:[#allocation71_spill] sm:$0xff] %v15909_v15  ;;  %v15912_v58 = vadd.f32 %v3517_v23, %v3469_v44 }
 0x543   :  { %v3470_v45 = vpop.f32.mrf.mxu1  ;;  %4151 = vmatmul.bf16.gmra.mxu0 %v14584_v1 }
 0x544   :  { %20030 = vst [vmem:[#allocation72_spill] sm:$0xff] %v15912_v58  ;;  %v3471_v59 = vadd.f32 %v3470_v45, %v20031_v18  ;;  %4200 = vmatmul.bf16.gmra.mxu2 %v14586_v60  ;;  %v12357_v18 = vld [vmem:[%s19667_s3 + $0x5f4] sm:$0xf0] }
 0x545   :  { %v10096_v31 = vor.u32 %v12357_v18, %v10095_v27 }
 0x547   :  { %v3610_v13 = vpop.f32.mrf.mxu2  ;;  %4280 = vmatpush.bf16.msrb.mxu3 %v10096_v31  ;;  %v10079_v31 = vld [vmem:[%s19667_s3 + $0x5c8] sm:$0xf] }
 0x548   :  { %v15923_v42 = vadd.f32 %v3610_v13, %v3562_v19  ;;  %v3563_v44 = vpop.f32.mrf.mxu0 }
 0x549   :  { %v3519_v46 = vpop.f32.mrf.mxu3  ;;  %v3564_v23 = vadd.f32 %v3563_v44, %v20033_v12  ;;  %v9972_v44 = vor.u32 %v12323_v30, %v9969_v26  ;;  %v12325_v12 = vld [vmem:[%s19667_s3 + $0x4f4] sm:$0xf0] }
 0x54a   :  { %20032 = vst [vmem:[#allocation73_spill] sm:$0xff] %v15923_v42  ;;  %v15926_v45 = vadd.f32 %v3519_v46, %v3471_v59  ;;  %v20035_v59 = vld [vmem:[#allocation42_spill] sm:$0xff]  ;;  %v9967_v46 = vld [vmem:[%s19667_s3 + $0x4e8] sm:$0xf]  ;;  %v12321_v26 = vld [vmem:[%s19667_s3 + $0x4d4] sm:$0xf0] }
 0x54b   :  { %v3473_v19 = vpop.f32.mrf.mxu1  ;;  %4329 = vmatpush.bf16.msrb.mxu0 %v9972_v44  ;;  %v20039_v42 = vld [vmem:[#allocation51_spill] sm:$0xff] }
 0x54c   :  { %20034 = vst [vmem:[#allocation74_spill] sm:$0xff] %v15926_v45  ;;  %v3474_v13 = vadd.f32 %v3473_v19, %v20035_v59  ;;  %v9968_v45 = vor.u32 %v12325_v12, %v9967_v46  ;;  %v9951_v19 = vld [vmem:[%s19667_s3 + $0x4c8] sm:$0xf] }
 0x54d   :  { %v20037_v46 = vld [vmem:[#allocation43_spill] sm:$0xff]  ;;  %v9952_v44 = vor.u32 %v12321_v26, %v9951_v19  ;;  %v10081_v19 = vld [vmem:[%s19667_s3 + $0x5d8] sm:$0xf0] }
 0x54e   :  { %4063 = vmatmul.bf16.gmra.mxu1 %v14708_v2  ;;  %4112 = vmatmul.bf16.gmra.mxu3 %v14710_v54 }
 0x54f   :  { %v3612_v27 = vpop.f32.mrf.mxu2  ;;  %4231 = vmatpush.bf16.msrb.mxu1 %v9968_v45 }
 0x550   :  { %v15949_v18 = vadd.f32 %v3612_v27, %v3564_v23  ;;  %v3566_v30 = vpop.f32.mrf.mxu0  ;;  %v12353_v23 = vld [vmem:[%s19667_s3 + $0x5d4] sm:$0xf0] }
 0x551   :  { %v3522_v59 = vpop.f32.mrf.mxu3  ;;  %v3567_v12 = vadd.f32 %v3566_v30, %v20037_v46  ;;  %v10080_v27 = vor.u32 %v12353_v23, %v10079_v31  ;;  %v12351_v30 = vld [vmem:[%s19667_s3 + $0x5cc] sm:$0xf]  ;;  %v12349_v31 = vld [vmem:[%s19667_s3 + $0x5b4] sm:$0xf0] }
 0x552   :  { %20036 = vst [vmem:[#allocation78_spill] sm:$0xff] %v15949_v18  ;;  %v15964_v45 = vadd.f32 %v3522_v59, %v3474_v13  ;;  %v9935_v13 = vld [vmem:[%s19667_s3 + $0x4a8] sm:$0xf]  ;;  %v10084_v26 = vor.u32 %v12351_v30, %v10081_v19  ;;  %v12313_v19 = vld [vmem:[%s19667_s3 + $0x494] sm:$0xf0] }
 0x553   :  { %v3475_v18 = vpop.f32.mrf.mxu1  ;;  %4156 = vmatmul.bf16.gmra.mxu0 %v14616_v48  ;;  %4232 = vmatpush.bf16.msrb.mxu1 %v9952_v44  ;;  %v9919_v30 = vld [vmem:[%s19667_s3 + $0x488] sm:$0xf] }
 0x554   :  { %20038 = vst [vmem:[#allocation75_spill] sm:$0xff] %v15964_v45  ;;  %v3476_v58 = vadd.f32 %v3475_v18, %v20039_v42  ;;  %4205 = vmatmul.bf16.gmra.mxu2 %v14618_v10  ;;  %4281 = vmatpush.bf16.msrb.mxu3 %v10080_v27  ;;  %v12317_v42 = vld [vmem:[%s19667_s3 + $0x4b4] sm:$0xf0]  ;;  %v10063_v18 = vld [vmem:[%s19667_s3 + $0x5a8] sm:$0xf] }
 0x555   :  { %v9936_v59 = vor.u32 %v12317_v42, %v9935_v13  ;;  %v10064_v46 = vor.u32 %v12349_v31, %v10063_v18  ;;  %4379 = vmatpush.bf16.msrb.mxu2 %v10084_v26  ;;  %v10047_v13 = vld [vmem:[%s19667_s3 + $0x588] sm:$0xf]  ;;  %v20041_v18 = vld [vmem:[#allocation53_spill] sm:$0xff] }
 0x556   :  { %v12345_v31 = vld [vmem:[%s19667_s3 + $0x594] sm:$0xf0] }
 0x557   :  { %v3615_v44 = vpop.f32.mrf.mxu2  ;;  %4233 = vmatpush.bf16.msrb.mxu1 %v9936_v59 }
 0x558   :  { %v15987_v23 = vadd.f32 %v3615_v44, %v3567_v12  ;;  %v3568_v27 = vpop.f32.mrf.mxu0  ;;  %4282 = vmatpush.bf16.msrb.mxu3 %v10064_v46  ;;  %v9920_v12 = vor.u32 %v12313_v19, %v9919_v30  ;;  %v12319_v46 = vld [vmem:[%s19667_s3 + $0x4cc] sm:$0xf]  ;;  %v9953_v44 = vld [vmem:[%s19667_s3 + $0x4d8] sm:$0xf0]  ;;  %v12309_v30 = vld [vmem:[%s19667_s3 + $0x474] sm:$0xf0] }
 0x559   :  { %v3524_v42 = vpop.f32.mrf.mxu3  ;;  %v3569_v26 = vadd.f32 %v3568_v27, %v20041_v18  ;;  %v9956_v15 = vor.u32 %v12319_v46, %v9953_v44  ;;  %v10031_v19 = vld [vmem:[%s19667_s3 + $0x568] sm:$0xf]  ;;  %v20045_v44 = vld [vmem:[#allocation56_spill] sm:$0xff] }
 0x55a   :  { %20040 = vst [vmem:[#allocation2_spill] sm:$0xff] %v15987_v23  ;;  %v16002_v59 = vadd.f32 %v3524_v42, %v3476_v58  ;;  %v10048_v23 = vor.u32 %v12345_v31, %v10047_v13  ;;  %v9903_v58 = vld [vmem:[%s19667_s3 + $0x468] sm:$0xf] }
 0x55b   :  { %v3478_v45 = vpop.f32.mrf.mxu1  ;;  %4234 = vmatpush.bf16.msrb.mxu1 %v9920_v12  ;;  %4330 = vmatpush.bf16.msrb.mxu0 %v9956_v15  ;;  %v9904_v13 = vor.u32 %v12309_v30, %v9903_v58  ;;  %v9887_v15 = vld [vmem:[%s19667_s3 + $0x448] sm:$0xf]  ;;  %v12305_v12 = vld [vmem:[%s19667_s3 + $0x454] sm:$0xf0] }
 0x55c   :  { %20042 = vst [vmem:[#allocation8_spill] sm:$0xff] %v16002_v59  ;;  %v3479_v27 = vadd.f32 %v3478_v45, %v20043_v41  ;;  %4283 = vmatpush.bf16.msrb.mxu3 %v10048_v23  ;;  %v12341_v41 = vld [vmem:[%s19667_s3 + $0x574] sm:$0xf0]  ;;  %v10015_v31 = vld [vmem:[%s19667_s3 + $0x548] sm:$0xf] }
 0x55d   :  { %v10032_v45 = vor.u32 %v12341_v41, %v10031_v19  ;;  %v12337_v30 = vld [vmem:[%s19667_s3 + $0x554] sm:$0xf0] }
 0x55e   :  { %4068 = vmatmul.bf16.gmra.mxu1 %v14816_v55  ;;  %4117 = vmatmul.bf16.gmra.mxu3 %v14818_v25 }
 0x55f   :  { %v3617_v23 = vpop.f32.mrf.mxu2  ;;  %4235 = vmatpush.bf16.msrb.mxu1 %v9904_v13  ;;  %v10016_v13 = vor.u32 %v12337_v30, %v10015_v31  ;;  %v12301_v31 = vld [vmem:[%s19667_s3 + $0x434] sm:$0xf0] }
 0x560   :  { %v16025_v42 = vadd.f32 %v3617_v23, %v3569_v26  ;;  %v3571_v18 = vpop.f32.mrf.mxu0  ;;  %4284 = vmatpush.bf16.msrb.mxu3 %v10032_v45  ;;  %v9888_v26 = vor.u32 %v12305_v12, %v9887_v15  ;;  %v20047_v45 = vld [vmem:[#allocation48_spill] sm:$0xff]  ;;  %v10065_v15 = vld [vmem:[%s19667_s3 + $0x5b8] sm:$0xf0] }
 0x561   :  { %v3527_v46 = vpop.f32.mrf.mxu3  ;;  %v3572_v58 = vadd.f32 %v3571_v18, %v20045_v44  ;;  %v12347_v18 = vld [vmem:[%s19667_s3 + $0x5ac] sm:$0xf]  ;;  %v12333_v44 = vld [vmem:[%s19667_s3 + $0x534] sm:$0xf0] }
 0x562   :  { %20044 = vst [vmem:[#allocation80_spill] sm:$0xff] %v16025_v42  ;;  %v16040_v19 = vadd.f32 %v3527_v46, %v3479_v27  ;;  %v9871_v27 = vld [vmem:[%s19667_s3 + $0x428] sm:$0xf]  ;;  %v10068_v12 = vor.u32 %v12347_v18, %v10065_v15  ;;  %v12297_v15 = vld [vmem:[%s19667_s3 + $0x414] sm:$0xf0] }
 0x563   :  { %v3480_v41 = vpop.f32.mrf.mxu1  ;;  %4161 = vmatmul.bf16.gmra.mxu0 %v14708_v2  ;;  %4236 = vmatpush.bf16.msrb.mxu1 %v9888_v26  ;;  %v9999_v46 = vld [vmem:[%s19667_s3 + $0x528] sm:$0xf]  ;;  %v9872_v26 = vor.u32 %v12301_v31, %v9871_v27  ;;  %v20049_v31 = vld [vmem:[#allocation49_spill] sm:$0xff] }
 0x564   :  { %20046 = vst [vmem:[#allocation76_spill] sm:$0xff] %v16040_v19  ;;  %v3481_v23 = vadd.f32 %v3480_v41, %v20047_v45  ;;  %4210 = vmatmul.bf16.gmra.mxu2 %v14710_v54  ;;  %4285 = vmatpush.bf16.msrb.mxu3 %v10016_v13  ;;  %v10000_v30 = vor.u32 %v12333_v44, %v9999_v46  ;;  %v9855_v18 = vld [vmem:[%s19667_s3 + $0x408] sm:$0xf] }
 0x565   :  { %4380 = vmatpush.bf16.msrb.mxu2 %v10068_v12  ;;  %v9983_v19 = vld [vmem:[%s19667_s3 + $0x508] sm:$0xf]  ;;  %v12329_v12 = vld [vmem:[%s19667_s3 + $0x514] sm:$0xf0] }
 0x567   :  { %v3620_v41 = vpop.f32.mrf.mxu2  ;;  %4237 = vmatpush.bf16.msrb.mxu1 %v9872_v26  ;;  %v12315_v26 = vld [vmem:[%s19667_s3 + $0x4ac] sm:$0xf] }
 0x568   :  { %v16063_v45 = vadd.f32 %v3620_v41, %v3572_v58  ;;  %v3573_v13 = vpop.f32.mrf.mxu0  ;;  %4286 = vmatpush.bf16.msrb.mxu3 %v10000_v30  ;;  %v9856_v58 = vor.u32 %v12297_v15, %v9855_v18  ;;  %v9937_v41 = vld [vmem:[%s19667_s3 + $0x4b8] sm:$0xf0]  ;;  %v20052_v18 = vld [vmem:[#allocation19_spill] sm:$0xff] }
 0x569   :  { %v3529_v27 = vpop.f32.mrf.mxu3  ;;  %v3574_v46 = vadd.f32 %v3573_v13, %v20049_v31  ;;  %v9940_v59 = vor.u32 %v12315_v26, %v9937_v41  ;;  %v20051_v13 = vld [vmem:[#allocation57_spill] sm:$0xff]  ;;  %v12311_v15 = vld [vmem:[%s19667_s3 + $0x48c] sm:$0xf] }
 0x56a   :  { %20048 = vst [vmem:[#allocation3_spill] sm:$0xff] %v16063_v45  ;;  %v16078_v44 = vadd.f32 %v3529_v27, %v3481_v23  ;;  %v9984_v45 = vor.u32 %v12329_v12, %v9983_v19  ;;  %v20053_v23 = vld [vmem:[#allocation27_spill] sm:$0xff]  ;;  %v9921_v27 = vld [vmem:[%s19667_s3 + $0x498] sm:$0xf0] }
 0x56b   :  { %v3483_v42 = vpop.f32.mrf.mxu1  ;;  %4238 = vmatpush.bf16.msrb.mxu1 %v9856_v58  ;;  %4331 = vmatpush.bf16.msrb.mxu0 %v9940_v59  ;;  %v12343_v19 = vld [vmem:[%s19667_s3 + $0x58c] sm:$0xf]  ;;  %v9924_v31 = vor.u32 %v12311_v15, %v9921_v27  ;;  %v10049_v59 = vld [vmem:[%s19667_s3 + $0x598] sm:$0xf0] }
 0x56c   :  { %20050 = vst [vmem:[#allocation4_spill] sm:$0xff] %v16078_v44  ;;  %v3484_v30 = vadd.f32 %v3483_v42, %v20051_v13  ;;  %4287 = vmatpush.bf16.msrb.mxu3 %v9984_v45  ;;  %v10052_v12 = vor.u32 %v12343_v19, %v10049_v59  ;;  %v20055_v41 = vld [vmem:[#allocation59_spill] sm:$0xff]  ;;  %v9905_v15 = vld [vmem:[%s19667_s3 + $0x478] sm:$0xf0] }
 0x56d   :  { %v9908_v19 = vor.u32 %v12307_v40, %v9905_v15  ;;  %v12335_v40 = vld [vmem:[%s19667_s3 + $0x54c] sm:$0xf]  ;;  %v10017_v15 = vld [vmem:[%s19667_s3 + $0x558] sm:$0xf0] }
 0x56e   :  { %4073 = vmatmul.bf16.gmra.mxu1 %v20052_v18  ;;  %4122 = vmatmul.bf16.gmra.mxu3 %v20053_v23 }
 0x56f   :  { %v3622_v42 = vpop.f32.mrf.mxu2  ;;  %4332 = vmatpush.bf16.msrb.mxu0 %v9924_v31  ;;  %4381 = vmatpush.bf16.msrb.mxu2 %v10052_v12  ;;  %v9889_v12 = vld [vmem:[%s19667_s3 + $0x458] sm:$0xf0] }
 0x570   :  { %v16101_v45 = vadd.f32 %v3622_v42, %v3574_v46  ;;  %v3576_v58 = vpop.f32.mrf.mxu0  ;;  %v12339_v46 = vld [vmem:[%s19667_s3 + $0x56c] sm:$0xf]  ;;  %v20057_v42 = vld [vmem:[#allocation52_spill] sm:$0xff] }
 0x571   :  { %v3532_v26 = vpop.f32.mrf.mxu3  ;;  %v3577_v13 = vadd.f32 %v3576_v58, %v20055_v41  ;;  %v12303_v58 = vld [vmem:[%s19667_s3 + $0x44c] sm:$0xf] }
 0x572   :  { %20054 = vst [vmem:[#allocation77_spill] sm:$0xff] %v16101_v45  ;;  %v16104_v44 = vadd.f32 %v3532_v26, %v3484_v30  ;;  %v10033_v30 = vld [vmem:[%s19667_s3 + $0x578] sm:$0xf0]  ;;  %v9892_v41 = vor.u32 %v12303_v58, %v9889_v12 }
 0x573   :  { %v3485_v27 = vpop.f32.mrf.mxu1  ;;  %4166 = vmatmul.bf16.gmra.mxu0 %v14816_v55  ;;  %v10036_v59 = vor.u32 %v12339_v46, %v10033_v30  ;;  %v9873_v58 = vld [vmem:[%s19667_s3 + $0x438] sm:$0xf0] }
 0x574   :  { %20056 = vst [vmem:[#allocation82_spill] sm:$0xff] %v16104_v44  ;;  %v3486_v31 = vadd.f32 %v3485_v27, %v20057_v42  ;;  %4215 = vmatmul.bf16.gmra.mxu2 %v14818_v25  ;;  %4333 = vmatpush.bf16.msrb.mxu0 %v9908_v19  ;;  %v10020_v19 = vor.u32 %v12335_v40, %v10017_v15  ;;  %v12299_v44 = vld [vmem:[%s19667_s3 + $0x42c] sm:$0xf]  ;;  %v20061_v15 = vld [vmem:[#allocation22_spill] sm:$0xff] }
 0x575   :  { %4382 = vmatpush.bf16.msrb.mxu2 %v10036_v59  ;;  %v9876_v40 = vor.u32 %v12299_v44, %v9873_v58  ;;  %v9857_v44 = vld [vmem:[%s19667_s3 + $0x418] sm:$0xf0] }
 0x576   :  { %v9985_v58 = vld [vmem:[%s19667_s3 + $0x518] sm:$0xf0] }
 0x577   :  { %v3625_v26 = vpop.f32.mrf.mxu2 }
 0x578   :  { %v16133_v46 = vadd.f32 %v3625_v26, %v3577_v13  ;;  %v3578_v27 = vpop.f32.mrf.mxu0  ;;  %4334 = vmatpush.bf16.msrb.mxu0 %v9892_v41  ;;  %v12331_v13 = vld [vmem:[%s19667_s3 + $0x52c] sm:$0xf]  ;;  %v20060_v41 = vld [vmem:[#allocation29_spill] sm:$0xff] }
 0x579   :  { %v3534_v30 = vpop.f32.mrf.mxu3  ;;  %v3579_v42 = vadd.f32 %v3578_v27, %v15530_v22  ;;  %4383 = vmatpush.bf16.msrb.mxu2 %v10020_v19  ;;  %v10001_v22 = vld [vmem:[%s19667_s3 + $0x538] sm:$0xf0]  ;;  %v12295_v27 = vld [vmem:[%s19667_s3 + $0x40c] sm:$0xf] }
 0x57a   :  { %20058 = vst [vmem:[#allocation9_spill] sm:$0xff] %v16133_v46  ;;  %v16136_v59 = vadd.f32 %v3534_v30, %v3486_v31  ;;  %v10004_v26 = vor.u32 %v12331_v13, %v10001_v22  ;;  %v12327_v19 = vld [vmem:[%s19667_s3 + $0x50c] sm:$0xf] }
 0x57b   :  { %v3488_v12 = vpop.f32.mrf.mxu1 }
 0x57c   :  { %20059 = vst [vmem:[#allocation11_spill] sm:$0xff] %v16136_v59  ;;  %v3489_v31 = vadd.f32 %v3488_v12, %v15532_v50  ;;  %4335 = vmatpush.bf16.msrb.mxu0 %v9876_v40  ;;  %v9860_v50 = vor.u32 %v12295_v27, %v9857_v44  ;;  %v9988_v40 = vor.u32 %v12327_v19, %v9985_v58 }
 0x57d   :  { %4384 = vmatpush.bf16.msrb.mxu2 %v10004_v26 }
 0x57e   :  { %4078 = vmatmul.bf16.gmra.mxu1 %v20060_v41  ;;  %4127 = vmatmul.bf16.gmra.mxu3 %v20061_v15 }
 0x57f   :  { %v3627_v30 = vpop.f32.mrf.mxu2 }
 0x580   :  { %v16165_v13 = vadd.f32 %v3627_v30, %v3579_v42  ;;  %v3581_v12 = vpop.f32.mrf.mxu0  ;;  %4336 = vmatpush.bf16.msrb.mxu0 %v9860_v50 }
 0x581   :  { %v3537_v22 = vpop.f32.mrf.mxu3  ;;  %v3582_v59 = vadd.f32 %v3581_v12, %v15536_v53  ;;  %4385 = vmatpush.bf16.msrb.mxu2 %v9988_v40 }
 0x582   :  { %v16168_v46 = vadd.f32 %v3537_v22, %v3489_v31  ;;  %v20064_v22 = vld [vmem:[#allocation62_spill] sm:$0xff] }
 0x583   :  { %v3490_v45 = vpop.f32.mrf.mxu1  ;;  %4171 = vmatmul.bf16.gmra.mxu0 %v20052_v18 }
 0x584   :  { %v3491_v26 = vadd.f32 %v3490_v45, %v15538_v5  ;;  %4220 = vmatmul.bf16.gmra.mxu2 %v20053_v23 }
 0x587   :  { %v3630_v27 = vpop.f32.mrf.mxu2 }
 0x588   :  { %v16173_v44 = vadd.f32 %v3630_v27, %v3582_v59  ;;  %v3583_v42 = vpop.f32.mrf.mxu0 }
 0x589   :  { %v3539_v30 = vpop.f32.mrf.mxu3  ;;  %v3584_v19 = vadd.f32 %v3583_v42, %v15543_v8 }
 0x58a   :  { %v16176_v58 = vadd.f32 %v3539_v30, %v3491_v26  ;;  %v20065_v30 = vld [vmem:[#allocation55_spill] sm:$0xff] }
 0x58b   :  { %v4044_v53 = vpop.f32.mrf.mxu1 }
 0x58c   :  { %20062 = vst [vmem:[#allocation84_spill] sm:$0xff] %v16176_v58 }
 0x58e   :  { %4239 = vmatmul.bf16.vlgmr.msrb.gmra.mxu1 %v14520_v21  ;;  %4288 = vmatmul.bf16.vlgmr.msrb.gmra.mxu3 %v14522_v29 }
 0x58f   :  { %v3632_v31 = vpop.f32.mrf.mxu2 }
 0x590   :  { %v16180_v50 = vadd.f32 %v3632_v31, %v3584_v19  ;;  %v3586_v5 = vpop.f32.mrf.mxu0 }
 0x591   :  { %v3587_v45 = vadd.f32 %v3586_v5, %v15550_v39  ;;  %v4093_v12 = vpop.f32.mrf.mxu3  ;;  %v20066_v39 = vld [vmem:[#allocation54_spill] sm:$0xff] }
 0x592   :  { %20063 = vst [vmem:[#allocation79_spill] sm:$0xff] %v16180_v50  ;;  %v4094_v59 = vadd.f32 %v4093_v12, %v4044_v53 }
 0x593   :  { %v4046_v40 = vpop.f32.mrf.mxu1  ;;  %4176 = vmatmul.bf16.gmra.mxu0 %v20060_v41 }
 0x594   :  { %v16185_v8 = vadd.f32 %v4094_v59, %v20064_v22  ;;  %4225 = vmatmul.bf16.gmra.mxu2 %v20061_v15 }
 0x597   :  { %v3635_v26 = vpop.f32.mrf.mxu2 }
 0x598   :  { %v16188_v27 = vadd.f32 %v3635_v26, %v3587_v45  ;;  %v3588_v42 = vpop.f32.mrf.mxu0 }
 0x599   :  { %v3589_v19 = vadd.f32 %v3588_v42, %v20065_v30  ;;  %v4095_v31 = vpop.f32.mrf.mxu3 }
 0x59a   :  { %v4096_v50 = vadd.f32 %v4095_v31, %v4046_v40 }
 0x59b   :  { %v4049_v58 = vpop.f32.mrf.mxu1 }
 0x59c   :  { %v16192_v5 = vadd.f32 %v4096_v50, %v20066_v39 }
 0x59e   :  { %4244 = vmatmul.bf16.gmra.mxu1 %v14552_v47  ;;  %4293 = vmatmul.bf16.gmra.mxu3 %v14554_v36 }
 0x59f   :  { %v3637_v53 = vpop.f32.mrf.mxu2 }
 0x5a0   :  { %v16196_v12 = vadd.f32 %v3637_v53, %v3589_v19  ;;  %v4142_v59 = vpop.f32.mrf.mxu0 }
 0x5a1   :  { %v4098_v22 = vpop.f32.mrf.mxu3 }
 0x5a2   :  { %20067 = vst [vmem:[#allocation5_spill] sm:$0xff] %v16196_v12  ;;  %v4099_v45 = vadd.f32 %v4098_v22, %v4049_v58 }
 0x5a3   :  { %v4051_v26 = vpop.f32.mrf.mxu1  ;;  %4337 = vmatmul.bf16.vlgmr.msrb.gmra.mxu0 %v14520_v21 }
 0x5a4   :  { %v16200_v42 = vadd.f32 %v4099_v45, %v15560_v49  ;;  %4386 = vmatmul.bf16.vlgmr.msrb.gmra.mxu2 %v14522_v29 }
 0x5a7   :  { %v4191_v50 = vpop.f32.mrf.mxu2 }
 0x5a8   :  { %v4192_v40 = vadd.f32 %v4191_v50, %v4142_v59  ;;  %v4144_v30 = vpop.f32.mrf.mxu0 }
 0x5a9   :  { %v4100_v31 = vpop.f32.mrf.mxu3 }
 0x5aa   :  { %v16204_v39 = vadd.f32 %v4192_v40, %v15565_v24  ;;  %v4101_v19 = vadd.f32 %v4100_v31, %v4051_v26 }
 0x5ab   :  { %v4054_v53 = vpop.f32.mrf.mxu1 }
 0x5ac   :  { %v16207_v12 = vadd.f32 %v4101_v19, %v15568_v6 }
 0x5ae   :  { %4249 = vmatmul.bf16.gmra.mxu1 %v14584_v1  ;;  %4298 = vmatmul.bf16.gmra.mxu3 %v14586_v60 }
 0x5af   :  { %v4193_v21 = vpop.f32.mrf.mxu2 }
 0x5b0   :  { %v4194_v49 = vadd.f32 %v4193_v21, %v4144_v30  ;;  %v4147_v58 = vpop.f32.mrf.mxu0 }
 0x5b1   :  { %v4103_v29 = vpop.f32.mrf.mxu3 }
 0x5b2   :  { %v16212_v59 = vadd.f32 %v4194_v49, %v15573_v7  ;;  %v4104_v22 = vadd.f32 %v4103_v29, %v4054_v53 }
 0x5b3   :  { %v4056_v45 = vpop.f32.mrf.mxu1  ;;  %4342 = vmatmul.bf16.gmra.mxu0 %v14552_v47 }
 0x5b4   :  { %v16216_v24 = vadd.f32 %v4104_v22, %v15576_v9  ;;  %4391 = vmatmul.bf16.gmra.mxu2 %v14554_v36 }
 0x5b7   :  { %v4196_v6 = vpop.f32.mrf.mxu2 }
 0x5b8   :  { %v4197_v26 = vadd.f32 %v4196_v6, %v4147_v58  ;;  %v4149_v50 = vpop.f32.mrf.mxu0 }
 0x5b9   :  { %v4105_v40 = vpop.f32.mrf.mxu3 }
 0x5ba   :  { %v16220_v30 = vadd.f32 %v4197_v26, %v15581_v43  ;;  %v4106_v31 = vadd.f32 %v4105_v40, %v4056_v45  ;;  %v10409_v45 = vld [vmem:[%s19667_s3 + $0x7f0] sm:$0xf0] }
 0x5bb   :  { %v4059_v19 = vpop.f32.mrf.mxu1 }
 0x5bc   :  { %v16223_v7 = vadd.f32 %v4106_v31, %v15584_v38  ;;  %v12418_v38 = vld [vmem:[%s19667_s3 + $0x7e4] sm:$0xf] }
 0x5bd   :  { %v10412_v6 = vor.u32 %v12418_v38, %v10409_v45 }
 0x5be   :  { %4254 = vmatmul.bf16.gmra.mxu1 %v14616_v48  ;;  %4303 = vmatmul.bf16.gmra.mxu3 %v14618_v10 }
 0x5bf   :  { %v4198_v9 = vpop.f32.mrf.mxu2  ;;  %5033 = vmatpush.bf16.msra.mxu2 %v10412_v6 }
 0x5c0   :  { %v4199_v53 = vadd.f32 %v4198_v9, %v4149_v50  ;;  %v4152_v21 = vpop.f32.mrf.mxu0 }
 0x5c1   :  { %v4108_v49 = vpop.f32.mrf.mxu3 }
 0x5c2   :  { %v16228_v58 = vadd.f32 %v4199_v53, %v15589_v20  ;;  %v4109_v29 = vadd.f32 %v4108_v49, %v4059_v19  ;;  %v10407_v53 = vld [vmem:[%s19667_s3 + $0x7e0] sm:$0xf]  ;;  %v12420_v49 = vld [vmem:[%s19667_s3 + $0x7ec] sm:$0xf0] }
 0x5c3   :  { %v4061_v22 = vpop.f32.mrf.mxu1  ;;  %4347 = vmatmul.bf16.gmra.mxu0 %v14584_v1 }
 0x5c4   :  { %v16232_v43 = vadd.f32 %v4109_v29, %v15592_v37  ;;  %4396 = vmatmul.bf16.gmra.mxu2 %v14586_v60  ;;  %v10408_v29 = vor.u32 %v12420_v49, %v10407_v53  ;;  %v10391_v53 = vld [vmem:[%s19667_s3 + $0x7c0] sm:$0xf] }
 0x5c6   :  { %4935 = vmatpush.bf16.msra.mxu3 %v10408_v29 }
 0x5c7   :  { %v4201_v20 = vpop.f32.mrf.mxu2 }
 0x5c8   :  { %v4202_v26 = vadd.f32 %v4201_v20, %v4152_v21  ;;  %v4154_v50 = vpop.f32.mrf.mxu0  ;;  %v12386_v21 = vld [vmem:[%s19667_s3 + $0x6e4] sm:$0xf] }
 0x5c9   :  { %v4110_v40 = vpop.f32.mrf.mxu3 }
 0x5ca   :  { %v16242_v31 = vadd.f32 %v4202_v26, %v15603_v0  ;;  %v4111_v37 = vadd.f32 %v4110_v40, %v4061_v22  ;;  %v10281_v0 = vld [vmem:[%s19667_s3 + $0x6f0] sm:$0xf0]  ;;  %v12388_v22 = vld [vmem:[%s19667_s3 + $0x6ec] sm:$0xf0]  ;;  %v10263_v40 = vld [vmem:[%s19667_s3 + $0x6c0] sm:$0xf] }
 0x5cb   :  { %v4064_v19 = vpop.f32.mrf.mxu1  ;;  %v10284_v38 = vor.u32 %v12386_v21, %v10281_v0 }
 0x5cc   :  { %v16245_v9 = vadd.f32 %v4111_v37, %v15606_v56  ;;  %v10279_v56 = vld [vmem:[%s19667_s3 + $0x6e0] sm:$0xf]  ;;  %v12384_v37 = vld [vmem:[%s19667_s3 + $0x6cc] sm:$0xf0] }
 0x5cd   :  { %v10280_v45 = vor.u32 %v12388_v22, %v10279_v56  ;;  %4984 = vmatpush.bf16.msra.mxu0 %v10284_v38  ;;  %v10264_v21 = vor.u32 %v12384_v37, %v10263_v40  ;;  %v12412_v40 = vld [vmem:[%s19667_s3 + $0x7ac] sm:$0xf0] }
 0x5ce   :  { %4259 = vmatmul.bf16.gmra.mxu1 %v14708_v2  ;;  %4308 = vmatmul.bf16.gmra.mxu3 %v14710_v54 }
 0x5cf   :  { %v4203_v6 = vpop.f32.mrf.mxu2  ;;  %4886 = vmatpush.bf16.msra.mxu1 %v10280_v45  ;;  %v12414_v45 = vld [vmem:[%s19667_s3 + $0x7c4] sm:$0xf] }
 0x5d0   :  { %v4204_v20 = vadd.f32 %v4203_v6, %v4154_v50  ;;  %v4157_v26 = vpop.f32.mrf.mxu0  ;;  %v12416_v50 = vld [vmem:[%s19667_s3 + $0x7cc] sm:$0xf0] }
 0x5d1   :  { %v4113_v49 = vpop.f32.mrf.mxu3  ;;  %v10392_v56 = vor.u32 %v12416_v50, %v10391_v53 }
 0x5d2   :  { %v16280_v29 = vadd.f32 %v4204_v20, %v15629_v17  ;;  %v4114_v0 = vadd.f32 %v4113_v49, %v4064_v19  ;;  %v10393_v17 = vld [vmem:[%s19667_s3 + $0x7d0] sm:$0xf0]  ;;  %v10247_v19 = vld [vmem:[%s19667_s3 + $0x6a0] sm:$0xf] }
 0x5d3   :  { %v4066_v22 = vpop.f32.mrf.mxu1  ;;  %4352 = vmatmul.bf16.gmra.mxu0 %v14616_v48  ;;  %4887 = vmatpush.bf16.msra.mxu1 %v10264_v21  ;;  %v10396_v6 = vor.u32 %v12414_v45, %v10393_v17  ;;  %v10375_v20 = vld [vmem:[%s19667_s3 + $0x7a0] sm:$0xf] }
 0x5d4   :  { %v16284_v38 = vadd.f32 %v4114_v0, %v15644_v33  ;;  %4401 = vmatmul.bf16.gmra.mxu2 %v14618_v10  ;;  %4936 = vmatpush.bf16.msra.mxu3 %v10392_v56  ;;  %v12380_v33 = vld [vmem:[%s19667_s3 + $0x6ac] sm:$0xf0]  ;;  %v10376_v53 = vor.u32 %v12412_v40, %v10375_v20  ;;  %v10231_v0 = vld [vmem:[%s19667_s3 + $0x680] sm:$0xf] }
 0x5d5   :  { %v10248_v37 = vor.u32 %v12380_v33, %v10247_v19  ;;  %5034 = vmatpush.bf16.msra.mxu2 %v10396_v6  ;;  %v12376_v56 = vld [vmem:[%s19667_s3 + $0x68c] sm:$0xf0]  ;;  %v10359_v45 = vld [vmem:[%s19667_s3 + $0x780] sm:$0xf] }
 0x5d6   :  { %v10232_v19 = vor.u32 %v12376_v56, %v10231_v0  ;;  %v12404_v0 = vld [vmem:[%s19667_s3 + $0x76c] sm:$0xf0] }
 0x5d7   :  { %v4206_v49 = vpop.f32.mrf.mxu2  ;;  %4888 = vmatpush.bf16.msra.mxu1 %v10248_v37 }
 0x5d8   :  { %v4207_v21 = vadd.f32 %v4206_v49, %v4157_v26  ;;  %v4159_v50 = vpop.f32.mrf.mxu0  ;;  %4937 = vmatpush.bf16.msra.mxu3 %v10376_v53  ;;  %v12408_v26 = vld [vmem:[%s19667_s3 + $0x78c] sm:$0xf0]  ;;  %v12382_v49 = vld [vmem:[%s19667_s3 + $0x6c4] sm:$0xf]  ;;  %v10265_v53 = vld [vmem:[%s19667_s3 + $0x6d0] sm:$0xf0] }
 0x5d9   :  { %v4115_v17 = vpop.f32.mrf.mxu3  ;;  %v10360_v20 = vor.u32 %v12408_v26, %v10359_v45 }
 0x5da   :  { %v16318_v6 = vadd.f32 %v4207_v21, %v15667_v16  ;;  %v4116_v33 = vadd.f32 %v4115_v17, %v4066_v22  ;;  %v10215_v16 = vld [vmem:[%s19667_s3 + $0x660] sm:$0xf]  ;;  %v10268_v21 = vor.u32 %v12382_v49, %v10265_v53 }
 0x5db   :  { %v4069_v40 = vpop.f32.mrf.mxu1  ;;  %4889 = vmatpush.bf16.msra.mxu1 %v10232_v19  ;;  %v10343_v22 = vld [vmem:[%s19667_s3 + $0x760] sm:$0xf] }
 0x5dc   :  { %v16321_v37 = vadd.f32 %v4116_v33, %v15682_v52  ;;  %4938 = vmatpush.bf16.msra.mxu3 %v10360_v20  ;;  %v12372_v52 = vld [vmem:[%s19667_s3 + $0x66c] sm:$0xf0]  ;;  %v10344_v45 = vor.u32 %v12404_v0, %v10343_v22  ;;  %4985 = vmatpush.bf16.msra.mxu0 %v10268_v21  ;;  %v10199_v33 = vld [vmem:[%s19667_s3 + $0x640] sm:$0xf] }
 0x5dd   :  { %v10216_v56 = vor.u32 %v12372_v52, %v10215_v16  ;;  %v12368_v20 = vld [vmem:[%s19667_s3 + $0x64c] sm:$0xf0]  ;;  %v10327_v49 = vld [vmem:[%s19667_s3 + $0x740] sm:$0xf] }
 0x5de   :  { %4264 = vmatmul.bf16.gmra.mxu1 %v14816_v55  ;;  %4313 = vmatmul.bf16.gmra.mxu3 %v14818_v25  ;;  %v10200_v16 = vor.u32 %v12368_v20, %v10199_v33  ;;  %v12396_v33 = vld [vmem:[%s19667_s3 + $0x72c] sm:$0xf0] }
 0x5df   :  { %v4208_v17 = vpop.f32.mrf.mxu2  ;;  %4890 = vmatpush.bf16.msra.mxu1 %v10216_v56 }
 0x5e0   :  { %v4209_v19 = vadd.f32 %v4208_v17, %v4159_v50  ;;  %v4162_v26 = vpop.f32.mrf.mxu0  ;;  %4939 = vmatpush.bf16.msra.mxu3 %v10344_v45  ;;  %v12400_v50 = vld [vmem:[%s19667_s3 + $0x74c] sm:$0xf0]  ;;  %v12410_v45 = vld [vmem:[%s19667_s3 + $0x7a4] sm:$0xf] }
 0x5e1   :  { %v4118_v53 = vpop.f32.mrf.mxu3  ;;  %v10328_v22 = vor.u32 %v12400_v50, %v10327_v49 }
 0x5e2   :  { %v16356_v21 = vadd.f32 %v4209_v19, %v15705_v28  ;;  %v4119_v52 = vadd.f32 %v4118_v53, %v4069_v40  ;;  %v10377_v28 = vld [vmem:[%s19667_s3 + $0x7b0] sm:$0xf0]  ;;  %v10183_v40 = vld [vmem:[%s19667_s3 + $0x620] sm:$0xf] }
 0x5e3   :  { %v4071_v0 = vpop.f32.mrf.mxu1  ;;  %4357 = vmatmul.bf16.gmra.mxu0 %v14708_v2  ;;  %4891 = vmatpush.bf16.msra.mxu1 %v10200_v16  ;;  %v10380_v17 = vor.u32 %v12410_v45, %v10377_v28  ;;  %v10311_v19 = vld [vmem:[%s19667_s3 + $0x720] sm:$0xf] }
 0x5e4   :  { %v16360_v56 = vadd.f32 %v4119_v52, %v15720_v11  ;;  %4406 = vmatmul.bf16.gmra.mxu2 %v14710_v54  ;;  %4940 = vmatpush.bf16.msra.mxu3 %v10328_v22  ;;  %v12364_v11 = vld [vmem:[%s19667_s3 + $0x62c] sm:$0xf0]  ;;  %v10312_v49 = vor.u32 %v12396_v33, %v10311_v19  ;;  %v10167_v52 = vld [vmem:[%s19667_s3 + $0x600] sm:$0xf]  ;;  %v12378_v19 = vld [vmem:[%s19667_s3 + $0x6a4] sm:$0xf] }
 0x5e5   :  { %v10184_v20 = vor.u32 %v12364_v11, %v10183_v40  ;;  %5035 = vmatpush.bf16.msra.mxu2 %v10380_v17  ;;  %v12360_v22 = vld [vmem:[%s19667_s3 + $0x60c] sm:$0xf0]  ;;  %v10295_v45 = vld [vmem:[%s19667_s3 + $0x700] sm:$0xf]  ;;  %v10249_v33 = vld [vmem:[%s19667_s3 + $0x6b0] sm:$0xf0] }
 0x5e6   :  { %v10168_v40 = vor.u32 %v12360_v22, %v10167_v52 }
 0x5e7   :  { %v4211_v53 = vpop.f32.mrf.mxu2  ;;  %4892 = vmatpush.bf16.msra.mxu1 %v10184_v20 }
 0x5e8   :  { %v4212_v16 = vadd.f32 %v4211_v53, %v4162_v26  ;;  %v4164_v50 = vpop.f32.mrf.mxu0  ;;  %4941 = vmatpush.bf16.msra.mxu3 %v10312_v49  ;;  %v12392_v26 = vld [vmem:[%s19667_s3 + $0x70c] sm:$0xf0]  ;;  %v10252_v49 = vor.u32 %v12378_v19, %v10249_v33 }
 0x5e9   :  { %v4120_v28 = vpop.f32.mrf.mxu3  ;;  %v10296_v20 = vor.u32 %v12392_v26, %v10295_v45  ;;  %v10361_v45 = vld [vmem:[%s19667_s3 + $0x790] sm:$0xf0] }
 0x5ea   :  { %v16394_v17 = vadd.f32 %v4212_v16, %v15743_v3  ;;  %v4121_v11 = vadd.f32 %v4120_v28, %v4071_v0  ;;  %4986 = vmatpush.bf16.msra.mxu0 %v10252_v49  ;;  %v12374_v3 = vld [vmem:[%s19667_s3 + $0x684] sm:$0xf]  ;;  %v10233_v0 = vld [vmem:[%s19667_s3 + $0x690] sm:$0xf0] }
 0x5eb   :  { %v4074_v53 = vpop.f32.mrf.mxu1  ;;  %4893 = vmatpush.bf16.msra.mxu1 %v10168_v40  ;;  %v10236_v22 = vor.u32 %v12374_v3, %v10233_v0  ;;  %v10217_v49 = vld [vmem:[%s19667_s3 + $0x670] sm:$0xf0] }
 0x5ec   :  { %v16403_v52 = vadd.f32 %v4121_v11, %v15758_v32  ;;  %4942 = vmatpush.bf16.msra.mxu3 %v10296_v20  ;;  %v12406_v32 = vld [vmem:[%s19667_s3 + $0x784] sm:$0xf] }
 0x5ed   :  { %v10364_v26 = vor.u32 %v12406_v32, %v10361_v45  ;;  %v12370_v20 = vld [vmem:[%s19667_s3 + $0x664] sm:$0xf] }
 0x5ee   :  { %4269 = vmatmul.bf16.gmra.mxu1 %v20052_v18  ;;  %4318 = vmatmul.bf16.gmra.mxu3 %v20053_v23  ;;  %v10220_v0 = vor.u32 %v12370_v20, %v10217_v49  ;;  %v12398_v45 = vld [vmem:[%s19667_s3 + $0x744] sm:$0xf] }
 0x5ef   :  { %v4213_v16 = vpop.f32.mrf.mxu2  ;;  %4987 = vmatpush.bf16.msra.mxu0 %v10236_v22  ;;  %5036 = vmatpush.bf16.msra.mxu2 %v10364_v26  ;;  %v10201_v22 = vld [vmem:[%s19667_s3 + $0x650] sm:$0xf0] }
 0x5f0   :  { %v4214_v28 = vadd.f32 %v4213_v16, %v4164_v50  ;;  %v4167_v40 = vpop.f32.mrf.mxu0  ;;  %v12402_v50 = vld [vmem:[%s19667_s3 + $0x764] sm:$0xf]  ;;  %v10329_v26 = vld [vmem:[%s19667_s3 + $0x750] sm:$0xf0] }
 0x5f1   :  { %v4123_v11 = vpop.f32.mrf.mxu3  ;;  %v12366_v16 = vld [vmem:[%s19667_s3 + $0x644] sm:$0xf]  ;;  %v10332_v20 = vor.u32 %v12398_v45, %v10329_v26 }
 0x5f2   :  { %v16420_v19 = vadd.f32 %v4214_v28, %v15781_v14  ;;  %v4124_v33 = vadd.f32 %v4123_v11, %v4074_v53  ;;  %v10345_v14 = vld [vmem:[%s19667_s3 + $0x770] sm:$0xf0]  ;;  %v12390_v26 = vld [vmem:[%s19667_s3 + $0x704] sm:$0xf] }
 0x5f3   :  { %v4076_v3 = vpop.f32.mrf.mxu1  ;;  %4362 = vmatmul.bf16.gmra.mxu0 %v14816_v55  ;;  %v10348_v32 = vor.u32 %v12402_v50, %v10345_v14  ;;  %v12362_v14 = vld [vmem:[%s19667_s3 + $0x624] sm:$0xf] }
 0x5f4   :  { %v16436_v53 = vadd.f32 %v4124_v33, %v15784_v35  ;;  %4411 = vmatmul.bf16.gmra.mxu2 %v14818_v25  ;;  %4988 = vmatpush.bf16.msra.mxu0 %v10220_v0  ;;  %v10204_v35 = vor.u32 %v12366_v16, %v10201_v22 }
 0x5f5   :  { %5037 = vmatpush.bf16.msra.mxu2 %v10348_v32  ;;  %v10185_v32 = vld [vmem:[%s19667_s3 + $0x630] sm:$0xf0] }
 0x5f6   :  { %v10188_v22 = vor.u32 %v12362_v14, %v10185_v32 }
 0x5f7   :  { %v4216_v28 = vpop.f32.mrf.mxu2 }
 0x5f8   :  { %v4217_v11 = vadd.f32 %v4216_v28, %v4167_v40  ;;  %v4169_v33 = vpop.f32.mrf.mxu0  ;;  %4989 = vmatpush.bf16.msra.mxu0 %v10204_v35  ;;  %v12394_v40 = vld [vmem:[%s19667_s3 + $0x724] sm:$0xf]  ;;  %v10169_v35 = vld [vmem:[%s19667_s3 + $0x610] sm:$0xf0] }
 0x5f9   :  { %v4125_v49 = vpop.f32.mrf.mxu3  ;;  %5038 = vmatpush.bf16.msra.mxu2 %v10332_v20  ;;  %v12358_v28 = vld [vmem:[%s19667_s3 + $0x604] sm:$0xf]  ;;  %v10297_v20 = vld [vmem:[%s19667_s3 + $0x710] sm:$0xf0] }
 0x5fa   :  { %v16452_v50 = vadd.f32 %v4217_v11, %v15813_v57  ;;  %v4126_v0 = vadd.f32 %v4125_v49, %v4076_v3  ;;  %v10313_v57 = vld [vmem:[%s19667_s3 + $0x730] sm:$0xf0]  ;;  %v10172_v11 = vor.u32 %v12358_v28, %v10169_v35  ;;  %v10300_v14 = vor.u32 %v12390_v26, %v10297_v20 }
 0x5fb   :  { %v4079_v16 = vpop.f32.mrf.mxu1  ;;  %v10316_v45 = vor.u32 %v12394_v40, %v10313_v57 }
 0x5fc   :  { %v16467_v3 = vadd.f32 %v4126_v0, %v15816_v51  ;;  %4990 = vmatpush.bf16.msra.mxu0 %v10188_v22 }
 0x5fd   :  { %5039 = vmatpush.bf16.msra.mxu2 %v10316_v45 }
 0x5fe   :  { %4274 = vmatmul.bf16.gmra.mxu1 %v20060_v41  ;;  %4323 = vmatmul.bf16.gmra.mxu3 %v20061_v15 }
 0x5ff   :  { %v4218_v51 = vpop.f32.mrf.mxu2 }
 0x600   :  { %v4219_v49 = vadd.f32 %v4218_v51, %v4169_v33  ;;  %v4172_v0 = vpop.f32.mrf.mxu0  ;;  %4991 = vmatpush.bf16.msra.mxu0 %v10172_v11 }
 0x601   :  { %v4128_v32 = vpop.f32.mrf.mxu3  ;;  %5040 = vmatpush.bf16.msra.mxu2 %v10300_v14 }
 0x602   :  { %v16484_v40 = vadd.f32 %v4219_v49, %v15845_v62  ;;  %v4129_v22 = vadd.f32 %v4128_v32, %v4079_v16 }
 0x603   :  { %v4081_v57 = vpop.f32.mrf.mxu1  ;;  %4367 = vmatmul.bf16.gmra.mxu0 %v20052_v18 }
 0x604   :  { %v16488_v45 = vadd.f32 %v4129_v22, %v15848_v61  ;;  %4416 = vmatmul.bf16.gmra.mxu2 %v20053_v23 }
 0x607   :  { %v4221_v28 = vpop.f32.mrf.mxu2 }
 0x608   :  { %v4222_v35 = vadd.f32 %v4221_v28, %v4172_v0  ;;  %v4174_v33 = vpop.f32.mrf.mxu0 }
 0x609   :  { %v4130_v51 = vpop.f32.mrf.mxu3 }
 0x60a   :  { %v16492_v26 = vadd.f32 %v4222_v35, %v15853_v4  ;;  %v4131_v11 = vadd.f32 %v4130_v51, %v4081_v57  ;;  %v20070_v4 = vld [vmem:[#allocation58_spill] sm:$0xff] }
 0x60b   :  { %v4240_v62 = vpop.f32.mrf.mxu1 }
 0x60c   :  { %v16495_v16 = vadd.f32 %v4131_v11, %v15856_v63  ;;  %v20072_v11 = vld [vmem:[#allocation65_spill] sm:$0xff] }
 0x60e   :  { %20068 = vst [vmem:[#allocation14_spill] sm:$0xff] %v16495_v16  ;;  %4894 = vmatmul.bf16.vlgmr.msra.gmra.mxu1 %v14552_v47  ;;  %4943 = vmatmul.bf16.vlgmr.msra.gmra.mxu3 %v14554_v36 }
 0x60f   :  { %v4223_v61 = vpop.f32.mrf.mxu2 }
 0x610   :  { %v4224_v20 = vadd.f32 %v4223_v61, %v4174_v33  ;;  %v4177_v49 = vpop.f32.mrf.mxu0 }
 0x611   :  { %v4289_v14 = vpop.f32.mrf.mxu3 }
 0x612   :  { %v16500_v0 = vadd.f32 %v4224_v20, %v15861_v34  ;;  %v4290_v32 = vadd.f32 %v4289_v14, %v4240_v62  ;;  %v20074_v34 = vld [vmem:[#allocation61_spill] sm:$0xff] }
 0x613   :  { %v4242_v22 = vpop.f32.mrf.mxu1  ;;  %4372 = vmatmul.bf16.gmra.mxu0 %v20060_v41 }
 0x614   :  { %20069 = vst [vmem:[#allocation81_spill] sm:$0xff] %v16500_v0  ;;  %v16504_v57 = vadd.f32 %v4290_v32, %v20070_v4  ;;  %4421 = vmatmul.bf16.gmra.mxu2 %v20061_v15 }
 0x616   :  { %20071 = vst [vmem:[#allocation86_spill] sm:$0xff] %v16504_v57  ;;  %v20076_v57 = vld [vmem:[#allocation60_spill] sm:$0xff] }
 0x617   :  { %v4226_v63 = vpop.f32.mrf.mxu2 }
 0x618   :  { %v4227_v28 = vadd.f32 %v4226_v63, %v4177_v49  ;;  %v4179_v35 = vpop.f32.mrf.mxu0 }
 0x619   :  { %v4291_v51 = vpop.f32.mrf.mxu3 }
 0x61a   :  { %v16508_v33 = vadd.f32 %v4227_v28, %v20072_v11  ;;  %v4292_v61 = vadd.f32 %v4291_v51, %v4242_v22  ;;  %v20078_v22 = vld [vmem:[#allocation66_spill] sm:$0xff] }
 0x61b   :  { %v4245_v16 = vpop.f32.mrf.mxu1 }
 0x61c   :  { %20073 = vst [vmem:[#allocation6_spill] sm:$0xff] %v16508_v33  ;;  %v16511_v20 = vadd.f32 %v4292_v61, %v20074_v34 }
 0x61e   :  { %20075 = vst [vmem:[#allocation7_spill] sm:$0xff] %v16511_v20  ;;  %4899 = vmatmul.bf16.gmra.mxu1 %v14584_v1  ;;  %4948 = vmatmul.bf16.gmra.mxu3 %v14586_v60  ;;  %v20080_v20 = vld [vmem:[#allocation68_spill] sm:$0xff] }
 0x61f   :  { %v4228_v62 = vpop.f32.mrf.mxu2 }
 0x620   :  { %v4229_v14 = vadd.f32 %v4228_v62, %v4179_v35  ;;  %v4338_v32 = vpop.f32.mrf.mxu0 }
 0x621   :  { %v4294_v4 = vpop.f32.mrf.mxu3 }
 0x622   :  { %v16516_v49 = vadd.f32 %v4229_v14, %v20076_v57  ;;  %v4295_v63 = vadd.f32 %v4294_v4, %v4245_v16  ;;  %v20082_v57 = vld [vmem:[#allocation63_spill] sm:$0xff] }
 0x623   :  { %v4247_v0 = vpop.f32.mrf.mxu1  ;;  %4992 = vmatmul.bf16.vlgmr.msra.gmra.mxu0 %v14552_v47 }
 0x624   :  { %20077 = vst [vmem:[#allocation88_spill] sm:$0xff] %v16516_v49  ;;  %v16520_v28 = vadd.f32 %v4295_v63, %v20078_v22  ;;  %5041 = vmatmul.bf16.vlgmr.msra.gmra.mxu2 %v14554_v36 }
 0x626   :  { %20079 = vst [vmem:[#allocation83_spill] sm:$0xff] %v16520_v28  ;;  %v20084_v28 = vld [vmem:[#allocation64_spill] sm:$0xff] }
 0x627   :  { %v4387_v51 = vpop.f32.mrf.mxu2 }
 0x628   :  { %v4388_v11 = vadd.f32 %v4387_v51, %v4338_v32  ;;  %v4340_v61 = vpop.f32.mrf.mxu0 }
 0x629   :  { %v4296_v34 = vpop.f32.mrf.mxu3 }
 0x62a   :  { %v16524_v35 = vadd.f32 %v4388_v11, %v20080_v20  ;;  %v4297_v62 = vadd.f32 %v4296_v34, %v4247_v0  ;;  %v20086_v0 = vld [vmem:[#allocation67_spill] sm:$0xff] }
 0x62b   :  { %v4250_v33 = vpop.f32.mrf.mxu1 }
 0x62c   :  { %20081 = vst [vmem:[#allocation15_spill] sm:$0xff] %v16524_v35  ;;  %v16527_v14 = vadd.f32 %v4297_v62, %v20082_v57 }
 0x62e   :  { %20083 = vst [vmem:[#allocation17_spill] sm:$0xff] %v16527_v14  ;;  %4904 = vmatmul.bf16.gmra.mxu1 %v14616_v48  ;;  %4953 = vmatmul.bf16.gmra.mxu3 %v14618_v10  ;;  %v20088_v14 = vld [vmem:[#allocation69_spill] sm:$0xff] }
 0x62f   :  { %v4389_v16 = vpop.f32.mrf.mxu2 }
 0x630   :  { %v4390_v4 = vadd.f32 %v4389_v16, %v4340_v61  ;;  %v4343_v63 = vpop.f32.mrf.mxu0 }
 0x631   :  { %v4299_v22 = vpop.f32.mrf.mxu3 }
 0x632   :  { %v16532_v32 = vadd.f32 %v4390_v4, %v20084_v28  ;;  %v4300_v51 = vadd.f32 %v4299_v22, %v4250_v33  ;;  %v20090_v28 = vld [vmem:[#allocation70_spill] sm:$0xff] }
 0x633   :  { %v4252_v49 = vpop.f32.mrf.mxu1  ;;  %4997 = vmatmul.bf16.gmra.mxu0 %v14584_v1 }
 0x634   :  { %20085 = vst [vmem:[#allocation90_spill] sm:$0xff] %v16532_v32  ;;  %v16536_v20 = vadd.f32 %v4300_v51, %v20086_v0  ;;  %5046 = vmatmul.bf16.gmra.mxu2 %v14586_v60 }
 0x636   :  { %20087 = vst [vmem:[#allocation85_spill] sm:$0xff] %v16536_v20  ;;  %v20092_v20 = vld [vmem:[#allocation71_spill] sm:$0xff] }
 0x637   :  { %v4392_v11 = vpop.f32.mrf.mxu2 }
 0x638   :  { %v4393_v34 = vadd.f32 %v4392_v11, %v4343_v63  ;;  %v4345_v62 = vpop.f32.mrf.mxu0 }
 0x639   :  { %v4301_v57 = vpop.f32.mrf.mxu3 }
 0x63a   :  { %v16540_v61 = vadd.f32 %v4393_v34, %v20088_v14  ;;  %v4302_v16 = vadd.f32 %v4301_v57, %v4252_v49  ;;  %v20094_v49 = vld [vmem:[#allocation72_spill] sm:$0xff]  ;;  %v12419_v34 = vld [vmem:[%s19667_s3 + $0x7ec] sm:$0xf] }
 0x63b   :  { %v4255_v35 = vpop.f32.mrf.mxu1 }
 0x63c   :  { %20089 = vst [vmem:[#allocation10_spill] sm:$0xff] %v16540_v61  ;;  %v16543_v4 = vadd.f32 %v4302_v16, %v20090_v28  ;;  %v12383_v61 = vld [vmem:[%s19667_s3 + $0x6cc] sm:$0xf] }
 0x63e   :  { %20091 = vst [vmem:[#allocation20_spill] sm:$0xff] %v16543_v4  ;;  %4909 = vmatmul.bf16.gmra.mxu1 %v14708_v2  ;;  %4958 = vmatmul.bf16.gmra.mxu3 %v14710_v54 }
 0x63f   :  { %v4394_v33 = vpop.f32.mrf.mxu2 }
 0x640   :  { %v4395_v22 = vadd.f32 %v4394_v33, %v4345_v62  ;;  %v4348_v51 = vpop.f32.mrf.mxu0  ;;  %v10417_v62 = vld [vmem:[%s19667_s3 + $0x7f8] sm:$0xf0] }
 0x641   :  { %v4304_v0 = vpop.f32.mrf.mxu3  ;;  %v10420_v57 = vor.u32 %v12419_v34, %v10417_v62  ;;  %v20096_v33 = vld [vmem:[#allocation73_spill] sm:$0xff] }
 0x642   :  { %v16548_v63 = vadd.f32 %v4395_v22, %v20092_v20  ;;  %v4305_v11 = vadd.f32 %v4304_v0, %v4255_v35  ;;  %v12421_v34 = vld [vmem:[%s19667_s3 + $0x7f4] sm:$0xf0] }
 0x643   :  { %v4257_v32 = vpop.f32.mrf.mxu1  ;;  %5002 = vmatmul.bf16.gmra.mxu0 %v14616_v48  ;;  %5229 = vmatpush.bf16.msrb.mxu2 %v10420_v57  ;;  %v10287_v57 = vld [vmem:[%s19667_s3 + $0x6e8] sm:$0xf] }
 0x644   :  { %20093 = vst [vmem:[#allocation92_spill] sm:$0xff] %v16548_v63  ;;  %v16552_v14 = vadd.f32 %v4305_v11, %v20094_v49  ;;  %5051 = vmatmul.bf16.gmra.mxu2 %v14618_v10  ;;  %v20098_v49 = vld [vmem:[#allocation74_spill] sm:$0xff]  ;;  %v10415_v63 = vld [vmem:[%s19667_s3 + $0x7e8] sm:$0xf] }
 0x645   :  { %v10416_v62 = vor.u32 %v12421_v34, %v10415_v63  ;;  %v12385_v34 = vld [vmem:[%s19667_s3 + $0x6d4] sm:$0xf0] }
 0x646   :  { %20095 = vst [vmem:[#allocation87_spill] sm:$0xff] %v16552_v14 }
 0x647   :  { %v4397_v20 = vpop.f32.mrf.mxu2  ;;  %5131 = vmatpush.bf16.msrb.mxu3 %v10416_v62  ;;  %v20100_v62 = vld [vmem:[#allocation78_spill] sm:$0xff] }
 0x648   :  { %v4398_v35 = vadd.f32 %v4397_v20, %v4348_v51  ;;  %v4350_v16 = vpop.f32.mrf.mxu0  ;;  %v12387_v51 = vld [vmem:[%s19667_s3 + $0x6ec] sm:$0xf]  ;;  %v12389_v20 = vld [vmem:[%s19667_s3 + $0x6f4] sm:$0xf0] }
 0x649   :  { %v4306_v28 = vpop.f32.mrf.mxu3 }
 0x64a   :  { %v16562_v22 = vadd.f32 %v4398_v35, %v20096_v33  ;;  %v4307_v0 = vadd.f32 %v4306_v28, %v4257_v32  ;;  %v10289_v32 = vld [vmem:[%s19667_s3 + $0x6f8] sm:$0xf0]  ;;  %v10288_v28 = vor.u32 %v12389_v20, %v10287_v57 }
 0x64b   :  { %v4260_v11 = vpop.f32.mrf.mxu1  ;;  %v10292_v35 = vor.u32 %v12387_v51, %v10289_v32 }
 0x64c   :  { %20097 = vst [vmem:[#allocation12_spill] sm:$0xff] %v16562_v22  ;;  %v16565_v14 = vadd.f32 %v4307_v0, %v20098_v49  ;;  %5082 = vmatpush.bf16.msrb.mxu1 %v10288_v28  ;;  %v10271_v49 = vld [vmem:[%s19667_s3 + $0x6c8] sm:$0xf] }
 0x64d   :  { %5180 = vmatpush.bf16.msrb.mxu0 %v10292_v35  ;;  %v10272_v32 = vor.u32 %v12385_v34, %v10271_v49  ;;  %v12415_v49 = vld [vmem:[%s19667_s3 + $0x7cc] sm:$0xf]  ;;  %v12381_v34 = vld [vmem:[%s19667_s3 + $0x6b4] sm:$0xf0] }
 0x64e   :  { %20099 = vst [vmem:[#allocation13_spill] sm:$0xff] %v16565_v14  ;;  %4914 = vmatmul.bf16.gmra.mxu1 %v14816_v55  ;;  %4963 = vmatmul.bf16.gmra.mxu3 %v14818_v25  ;;  %v10399_v14 = vld [vmem:[%s19667_s3 + $0x7c8] sm:$0xf] }
 0x64f   :  { %v4399_v33 = vpop.f32.mrf.mxu2 }
 0x650   :  { %v4400_v63 = vadd.f32 %v4399_v33, %v4350_v16  ;;  %v4353_v0 = vpop.f32.mrf.mxu0  ;;  %v12417_v16 = vld [vmem:[%s19667_s3 + $0x7d4] sm:$0xf0]  ;;  %v20102_v33 = vld [vmem:[#allocation75_spill] sm:$0xff]  ;;  %5083 = vmatpush.bf16.msrb.mxu1 %v10272_v32 }
 0x651   :  { %v4309_v51 = vpop.f32.mrf.mxu3  ;;  %v10400_v35 = vor.u32 %v12417_v16, %v10399_v14  ;;  %v10255_v14 = vld [vmem:[%s19667_s3 + $0x6a8] sm:$0xf]  ;;  %v12413_v32 = vld [vmem:[%s19667_s3 + $0x7b4] sm:$0xf0] }
 0x652   :  { %v16600_v57 = vadd.f32 %v4400_v63, %v20100_v62  ;;  %v4310_v20 = vadd.f32 %v4309_v51, %v4260_v11  ;;  %v10401_v63 = vld [vmem:[%s19667_s3 + $0x7d8] sm:$0xf0]  ;;  %v10383_v51 = vld [vmem:[%s19667_s3 + $0x7a8] sm:$0xf]  ;;  %v10256_v16 = vor.u32 %v12381_v34, %v10255_v14 }
 0x653   :  { %v4262_v28 = vpop.f32.mrf.mxu1  ;;  %5007 = vmatmul.bf16.gmra.mxu0 %v14708_v2  ;;  %5132 = vmatpush.bf16.msrb.mxu3 %v10400_v35  ;;  %v10404_v11 = vor.u32 %v12415_v49, %v10401_v63  ;;  %v10384_v62 = vor.u32 %v12413_v32, %v10383_v51  ;;  %v10239_v35 = vld [vmem:[%s19667_s3 + $0x688] sm:$0xf]  ;;  %v12377_v49 = vld [vmem:[%s19667_s3 + $0x694] sm:$0xf0] }
 0x654   :  { %20101 = vst [vmem:[#allocation94_spill] sm:$0xff] %v16600_v57  ;;  %v16604_v22 = vadd.f32 %v4310_v20, %v20102_v33  ;;  %5056 = vmatmul.bf16.gmra.mxu2 %v14710_v54  ;;  %5084 = vmatpush.bf16.msrb.mxu1 %v10256_v16  ;;  %v10367_v63 = vld [vmem:[%s19667_s3 + $0x788] sm:$0xf]  ;;  %v10240_v14 = vor.u32 %v12377_v49, %v10239_v35  ;;  %v12405_v49 = vld [vmem:[%s19667_s3 + $0x774] sm:$0xf0] }
 0x655   :  { %5230 = vmatpush.bf16.msrb.mxu2 %v10404_v11  ;;  %v20104_v11 = vld [vmem:[#allocation2_spill] sm:$0xff] }
 0x656   :  { %20103 = vst [vmem:[#allocation89_spill] sm:$0xff] %v16604_v22 }
 0x657   :  { %v4402_v20 = vpop.f32.mrf.mxu2  ;;  %5133 = vmatpush.bf16.msrb.mxu3 %v10384_v62  ;;  %v10273_v62 = vld [vmem:[%s19667_s3 + $0x6d8] sm:$0xf0] }
 0x658   :  { %v4403_v33 = vadd.f32 %v4402_v20, %v4353_v0  ;;  %v4355_v22 = vpop.f32.mrf.mxu0  ;;  %v12409_v0 = vld [vmem:[%s19667_s3 + $0x794] sm:$0xf0]  ;;  %v20106_v20 = vld [vmem:[#allocation8_spill] sm:$0xff]  ;;  %5085 = vmatpush.bf16.msrb.mxu1 %v10240_v14  ;;  %v10276_v35 = vor.u32 %v12383_v61, %v10273_v62 }
 0x659   :  { %v4311_v57 = vpop.f32.mrf.mxu3  ;;  %v10368_v32 = vor.u32 %v12409_v0, %v10367_v63 }
 0x65a   :  { %v16638_v34 = vadd.f32 %v4403_v33, %v20104_v11  ;;  %v4312_v51 = vadd.f32 %v4311_v57, %v4262_v28  ;;  %v10223_v33 = vld [vmem:[%s19667_s3 + $0x668] sm:$0xf]  ;;  %v12373_v57 = vld [vmem:[%s19667_s3 + $0x674] sm:$0xf0]  ;;  %5181 = vmatpush.bf16.msrb.mxu0 %v10276_v35  ;;  %v20108_v35 = vld [vmem:[#allocation80_spill] sm:$0xff] }
 0x65b   :  { %v4265_v16 = vpop.f32.mrf.mxu1  ;;  %5134 = vmatpush.bf16.msrb.mxu3 %v10368_v32  ;;  %v10351_v28 = vld [vmem:[%s19667_s3 + $0x768] sm:$0xf]  ;;  %v10224_v63 = vor.u32 %v12373_v57, %v10223_v33  ;;  %v12369_v32 = vld [vmem:[%s19667_s3 + $0x654] sm:$0xf0] }
 0x65c   :  { %20105 = vst [vmem:[#allocation21_spill] sm:$0xff] %v16638_v34  ;;  %v16641_v4 = vadd.f32 %v4312_v51, %v20106_v20  ;;  %v10352_v14 = vor.u32 %v12405_v49, %v10351_v28  ;;  %v10207_v51 = vld [vmem:[%s19667_s3 + $0x648] sm:$0xf] }
 0x65d   :  { %5086 = vmatpush.bf16.msrb.mxu1 %v10224_v63  ;;  %v10335_v20 = vld [vmem:[%s19667_s3 + $0x748] sm:$0xf]  ;;  %v10208_v33 = vor.u32 %v12369_v32, %v10207_v51  ;;  %v12365_v32 = vld [vmem:[%s19667_s3 + $0x634] sm:$0xf0] }
 0x65e   :  { %20107 = vst [vmem:[#allocation23_spill] sm:$0xff] %v16641_v4  ;;  %4919 = vmatmul.bf16.gmra.mxu1 %v20052_v18  ;;  %4968 = vmatmul.bf16.gmra.mxu3 %v20053_v23 }
 0x65f   :  { %v4404_v61 = vpop.f32.mrf.mxu2  ;;  %5135 = vmatpush.bf16.msrb.mxu3 %v10352_v14  ;;  %v12411_v14 = vld [vmem:[%s19667_s3 + $0x7ac] sm:$0xf] }
 0x660   :  { %v4405_v0 = vadd.f32 %v4404_v61, %v4355_v22  ;;  %v4358_v11 = vpop.f32.mrf.mxu0  ;;  %v12401_v22 = vld [vmem:[%s19667_s3 + $0x754] sm:$0xf0]  ;;  %v20110_v61 = vld [vmem:[#allocation76_spill] sm:$0xff] }
 0x661   :  { %v4314_v62 = vpop.f32.mrf.mxu3  ;;  %v10336_v49 = vor.u32 %v12401_v22, %v10335_v20  ;;  %5087 = vmatpush.bf16.msrb.mxu1 %v10208_v33  ;;  %v10319_v20 = vld [vmem:[%s19667_s3 + $0x728] sm:$0xf] }
 0x662   :  { %v16676_v57 = vadd.f32 %v4405_v0, %v20108_v35  ;;  %v4315_v28 = vadd.f32 %v4314_v62, %v4265_v16  ;;  %v10385_v0 = vld [vmem:[%s19667_s3 + $0x7b8] sm:$0xf0]  ;;  %v10191_v16 = vld [vmem:[%s19667_s3 + $0x628] sm:$0xf]  ;;  %v12397_v62 = vld [vmem:[%s19667_s3 + $0x734] sm:$0xf0] }
 0x663   :  { %v4267_v63 = vpop.f32.mrf.mxu1  ;;  %5012 = vmatmul.bf16.gmra.mxu0 %v14816_v55  ;;  %5136 = vmatpush.bf16.msrb.mxu3 %v10336_v49  ;;  %v10388_v51 = vor.u32 %v12411_v14, %v10385_v0  ;;  %v10192_v33 = vor.u32 %v12365_v32, %v10191_v16  ;;  %v10320_v22 = vor.u32 %v12397_v62, %v10319_v20  ;;  %v10175_v49 = vld [vmem:[%s19667_s3 + $0x608] sm:$0xf]  ;;  %v12361_v14 = vld [vmem:[%s19667_s3 + $0x614] sm:$0xf0]  ;;  %v12379_v62 = vld [vmem:[%s19667_s3 + $0x6ac] sm:$0xf] }
 0x664   :  { %20109 = vst [vmem:[#allocation91_spill] sm:$0xff] %v16676_v57  ;;  %v16680_v4 = vadd.f32 %v4315_v28, %v20110_v61  ;;  %5061 = vmatmul.bf16.gmra.mxu2 %v14818_v25  ;;  %v10303_v0 = vld [vmem:[%s19667_s3 + $0x708] sm:$0xf]  ;;  %v10176_v16 = vor.u32 %v12361_v14, %v10175_v49  ;;  %v20114_v49 = vld [vmem:[#allocation4_spill] sm:$0xff] }
 0x665   :  { %5231 = vmatpush.bf16.msrb.mxu2 %v10388_v51  ;;  %5088 = vmatpush.bf16.msrb.mxu1 %v10192_v33  ;;  %v20112_v51 = vld [vmem:[#allocation3_spill] sm:$0xff]  ;;  %v10257_v33 = vld [vmem:[%s19667_s3 + $0x6b8] sm:$0xf0] }
 0x666   :  { %20111 = vst [vmem:[#allocation16_spill] sm:$0xff] %v16680_v4 }
 0x667   :  { %v4407_v35 = vpop.f32.mrf.mxu2  ;;  %5137 = vmatpush.bf16.msrb.mxu3 %v10320_v22  ;;  %v10260_v22 = vor.u32 %v12379_v62, %v10257_v33 }
 0x668   :  { %v4408_v28 = vadd.f32 %v4407_v35, %v4358_v11  ;;  %v4360_v61 = vpop.f32.mrf.mxu0  ;;  %v12393_v11 = vld [vmem:[%s19667_s3 + $0x714] sm:$0xf0] }
 0x669   :  { %v4316_v4 = vpop.f32.mrf.mxu3  ;;  %v10304_v35 = vor.u32 %v12393_v11, %v10303_v0  ;;  %5089 = vmatpush.bf16.msrb.mxu1 %v10176_v16  ;;  %5182 = vmatpush.bf16.msrb.mxu0 %v10260_v22  ;;  %v10369_v11 = vld [vmem:[%s19667_s3 + $0x798] sm:$0xf0] }
 0x66a   :  { %v16714_v32 = vadd.f32 %v4408_v28, %v20112_v51  ;;  %v4317_v20 = vadd.f32 %v4316_v4, %v4267_v63  ;;  %v12375_v4 = vld [vmem:[%s19667_s3 + $0x68c] sm:$0xf]  ;;  %v10241_v63 = vld [vmem:[%s19667_s3 + $0x698] sm:$0xf0] }
 0x66b   :  { %v4270_v57 = vpop.f32.mrf.mxu1  ;;  %5138 = vmatpush.bf16.msrb.mxu3 %v10304_v35  ;;  %v12407_v28 = vld [vmem:[%s19667_s3 + $0x78c] sm:$0xf]  ;;  %v10244_v16 = vor.u32 %v12375_v4, %v10241_v63  ;;  %v20116_v35 = vld [vmem:[#allocation77_spill] sm:$0xff] }
 0x66c   :  { %20113 = vst [vmem:[#allocation93_spill] sm:$0xff] %v16714_v32  ;;  %v16723_v14 = vadd.f32 %v4317_v20, %v20114_v49  ;;  %v10372_v62 = vor.u32 %v12407_v28, %v10369_v11  ;;  %v10225_v4 = vld [vmem:[%s19667_s3 + $0x678] sm:$0xf0] }
 0x66d   :  { %5183 = vmatpush.bf16.msrb.mxu0 %v10244_v16 }
 0x66e   :  { %20115 = vst [vmem:[#allocation26_spill] sm:$0xff] %v16723_v14  ;;  %4924 = vmatmul.bf16.gmra.mxu1 %v20060_v41  ;;  %4973 = vmatmul.bf16.gmra.mxu3 %v20061_v15  ;;  %v12371_v14 = vld [vmem:[%s19667_s3 + $0x66c] sm:$0xf] }
 0x66f   :  { %v4409_v0 = vpop.f32.mrf.mxu2  ;;  %5232 = vmatpush.bf16.msrb.mxu2 %v10372_v62  ;;  %v10228_v28 = vor.u32 %v12371_v14, %v10225_v4  ;;  %v10209_v14 = vld [vmem:[%s19667_s3 + $0x658] sm:$0xf0]  ;;  %v12399_v62 = vld [vmem:[%s19667_s3 + $0x74c] sm:$0xf] }
 0x670   :  { %v4410_v51 = vadd.f32 %v4409_v0, %v4360_v61  ;;  %v4363_v20 = vpop.f32.mrf.mxu0  ;;  %v12403_v61 = vld [vmem:[%s19667_s3 + $0x76c] sm:$0xf]  ;;  %v20118_v0 = vld [vmem:[#allocation82_spill] sm:$0xff] }
 0x671   :  { %v4319_v33 = vpop.f32.mrf.mxu3  ;;  %5184 = vmatpush.bf16.msrb.mxu0 %v10228_v28 }
 0x672   :  { %v16740_v22 = vadd.f32 %v4410_v51, %v20116_v35  ;;  %v4320_v49 = vadd.f32 %v4319_v33, %v4270_v57  ;;  %v10353_v57 = vld [vmem:[%s19667_s3 + $0x778] sm:$0xf0]  ;;  %v12367_v51 = vld [vmem:[%s19667_s3 + $0x64c] sm:$0xf] }
 0x673   :  { %v4272_v63 = vpop.f32.mrf.mxu1  ;;  %5017 = vmatmul.bf16.gmra.mxu0 %v20052_v18  ;;  %v10356_v11 = vor.u32 %v12403_v61, %v10353_v57  ;;  %v10212_v35 = vor.u32 %v12367_v51, %v10209_v14  ;;  %v10193_v51 = vld [vmem:[%s19667_s3 + $0x638] sm:$0xf0] }
 0x674   :  { %20117 = vst [vmem:[#allocation95_spill] sm:$0xff] %v16740_v22  ;;  %v16756_v16 = vadd.f32 %v4320_v49, %v20118_v0  ;;  %5066 = vmatmul.bf16.gmra.mxu2 %v20053_v23  ;;  %v10337_v49 = vld [vmem:[%s19667_s3 + $0x758] sm:$0xf0]  ;;  %v12363_v22 = vld [vmem:[%s19667_s3 + $0x62c] sm:$0xf] }
 0x675   :  { %5233 = vmatpush.bf16.msrb.mxu2 %v10356_v11  ;;  %v10340_v28 = vor.u32 %v12399_v62, %v10337_v49  ;;  %5185 = vmatpush.bf16.msrb.mxu0 %v10212_v35  ;;  %v20120_v0 = vld [vmem:[#allocation9_spill] sm:$0xff]  ;;  %v10196_v62 = vor.u32 %v12363_v22, %v10193_v51 }
 0x676   :  { %20119 = vst [vmem:[#allocation18_spill] sm:$0xff] %v16756_v16  ;;  %v10177_v22 = vld [vmem:[%s19667_s3 + $0x618] sm:$0xf0] }
 0x677   :  { %v4412_v33 = vpop.f32.mrf.mxu2 }
 0x678   :  { %v4413_v4 = vadd.f32 %v4412_v33, %v4363_v20  ;;  %v4365_v61 = vpop.f32.mrf.mxu0  ;;  %v12395_v20 = vld [vmem:[%s19667_s3 + $0x72c] sm:$0xf]  ;;  %v10321_v33 = vld [vmem:[%s19667_s3 + $0x738] sm:$0xf0] }
 0x679   :  { %v4321_v57 = vpop.f32.mrf.mxu3  ;;  %5234 = vmatpush.bf16.msrb.mxu2 %v10340_v28  ;;  %v10324_v49 = vor.u32 %v12395_v20, %v10321_v33  ;;  %5186 = vmatpush.bf16.msrb.mxu0 %v10196_v62  ;;  %v20125_v28 = vld [vmem:[#allocation24_spill] sm:$0xff]  ;;  %v10305_v20 = vld [vmem:[%s19667_s3 + $0x718] sm:$0xf0] }
 0x67a   :  { %v16772_v11 = vadd.f32 %v4413_v4, %v20120_v0  ;;  %v4322_v16 = vadd.f32 %v4321_v57, %v4272_v63  ;;  %v20122_v63 = vld [vmem:[#allocation11_spill] sm:$0xff]  ;;  %v20124_v4 = vld [vmem:[#allocation32_spill] sm:$0xff] }
 0x67b   :  { %v4275_v14 = vpop.f32.mrf.mxu1  ;;  %v12359_v57 = vld [vmem:[%s19667_s3 + $0x60c] sm:$0xf] }
 0x67c   :  { %20121 = vst [vmem:[#allocation35_spill] sm:$0xff] %v16772_v11  ;;  %v16787_v35 = vadd.f32 %v4322_v16, %v20122_v63  ;;  %v12391_v0 = vld [vmem:[%s19667_s3 + $0x70c] sm:$0xf]  ;;  %v10180_v51 = vor.u32 %v12359_v57, %v10177_v22 }
 0x67d   :  { %5235 = vmatpush.bf16.msrb.mxu2 %v10324_v49  ;;  %v10308_v63 = vor.u32 %v12391_v0, %v10305_v20  ;;  %v20127_v20 = vld [vmem:[#allocation84_spill] sm:$0xff] }
 0x67e   :  { %20123 = vst [vmem:[#allocation28_spill] sm:$0xff] %v16787_v35  ;;  %4929 = vmatmul.bf16.gmra.mxu1 %v20124_v4  ;;  %4978 = vmatmul.bf16.gmra.mxu3 %v20125_v28 }
 0x67f   :  { %v4414_v16 = vpop.f32.mrf.mxu2  ;;  %5187 = vmatpush.bf16.msrb.mxu0 %v10180_v51 }
 0x680   :  { %v4415_v62 = vadd.f32 %v4414_v16, %v4365_v61  ;;  %v4368_v33 = vpop.f32.mrf.mxu0 }
 0x681   :  { %v4324_v35 = vpop.f32.mrf.mxu3  ;;  %5236 = vmatpush.bf16.msrb.mxu2 %v10308_v63  ;;  %v20128_v63 = vld [vmem:[#allocation79_spill] sm:$0xff] }
 0x682   :  { %v16804_v11 = vadd.f32 %v4415_v62, %v16165_v13  ;;  %v4325_v32 = vadd.f32 %v4324_v35, %v4275_v14 }
 0x683   :  { %v4277_v34 = vpop.f32.mrf.mxu1  ;;  %5022 = vmatmul.bf16.gmra.mxu0 %v20060_v41 }
 0x684   :  { %v16808_v49 = vadd.f32 %v4325_v32, %v16168_v46  ;;  %5071 = vmatmul.bf16.gmra.mxu2 %v20061_v15 }
 0x686   :  { %20126 = vst [vmem:[#allocation38_spill] sm:$0xff] %v16808_v49 }
 0x687   :  { %v4417_v57 = vpop.f32.mrf.mxu2 }
 0x688   :  { %v4418_v22 = vadd.f32 %v4417_v57, %v4368_v33  ;;  %v4370_v61 = vpop.f32.mrf.mxu0 }
 0x689   :  { %v4326_v16 = vpop.f32.mrf.mxu3 }
 0x68a   :  { %v16812_v0 = vadd.f32 %v4418_v22, %v16173_v44  ;;  %v4327_v51 = vadd.f32 %v4326_v16, %v4277_v34 }
 0x68b   :  { %v4895_v13 = vpop.f32.mrf.mxu1 }
 0x68c   :  { %v16815_v14 = vadd.f32 %v4327_v51, %v20127_v20 }
 0x68e   :  { %5090 = vmatmul.bf16.vlgmr.msrb.gmra.mxu1 %v14552_v47  ;;  %5139 = vmatmul.bf16.vlgmr.msrb.gmra.mxu3 %v14554_v36 }
 0x68f   :  { %v4419_v46 = vpop.f32.mrf.mxu2 }
 0x690   :  { %v4420_v32 = vadd.f32 %v4419_v46, %v4370_v61  ;;  %v4373_v35 = vpop.f32.mrf.mxu0 }
 0x691   :  { %v4944_v62 = vpop.f32.mrf.mxu3 }
 0x692   :  { %v16820_v33 = vadd.f32 %v4420_v32, %v20128_v63  ;;  %v4945_v57 = vadd.f32 %v4944_v62, %v4895_v13 }
 0x693   :  { %v4897_v49 = vpop.f32.mrf.mxu1  ;;  %5027 = vmatmul.bf16.gmra.mxu0 %v20124_v4 }
 0x694   :  { %v16824_v44 = vadd.f32 %v4945_v57, %v16185_v8  ;;  %5076 = vmatmul.bf16.gmra.mxu2 %v20125_v28  ;;  %v20130_v57 = vld [vmem:[#allocation5_spill] sm:$0xff] }
 0x696   :  { %20129 = vst [vmem:[#allocation30_spill] sm:$0xff] %v16824_v44 }
 0x697   :  { %v4422_v34 = vpop.f32.mrf.mxu2 }
 0x698   :  { %v4423_v22 = vadd.f32 %v4422_v34, %v4373_v35  ;;  %v4375_v16 = vpop.f32.mrf.mxu0 }
 0x699   :  { %v4946_v51 = vpop.f32.mrf.mxu3 }
 0x69a   :  { %v16828_v61 = vadd.f32 %v4423_v22, %v16188_v27  ;;  %v4947_v20 = vadd.f32 %v4946_v51, %v4897_v49 }
 0x69b   :  { %v4900_v46 = vpop.f32.mrf.mxu1 }
 0x69c   :  { %v16831_v32 = vadd.f32 %v4947_v20, %v16192_v5 }
 0x69e   :  { %5095 = vmatmul.bf16.gmra.mxu1 %v14584_v1  ;;  %5144 = vmatmul.bf16.gmra.mxu3 %v14586_v60 }
 0x69f   :  { %v4424_v8 = vpop.f32.mrf.mxu2 }
 0x6a0   :  { %v4425_v13 = vadd.f32 %v4424_v8, %v4375_v16  ;;  %v4993_v62 = vpop.f32.mrf.mxu0 }
 0x6a1   :  { %v4949_v63 = vpop.f32.mrf.mxu3 }
 0x6a2   :  { %v16836_v35 = vadd.f32 %v4425_v13, %v20130_v57  ;;  %v4950_v34 = vadd.f32 %v4949_v63, %v4900_v46 }
 0x6a3   :  { %v4902_v44 = vpop.f32.mrf.mxu1  ;;  %5188 = vmatmul.bf16.vlgmr.msrb.gmra.mxu0 %v14552_v47 }
 0x6a4   :  { %v16840_v27 = vadd.f32 %v4950_v34, %v16200_v42  ;;  %5237 = vmatmul.bf16.vlgmr.msrb.gmra.mxu2 %v14554_v36 }
 0x6a7   :  { %v5042_v5 = vpop.f32.mrf.mxu2 }
 0x6a8   :  { %v5043_v49 = vadd.f32 %v5042_v5, %v4993_v62  ;;  %v4995_v22 = vpop.f32.mrf.mxu0 }
 0x6a9   :  { %v4951_v51 = vpop.f32.mrf.mxu3 }
 0x6aa   :  { %v16844_v16 = vadd.f32 %v5043_v49, %v16204_v39  ;;  %v4952_v20 = vadd.f32 %v4951_v51, %v4902_v44 }
 0x6ab   :  { %v4905_v8 = vpop.f32.mrf.mxu1 }
 0x6ac   :  { %v16847_v13 = vadd.f32 %v4952_v20, %v16207_v12 }
 0x6ae   :  { %5100 = vmatmul.bf16.gmra.mxu1 %v14616_v48  ;;  %5149 = vmatmul.bf16.gmra.mxu3 %v14618_v10 }
 0x6af   :  { %v5044_v47 = vpop.f32.mrf.mxu2 }
 0x6b0   :  { %v5045_v42 = vadd.f32 %v5044_v47, %v4995_v22  ;;  %v4998_v46 = vpop.f32.mrf.mxu0 }
 0x6b1   :  { %v4954_v36 = vpop.f32.mrf.mxu3 }
 0x6b2   :  { %v16852_v62 = vadd.f32 %v5045_v42, %v16212_v59  ;;  %v4955_v63 = vadd.f32 %v4954_v36, %v4905_v8 }
 0x6b3   :  { %v4907_v57 = vpop.f32.mrf.mxu1  ;;  %5193 = vmatmul.bf16.gmra.mxu0 %v14584_v1 }
 0x6b4   :  { %v16856_v39 = vadd.f32 %v4955_v63, %v16216_v24  ;;  %5242 = vmatmul.bf16.gmra.mxu2 %v14586_v60  ;;  %v10729_v63 = vld [vmem:[%s19667_s3 + $0x9f0] sm:$0xf0] }
 0x6b7   :  { %v5047_v12 = vpop.f32.mrf.mxu2 }
 0x6b8   :  { %v5048_v44 = vadd.f32 %v5047_v12, %v4998_v46  ;;  %v5000_v34 = vpop.f32.mrf.mxu0 }
 0x6b9   :  { %v4956_v5 = vpop.f32.mrf.mxu3 }
 0x6ba   :  { %v16860_v49 = vadd.f32 %v5048_v44, %v16220_v30  ;;  %v4957_v22 = vadd.f32 %v4956_v5, %v4907_v57 }
 0x6bb   :  { %v4910_v51 = vpop.f32.mrf.mxu1 }
 0x6bc   :  { %v16863_v59 = vadd.f32 %v4957_v22, %v16223_v7  ;;  %v12482_v7 = vld [vmem:[%s19667_s3 + $0x9e4] sm:$0xf] }
 0x6bd   :  { %v10732_v57 = vor.u32 %v12482_v7, %v10729_v63 }
 0x6be   :  { %5105 = vmatmul.bf16.gmra.mxu1 %v14708_v2  ;;  %5154 = vmatmul.bf16.gmra.mxu3 %v14710_v54 }
 0x6bf   :  { %v5049_v24 = vpop.f32.mrf.mxu2  ;;  %5884 = vmatpush.bf16.msra.mxu2 %v10732_v57 }
 0x6c0   :  { %v5050_v20 = vadd.f32 %v5049_v24, %v5000_v34  ;;  %v5003_v8 = vpop.f32.mrf.mxu0  ;;  %v10727_v24 = vld [vmem:[%s19667_s3 + $0x9e0] sm:$0xf] }
 0x6c1   :  { %v4959_v47 = vpop.f32.mrf.mxu3 }
 0x6c2   :  { %v16868_v42 = vadd.f32 %v5050_v20, %v16228_v58  ;;  %v4960_v46 = vadd.f32 %v4959_v47, %v4910_v51  ;;  %v12484_v20 = vld [vmem:[%s19667_s3 + $0x9ec] sm:$0xf0] }
 0x6c3   :  { %v4912_v36 = vpop.f32.mrf.mxu1  ;;  %5198 = vmatmul.bf16.gmra.mxu0 %v14616_v48  ;;  %v10728_v47 = vor.u32 %v12484_v20, %v10727_v24 }
 0x6c4   :  { %v16872_v30 = vadd.f32 %v4960_v46, %v16232_v43  ;;  %5247 = vmatmul.bf16.gmra.mxu2 %v14618_v10  ;;  %v12452_v46 = vld [vmem:[%s19667_s3 + $0x8ec] sm:$0xf0] }
 0x6c5   :  { %5786 = vmatpush.bf16.msra.mxu3 %v10728_v47 }
 0x6c7   :  { %v5052_v58 = vpop.f32.mrf.mxu2 }
 0x6c8   :  { %v5053_v12 = vadd.f32 %v5052_v58, %v5003_v8  ;;  %v5005_v44 = vpop.f32.mrf.mxu0  ;;  %v12450_v8 = vld [vmem:[%s19667_s3 + $0x8e4] sm:$0xf] }
 0x6c9   :  { %v4961_v34 = vpop.f32.mrf.mxu3 }
 0x6ca   :  { %v16882_v5 = vadd.f32 %v5053_v12, %v16242_v31  ;;  %v4962_v43 = vadd.f32 %v4961_v34, %v4912_v36  ;;  %v10601_v31 = vld [vmem:[%s19667_s3 + $0x8f0] sm:$0xf0]  ;;  %v10583_v12 = vld [vmem:[%s19667_s3 + $0x8c0] sm:$0xf]  ;;  %v12448_v34 = vld [vmem:[%s19667_s3 + $0x8cc] sm:$0xf0] }
 0x6cb   :  { %v4915_v22 = vpop.f32.mrf.mxu1  ;;  %v10604_v36 = vor.u32 %v12450_v8, %v10601_v31  ;;  %v10584_v20 = vor.u32 %v12448_v34, %v10583_v12 }
 0x6cc   :  { %v16885_v51 = vadd.f32 %v4962_v43, %v16245_v9  ;;  %v10599_v9 = vld [vmem:[%s19667_s3 + $0x8e0] sm:$0xf] }
 0x6cd   :  { %v10600_v7 = vor.u32 %v12452_v46, %v10599_v9  ;;  %5835 = vmatpush.bf16.msra.mxu0 %v10604_v36  ;;  %v10711_v43 = vld [vmem:[%s19667_s3 + $0x9c0] sm:$0xf]  ;;  %v12478_v36 = vld [vmem:[%s19667_s3 + $0x9c4] sm:$0xf] }
 0x6ce   :  { %5110 = vmatmul.bf16.gmra.mxu1 %v14816_v55  ;;  %5159 = vmatmul.bf16.gmra.mxu3 %v14818_v25 }
 0x6cf   :  { %v5054_v63 = vpop.f32.mrf.mxu2  ;;  %5737 = vmatpush.bf16.msra.mxu1 %v10600_v7 }
 0x6d0   :  { %v5055_v57 = vadd.f32 %v5054_v63, %v5005_v44  ;;  %v5008_v58 = vpop.f32.mrf.mxu0  ;;  %v12480_v44 = vld [vmem:[%s19667_s3 + $0x9cc] sm:$0xf0]  ;;  %v10695_v63 = vld [vmem:[%s19667_s3 + $0x9a0] sm:$0xf] }
 0x6d1   :  { %v4964_v24 = vpop.f32.mrf.mxu3  ;;  %v10712_v31 = vor.u32 %v12480_v44, %v10711_v43  ;;  %v10551_v44 = vld [vmem:[%s19667_s3 + $0x880] sm:$0xf] }
 0x6d2   :  { %v16920_v8 = vadd.f32 %v5055_v57, %v16280_v29  ;;  %v4965_v47 = vadd.f32 %v4964_v24, %v4915_v22  ;;  %v10713_v29 = vld [vmem:[%s19667_s3 + $0x9d0] sm:$0xf0]  ;;  %v10567_v22 = vld [vmem:[%s19667_s3 + $0x8a0] sm:$0xf]  ;;  %v12476_v57 = vld [vmem:[%s19667_s3 + $0x9ac] sm:$0xf0] }
 0x6d3   :  { %v4917_v9 = vpop.f32.mrf.mxu1  ;;  %5203 = vmatmul.bf16.gmra.mxu0 %v14708_v2  ;;  %5738 = vmatpush.bf16.msra.mxu1 %v10584_v20  ;;  %v10716_v7 = vor.u32 %v12478_v36, %v10713_v29  ;;  %v10696_v34 = vor.u32 %v12476_v57, %v10695_v63 }
 0x6d4   :  { %v16924_v46 = vadd.f32 %v4965_v47, %v16284_v38  ;;  %5252 = vmatmul.bf16.gmra.mxu2 %v14710_v54  ;;  %5787 = vmatpush.bf16.msra.mxu3 %v10712_v31  ;;  %v12444_v38 = vld [vmem:[%s19667_s3 + $0x8ac] sm:$0xf0]  ;;  %v10679_v31 = vld [vmem:[%s19667_s3 + $0x980] sm:$0xf] }
 0x6d5   :  { %v10568_v12 = vor.u32 %v12444_v38, %v10567_v22  ;;  %5885 = vmatpush.bf16.msra.mxu2 %v10716_v7  ;;  %v12440_v47 = vld [vmem:[%s19667_s3 + $0x88c] sm:$0xf0] }
 0x6d6   :  { %v10552_v29 = vor.u32 %v12440_v47, %v10551_v44 }
 0x6d7   :  { %v5057_v43 = vpop.f32.mrf.mxu2  ;;  %5739 = vmatpush.bf16.msra.mxu1 %v10568_v12  ;;  %v12446_v12 = vld [vmem:[%s19667_s3 + $0x8c4] sm:$0xf] }
 0x6d8   :  { %v5058_v24 = vadd.f32 %v5057_v43, %v5008_v58  ;;  %v5010_v20 = vpop.f32.mrf.mxu0  ;;  %5788 = vmatpush.bf16.msra.mxu3 %v10696_v34  ;;  %v12472_v58 = vld [vmem:[%s19667_s3 + $0x98c] sm:$0xf0]  ;;  %v10585_v34 = vld [vmem:[%s19667_s3 + $0x8d0] sm:$0xf0] }
 0x6d9   :  { %v4966_v36 = vpop.f32.mrf.mxu3  ;;  %v10680_v38 = vor.u32 %v12472_v58, %v10679_v31  ;;  %v10588_v43 = vor.u32 %v12446_v12, %v10585_v34  ;;  %v10519_v58 = vld [vmem:[%s19667_s3 + $0x840] sm:$0xf] }
 0x6da   :  { %v16958_v22 = vadd.f32 %v5058_v24, %v16318_v6  ;;  %v4967_v7 = vadd.f32 %v4966_v36, %v4917_v9  ;;  %v10535_v6 = vld [vmem:[%s19667_s3 + $0x860] sm:$0xf]  ;;  %v12468_v24 = vld [vmem:[%s19667_s3 + $0x96c] sm:$0xf0] }
 0x6db   :  { %v4920_v63 = vpop.f32.mrf.mxu1  ;;  %5740 = vmatpush.bf16.msra.mxu1 %v10552_v29  ;;  %v10663_v9 = vld [vmem:[%s19667_s3 + $0x960] sm:$0xf]  ;;  %5836 = vmatpush.bf16.msra.mxu0 %v10588_v43 }
 0x6dc   :  { %v16961_v57 = vadd.f32 %v4967_v7, %v16321_v37  ;;  %5789 = vmatpush.bf16.msra.mxu3 %v10680_v38  ;;  %v12436_v37 = vld [vmem:[%s19667_s3 + $0x86c] sm:$0xf0]  ;;  %v10664_v47 = vor.u32 %v12468_v24, %v10663_v9  ;;  %v10647_v38 = vld [vmem:[%s19667_s3 + $0x940] sm:$0xf] }
 0x6dd   :  { %v10536_v44 = vor.u32 %v12436_v37, %v10535_v6  ;;  %v12432_v7 = vld [vmem:[%s19667_s3 + $0x84c] sm:$0xf0] }
 0x6de   :  { %20131 = vst [vmem:[#allocation31_spill] sm:$0xff] %v16961_v57  ;;  %5115 = vmatmul.bf16.gmra.mxu1 %v20052_v18  ;;  %5164 = vmatmul.bf16.gmra.mxu3 %v20053_v23  ;;  %v10520_v34 = vor.u32 %v12432_v7, %v10519_v58 }
 0x6df   :  { %v5059_v31 = vpop.f32.mrf.mxu2  ;;  %5741 = vmatpush.bf16.msra.mxu1 %v10536_v44  ;;  %v12474_v44 = vld [vmem:[%s19667_s3 + $0x9a4] sm:$0xf] }
 0x6e0   :  { %v5060_v36 = vadd.f32 %v5059_v31, %v5010_v20  ;;  %v5013_v29 = vpop.f32.mrf.mxu0  ;;  %5790 = vmatpush.bf16.msra.mxu3 %v10664_v47  ;;  %v12464_v20 = vld [vmem:[%s19667_s3 + $0x94c] sm:$0xf0]  ;;  %v10631_v31 = vld [vmem:[%s19667_s3 + $0x920] sm:$0xf] }
 0x6e1   :  { %v4969_v12 = vpop.f32.mrf.mxu3  ;;  %v10648_v37 = vor.u32 %v12464_v20, %v10647_v38  ;;  %v10487_v20 = vld [vmem:[%s19667_s3 + $0x800] sm:$0xf] }
 0x6e2   :  { %v16996_v6 = vadd.f32 %v5060_v36, %v16356_v21  ;;  %v4970_v43 = vadd.f32 %v4969_v12, %v4920_v63  ;;  %v10697_v21 = vld [vmem:[%s19667_s3 + $0x9b0] sm:$0xf0]  ;;  %v10503_v63 = vld [vmem:[%s19667_s3 + $0x820] sm:$0xf]  ;;  %v12460_v36 = vld [vmem:[%s19667_s3 + $0x92c] sm:$0xf0] }
 0x6e3   :  { %v4922_v9 = vpop.f32.mrf.mxu1  ;;  %5208 = vmatmul.bf16.gmra.mxu0 %v14816_v55  ;;  %5742 = vmatpush.bf16.msra.mxu1 %v10520_v34  ;;  %v10700_v47 = vor.u32 %v12474_v44, %v10697_v21  ;;  %v10632_v7 = vor.u32 %v12460_v36, %v10631_v31  ;;  %v10569_v31 = vld [vmem:[%s19667_s3 + $0x8b0] sm:$0xf0] }
 0x6e4   :  { %v17000_v24 = vadd.f32 %v4970_v43, %v16360_v56  ;;  %5257 = vmatmul.bf16.gmra.mxu2 %v14818_v25  ;;  %5791 = vmatpush.bf16.msra.mxu3 %v10648_v37  ;;  %v12428_v56 = vld [vmem:[%s19667_s3 + $0x82c] sm:$0xf0]  ;;  %v10615_v37 = vld [vmem:[%s19667_s3 + $0x900] sm:$0xf] }
 0x6e5   :  { %v10504_v58 = vor.u32 %v12428_v56, %v10503_v63  ;;  %5886 = vmatpush.bf16.msra.mxu2 %v10700_v47  ;;  %v12424_v43 = vld [vmem:[%s19667_s3 + $0x80c] sm:$0xf0]  ;;  %v12442_v56 = vld [vmem:[%s19667_s3 + $0x8a4] sm:$0xf] }
 0x6e6   :  { %v10488_v21 = vor.u32 %v12424_v43, %v10487_v20  ;;  %v10681_v43 = vld [vmem:[%s19667_s3 + $0x990] sm:$0xf0] }
 0x6e7   :  { %v5062_v38 = vpop.f32.mrf.mxu2  ;;  %5743 = vmatpush.bf16.msra.mxu1 %v10504_v58 }
 0x6e8   :  { %v5063_v12 = vadd.f32 %v5062_v38, %v5013_v29  ;;  %v5015_v34 = vpop.f32.mrf.mxu0  ;;  %5792 = vmatpush.bf16.msra.mxu3 %v10632_v7  ;;  %v12456_v29 = vld [vmem:[%s19667_s3 + $0x90c] sm:$0xf0]  ;;  %v10572_v7 = vor.u32 %v12442_v56, %v10569_v31  ;;  %v12434_v31 = vld [vmem:[%s19667_s3 + $0x864] sm:$0xf] }
 0x6e9   :  { %v4971_v44 = vpop.f32.mrf.mxu3  ;;  %v10616_v36 = vor.u32 %v12456_v29, %v10615_v37 }
 0x6ea   :  { %v17034_v63 = vadd.f32 %v5063_v12, %v16394_v17  ;;  %v4972_v47 = vadd.f32 %v4971_v44, %v4922_v9  ;;  %5837 = vmatpush.bf16.msra.mxu0 %v10572_v7  ;;  %v12438_v17 = vld [vmem:[%s19667_s3 + $0x884] sm:$0xf]  ;;  %v10553_v9 = vld [vmem:[%s19667_s3 + $0x890] sm:$0xf0] }
 0x6eb   :  { %v4925_v58 = vpop.f32.mrf.mxu1  ;;  %5744 = vmatpush.bf16.msra.mxu1 %v10488_v21  ;;  %v10556_v20 = vor.u32 %v12438_v17, %v10553_v9 }
 0x6ec   :  { %v17043_v38 = vadd.f32 %v4972_v47, %v16403_v52  ;;  %5793 = vmatpush.bf16.msra.mxu3 %v10616_v36  ;;  %v12470_v52 = vld [vmem:[%s19667_s3 + $0x984] sm:$0xf]  ;;  %v10537_v36 = vld [vmem:[%s19667_s3 + $0x870] sm:$0xf0] }
 0x6ed   :  { %v10684_v21 = vor.u32 %v12470_v52, %v10681_v43  ;;  %v10540_v17 = vor.u32 %v12434_v31, %v10537_v36  ;;  %v12430_v52 = vld [vmem:[%s19667_s3 + $0x844] sm:$0xf] }
 0x6ee   :  { %20132 = vst [vmem:[#allocation39_spill] sm:$0xff] %v17043_v38  ;;  %5120 = vmatmul.bf16.gmra.mxu1 %v20060_v41  ;;  %5169 = vmatmul.bf16.gmra.mxu3 %v20061_v15 }
 0x6ef   :  { %v5064_v12 = vpop.f32.mrf.mxu2  ;;  %5838 = vmatpush.bf16.msra.mxu0 %v10556_v20  ;;  %5887 = vmatpush.bf16.msra.mxu2 %v10684_v21  ;;  %v12462_v20 = vld [vmem:[%s19667_s3 + $0x944] sm:$0xf] }
 0x6f0   :  { %v5065_v37 = vadd.f32 %v5064_v12, %v5015_v34  ;;  %v5018_v44 = vpop.f32.mrf.mxu0  ;;  %v12466_v34 = vld [vmem:[%s19667_s3 + $0x964] sm:$0xf]  ;;  %v10521_v12 = vld [vmem:[%s19667_s3 + $0x850] sm:$0xf0] }
 0x6f1   :  { %v4974_v29 = vpop.f32.mrf.mxu3 }
 0x6f2   :  { %v17060_v47 = vadd.f32 %v5065_v37, %v16420_v19  ;;  %v4975_v56 = vadd.f32 %v4974_v29, %v4925_v58  ;;  %v10665_v19 = vld [vmem:[%s19667_s3 + $0x970] sm:$0xf0] }
 0x6f3   :  { %v4927_v7 = vpop.f32.mrf.mxu1  ;;  %5213 = vmatmul.bf16.gmra.mxu0 %v20052_v18  ;;  %v10668_v9 = vor.u32 %v12466_v34, %v10665_v19  ;;  %v10649_v37 = vld [vmem:[%s19667_s3 + $0x950] sm:$0xf0] }
 0x6f4   :  { %20133 = vst [vmem:[#allocation41_spill] sm:$0xff] %v17060_v47  ;;  %v17076_v58 = vadd.f32 %v4975_v56, %v16436_v53  ;;  %5262 = vmatmul.bf16.gmra.mxu2 %v20053_v23  ;;  %5839 = vmatpush.bf16.msra.mxu0 %v10540_v17  ;;  %v10524_v53 = vor.u32 %v12430_v52, %v10521_v12  ;;  %v12426_v17 = vld [vmem:[%s19667_s3 + $0x824] sm:$0xf]  ;;  %v10505_v19 = vld [vmem:[%s19667_s3 + $0x830] sm:$0xf0]  ;;  %v20147_v47 = vld [vmem:[#allocation15_spill] sm:$0xff] }
 0x6f5   :  { %5888 = vmatpush.bf16.msra.mxu2 %v10668_v9  ;;  %v10652_v56 = vor.u32 %v12462_v20, %v10649_v37  ;;  %v10508_v52 = vor.u32 %v12426_v17, %v10505_v19  ;;  %v12422_v20 = vld [vmem:[%s19667_s3 + $0x804] sm:$0xf] }
 0x6f7   :  { %v5067_v43 = vpop.f32.mrf.mxu2 }
 0x6f8   :  { %v5068_v21 = vadd.f32 %v5067_v43, %v5018_v44  ;;  %v5020_v29 = vpop.f32.mrf.mxu0  ;;  %5840 = vmatpush.bf16.msra.mxu0 %v10524_v53  ;;  %v12458_v44 = vld [vmem:[%s19667_s3 + $0x924] sm:$0xf]  ;;  %v10489_v43 = vld [vmem:[%s19667_s3 + $0x810] sm:$0xf0] }
 0x6f9   :  { %v4976_v31 = vpop.f32.mrf.mxu3  ;;  %5889 = vmatpush.bf16.msra.mxu2 %v10652_v56  ;;  %v12454_v53 = vld [vmem:[%s19667_s3 + $0x904] sm:$0xf]  ;;  %v10492_v37 = vor.u32 %v12422_v20, %v10489_v43 }
 0x6fa   :  { %v17092_v36 = vadd.f32 %v5068_v21, %v16452_v50  ;;  %v4977_v34 = vadd.f32 %v4976_v31, %v4927_v7  ;;  %v10633_v50 = vld [vmem:[%s19667_s3 + $0x930] sm:$0xf0] }
 0x6fb   :  { %v4930_v9 = vpop.f32.mrf.mxu1  ;;  %v10636_v12 = vor.u32 %v12458_v44, %v10633_v50  ;;  %v10617_v21 = vld [vmem:[%s19667_s3 + $0x910] sm:$0xf0] }
 0x6fc   :  { %v17107_v7 = vadd.f32 %v4977_v34, %v16467_v3  ;;  %5841 = vmatpush.bf16.msra.mxu0 %v10508_v52  ;;  %v10620_v34 = vor.u32 %v12454_v53, %v10617_v21 }
 0x6fd   :  { %5890 = vmatpush.bf16.msra.mxu2 %v10636_v12 }
 0x6fe   :  { %20134 = vst [vmem:[#allocation34_spill] sm:$0xff] %v17107_v7  ;;  %5125 = vmatmul.bf16.gmra.mxu1 %v20124_v4  ;;  %5174 = vmatmul.bf16.gmra.mxu3 %v20125_v28 }
 0x6ff   :  { %v5069_v3 = vpop.f32.mrf.mxu2 }
 0x700   :  { %v5070_v56 = vadd.f32 %v5069_v3, %v5020_v29  ;;  %v5023_v31 = vpop.f32.mrf.mxu0  ;;  %5842 = vmatpush.bf16.msra.mxu0 %v10492_v37  ;;  %v20136_v37 = vld [vmem:[#allocation14_spill] sm:$0xff] }
 0x701   :  { %v4979_v17 = vpop.f32.mrf.mxu3  ;;  %5891 = vmatpush.bf16.msra.mxu2 %v10620_v34 }
 0x702   :  { %v17124_v19 = vadd.f32 %v5070_v56, %v16484_v40  ;;  %v4980_v44 = vadd.f32 %v4979_v17, %v4930_v9  ;;  %v20138_v17 = vld [vmem:[#allocation81_spill] sm:$0xff] }
 0x703   :  { %v4932_v52 = vpop.f32.mrf.mxu1  ;;  %5218 = vmatmul.bf16.gmra.mxu0 %v20060_v41 }
 0x704   :  { %20135 = vst [vmem:[#allocation44_spill] sm:$0xff] %v17124_v19  ;;  %v17128_v50 = vadd.f32 %v4980_v44, %v16488_v45  ;;  %5267 = vmatmul.bf16.gmra.mxu2 %v20061_v15 }
 0x707   :  { %v5072_v12 = vpop.f32.mrf.mxu2 }
 0x708   :  { %v5073_v20 = vadd.f32 %v5072_v12, %v5023_v31  ;;  %v5025_v29 = vpop.f32.mrf.mxu0 }
 0x709   :  { %v4981_v43 = vpop.f32.mrf.mxu3 }
 0x70a   :  { %v17132_v53 = vadd.f32 %v5073_v20, %v16492_v26  ;;  %v4982_v3 = vadd.f32 %v4981_v43, %v4932_v52  ;;  %v20140_v26 = vld [vmem:[#allocation86_spill] sm:$0xff] }
 0x70b   :  { %v5091_v40 = vpop.f32.mrf.mxu1 }
 0x70c   :  { %v17135_v9 = vadd.f32 %v4982_v3, %v20136_v37 }
 0x70e   :  { %20137 = vst [vmem:[#allocation36_spill] sm:$0xff] %v17135_v9  ;;  %5745 = vmatmul.bf16.vlgmr.msra.gmra.mxu1 %v14584_v1  ;;  %5794 = vmatmul.bf16.vlgmr.msra.gmra.mxu3 %v14586_v60  ;;  %v20141_v9 = vld [vmem:[#allocation6_spill] sm:$0xff] }
 0x70f   :  { %v5074_v45 = vpop.f32.mrf.mxu2 }
 0x710   :  { %v5075_v21 = vadd.f32 %v5074_v45, %v5025_v29  ;;  %v5028_v56 = vpop.f32.mrf.mxu0 }
 0x711   :  { %v5140_v34 = vpop.f32.mrf.mxu3 }
 0x712   :  { %v17140_v31 = vadd.f32 %v5075_v21, %v20138_v17  ;;  %v5141_v44 = vadd.f32 %v5140_v34, %v5091_v40  ;;  %v20142_v21 = vld [vmem:[#allocation7_spill] sm:$0xff] }
 0x713   :  { %v5093_v12 = vpop.f32.mrf.mxu1  ;;  %5223 = vmatmul.bf16.gmra.mxu0 %v20124_v4 }
 0x714   :  { %20139 = vst [vmem:[#allocation37_spill] sm:$0xff] %v17140_v31  ;;  %v17144_v52 = vadd.f32 %v5141_v44, %v20140_v26  ;;  %5272 = vmatmul.bf16.gmra.mxu2 %v20125_v28  ;;  %v20143_v31 = vld [vmem:[#allocation88_spill] sm:$0xff] }
 0x717   :  { %v5077_v20 = vpop.f32.mrf.mxu2 }
 0x718   :  { %v5078_v43 = vadd.f32 %v5077_v20, %v5028_v56  ;;  %v5030_v3 = vpop.f32.mrf.mxu0 }
 0x719   :  { %v5142_v37 = vpop.f32.mrf.mxu3 }
 0x71a   :  { %v17148_v29 = vadd.f32 %v5078_v43, %v20141_v9  ;;  %v5143_v45 = vadd.f32 %v5142_v37, %v5093_v12  ;;  %v20145_v9 = vld [vmem:[#allocation83_spill] sm:$0xff] }
 0x71b   :  { %v5096_v19 = vpop.f32.mrf.mxu1 }
 0x71c   :  { %v17151_v17 = vadd.f32 %v5143_v45, %v20142_v21 }
 0x71e   :  { %5750 = vmatmul.bf16.gmra.mxu1 %v14616_v48  ;;  %5799 = vmatmul.bf16.gmra.mxu3 %v14618_v10 }
 0x71f   :  { %v5079_v40 = vpop.f32.mrf.mxu2 }
 0x720   :  { %v5080_v34 = vadd.f32 %v5079_v40, %v5030_v3  ;;  %v5189_v44 = vpop.f32.mrf.mxu0 }
 0x721   :  { %v5145_v26 = vpop.f32.mrf.mxu3 }
 0x722   :  { %v17156_v56 = vadd.f32 %v5080_v34, %v20143_v31  ;;  %v5146_v20 = vadd.f32 %v5145_v26, %v5096_v19  ;;  %v20149_v31 = vld [vmem:[#allocation17_spill] sm:$0xff] }
 0x723   :  { %v5098_v7 = vpop.f32.mrf.mxu1  ;;  %5843 = vmatmul.bf16.vlgmr.msra.gmra.mxu0 %v14584_v1 }
 0x724   :  { %20144 = vst [vmem:[#allocation45_spill] sm:$0xff] %v17156_v56  ;;  %v17160_v12 = vadd.f32 %v5146_v20, %v20145_v9  ;;  %5892 = vmatmul.bf16.vlgmr.msra.gmra.mxu2 %v14586_v60  ;;  %v20151_v56 = vld [vmem:[#allocation90_spill] sm:$0xff] }
 0x726   :  { %20146 = vst [vmem:[#allocation47_spill] sm:$0xff] %v17160_v12  ;;  %v20193_v12 = vld [vmem:[#allocation38_spill] sm:$0xff] }
 0x727   :  { %v5238_v43 = vpop.f32.mrf.mxu2 }
 0x728   :  { %v5239_v37 = vadd.f32 %v5238_v43, %v5189_v44  ;;  %v5191_v45 = vpop.f32.mrf.mxu0 }
 0x729   :  { %v5147_v21 = vpop.f32.mrf.mxu3 }
 0x72a   :  { %v17164_v3 = vadd.f32 %v5239_v37, %v20147_v47  ;;  %v5148_v40 = vadd.f32 %v5147_v21, %v5098_v7  ;;  %v20153_v47 = vld [vmem:[#allocation85_spill] sm:$0xff] }
 0x72b   :  { %v5101_v38 = vpop.f32.mrf.mxu1 }
 0x72c   :  { %20148 = vst [vmem:[#allocation40_spill] sm:$0xff] %v17164_v3  ;;  %v17167_v34 = vadd.f32 %v5148_v40, %v20149_v31 }
 0x72e   :  { %20150 = vst [vmem:[#allocation50_spill] sm:$0xff] %v17167_v34  ;;  %5755 = vmatmul.bf16.gmra.mxu1 %v14708_v2  ;;  %5804 = vmatmul.bf16.gmra.mxu3 %v14710_v54  ;;  %v20155_v34 = vld [vmem:[#allocation10_spill] sm:$0xff] }
 0x72f   :  { %v5240_v19 = vpop.f32.mrf.mxu2 }
 0x730   :  { %v5241_v26 = vadd.f32 %v5240_v19, %v5191_v45  ;;  %v5194_v20 = vpop.f32.mrf.mxu0 }
 0x731   :  { %v5150_v9 = vpop.f32.mrf.mxu3 }
 0x732   :  { %v17172_v44 = vadd.f32 %v5241_v26, %v20151_v56  ;;  %v5151_v43 = vadd.f32 %v5150_v9, %v5101_v38  ;;  %v20157_v56 = vld [vmem:[#allocation20_spill] sm:$0xff] }
 0x733   :  { %v5103_v57 = vpop.f32.mrf.mxu1  ;;  %5848 = vmatmul.bf16.gmra.mxu0 %v14616_v48 }
 0x734   :  { %20152 = vst [vmem:[#allocation42_spill] sm:$0xff] %v17172_v44  ;;  %v17176_v7 = vadd.f32 %v5151_v43, %v20153_v47  ;;  %5897 = vmatmul.bf16.gmra.mxu2 %v14618_v10 }
 0x736   :  { %20154 = vst [vmem:[#allocation43_spill] sm:$0xff] %v17176_v7  ;;  %v20159_v7 = vld [vmem:[#allocation92_spill] sm:$0xff] }
 0x737   :  { %v5243_v37 = vpop.f32.mrf.mxu2 }
 0x738   :  { %v5244_v21 = vadd.f32 %v5243_v37, %v5194_v20  ;;  %v5196_v40 = vpop.f32.mrf.mxu0 }
 0x739   :  { %v5152_v31 = vpop.f32.mrf.mxu3 }
 0x73a   :  { %v17180_v45 = vadd.f32 %v5244_v21, %v20155_v34  ;;  %v5153_v19 = vadd.f32 %v5152_v31, %v5103_v57  ;;  %v20161_v57 = vld [vmem:[#allocation87_spill] sm:$0xff] }
 0x73b   :  { %v5106_v3 = vpop.f32.mrf.mxu1  ;;  %v12483_v21 = vld [vmem:[%s19667_s3 + $0x9ec] sm:$0xf] }
 0x73c   :  { %20156 = vst [vmem:[#allocation51_spill] sm:$0xff] %v17180_v45  ;;  %v17183_v26 = vadd.f32 %v5153_v19, %v20157_v56  ;;  %v12447_v45 = vld [vmem:[%s19667_s3 + $0x8cc] sm:$0xf] }
 0x73e   :  { %20158 = vst [vmem:[#allocation53_spill] sm:$0xff] %v17183_v26  ;;  %5760 = vmatmul.bf16.gmra.mxu1 %v14816_v55  ;;  %5809 = vmatmul.bf16.gmra.mxu3 %v14818_v25 }
 0x73f   :  { %v5245_v38 = vpop.f32.mrf.mxu2 }
 0x740   :  { %v5246_v9 = vadd.f32 %v5245_v38, %v5196_v40  ;;  %v5199_v43 = vpop.f32.mrf.mxu0  ;;  %v10737_v40 = vld [vmem:[%s19667_s3 + $0x9f8] sm:$0xf0]  ;;  %v20163_v38 = vld [vmem:[#allocation12_spill] sm:$0xff] }
 0x741   :  { %v5155_v47 = vpop.f32.mrf.mxu3  ;;  %v10740_v31 = vor.u32 %v12483_v21, %v10737_v40  ;;  %v12485_v21 = vld [vmem:[%s19667_s3 + $0x9f4] sm:$0xf0] }
 0x742   :  { %v17188_v20 = vadd.f32 %v5246_v9, %v20159_v7  ;;  %v5156_v37 = vadd.f32 %v5155_v47, %v5106_v3 }
 0x743   :  { %v5108_v44 = vpop.f32.mrf.mxu1  ;;  %5853 = vmatmul.bf16.gmra.mxu0 %v14708_v2  ;;  %6080 = vmatpush.bf16.msrb.mxu2 %v10740_v31  ;;  %v10607_v31 = vld [vmem:[%s19667_s3 + $0x8e8] sm:$0xf] }
 0x744   :  { %20160 = vst [vmem:[#allocation46_spill] sm:$0xff] %v17188_v20  ;;  %v17192_v34 = vadd.f32 %v5156_v37, %v20161_v57  ;;  %5902 = vmatmul.bf16.gmra.mxu2 %v14710_v54  ;;  %v20165_v57 = vld [vmem:[#allocation13_spill] sm:$0xff]  ;;  %v10735_v20 = vld [vmem:[%s19667_s3 + $0x9e8] sm:$0xf] }
 0x745   :  { %v10736_v40 = vor.u32 %v12485_v21, %v10735_v20  ;;  %v12449_v21 = vld [vmem:[%s19667_s3 + $0x8d4] sm:$0xf0] }
 0x746   :  { %20162 = vst [vmem:[#allocation56_spill] sm:$0xff] %v17192_v34 }
 0x747   :  { %v5248_v7 = vpop.f32.mrf.mxu2  ;;  %5982 = vmatpush.bf16.msrb.mxu3 %v10736_v40  ;;  %v20167_v40 = vld [vmem:[#allocation94_spill] sm:$0xff] }
 0x748   :  { %v5249_v3 = vadd.f32 %v5248_v7, %v5199_v43  ;;  %v5201_v19 = vpop.f32.mrf.mxu0  ;;  %v12451_v43 = vld [vmem:[%s19667_s3 + $0x8ec] sm:$0xf]  ;;  %v12453_v7 = vld [vmem:[%s19667_s3 + $0x8f4] sm:$0xf0] }
 0x749   :  { %v5157_v56 = vpop.f32.mrf.mxu3 }
 0x74a   :  { %v17202_v9 = vadd.f32 %v5249_v3, %v20163_v38  ;;  %v5158_v47 = vadd.f32 %v5157_v56, %v5108_v44  ;;  %v10609_v44 = vld [vmem:[%s19667_s3 + $0x8f8] sm:$0xf0]  ;;  %v10608_v56 = vor.u32 %v12453_v7, %v10607_v31 }
 0x74b   :  { %v5111_v37 = vpop.f32.mrf.mxu1  ;;  %v10612_v3 = vor.u32 %v12451_v43, %v10609_v44 }
 0x74c   :  { %20164 = vst [vmem:[#allocation48_spill] sm:$0xff] %v17202_v9  ;;  %v17205_v34 = vadd.f32 %v5158_v47, %v20165_v57  ;;  %5933 = vmatpush.bf16.msrb.mxu1 %v10608_v56  ;;  %v10591_v57 = vld [vmem:[%s19667_s3 + $0x8c8] sm:$0xf] }
 0x74d   :  { %6031 = vmatpush.bf16.msrb.mxu0 %v10612_v3  ;;  %v10592_v44 = vor.u32 %v12449_v21, %v10591_v57  ;;  %v12479_v57 = vld [vmem:[%s19667_s3 + $0x9cc] sm:$0xf]  ;;  %v12445_v21 = vld [vmem:[%s19667_s3 + $0x8b4] sm:$0xf0] }
 0x74e   :  { %20166 = vst [vmem:[#allocation49_spill] sm:$0xff] %v17205_v34  ;;  %5765 = vmatmul.bf16.gmra.mxu1 %v20052_v18  ;;  %5814 = vmatmul.bf16.gmra.mxu3 %v20053_v23  ;;  %v10719_v34 = vld [vmem:[%s19667_s3 + $0x9c8] sm:$0xf] }
 0x74f   :  { %v5250_v38 = vpop.f32.mrf.mxu2 }
 0x750   :  { %v5251_v20 = vadd.f32 %v5250_v38, %v5201_v19  ;;  %v5204_v47 = vpop.f32.mrf.mxu0  ;;  %v12481_v19 = vld [vmem:[%s19667_s3 + $0x9d4] sm:$0xf0]  ;;  %5934 = vmatpush.bf16.msrb.mxu1 %v10592_v44 }
 0x751   :  { %v5160_v43 = vpop.f32.mrf.mxu3  ;;  %v10720_v3 = vor.u32 %v12481_v19, %v10719_v34  ;;  %v20169_v38 = vld [vmem:[#allocation89_spill] sm:$0xff]  ;;  %v10575_v34 = vld [vmem:[%s19667_s3 + $0x8a8] sm:$0xf] }
 0x752   :  { %v17240_v31 = vadd.f32 %v5251_v20, %v20167_v40  ;;  %v5161_v7 = vadd.f32 %v5160_v43, %v5111_v37  ;;  %v10721_v20 = vld [vmem:[%s19667_s3 + $0x9d8] sm:$0xf0]  ;;  %v10703_v43 = vld [vmem:[%s19667_s3 + $0x9a8] sm:$0xf]  ;;  %v12477_v44 = vld [vmem:[%s19667_s3 + $0x9b4] sm:$0xf0]  ;;  %v10576_v19 = vor.u32 %v12445_v21, %v10575_v34 }
 0x753   :  { %v5113_v56 = vpop.f32.mrf.mxu1  ;;  %5858 = vmatmul.bf16.gmra.mxu0 %v14816_v55  ;;  %5983 = vmatpush.bf16.msrb.mxu3 %v10720_v3  ;;  %v10724_v37 = vor.u32 %v12479_v57, %v10721_v20  ;;  %v10704_v40 = vor.u32 %v12477_v44, %v10703_v43  ;;  %v10559_v3 = vld [vmem:[%s19667_s3 + $0x888] sm:$0xf]  ;;  %v12441_v57 = vld [vmem:[%s19667_s3 + $0x894] sm:$0xf0] }
 0x754   :  { %20168 = vst [vmem:[#allocation57_spill] sm:$0xff] %v17240_v31  ;;  %v17244_v9 = vadd.f32 %v5161_v7, %v20169_v38  ;;  %5907 = vmatmul.bf16.gmra.mxu2 %v14818_v25  ;;  %5935 = vmatpush.bf16.msrb.mxu1 %v10576_v19  ;;  %v10687_v20 = vld [vmem:[%s19667_s3 + $0x988] sm:$0xf]  ;;  %v10560_v34 = vor.u32 %v12441_v57, %v10559_v3  ;;  %v12469_v57 = vld [vmem:[%s19667_s3 + $0x974] sm:$0xf0] }
 0x755   :  { %6081 = vmatpush.bf16.msrb.mxu2 %v10724_v37  ;;  %v20171_v37 = vld [vmem:[#allocation21_spill] sm:$0xff] }
 0x756   :  { %20170 = vst [vmem:[#allocation19_spill] sm:$0xff] %v17244_v9 }
 0x757   :  { %v5253_v7 = vpop.f32.mrf.mxu2  ;;  %5984 = vmatpush.bf16.msrb.mxu3 %v10704_v40  ;;  %v10593_v40 = vld [vmem:[%s19667_s3 + $0x8d8] sm:$0xf0] }
 0x758   :  { %v5254_v38 = vadd.f32 %v5253_v7, %v5204_v47  ;;  %v5206_v9 = vpop.f32.mrf.mxu0  ;;  %v12473_v47 = vld [vmem:[%s19667_s3 + $0x994] sm:$0xf0]  ;;  %v20173_v7 = vld [vmem:[#allocation23_spill] sm:$0xff]  ;;  %5936 = vmatpush.bf16.msrb.mxu1 %v10560_v34  ;;  %v10596_v3 = vor.u32 %v12447_v45, %v10593_v40 }
 0x759   :  { %v5162_v31 = vpop.f32.mrf.mxu3  ;;  %v10688_v44 = vor.u32 %v12473_v47, %v10687_v20 }
 0x75a   :  { %v17278_v21 = vadd.f32 %v5254_v38, %v20171_v37  ;;  %v5163_v43 = vadd.f32 %v5162_v31, %v5113_v56  ;;  %v10543_v38 = vld [vmem:[%s19667_s3 + $0x868] sm:$0xf]  ;;  %v12437_v31 = vld [vmem:[%s19667_s3 + $0x874] sm:$0xf0]  ;;  %6032 = vmatpush.bf16.msrb.mxu0 %v10596_v3 }
 0x75b   :  { %v5116_v19 = vpop.f32.mrf.mxu1  ;;  %5985 = vmatpush.bf16.msrb.mxu3 %v10688_v44  ;;  %v10671_v56 = vld [vmem:[%s19667_s3 + $0x968] sm:$0xf]  ;;  %v10544_v20 = vor.u32 %v12437_v31, %v10543_v38  ;;  %v12433_v44 = vld [vmem:[%s19667_s3 + $0x854] sm:$0xf0] }
 0x75c   :  { %20172 = vst [vmem:[#allocation27_spill] sm:$0xff] %v17278_v21  ;;  %v17281_v26 = vadd.f32 %v5163_v43, %v20173_v7  ;;  %v10672_v34 = vor.u32 %v12469_v57, %v10671_v56  ;;  %v10527_v43 = vld [vmem:[%s19667_s3 + $0x848] sm:$0xf] }
 0x75d   :  { %5937 = vmatpush.bf16.msrb.mxu1 %v10544_v20  ;;  %v10655_v7 = vld [vmem:[%s19667_s3 + $0x948] sm:$0xf]  ;;  %v10528_v38 = vor.u32 %v12433_v44, %v10527_v43  ;;  %v12429_v44 = vld [vmem:[%s19667_s3 + $0x834] sm:$0xf0] }
 0x75e   :  { %20174 = vst [vmem:[#allocation59_spill] sm:$0xff] %v17281_v26  ;;  %5770 = vmatmul.bf16.gmra.mxu1 %v20060_v41  ;;  %5819 = vmatmul.bf16.gmra.mxu3 %v20061_v15  ;;  %v20175_v3 = vld [vmem:[#allocation91_spill] sm:$0xff] }
 0x75f   :  { %v5255_v45 = vpop.f32.mrf.mxu2  ;;  %5986 = vmatpush.bf16.msrb.mxu3 %v10672_v34  ;;  %v12475_v34 = vld [vmem:[%s19667_s3 + $0x9ac] sm:$0xf] }
 0x760   :  { %v5256_v47 = vadd.f32 %v5255_v45, %v5206_v9  ;;  %v5209_v37 = vpop.f32.mrf.mxu0  ;;  %v12465_v9 = vld [vmem:[%s19667_s3 + $0x954] sm:$0xf0]  ;;  %v20177_v45 = vld [vmem:[#allocation16_spill] sm:$0xff] }
 0x761   :  { %v5165_v40 = vpop.f32.mrf.mxu3  ;;  %v10656_v57 = vor.u32 %v12465_v9, %v10655_v7  ;;  %5938 = vmatpush.bf16.msrb.mxu1 %v10528_v38  ;;  %v10639_v7 = vld [vmem:[%s19667_s3 + $0x928] sm:$0xf] }
 0x762   :  { %v17316_v31 = vadd.f32 %v5256_v47, %v20175_v3  ;;  %v5166_v56 = vadd.f32 %v5165_v40, %v5116_v19  ;;  %v10705_v47 = vld [vmem:[%s19667_s3 + $0x9b8] sm:$0xf0]  ;;  %v10511_v19 = vld [vmem:[%s19667_s3 + $0x828] sm:$0xf]  ;;  %v12461_v40 = vld [vmem:[%s19667_s3 + $0x934] sm:$0xf0] }
 0x763   :  { %v5118_v20 = vpop.f32.mrf.mxu1  ;;  %5863 = vmatmul.bf16.gmra.mxu0 %v20052_v18  ;;  %5987 = vmatpush.bf16.msrb.mxu3 %v10656_v57  ;;  %v10708_v43 = vor.u32 %v12475_v34, %v10705_v47  ;;  %v10512_v38 = vor.u32 %v12429_v44, %v10511_v19  ;;  %v10640_v9 = vor.u32 %v12461_v40, %v10639_v7  ;;  %v10495_v57 = vld [vmem:[%s19667_s3 + $0x808] sm:$0xf]  ;;  %v12425_v34 = vld [vmem:[%s19667_s3 + $0x814] sm:$0xf0]  ;;  %v12443_v40 = vld [vmem:[%s19667_s3 + $0x8ac] sm:$0xf] }
 0x764   :  { %20176 = vst [vmem:[#allocation52_spill] sm:$0xff] %v17316_v31  ;;  %v17320_v26 = vadd.f32 %v5166_v56, %v20177_v45  ;;  %5912 = vmatmul.bf16.gmra.mxu2 %v20053_v23  ;;  %v10623_v47 = vld [vmem:[%s19667_s3 + $0x908] sm:$0xf]  ;;  %v10496_v19 = vor.u32 %v12425_v34, %v10495_v57  ;;  %v20181_v57 = vld [vmem:[#allocation26_spill] sm:$0xff] }
 0x765   :  { %6082 = vmatpush.bf16.msrb.mxu2 %v10708_v43  ;;  %5939 = vmatpush.bf16.msrb.mxu1 %v10512_v38  ;;  %v20179_v43 = vld [vmem:[#allocation93_spill] sm:$0xff] }
 0x766   :  { %20178 = vst [vmem:[#allocation29_spill] sm:$0xff] %v17320_v26  ;;  %v10577_v38 = vld [vmem:[%s19667_s3 + $0x8b8] sm:$0xf0] }
 0x767   :  { %v5258_v3 = vpop.f32.mrf.mxu2  ;;  %5988 = vmatpush.bf16.msrb.mxu3 %v10640_v9  ;;  %v10580_v9 = vor.u32 %v12443_v40, %v10577_v38 }
 0x768   :  { %v5259_v56 = vadd.f32 %v5258_v3, %v5209_v37  ;;  %v5211_v45 = vpop.f32.mrf.mxu0  ;;  %v12457_v37 = vld [vmem:[%s19667_s3 + $0x914] sm:$0xf0] }
 0x769   :  { %v5167_v26 = vpop.f32.mrf.mxu3  ;;  %v10624_v3 = vor.u32 %v12457_v37, %v10623_v47  ;;  %5940 = vmatpush.bf16.msrb.mxu1 %v10496_v19  ;;  %6033 = vmatpush.bf16.msrb.mxu0 %v10580_v9  ;;  %v10689_v37 = vld [vmem:[%s19667_s3 + $0x998] sm:$0xf0] }
 0x76a   :  { %v17354_v44 = vadd.f32 %v5259_v56, %v20179_v43  ;;  %v5168_v7 = vadd.f32 %v5167_v26, %v5118_v20  ;;  %v12439_v26 = vld [vmem:[%s19667_s3 + $0x88c] sm:$0xf]  ;;  %v10561_v20 = vld [vmem:[%s19667_s3 + $0x898] sm:$0xf0] }
 0x76b   :  { %v5121_v31 = vpop.f32.mrf.mxu1  ;;  %5989 = vmatpush.bf16.msrb.mxu3 %v10624_v3  ;;  %v12471_v56 = vld [vmem:[%s19667_s3 + $0x98c] sm:$0xf]  ;;  %v10564_v19 = vor.u32 %v12439_v26, %v10561_v20  ;;  %v10545_v26 = vld [vmem:[%s19667_s3 + $0x878] sm:$0xf0] }
 0x76c   :  { %20180 = vst [vmem:[#allocation22_spill] sm:$0xff] %v17354_v44  ;;  %v17363_v34 = vadd.f32 %v5168_v7, %v20181_v57  ;;  %v10692_v40 = vor.u32 %v12471_v56, %v10689_v37  ;;  %v20183_v3 = vld [vmem:[#allocation95_spill] sm:$0xff] }
 0x76d   :  { %6034 = vmatpush.bf16.msrb.mxu0 %v10564_v19 }
 0x76e   :  { %20182 = vst [vmem:[#allocation62_spill] sm:$0xff] %v17363_v34  ;;  %5775 = vmatmul.bf16.gmra.mxu1 %v20124_v4  ;;  %5824 = vmatmul.bf16.gmra.mxu3 %v20125_v28  ;;  %v12435_v34 = vld [vmem:[%s19667_s3 + $0x86c] sm:$0xf] }
 0x76f   :  { %v5260_v47 = vpop.f32.mrf.mxu2  ;;  %6083 = vmatpush.bf16.msrb.mxu2 %v10692_v40  ;;  %v10548_v56 = vor.u32 %v12435_v34, %v10545_v26  ;;  %v10529_v34 = vld [vmem:[%s19667_s3 + $0x858] sm:$0xf0]  ;;  %v12463_v40 = vld [vmem:[%s19667_s3 + $0x94c] sm:$0xf] }
 0x770   :  { %v5261_v43 = vadd.f32 %v5260_v47, %v5211_v45  ;;  %v5214_v7 = vpop.f32.mrf.mxu0  ;;  %v12467_v45 = vld [vmem:[%s19667_s3 + $0x96c] sm:$0xf]  ;;  %v20185_v47 = vld [vmem:[#allocation18_spill] sm:$0xff] }
 0x771   :  { %v5170_v38 = vpop.f32.mrf.mxu3  ;;  %6035 = vmatpush.bf16.msrb.mxu0 %v10548_v56 }
 0x772   :  { %v17380_v9 = vadd.f32 %v5261_v43, %v20183_v3  ;;  %v5171_v57 = vadd.f32 %v5170_v38, %v5121_v31  ;;  %v10673_v31 = vld [vmem:[%s19667_s3 + $0x978] sm:$0xf0]  ;;  %v12431_v43 = vld [vmem:[%s19667_s3 + $0x84c] sm:$0xf] }
 0x773   :  { %v5123_v20 = vpop.f32.mrf.mxu1  ;;  %5868 = vmatmul.bf16.gmra.mxu0 %v20060_v41  ;;  %v10676_v37 = vor.u32 %v12467_v45, %v10673_v31  ;;  %v10532_v3 = vor.u32 %v12431_v43, %v10529_v34  ;;  %v10513_v43 = vld [vmem:[%s19667_s3 + $0x838] sm:$0xf0] }
 0x774   :  { %20184 = vst [vmem:[#allocation55_spill] sm:$0xff] %v17380_v9  ;;  %v17396_v19 = vadd.f32 %v5171_v57, %v20185_v47  ;;  %5917 = vmatmul.bf16.gmra.mxu2 %v20061_v15  ;;  %v10657_v57 = vld [vmem:[%s19667_s3 + $0x958] sm:$0xf0]  ;;  %v20187_v47 = vld [vmem:[#allocation35_spill] sm:$0xff] }
 0x775   :  { %6084 = vmatpush.bf16.msrb.mxu2 %v10676_v37  ;;  %v10660_v56 = vor.u32 %v12463_v40, %v10657_v57  ;;  %6036 = vmatpush.bf16.msrb.mxu0 %v10532_v3  ;;  %v12427_v9 = vld [vmem:[%s19667_s3 + $0x82c] sm:$0xf] }
 0x776   :  { %20186 = vst [vmem:[#allocation54_spill] sm:$0xff] %v17396_v19  ;;  %v10516_v40 = vor.u32 %v12427_v9, %v10513_v43  ;;  %v10497_v9 = vld [vmem:[%s19667_s3 + $0x818] sm:$0xf0] }
 0x777   :  { %v5263_v38 = vpop.f32.mrf.mxu2 }
 0x778   :  { %v5264_v26 = vadd.f32 %v5263_v38, %v5214_v7  ;;  %v5216_v45 = vpop.f32.mrf.mxu0  ;;  %v12459_v7 = vld [vmem:[%s19667_s3 + $0x92c] sm:$0xf]  ;;  %v10641_v38 = vld [vmem:[%s19667_s3 + $0x938] sm:$0xf0] }
 0x779   :  { %v5172_v31 = vpop.f32.mrf.mxu3  ;;  %6085 = vmatpush.bf16.msrb.mxu2 %v10660_v56  ;;  %v10644_v57 = vor.u32 %v12459_v7, %v10641_v38  ;;  %6037 = vmatpush.bf16.msrb.mxu0 %v10516_v40  ;;  %v20192_v56 = vld [vmem:[#allocation33_spill] sm:$0xff] }
 0x77a   :  { %v17412_v37 = vadd.f32 %v5264_v26, %v20187_v47  ;;  %v5173_v19 = vadd.f32 %v5172_v31, %v5123_v20  ;;  %v20189_v20 = vld [vmem:[#allocation28_spill] sm:$0xff]  ;;  %v20191_v26 = vld [vmem:[#allocation25_spill] sm:$0xff]  ;;  %v12423_v31 = vld [vmem:[%s19667_s3 + $0x80c] sm:$0xf] }
 0x77b   :  { %v5126_v34 = vpop.f32.mrf.mxu1  ;;  %v12455_v47 = vld [vmem:[%s19667_s3 + $0x90c] sm:$0xf]  ;;  %v10500_v43 = vor.u32 %v12423_v31, %v10497_v9  ;;  %v10625_v7 = vld [vmem:[%s19667_s3 + $0x918] sm:$0xf0] }
 0x77c   :  { %20188 = vst [vmem:[#allocation58_spill] sm:$0xff] %v17412_v37  ;;  %v17427_v3 = vadd.f32 %v5173_v19, %v20189_v20  ;;  %v10628_v20 = vor.u32 %v12455_v47, %v10625_v7 }
 0x77d   :  { %6086 = vmatpush.bf16.msrb.mxu2 %v10644_v57  ;;  %6038 = vmatpush.bf16.msrb.mxu0 %v10500_v43 }
 0x77e   :  { %20190 = vst [vmem:[#allocation65_spill] sm:$0xff] %v17427_v3  ;;  %5780 = vmatmul.bf16.gmra.mxu1 %v20191_v26  ;;  %5829 = vmatmul.bf16.gmra.mxu3 %v20192_v56 }
 0x77f   :  { %v5265_v19 = vpop.f32.mrf.mxu2 }
 0x780   :  { %v5266_v40 = vadd.f32 %v5265_v19, %v5216_v45  ;;  %v5219_v38 = vpop.f32.mrf.mxu0 }
 0x781   :  { %v5175_v3 = vpop.f32.mrf.mxu3  ;;  %6087 = vmatpush.bf16.msrb.mxu2 %v10628_v20 }
 0x782   :  { %v17444_v37 = vadd.f32 %v5266_v40, %v16804_v11  ;;  %v5176_v44 = vadd.f32 %v5175_v3, %v5126_v34 }
 0x783   :  { %v5128_v21 = vpop.f32.mrf.mxu1  ;;  %5873 = vmatmul.bf16.gmra.mxu0 %v20124_v4 }
 0x784   :  { %v17448_v57 = vadd.f32 %v5176_v44, %v20193_v12  ;;  %5922 = vmatmul.bf16.gmra.mxu2 %v20125_v28 }
 0x787   :  { %v5268_v31 = vpop.f32.mrf.mxu2 }
 0x788   :  { %v5269_v9 = vadd.f32 %v5268_v31, %v5219_v38  ;;  %v5221_v45 = vpop.f32.mrf.mxu0 }
 0x789   :  { %v5177_v19 = vpop.f32.mrf.mxu3 }
 0x78a   :  { %v17452_v47 = vadd.f32 %v5269_v9, %v16812_v0  ;;  %v5178_v43 = vadd.f32 %v5177_v19, %v5128_v21  ;;  %v20197_v0 = vld [vmem:[#allocation30_spill] sm:$0xff] }
 0x78b   :  { %v5746_v11 = vpop.f32.mrf.mxu1 }
 0x78c   :  { %20194 = vst [vmem:[#allocation61_spill] sm:$0xff] %v17452_v47  ;;  %v17455_v34 = vadd.f32 %v5178_v43, %v16815_v14 }
 0x78e   :  { %20195 = vst [vmem:[#allocation60_spill] sm:$0xff] %v17455_v34  ;;  %5941 = vmatmul.bf16.vlgmr.msrb.gmra.mxu1 %v14584_v1  ;;  %5990 = vmatmul.bf16.vlgmr.msrb.gmra.mxu3 %v14586_v60  ;;  %v10823_v34 = vld [vmem:[%s19668_s5 + $0x220] sm:$0xf] }
 0x78f   :  { %v5270_v12 = vpop.f32.mrf.mxu2 }
 0x790   :  { %v5271_v44 = vadd.f32 %v5270_v12, %v5221_v45  ;;  %v5224_v3 = vpop.f32.mrf.mxu0 }
 0x791   :  { %v5795_v7 = vpop.f32.mrf.mxu3 }
 0x792   :  { %v17460_v40 = vadd.f32 %v5271_v44, %v16820_v33  ;;  %v5796_v38 = vadd.f32 %v5795_v7, %v5746_v11 }
 0x793   :  { %v5748_v20 = vpop.f32.mrf.mxu1  ;;  %5878 = vmatmul.bf16.gmra.mxu0 %v20191_v26 }
 0x794   :  { %20196 = vst [vmem:[#allocation66_spill] sm:$0xff] %v17460_v40  ;;  %v17464_v21 = vadd.f32 %v5796_v38, %v20197_v0  ;;  %5927 = vmatmul.bf16.gmra.mxu2 %v20192_v56 }
 0x797   :  { %v5273_v14 = vpop.f32.mrf.mxu2 }
 0x798   :  { %v5274_v31 = vadd.f32 %v5273_v14, %v5224_v3  ;;  %v5226_v9 = vpop.f32.mrf.mxu0 }
 0x799   :  { %v5797_v19 = vpop.f32.mrf.mxu3 }
 0x79a   :  { %v17468_v45 = vadd.f32 %v5274_v31, %v16828_v61  ;;  %v5798_v43 = vadd.f32 %v5797_v19, %v5748_v20 }
 0x79b   :  { %v5751_v12 = vpop.f32.mrf.mxu1 }
 0x79c   :  { %20198 = vst [vmem:[#allocation68_spill] sm:$0xff] %v17468_v45  ;;  %v17471_v33 = vadd.f32 %v5798_v43, %v16831_v32 }
 0x79e   :  { %5946 = vmatmul.bf16.gmra.mxu1 %v14616_v48  ;;  %5995 = vmatmul.bf16.gmra.mxu3 %v14618_v10 }
 0x79f   :  { %v5275_v11 = vpop.f32.mrf.mxu2 }
 0x7a0   :  { %v5276_v44 = vadd.f32 %v5275_v11, %v5226_v9  ;;  %v5844_v7 = vpop.f32.mrf.mxu0 }
 0x7a1   :  { %v5800_v38 = vpop.f32.mrf.mxu3 }
 0x7a2   :  { %v17476_v3 = vadd.f32 %v5276_v44, %v16836_v35  ;;  %v5801_v0 = vadd.f32 %v5800_v38, %v5751_v12 }
 0x7a3   :  { %v5753_v14 = vpop.f32.mrf.mxu1  ;;  %6039 = vmatmul.bf16.vlgmr.msrb.gmra.mxu0 %v14584_v1 }
 0x7a4   :  { %20199 = vst [vmem:[#allocation63_spill] sm:$0xff] %v17476_v3  ;;  %v17480_v61 = vadd.f32 %v5801_v0, %v16840_v27  ;;  %6088 = vmatmul.bf16.vlgmr.msrb.gmra.mxu2 %v14586_v60  ;;  %v12612_v3 = vld [vmem:[%s19668_s5 + $0x3ec] sm:$0xf0] }
 0x7a7   :  { %v5893_v32 = vpop.f32.mrf.mxu2 }
 0x7a8   :  { %v5894_v20 = vadd.f32 %v5893_v32, %v5844_v7  ;;  %v5846_v31 = vpop.f32.mrf.mxu0 }
 0x7a9   :  { %v5802_v19 = vpop.f32.mrf.mxu3 }
 0x7aa   :  { %v17484_v9 = vadd.f32 %v5894_v20, %v16844_v16  ;;  %v5803_v43 = vadd.f32 %v5802_v19, %v5753_v14 }
 0x7ab   :  { %v5756_v11 = vpop.f32.mrf.mxu1 }
 0x7ac   :  { %v17487_v35 = vadd.f32 %v5803_v43, %v16847_v13 }
 0x7ae   :  { %5951 = vmatmul.bf16.gmra.mxu1 %v14708_v2  ;;  %6000 = vmatmul.bf16.gmra.mxu3 %v14710_v54 }
 0x7af   :  { %v5895_v1 = vpop.f32.mrf.mxu2 }
 0x7b0   :  { %v5896_v27 = vadd.f32 %v5895_v1, %v5846_v31  ;;  %v5849_v12 = vpop.f32.mrf.mxu0 }
 0x7b1   :  { %v5805_v60 = vpop.f32.mrf.mxu3 }
 0x7b2   :  { %v17492_v44 = vadd.f32 %v5896_v27, %v16852_v62  ;;  %v5806_v7 = vadd.f32 %v5805_v60, %v5756_v11 }
 0x7b3   :  { %v5758_v38 = vpop.f32.mrf.mxu1  ;;  %6044 = vmatmul.bf16.gmra.mxu0 %v14616_v48 }
 0x7b4   :  { %v17496_v16 = vadd.f32 %v5806_v7, %v16856_v39  ;;  %6093 = vmatmul.bf16.gmra.mxu2 %v14618_v10 }
 0x7b7   :  { %v5898_v13 = vpop.f32.mrf.mxu2 }
 0x7b8   :  { %v5899_v0 = vadd.f32 %v5898_v13, %v5849_v12  ;;  %v5851_v14 = vpop.f32.mrf.mxu0 }
 0x7b9   :  { %v5807_v32 = vpop.f32.mrf.mxu3 }
 0x7ba   :  { %v17500_v20 = vadd.f32 %v5899_v0, %v16860_v49  ;;  %v5808_v31 = vadd.f32 %v5807_v32, %v5758_v38 }
 0x7bb   :  { %v5761_v19 = vpop.f32.mrf.mxu1 }
 0x7bc   :  { %v17503_v62 = vadd.f32 %v5808_v31, %v16863_v59 }
 0x7be   :  { %5956 = vmatmul.bf16.gmra.mxu1 %v14816_v55  ;;  %6005 = vmatmul.bf16.gmra.mxu3 %v14818_v25 }
 0x7bf   :  { %v5900_v48 = vpop.f32.mrf.mxu2 }
 0x7c0   :  { %v5901_v39 = vadd.f32 %v5900_v48, %v5851_v14  ;;  %v5854_v43 = vpop.f32.mrf.mxu0 }
 0x7c1   :  { %v5810_v10 = vpop.f32.mrf.mxu3 }
 0x7c2   :  { %v17508_v11 = vadd.f32 %v5901_v39, %v16868_v42  ;;  %v5811_v1 = vadd.f32 %v5810_v10, %v5761_v19 }
 0x7c3   :  { %v5763_v27 = vpop.f32.mrf.mxu1  ;;  %6049 = vmatmul.bf16.gmra.mxu0 %v14708_v2 }
 0x7c4   :  { %v17512_v49 = vadd.f32 %v5811_v1, %v16872_v30  ;;  %6098 = vmatmul.bf16.gmra.mxu2 %v14710_v54 }
 0x7c7   :  { %v5903_v59 = vpop.f32.mrf.mxu2 }
 0x7c8   :  { %v5904_v12 = vadd.f32 %v5903_v59, %v5854_v43  ;;  %v5856_v60 = vpop.f32.mrf.mxu0 }
 0x7c9   :  { %v5812_v7 = vpop.f32.mrf.mxu3 }
 0x7ca   :  { %v17516_v38 = vadd.f32 %v5904_v12, %v16882_v5  ;;  %v5813_v13 = vadd.f32 %v5812_v7, %v5763_v27 }
 0x7cb   :  { %v5766_v0 = vpop.f32.mrf.mxu1 }
 0x7cc   :  { %v17519_v42 = vadd.f32 %v5813_v13, %v16885_v51 }
 0x7ce   :  { %5961 = vmatmul.bf16.gmra.mxu1 %v20052_v18  ;;  %6010 = vmatmul.bf16.gmra.mxu3 %v20053_v23 }
 0x7cf   :  { %v5905_v2 = vpop.f32.mrf.mxu2 }
 0x7d0   :  { %v5906_v30 = vadd.f32 %v5905_v2, %v5856_v60  ;;  %v5859_v14 = vpop.f32.mrf.mxu0 }
 0x7d1   :  { %v5815_v54 = vpop.f32.mrf.mxu3 }
 0x7d2   :  { %v17524_v32 = vadd.f32 %v5906_v30, %v16920_v8  ;;  %v5816_v31 = vadd.f32 %v5815_v54, %v5766_v0 }
 0x7d3   :  { %v17526_v19 = vpop.f32.mrf.mxu1  ;;  %6054 = vmatmul.bf16.gmra.mxu0 %v14816_v55 }
 0x7d4   :  { %v17530_v5 = vadd.f32 %v5816_v31, %v16924_v46  ;;  %6103 = vmatmul.bf16.gmra.mxu2 %v14818_v25 }
 0x7d7   :  { %v5908_v51 = vpop.f32.mrf.mxu2 }
 0x7d8   :  { %v5909_v48 = vadd.f32 %v5908_v51, %v5859_v14  ;;  %v5861_v39 = vpop.f32.mrf.mxu0 }
 0x7d9   :  { %v17533_v43 = vpop.f32.mrf.mxu3 }
 0x7da   :  { %v17536_v10 = vadd.f32 %v5909_v48, %v16958_v22 }
 0x7db   :  { %v5771_v8 = vpop.f32.mrf.mxu1 }
 0x7de   :  { %5966 = vmatmul.bf16.gmra.mxu1 %v20060_v41  ;;  %6015 = vmatmul.bf16.gmra.mxu3 %v20061_v15 }
 0x7df   :  { %v5910_v1 = vpop.f32.mrf.mxu2 }
 0x7e0   :  { %v5911_v55 = vadd.f32 %v5910_v1, %v5861_v39  ;;  %v5864_v27 = vpop.f32.mrf.mxu0  ;;  %v10919_v1 = vld [vmem:[%s19668_s5 + $0x2e0] sm:$0xf] }
 0x7e1   :  { %v5820_v46 = vpop.f32.mrf.mxu3 }
 0x7e2   :  { %v17541_v59 = vadd.f32 %v5911_v55, %v16996_v6  ;;  %v5821_v25 = vadd.f32 %v5820_v46, %v5771_v8  ;;  %v10921_v55 = vld [vmem:[%s19668_s5 + $0x2f0] sm:$0xf0]  ;;  %v10903_v46 = vld [vmem:[%s19668_s5 + $0x2c0] sm:$0xf] }
 0x7e3   :  { %v17543_v12 = vpop.f32.mrf.mxu1  ;;  %6059 = vmatmul.bf16.gmra.mxu0 %v20052_v18 }
 0x7e4   :  { %v17547_v22 = vadd.f32 %v5821_v25, %v17000_v24  ;;  %6108 = vmatmul.bf16.gmra.mxu2 %v20053_v23  ;;  %v12576_v25 = vld [vmem:[%s19668_s5 + $0x2cc] sm:$0xf0] }
 0x7e7   :  { %v5913_v60 = vpop.f32.mrf.mxu2 }
 0x7e8   :  { %v5914_v7 = vadd.f32 %v5913_v60, %v5864_v27  ;;  %v17550_v13 = vpop.f32.mrf.mxu0  ;;  %v12574_v60 = vld [vmem:[%s19668_s5 + $0x2c4] sm:$0xf] }
 0x7e9   :  { %v17552_v0 = vpop.f32.mrf.mxu3 }
 0x7ea   :  { %v17555_v2 = vadd.f32 %v5914_v7, %v17034_v63 }
 0x7eb   :  { %v5776_v6 = vpop.f32.mrf.mxu1 }
 0x7ee   :  { %5971 = vmatmul.bf16.gmra.mxu1 %v20124_v4  ;;  %6020 = vmatmul.bf16.gmra.mxu3 %v20125_v28 }
 0x7ef   :  { %v17559_v18 = vpop.f32.mrf.mxu2 }
 0x7f0   :  { %v5869_v24 = vpop.f32.mrf.mxu0 }
 0x7f1   :  { %v5825_v30 = vpop.f32.mrf.mxu3 }
 0x7f2   :  { %v5826_v14 = vadd.f32 %v5825_v30, %v5776_v6  ;;  %v10904_v6 = vor.u32 %v12576_v25, %v10903_v46  ;;  %v10871_v46 = vld [vmem:[%s19668_s5 + $0x280] sm:$0xf] }
 0x7f3   :  { %v17561_v23 = vpop.f32.mrf.mxu1  ;;  %6064 = vmatmul.bf16.gmra.mxu0 %v20060_v41  ;;  %v12580_v41 = vld [vmem:[%s19668_s5 + $0x2ec] sm:$0xf0] }
 0x7f4   :  { %v17565_v54 = vadd.f32 %v5826_v14, %v17076_v58  ;;  %6113 = vmatmul.bf16.gmra.mxu2 %v20061_v15  ;;  %v12578_v15 = vld [vmem:[%s19668_s5 + $0x2e4] sm:$0xf]  ;;  %v10920_v58 = vor.u32 %v12580_v41, %v10919_v1  ;;  %v10887_v1 = vld [vmem:[%s19668_s5 + $0x2a0] sm:$0xf]  ;;  %v12572_v41 = vld [vmem:[%s19668_s5 + $0x2ac] sm:$0xf0] }
 0x7f6   :  { %6824 = vmatpush.bf16.msra.mxu1 %v10920_v58 }
 0x7f7   :  { %v5918_v63 = vpop.f32.mrf.mxu2 }
 0x7f8   :  { %v5919_v31 = vadd.f32 %v5918_v63, %v5869_v24  ;;  %v17568_v51 = vpop.f32.mrf.mxu0  ;;  %v10905_v24 = vld [vmem:[%s19668_s5 + $0x2d0] sm:$0xf0] }
 0x7f9   :  { %v17570_v48 = vpop.f32.mrf.mxu3  ;;  %v10908_v14 = vor.u32 %v12574_v60, %v10905_v24  ;;  %v10873_v24 = vld [vmem:[%s19668_s5 + $0x290] sm:$0xf0] }
 0x7fa   :  { %v17573_v39 = vadd.f32 %v5919_v31, %v17092_v36  ;;  %v10924_v36 = vor.u32 %v12578_v15, %v10921_v55  ;;  %6825 = vmatpush.bf16.msra.mxu1 %v10904_v6  ;;  %v12570_v15 = vld [vmem:[%s19668_s5 + $0x2a4] sm:$0xf] }
 0x7fb   :  { %v5781_v8 = vpop.f32.mrf.mxu1 }
 0x7fc   :  { %6852 = vmatpush.bf16.msra.mxu0 %v10924_v36 }
 0x7fe   :  { %5976 = vmatmul.bf16.gmra.mxu1 %v20191_v26  ;;  %6025 = vmatmul.bf16.gmra.mxu3 %v20192_v56 }
 0x7ff   :  { %v17589_v27 = vpop.f32.mrf.mxu2 }
 0x800   :  { %v5874_v7 = vpop.f32.mrf.mxu0  ;;  %6853 = vmatpush.bf16.msra.mxu0 %v10908_v14 }
 0x801   :  { %v5830_v30 = vpop.f32.mrf.mxu3 }
 0x802   :  { %v5831_v63 = vadd.f32 %v5830_v30, %v5781_v8  ;;  %v10889_v8 = vld [vmem:[%s19668_s5 + $0x2b0] sm:$0xf0] }
 0x803   :  { %v17603_v31 = vpop.f32.mrf.mxu1  ;;  %6069 = vmatmul.bf16.gmra.mxu0 %v20124_v4  ;;  %v10888_v4 = vor.u32 %v12572_v41, %v10887_v1  ;;  %v10892_v55 = vor.u32 %v12570_v15, %v10889_v8  ;;  %v12564_v41 = vld [vmem:[%s19668_s5 + $0x26c] sm:$0xf0]  ;;  %v12562_v15 = vld [vmem:[%s19668_s5 + $0x264] sm:$0xf]  ;;  %v17656_v8 = vld [vmem:[%s19669_s4] sm:$0xf] }
 0x804   :  { %v17616_v58 = vadd.f32 %v5831_v63, %v17128_v50  ;;  %6118 = vmatmul.bf16.gmra.mxu2 %v20125_v28  ;;  %v12568_v50 = vld [vmem:[%s19668_s5 + $0x28c] sm:$0xf0]  ;;  %v12566_v28 = vld [vmem:[%s19668_s5 + $0x284] sm:$0xf] }
 0x805   :  { %6826 = vmatpush.bf16.msra.mxu1 %v10888_v4  ;;  %6854 = vmatpush.bf16.msra.mxu0 %v10892_v55  ;;  %v10872_v6 = vor.u32 %v12568_v50, %v10871_v46  ;;  %v10876_v14 = vor.u32 %v12566_v28, %v10873_v24  ;;  %v10839_v46 = vld [vmem:[%s19668_s5 + $0x240] sm:$0xf]  ;;  %v12560_v50 = vld [vmem:[%s19668_s5 + $0x24c] sm:$0xf0]  ;;  %v12558_v28 = vld [vmem:[%s19668_s5 + $0x244] sm:$0xf] }
 0x806   :  { %v10840_v24 = vor.u32 %v12560_v50, %v10839_v46  ;;  %v17685_v46 = vperm.slane %v17656_v8, 2 }
 0x807   :  { %v5923_v36 = vpop.f32.mrf.mxu2 }
 0x808   :  { %v5924_v25 = vadd.f32 %v5923_v36, %v5874_v7  ;;  %v17631_v60 = vpop.f32.mrf.mxu0  ;;  %v10855_v7 = vld [vmem:[%s19668_s5 + $0x260] sm:$0xf] }
 0x809   :  { %v17636_v30 = vpop.f32.mrf.mxu3  ;;  %6827 = vmatpush.bf16.msra.mxu1 %v10872_v6  ;;  %6855 = vmatpush.bf16.msra.mxu0 %v10876_v14  ;;  %v10856_v4 = vor.u32 %v12564_v41, %v10855_v7  ;;  %v10841_v14 = vld [vmem:[%s19668_s5 + $0x250] sm:$0xf0]  ;;  %v12610_v41 = vld [vmem:[%s19668_s5 + $0x3e4] sm:$0xf] }
 0x80a   :  { %v17639_v63 = vadd.f32 %v5924_v25, %v17132_v53  ;;  %v10857_v53 = vld [vmem:[%s19668_s5 + $0x270] sm:$0xf0]  ;;  %v17670_v25 = vperm.slane %v17656_v8, 0 }
 0x80b   :  { %v5942_v1 = vpop.f32.mrf.mxu1  ;;  %v10860_v55 = vor.u32 %v12562_v15, %v10857_v53  ;;  %v11049_v15 = vld [vmem:[%s19668_s5 + $0x3f0] sm:$0xf0]  ;;  %v10844_v53 = vor.u32 %v12558_v28, %v10841_v14  ;;  %v12554_v28 = vld [vmem:[%s19668_s5 + $0x224] sm:$0xf] }
 0x80c   :  { %v11052_v50 = vor.u32 %v12610_v41, %v11049_v15  ;;  %v6203_v14 = vadd.f32 %v17670_v25, %v17464_v21  ;;  %v11031_v41 = vld [vmem:[%s19668_s5 + $0x3c0] sm:$0xf]  ;;  %v12608_v21 = vld [vmem:[%s19668_s5 + $0x3cc] sm:$0xf0] }
 0x80d   :  { %6828 = vmatpush.bf16.msra.mxu1 %v10856_v4  ;;  %6856 = vmatpush.bf16.msra.mxu0 %v10860_v55  ;;  %v11047_v4 = vld [vmem:[%s19668_s5 + $0x3e0] sm:$0xf] }
 0x80e   :  { %v11048_v40 = vor.u32 %v12612_v3, %v11047_v4  ;;  %v10825_v3 = vld [vmem:[%s19668_s5 + $0x230] sm:$0xf0]  ;;  %6866 = vmatpush.bf16.msra.mxu2 %v11052_v50  ;;  %v12550_v50 = vld [vmem:[%s19668_s5 + $0x204] sm:$0xf] }
 0x80f   :  { %v17658_v36 = vpop.f32.mrf.mxu2 }
 0x810   :  { %20200 = vst [vmem:[#allocation64_spill] sm:$0xff] %v17658_v36  ;;  %v5879_v6 = vpop.f32.mrf.mxu0  ;;  %6838 = vmatpush.bf16.msra.mxu3 %v11048_v40  ;;  %v11033_v40 = vld [vmem:[%s19668_s5 + $0x3d0] sm:$0xf0]  ;;  %v10815_v36 = vld [vmem:[%s19668_s5 + $0x208] sm:$0xf] }
 0x811   :  { %v5991_v7 = vpop.f32.mrf.mxu3  ;;  %6829 = vmatpush.bf16.msra.mxu1 %v10840_v24  ;;  %6857 = vmatpush.bf16.msra.mxu0 %v10844_v53  ;;  %v10828_v24 = vor.u32 %v12554_v28, %v10825_v3  ;;  %v10807_v53 = vld [vmem:[%s19668_s5 + $0x200] sm:$0xf] }
 0x812   :  { %v5992_v55 = vadd.f32 %v5991_v7, %v5942_v1  ;;  %v12556_v1 = vld [vmem:[%s19668_s5 + $0x22c] sm:$0xf0] }
 0x813   :  { %v5944_v45 = vpop.f32.mrf.mxu1  ;;  %6074 = vmatmul.bf16.gmra.mxu0 %v20191_v26  ;;  %v10824_v26 = vor.u32 %v12556_v1, %v10823_v34  ;;  %v11032_v34 = vor.u32 %v12608_v21, %v11031_v41  ;;  %v6267_v1 = vmax.f32 %v6203_v14, 0.0  ;;  %v10809_v41 = vld [vmem:[%s19668_s5 + $0x210] sm:$0xf0]  ;;  %v10927_v21 = vld [vmem:[%s19668_s5 + $0x2e8] sm:$0xf] }
 0x814   :  { %v6131_v7 = vadd.f32 %v5992_v55, %v17144_v52  ;;  %6123 = vmatmul.bf16.gmra.mxu2 %v20192_v56  ;;  %v12606_v52 = vld [vmem:[%s19668_s5 + $0x3c4] sm:$0xf]  ;;  %v12552_v55 = vld [vmem:[%s19668_s5 + $0x20c] sm:$0xf0]  ;;  %v12579_v14 = vld [vmem:[%s19668_s5 + $0x2ec] sm:$0xf] }
 0x815   :  { %6830 = vmatpush.bf16.msra.mxu1 %v10824_v26  ;;  %v11036_v4 = vor.u32 %v12606_v52, %v11033_v40  ;;  %6858 = vmatpush.bf16.msra.mxu0 %v10828_v24  ;;  %v10808_v26 = vor.u32 %v12552_v55, %v10807_v53  ;;  %v10812_v40 = vor.u32 %v12550_v50, %v10809_v41  ;;  %v10929_v24 = vld [vmem:[%s19668_s5 + $0x2f8] sm:$0xf0]  ;;  %v11015_v53 = vld [vmem:[%s19668_s5 + $0x3a0] sm:$0xf]  ;;  %v12604_v55 = vld [vmem:[%s19668_s5 + $0x3ac] sm:$0xf0] }
 0x816   :  { %v6205_v56 = vadd.f32 %v17685_v46, %v6131_v7  ;;  %6839 = vmatpush.bf16.msra.mxu3 %v11032_v34  ;;  %v12602_v50 = vld [vmem:[%s19668_s5 + $0x3a4] sm:$0xf] }
 0x817   :  { %v5928_v15 = vpop.f32.mrf.mxu2  ;;  %6867 = vmatpush.bf16.msra.mxu2 %v11036_v4 }
 0x818   :  { %v6269_v28 = vmax.f32 %v6205_v56, 0.0  ;;  %v5929_v7 = vadd.f32 %v5928_v15, %v5879_v6  ;;  %v17729_v3 = vpop.f32.mrf.mxu0  ;;  %v12581_v6 = vld [vmem:[%s19668_s5 + $0x2f4] sm:$0xf0] }
 0x819   :  { %20201 = vst [vmem:[#allocation67_spill] sm:$0xff] %v17729_v3  ;;  %v5993_v52 = vpop.f32.mrf.mxu3  ;;  %v10928_v4 = vor.u32 %v12581_v6, %v10927_v21  ;;  %6831 = vmatpush.bf16.msra.mxu1 %v10808_v26  ;;  %6859 = vmatpush.bf16.msra.mxu0 %v10812_v40  ;;  %v12577_v26 = vld [vmem:[%s19668_s5 + $0x2d4] sm:$0xf0]  ;;  %v12575_v6 = vld [vmem:[%s19668_s5 + $0x2cc] sm:$0xf] }
 0x81a   :  { %v17746_v56 = vmax.f32 %v6267_v1, %v6269_v28  ;;  %v17749_v15 = vadd.f32 %v5929_v7, %v17148_v29  ;;  %v5994_v34 = vadd.f32 %v5993_v52, %v5944_v45  ;;  %v10932_v1 = vor.u32 %v12579_v14, %v10929_v24  ;;  %v11017_v29 = vld [vmem:[%s19668_s5 + $0x3b0] sm:$0xf0]  ;;  %v10911_v52 = vld [vmem:[%s19668_s5 + $0x2c8] sm:$0xf]  ;;  %v10999_v40 = vld [vmem:[%s19668_s5 + $0x380] sm:$0xf] }
 0x81b   :  { %v5947_v41 = vpop.f32.mrf.mxu1  ;;  %v11016_v28 = vor.u32 %v12604_v55, %v11015_v53  ;;  %v6207_v45 = vadd.f32 %v17670_v25, %v17471_v33  ;;  %v11020_v21 = vor.u32 %v12602_v50, %v11017_v29  ;;  %v10912_v33 = vor.u32 %v12577_v26, %v10911_v52  ;;  %v12600_v14 = vld [vmem:[%s19668_s5 + $0x38c] sm:$0xf0]  ;;  %v12598_v53 = vld [vmem:[%s19668_s5 + $0x384] sm:$0xf]  ;;  %v11001_v55 = vld [vmem:[%s19668_s5 + $0x390] sm:$0xf0] }
 0x81c   :  { %20202 = vst [vmem:[#allocation69_spill] sm:$0xff] %v17749_v15  ;;  %v6135_v7 = vadd.f32 %v5994_v34, %v17151_v17  ;;  %v10913_v17 = vld [vmem:[%s19668_s5 + $0x2d8] sm:$0xf0] }
 0x81d   :  { %6880 = vmatpush.bf16.msrb.mxu1 %v10928_v4  ;;  %6908 = vmatpush.bf16.msrb.mxu0 %v10932_v1  ;;  %v10916_v34 = vor.u32 %v12575_v6, %v10913_v17  ;;  %v11000_v4 = vor.u32 %v12600_v14, %v10999_v40  ;;  %v11004_v1 = vor.u32 %v12598_v53, %v11001_v55  ;;  %v12571_v17 = vld [vmem:[%s19668_s5 + $0x2ac] sm:$0xf]  ;;  %v10985_v53 = vld [vmem:[%s19668_s5 + $0x370] sm:$0xf0] }
 0x81e   :  { %6840 = vmatpush.bf16.msra.mxu3 %v11016_v28  ;;  %v6209_v24 = vadd.f32 %v17685_v46, %v6135_v7  ;;  %6868 = vmatpush.bf16.msra.mxu2 %v11020_v21  ;;  %v6271_v28 = vmax.f32 %v6207_v45, 0.0  ;;  %v10895_v7 = vld [vmem:[%s19668_s5 + $0x2a8] sm:$0xf]  ;;  %v12573_v21 = vld [vmem:[%s19668_s5 + $0x2b4] sm:$0xf0]  ;;  %v6211_v55 = vadd.f32 %v17670_v25, %v17480_v61 }
 0x81f   :  { %v17791_v50 = vpop.f32.mrf.mxu2  ;;  %v10896_v6 = vor.u32 %v12573_v21, %v10895_v7  ;;  %v10897_v45 = vld [vmem:[%s19668_s5 + $0x2b8] sm:$0xf0]  ;;  %v20204_v7 = vld [vmem:[#allocation47_spill] sm:$0xff] }
 0x820   :  { %20203 = vst [vmem:[#allocation70_spill] sm:$0xff] %v17791_v50  ;;  %v6273_v29 = vmax.f32 %v6209_v24, 0.0  ;;  %v6040_v52 = vpop.f32.mrf.mxu0  ;;  %v10900_v24 = vor.u32 %v12571_v17, %v10897_v45  ;;  %v12569_v17 = vld [vmem:[%s19668_s5 + $0x294] sm:$0xf0]  ;;  %v12567_v61 = vld [vmem:[%s19668_s5 + $0x28c] sm:$0xf] }
 0x821   :  { %6881 = vmatpush.bf16.msrb.mxu1 %v10912_v33  ;;  %v5996_v26 = vpop.f32.mrf.mxu3  ;;  %6909 = vmatpush.bf16.msrb.mxu0 %v10916_v34  ;;  %v10983_v33 = vld [vmem:[%s19668_s5 + $0x360] sm:$0xf]  ;;  %v12596_v34 = vld [vmem:[%s19668_s5 + $0x36c] sm:$0xf0] }
 0x822   :  { %6841 = vmatpush.bf16.msra.mxu3 %v11000_v4  ;;  %v17808_v40 = vmax.f32 %v6271_v28, %v6273_v29  ;;  %v5997_v14 = vadd.f32 %v5996_v26, %v5947_v41  ;;  %6869 = vmatpush.bf16.msra.mxu2 %v11004_v1  ;;  %v12594_v4 = vld [vmem:[%s19668_s5 + $0x364] sm:$0xf]  ;;  %v17822_v28 = vperm.slane %v17656_v8, 1  ;;  %v10984_v1 = vor.u32 %v12596_v34, %v10983_v33  ;;  %v10879_v26 = vld [vmem:[%s19668_s5 + $0x288] sm:$0xf] }
 0x823   :  { %v5949_v41 = vpop.f32.mrf.mxu1  ;;  %v10988_v29 = vor.u32 %v12594_v4, %v10985_v53  ;;  %v10880_v45 = vor.u32 %v12569_v17, %v10879_v26  ;;  %v10881_v33 = vld [vmem:[%s19668_s5 + $0x298] sm:$0xf0]  ;;  %v17854_v17 = vadd.f32 %v17670_v25, %v17487_v35 }
 0x824   :  { %v6139_v21 = vadd.f32 %v5997_v14, %v20204_v7  ;;  %v12592_v14 = vld [vmem:[%s19668_s5 + $0x34c] sm:$0xf0]  ;;  %v10884_v4 = vor.u32 %v12567_v61, %v10881_v33  ;;  %v6275_v7 = vmax.f32 %v6211_v55, 0.0  ;;  %v6204_v26 = vadd.f32 %v17822_v28, %v17484_v9  ;;  %v10863_v55 = vld [vmem:[%s19668_s5 + $0x268] sm:$0xf] }
 0x825   :  { %6882 = vmatpush.bf16.msrb.mxu1 %v10896_v6  ;;  %6910 = vmatpush.bf16.msrb.mxu0 %v10900_v24  ;;  %v10967_v6 = vld [vmem:[%s19668_s5 + $0x340] sm:$0xf]  ;;  %v12590_v24 = vld [vmem:[%s19668_s5 + $0x344] sm:$0xf]  ;;  %v12565_v9 = vld [vmem:[%s19668_s5 + $0x274] sm:$0xf0]  ;;  %v6208_v15 = vadd.f32 %v17822_v28, %v17492_v44 }
 0x826   :  { %6842 = vmatpush.bf16.msra.mxu3 %v10984_v1  ;;  %v6213_v34 = vadd.f32 %v17685_v46, %v6139_v21  ;;  %6870 = vmatpush.bf16.msra.mxu2 %v10988_v29  ;;  %v10968_v53 = vor.u32 %v12592_v14, %v10967_v6  ;;  %v10969_v1 = vld [vmem:[%s19668_s5 + $0x350] sm:$0xf0]  ;;  %v17857_v6 = vperm.slane %v17656_v8, 3  ;;  %v10864_v35 = vor.u32 %v12565_v9, %v10863_v55  ;;  %v10865_v8 = vld [vmem:[%s19668_s5 + $0x278] sm:$0xf0] }
 0x827   :  { %v6089_v21 = vpop.f32.mrf.mxu2  ;;  %v10972_v29 = vor.u32 %v12590_v24, %v10969_v1  ;;  %v20205_v24 = vld [vmem:[#allocation40_spill] sm:$0xff]  ;;  %v12586_v55 = vld [vmem:[%s19668_s5 + $0x324] sm:$0xf]  ;;  %v6268_v3 = vmax.f32 %v6204_v26, 0.0  ;;  %v12561_v26 = vld [vmem:[%s19668_s5 + $0x254] sm:$0xf0] }
 0x828   :  { %v6277_v61 = vmax.f32 %v6213_v34, 0.0  ;;  %v6090_v33 = vadd.f32 %v6089_v21, %v6040_v52  ;;  %v6042_v14 = vpop.f32.mrf.mxu0  ;;  %v12563_v52 = vld [vmem:[%s19668_s5 + $0x26c] sm:$0xf]  ;;  %v10953_v9 = vld [vmem:[%s19668_s5 + $0x330] sm:$0xf0] }
 0x829   :  { %6883 = vmatpush.bf16.msrb.mxu1 %v10880_v45  ;;  %v5998_v50 = vpop.f32.mrf.mxu3  ;;  %6911 = vmatpush.bf16.msrb.mxu0 %v10884_v4  ;;  %v10951_v45 = vld [vmem:[%s19668_s5 + $0x320] sm:$0xf]  ;;  %v10868_v4 = vor.u32 %v12563_v52, %v10865_v8 }
 0x82a   :  { %6843 = vmatpush.bf16.msra.mxu3 %v10968_v53  ;;  %v17874_v34 = vmax.f32 %v6275_v7, %v6277_v61  ;;  %v6132_v1 = vadd.f32 %v6090_v33, %v20205_v24  ;;  %v5999_v21 = vadd.f32 %v5998_v50, %v5949_v41  ;;  %6871 = vmatpush.bf16.msra.mxu2 %v10972_v29  ;;  %v12588_v53 = vld [vmem:[%s19668_s5 + $0x32c] sm:$0xf0]  ;;  %v6279_v7 = vmax.f32 %v17854_v17, 0.0  ;;  %v20206_v52 = vld [vmem:[#allocation50_spill] sm:$0xff]  ;;  %v10847_v24 = vld [vmem:[%s19668_s5 + $0x248] sm:$0xf] }
 0x82b   :  { %v5952_v61 = vpop.f32.mrf.mxu1  ;;  %v10952_v33 = vor.u32 %v12588_v53, %v10951_v45  ;;  %v10956_v50 = vor.u32 %v12586_v55, %v10953_v9  ;;  %v12559_v17 = vld [vmem:[%s19668_s5 + $0x24c] sm:$0xf]  ;;  %v10848_v45 = vor.u32 %v12561_v26, %v10847_v24  ;;  %v11055_v41 = vld [vmem:[%s19668_s5 + $0x3e8] sm:$0xf] }
 0x82c   :  { %v6206_v29 = vadd.f32 %v17857_v6, %v6132_v1  ;;  %v6143_v8 = vadd.f32 %v5999_v21, %v20206_v52  ;;  %v10849_v1 = vld [vmem:[%s19668_s5 + $0x258] sm:$0xf0]  ;;  %v12584_v21 = vld [vmem:[%s19668_s5 + $0x30c] sm:$0xf0]  ;;  %v10937_v52 = vld [vmem:[%s19668_s5 + $0x310] sm:$0xf0] }
 0x82d   :  { %6884 = vmatpush.bf16.msrb.mxu1 %v10864_v35  ;;  %6912 = vmatpush.bf16.msrb.mxu0 %v10868_v4  ;;  %v10935_v35 = vld [vmem:[%s19668_s5 + $0x300] sm:$0xf]  ;;  %v10852_v9 = vor.u32 %v12559_v17, %v10849_v1 }
 0x82e   :  { %6844 = vmatpush.bf16.msra.mxu3 %v10952_v33  ;;  %v6270_v53 = vmax.f32 %v6206_v29, 0.0  ;;  %v6217_v55 = vadd.f32 %v17685_v46, %v6143_v8  ;;  %6872 = vmatpush.bf16.msra.mxu2 %v10956_v50  ;;  %v10936_v4 = vor.u32 %v12584_v21, %v10935_v35  ;;  %v12582_v33 = vld [vmem:[%s19668_s5 + $0x304] sm:$0xf]  ;;  %v12613_v50 = vld [vmem:[%s19668_s5 + $0x3f4] sm:$0xf0] }
 0x82f   :  { %v6091_v24 = vpop.f32.mrf.mxu2  ;;  %v10940_v26 = vor.u32 %v12582_v33, %v10937_v52  ;;  %v12611_v29 = vld [vmem:[%s19668_s5 + $0x3ec] sm:$0xf]  ;;  %v11056_v21 = vor.u32 %v12613_v50, %v11055_v41  ;;  %v11057_v33 = vld [vmem:[%s19668_s5 + $0x3f8] sm:$0xf0]  ;;  %v10831_v52 = vld [vmem:[%s19668_s5 + $0x228] sm:$0xf] }
 0x830   :  { %v17925_v8 = vmax.f32 %v6268_v3, %v6270_v53  ;;  %v6281_v17 = vmax.f32 %v6217_v55, 0.0  ;;  %v6092_v1 = vadd.f32 %v6091_v24, %v6042_v14  ;;  %v6045_v35 = vpop.f32.mrf.mxu0  ;;  %v6219_v3 = vadd.f32 %v17670_v25, %v17496_v16  ;;  %v12557_v41 = vld [vmem:[%s19668_s5 + $0x234] sm:$0xf0]  ;;  %v10833_v55 = vld [vmem:[%s19668_s5 + $0x238] sm:$0xf0]  ;;  %v20207_v24 = vld [vmem:[#allocation42_spill] sm:$0xff] }
 0x831   :  { %6885 = vmatpush.bf16.msrb.mxu1 %v10848_v45  ;;  %v6001_v53 = vpop.f32.mrf.mxu3  ;;  %6913 = vmatpush.bf16.msrb.mxu0 %v10852_v9  ;;  %v11060_v14 = vor.u32 %v12611_v29, %v11057_v33  ;;  %v12555_v45 = vld [vmem:[%s19668_s5 + $0x22c] sm:$0xf]  ;;  %v11039_v9 = vld [vmem:[%s19668_s5 + $0x3c8] sm:$0xf] }
 0x832   :  { %6845 = vmatpush.bf16.msra.mxu3 %v10936_v4  ;;  %v6337_v44 = vmax.f32 %v6279_v7, %v6281_v17  ;;  %v6136_v50 = vadd.f32 %v6092_v1, %v20207_v24  ;;  %v6002_v16 = vadd.f32 %v6001_v53, %v5952_v61  ;;  %6873 = vmatpush.bf16.msra.mxu2 %v10940_v26  ;;  %v12609_v4 = vld [vmem:[%s19668_s5 + $0x3d4] sm:$0xf0]  ;;  %v12607_v29 = vld [vmem:[%s19668_s5 + $0x3cc] sm:$0xf]  ;;  %v11041_v61 = vld [vmem:[%s19668_s5 + $0x3d8] sm:$0xf0] }
 0x833   :  { %v5954_v33 = vpop.f32.mrf.mxu1  ;;  %v10832_v7 = vor.u32 %v12557_v41, %v10831_v52  ;;  %v10836_v17 = vor.u32 %v12555_v45, %v10833_v55  ;;  %v11040_v1 = vor.u32 %v12609_v4, %v11039_v9  ;;  %v20208_v53 = vld [vmem:[#allocation43_spill] sm:$0xff]  ;;  %v11044_v47 = vor.u32 %v12607_v29, %v11041_v61  ;;  %v12553_v52 = vld [vmem:[%s19668_s5 + $0x214] sm:$0xf0]  ;;  %v10817_v45 = vld [vmem:[%s19668_s5 + $0x218] sm:$0xf0] }
 0x834   :  { %v6365_v26 = vmax.f32 %v17808_v40, %v6337_v44  ;;  %v6147_v24 = vadd.f32 %v6002_v16, %v20208_v53  ;;  %v6272_v41 = vmax.f32 %v6208_v15, 0.0  ;;  %v10816_v40 = vor.u32 %v12553_v52, %v10815_v36  ;;  %v11023_v4 = vld [vmem:[%s19668_s5 + $0x3a8] sm:$0xf]  ;;  %v12605_v36 = vld [vmem:[%s19668_s5 + $0x3b4] sm:$0xf0] }
 0x835   :  { %6886 = vmatpush.bf16.msrb.mxu1 %v10832_v7  ;;  %6914 = vmatpush.bf16.msrb.mxu0 %v10836_v17  ;;  %v6283_v55 = vmax.f32 %v6219_v3, 0.0  ;;  %v12603_v15 = vld [vmem:[%s19668_s5 + $0x3ac] sm:$0xf]  ;;  %v20209_v3 = vmax.f32 %v17746_v56, %v17874_v34  ;;  %v11024_v61 = vor.u32 %v12605_v36, %v11023_v4  ;;  %v6212_v52 = vadd.f32 %v17822_v28, %v17500_v20 }
 0x836   :  { %6894 = vmatpush.bf16.msrb.mxu3 %v11056_v21  ;;  %6922 = vmatpush.bf16.msrb.mxu2 %v11060_v14  ;;  %v6210_v21 = vadd.f32 %v17857_v6, %v6136_v50  ;;  %v12551_v14 = vld [vmem:[%s19668_s5 + $0x20c] sm:$0xf]  ;;  %v6221_v50 = vadd.f32 %v17685_v46, %v6147_v24 }
 0x837   :  { %v10820_v16 = vor.u32 %v12551_v14, %v10817_v45  ;;  %v6094_v9 = vpop.f32.mrf.mxu2  ;;  %v17987_v29 = vpack.c.bf16 %v6365_v26, %v20209_v3  ;;  %v20210_v34 = vld [vmem:[#allocation51_spill] sm:$0xff]  ;;  %v6223_v45 = vadd.f32 %v17670_v25, %v17503_v62  ;;  %v6276_v4 = vmax.f32 %v6212_v52, 0.0 }
 0x838   :  { %v6274_v44 = vmax.f32 %v6210_v21, 0.0  ;;  %v6095_v17 = vadd.f32 %v6094_v9, %v6045_v35  ;;  %v11025_v21 = vld [vmem:[%s19668_s5 + $0x3b8] sm:$0xf0]  ;;  %v10991_v3 = vld [vmem:[%s19668_s5 + $0x368] sm:$0xf] }
 0x839   :  { %v6003_v53 = vpop.f32.mrf.mxu3  ;;  %6887 = vmatpush.bf16.msrb.mxu1 %v10816_v40  ;;  %6915 = vmatpush.bf16.msrb.mxu0 %v10820_v16  ;;  %v11028_v24 = vor.u32 %v12603_v15, %v11025_v21  ;;  %v12601_v40 = vld [vmem:[%s19668_s5 + $0x394] sm:$0xf0]  ;;  %v11009_v16 = vld [vmem:[%s19668_s5 + $0x398] sm:$0xf0]  ;;  %v12595_v52 = vld [vmem:[%s19668_s5 + $0x36c] sm:$0xf] }
 0x83a   :  { %6895 = vmatpush.bf16.msrb.mxu3 %v11040_v1  ;;  %6923 = vmatpush.bf16.msrb.mxu2 %v11044_v47  ;;  %v17989_v7 = vmax.f32 %v6272_v41, %v6274_v44  ;;  %v6285_v47 = vmax.f32 %v6221_v50, 0.0  ;;  %v6047_v1 = vpop.f32.mrf.mxu0  ;;  %v6140_v26 = vadd.f32 %v6095_v17, %v20210_v34  ;;  %v6004_v14 = vadd.f32 %v6003_v53, %v5954_v33  ;;  %v11007_v41 = vld [vmem:[%s19668_s5 + $0x388] sm:$0xf]  ;;  %v12599_v33 = vld [vmem:[%s19668_s5 + $0x38c] sm:$0xf] }
 0x83b   :  { %v5957_v35 = vpop.f32.mrf.mxu1  ;;  %v11008_v50 = vor.u32 %v12601_v40, %v11007_v41  ;;  %v11012_v9 = vor.u32 %v12599_v33, %v11009_v16  ;;  %v6216_v34 = vadd.f32 %v17822_v28, %v17508_v11  ;;  %v10993_v41 = vld [vmem:[%s19668_s5 + $0x378] sm:$0xf0]  ;;  %v10975_v11 = vld [vmem:[%s19668_s5 + $0x348] sm:$0xf]  ;;  %v12593_v33 = vld [vmem:[%s19668_s5 + $0x354] sm:$0xf0]  ;;  %v6227_v16 = vadd.f32 %v17670_v25, %v17512_v49 }
 0x83c   :  { %v17996_v56 = vmax.f32 %v6283_v55, %v6285_v47  ;;  %v6214_v20 = vadd.f32 %v17857_v6, %v6140_v26  ;;  %v20211_v55 = vld [vmem:[#allocation53_spill] sm:$0xff]  ;;  %v6287_v47 = vmax.f32 %v6223_v45, 0.0  ;;  %v20212_v45 = vld [vmem:[#allocation46_spill] sm:$0xff] }
 0x83d   :  { %v6151_v44 = vadd.f32 %v6004_v14, %v20211_v55 }
 0x83e   :  { %6896 = vmatpush.bf16.msrb.mxu3 %v11024_v61  ;;  %6924 = vmatpush.bf16.msrb.mxu2 %v11028_v24  ;;  %v6278_v36 = vmax.f32 %v6214_v20, 0.0  ;;  %v12597_v24 = vld [vmem:[%s19668_s5 + $0x374] sm:$0xf0] }
 0x83f   :  { %v6225_v15 = vadd.f32 %v17685_v46, %v6151_v44  ;;  %v6096_v62 = vpop.f32.mrf.mxu2  ;;  %v10992_v14 = vor.u32 %v12597_v24, %v10991_v3  ;;  %v6280_v3 = vmax.f32 %v6216_v34, 0.0  ;;  %v12587_v34 = vld [vmem:[%s19668_s5 + $0x32c] sm:$0xf] }
 0x840   :  { %v18019_v17 = vmax.f32 %v6276_v4, %v6278_v36  ;;  %v6097_v21 = vadd.f32 %v6096_v62, %v6047_v1  ;;  %v10976_v36 = vor.u32 %v12593_v33, %v10975_v11  ;;  %v20214_v33 = vld [vmem:[#allocation48_spill] sm:$0xff] }
 0x841   :  { %v6289_v61 = vmax.f32 %v6225_v15, 0.0  ;;  %v6006_v26 = vpop.f32.mrf.mxu3  ;;  %v10977_v15 = vld [vmem:[%s19668_s5 + $0x358] sm:$0xf0] }
 0x842   :  { %6897 = vmatpush.bf16.msrb.mxu3 %v11008_v50  ;;  %6925 = vmatpush.bf16.msrb.mxu2 %v11012_v9  ;;  %v6050_v53 = vpop.f32.mrf.mxu0  ;;  %v6364_v1 = vmax.f32 %v17925_v8, %v18019_v17  ;;  %v6144_v20 = vadd.f32 %v6097_v21, %v20212_v45  ;;  %v6007_v55 = vadd.f32 %v6006_v26, %v5957_v35  ;;  %v20213_v9 = vld [vmem:[#allocation56_spill] sm:$0xff]  ;;  %v12591_v35 = vld [vmem:[%s19668_s5 + $0x34c] sm:$0xf]  ;;  %v6291_v21 = vmax.f32 %v6227_v16, 0.0 }
 0x843   :  { %v18034_v40 = vmax.f32 %v6287_v47, %v6289_v61  ;;  %v5959_v44 = vpop.f32.mrf.mxu1  ;;  %v10996_v50 = vor.u32 %v12595_v52, %v10993_v41  ;;  %v10980_v62 = vor.u32 %v12591_v35, %v10977_v15  ;;  %v10959_v61 = vld [vmem:[%s19668_s5 + $0x328] sm:$0xf]  ;;  %v12589_v41 = vld [vmem:[%s19668_s5 + $0x334] sm:$0xf0]  ;;  %v6220_v45 = vadd.f32 %v17822_v28, %v17516_v38 }
 0x844   :  { %v6218_v8 = vadd.f32 %v17857_v6, %v6144_v20  ;;  %v6155_v4 = vadd.f32 %v6007_v55, %v20213_v9  ;;  %v10960_v55 = vor.u32 %v12589_v41, %v10959_v61  ;;  %v10943_v38 = vld [vmem:[%s19668_s5 + $0x308] sm:$0xf]  ;;  %v6231_v35 = vadd.f32 %v17670_v25, %v17519_v42 }
 0x845   :  { %v6284_v42 = vmax.f32 %v6220_v45, 0.0 }
 0x846   :  { %6898 = vmatpush.bf16.msrb.mxu3 %v10992_v14  ;;  %6926 = vmatpush.bf16.msrb.mxu2 %v10996_v50  ;;  %v6282_v47 = vmax.f32 %v6218_v8, 0.0  ;;  %v6229_v17 = vadd.f32 %v17685_v46, %v6155_v4  ;;  %v10961_v50 = vld [vmem:[%s19668_s5 + $0x338] sm:$0xf0] }
 0x847   :  { %v6099_v49 = vpop.f32.mrf.mxu2  ;;  %v10964_v4 = vor.u32 %v12587_v34, %v10961_v50  ;;  %v11175_v50 = vld [vmem:[%s19668_s5 + $0xe0] sm:$0xf] }
 0x848   :  { %v6338_v24 = vmax.f32 %v6280_v3, %v6282_v47  ;;  %v6293_v52 = vmax.f32 %v6229_v17, 0.0  ;;  %v6100_v26 = vadd.f32 %v6099_v49, %v6050_v53  ;;  %v12583_v3 = vld [vmem:[%s19668_s5 + $0x30c] sm:$0xf]  ;;  %v10945_v47 = vld [vmem:[%s19668_s5 + $0x318] sm:$0xf0] }
 0x849   :  { %v6008_v20 = vpop.f32.mrf.mxu3  ;;  %v10948_v49 = vor.u32 %v12583_v3, %v10945_v47  ;;  %v11159_v3 = vld [vmem:[%s19668_s5 + $0xc0] sm:$0xf] }
 0x84a   :  { %6899 = vmatpush.bf16.msrb.mxu3 %v10976_v36  ;;  %v6052_v14 = vpop.f32.mrf.mxu0  ;;  %6927 = vmatpush.bf16.msrb.mxu2 %v10980_v62  ;;  %v6366_v53 = vmax.f32 %v17989_v7, %v6338_v24  ;;  %v6343_v11 = vmax.f32 %v6291_v21, %v6293_v52  ;;  %v6148_v16 = vadd.f32 %v6100_v26, %v20214_v33  ;;  %v12585_v36 = vld [vmem:[%s19668_s5 + $0x314] sm:$0xf0]  ;;  %v6295_v52 = vmax.f32 %v6231_v35, 0.0  ;;  %v20217_v35 = vld [vmem:[#allocation19_spill] sm:$0xff] }
 0x84b   :  { %v6009_v8 = vadd.f32 %v6008_v20, %v5959_v44  ;;  %v5962_v9 = vpop.f32.mrf.mxu1  ;;  %v20215_v62 = vld [vmem:[#allocation49_spill] sm:$0xff]  ;;  %v10944_v17 = vor.u32 %v12585_v36, %v10943_v38  ;;  %v6235_v38 = vadd.f32 %v17670_v25, %v17530_v5 }
 0x84c   :  { %v6433_v7 = vmax.f32 %v17996_v56, %v6343_v11  ;;  %v6222_v15 = vadd.f32 %v17857_v6, %v6148_v16  ;;  %v18087_v61 = vpack.c.bf16 %v6366_v53, %v6364_v1  ;;  %v6224_v1 = vadd.f32 %v17822_v28, %v17524_v32  ;;  %v20216_v53 = vld [vmem:[#allocation57_spill] sm:$0xff]  ;;  %v12516_v16 = vld [vmem:[%s19668_s5 + $0xec] sm:$0xf0] }
 0x84d   :  { %v6159_v44 = vadd.f32 %v6009_v8, %v20215_v62  ;;  %v11177_v8 = vld [vmem:[%s19668_s5 + $0xf0] sm:$0xf0]  ;;  %v11176_v62 = vor.u32 %v12516_v16, %v11175_v50 }
 0x84e   :  { %6900 = vmatpush.bf16.msrb.mxu3 %v10960_v55  ;;  %6928 = vmatpush.bf16.msrb.mxu2 %v10964_v4  ;;  %v6286_v21 = vmax.f32 %v6222_v15, 0.0  ;;  %v5818_v4 = vadd.f32 %v17533_v43, %v17526_v19  ;;  %v12512_v19 = vld [vmem:[%s19668_s5 + $0xcc] sm:$0xf0]  ;;  %v6288_v43 = vmax.f32 %v6224_v1, 0.0 }
 0x84f   :  { %v6233_v56 = vadd.f32 %v17685_v46, %v6159_v44  ;;  %v6101_v24 = vpop.f32.mrf.mxu2  ;;  %v11160_v50 = vor.u32 %v12512_v19, %v11159_v3 }
 0x850   :  { %v18090_v26 = vmax.f32 %v6284_v42, %v6286_v21  ;;  %v6102_v34 = vadd.f32 %v6101_v24, %v6052_v14  ;;  %v12514_v14 = vld [vmem:[%s19668_s5 + $0xe4] sm:$0xf]  ;;  %v20218_v42 = vld [vmem:[#allocation31_spill] sm:$0xff]  ;;  %v6299_v24 = vmax.f32 %v6235_v38, 0.0 }
 0x851   :  { %v6297_v41 = vmax.f32 %v6233_v56, 0.0  ;;  %v6011_v55 = vpop.f32.mrf.mxu3  ;;  %v11180_v44 = vor.u32 %v12514_v14, %v11177_v8  ;;  %v6165_v21 = vadd.f32 %v5818_v4, %v20218_v42  ;;  %v12508_v14 = vld [vmem:[%s19668_s5 + $0xac] sm:$0xf0]  ;;  %v12506_v8 = vld [vmem:[%s19668_s5 + $0xa4] sm:$0xf]  ;;  %v6232_v42 = vadd.f32 %v17822_v28, %v17541_v59 }
 0x852   :  { %6901 = vmatpush.bf16.msrb.mxu3 %v10944_v17  ;;  %v6055_v20 = vpop.f32.mrf.mxu0  ;;  %6929 = vmatpush.bf16.msrb.mxu2 %v10948_v49  ;;  %v6152_v11 = vadd.f32 %v6102_v34, %v20216_v53  ;;  %v6012_v33 = vadd.f32 %v6011_v55, %v5962_v9  ;;  %v11161_v49 = vld [vmem:[%s19668_s5 + $0xd0] sm:$0xf0]  ;;  %v6228_v53 = vadd.f32 %v17822_v28, %v17536_v10 }
 0x853   :  { %v6345_v45 = vmax.f32 %v6295_v52, %v6297_v41  ;;  %v5964_v32 = vpop.f32.mrf.mxu1  ;;  %v11145_v4 = vld [vmem:[%s19668_s5 + $0xb0] sm:$0xf0]  ;;  %v6239_v38 = vadd.f32 %v17670_v25, %v6165_v21 }
 0x854   :  { %v6226_v36 = vadd.f32 %v17857_v6, %v6152_v11  ;;  %v6163_v15 = vadd.f32 %v6012_v33, %v20217_v35  ;;  %v6292_v3 = vmax.f32 %v6228_v53, 0.0 }
 0x855   :  { %v6435_v9 = vmax.f32 %v18034_v40, %v6345_v45  ;;  %v12510_v40 = vld [vmem:[%s19668_s5 + $0xc4] sm:$0xf]  ;;  %v11143_v45 = vld [vmem:[%s19668_s5 + $0xa0] sm:$0xf] }
 0x856   :  { %v6290_v47 = vmax.f32 %v6226_v36, 0.0  ;;  %v6237_v5 = vadd.f32 %v17685_v46, %v6163_v15  ;;  %v11164_v1 = vor.u32 %v12510_v40, %v11161_v49  ;;  %v20220_v36 = vld [vmem:[#allocation59_spill] sm:$0xff]  ;;  %v11148_v15 = vor.u32 %v12506_v8, %v11145_v4 }
 0x857   :  { %v18121_v17 = vpack.c.bf16 %v6435_v9, %v6433_v7  ;;  %v6104_v56 = vpop.f32.mrf.mxu2  ;;  %v6303_v40 = vmax.f32 %v6239_v38, 0.0  ;;  %v18194_v8 = vadd.f32 %v17822_v28, %v17555_v2  ;;  %v20222_v38 = vld [vmem:[#allocation29_spill] sm:$0xff]  ;;  %v6296_v2 = vmax.f32 %v6232_v42, 0.0 }
 0x858   :  { %v18130_v52 = vmax.f32 %v6288_v43, %v6290_v47  ;;  %v6301_v41 = vmax.f32 %v6237_v5, 0.0  ;;  %v6105_v34 = vadd.f32 %v6104_v56, %v6055_v20  ;;  %v20219_v20 = vld [vmem:[#allocation27_spill] sm:$0xff]  ;;  %v12502_v47 = vld [vmem:[%s19668_s5 + $0x84] sm:$0xf]  ;;  %v11129_v5 = vld [vmem:[%s19668_s5 + $0x90] sm:$0xf0] }
 0x859   :  { %6832 = vmatmul.bf16.vlgmr.msra.gmra.mxu1 %v18121_v17  ;;  %6860 = vmatmul.bf16.vlgmr.msra.gmra.mxu0 %v18121_v17  ;;  %v6013_v55 = vpop.f32.mrf.mxu3 }
 0x85a   :  { %v6057_v7 = vpop.f32.mrf.mxu0  ;;  %7256 = vmatpush.bf16.msra.mxu1 %v11176_v62  ;;  %7284 = vmatpush.bf16.msra.mxu0 %v11180_v44  ;;  %v18139_v11 = vmax.f32 %v6299_v24, %v6301_v41  ;;  %v6156_v33 = vadd.f32 %v6105_v34, %v20219_v20  ;;  %v6014_v16 = vadd.f32 %v6013_v55, %v5964_v32  ;;  %v11127_v62 = vld [vmem:[%s19668_s5 + $0x80] sm:$0xf]  ;;  %v12504_v44 = vld [vmem:[%s19668_s5 + $0x8c] sm:$0xf0] }
 0x85b   :  { %v5967_v10 = vpop.f32.mrf.mxu1  ;;  %v11144_v32 = vor.u32 %v12508_v14, %v11143_v45  ;;  %v5823_v34 = vadd.f32 %v17552_v0, %v17543_v12  ;;  %v11111_v45 = vld [vmem:[%s19668_s5 + $0x60] sm:$0xf]  ;;  %v20221_v20 = vld [vmem:[#allocation52_spill] sm:$0xff]  ;;  %v12498_v0 = vld [vmem:[%s19668_s5 + $0x64] sm:$0xf] }
 0x85c   :  { %v6230_v9 = vadd.f32 %v17857_v6, %v6156_v33  ;;  %v6167_v35 = vadd.f32 %v6014_v16, %v20220_v36  ;;  %v12500_v12 = vld [vmem:[%s19668_s5 + $0x6c] sm:$0xf0]  ;;  %v11113_v16 = vld [vmem:[%s19668_s5 + $0x70] sm:$0xf0] }
 0x85e   :  { %7257 = vmatpush.bf16.msra.mxu1 %v11160_v50  ;;  %7285 = vmatpush.bf16.msra.mxu0 %v11164_v1  ;;  %v6294_v19 = vmax.f32 %v6230_v9, 0.0  ;;  %v6241_v43 = vadd.f32 %v17685_v46, %v6167_v35  ;;  %v11128_v50 = vor.u32 %v12504_v44, %v11127_v62  ;;  %v11132_v1 = vor.u32 %v12502_v47, %v11129_v5  ;;  %v20223_v9 = vld [vmem:[#allocation39_spill] sm:$0xff]  ;;  %v11303_v5 = vld [vmem:[%s19668_s5 + $0x1e0] sm:$0xf] }
 0x85f   :  { %v6106_v49 = vpop.f32.mrf.mxu2  ;;  %v6173_v36 = vadd.f32 %v5823_v34, %v20223_v9  ;;  %v11112_v35 = vor.u32 %v12500_v12, %v11111_v45  ;;  %v6300_v34 = vmax.f32 %v18194_v8, 0.0  ;;  %v20225_v8 = vld [vmem:[#allocation41_spill] sm:$0xff]  ;;  %v12544_v9 = vld [vmem:[%s19668_s5 + $0x1cc] sm:$0xf0] }
 0x860   :  { %v18169_v21 = vmax.f32 %v6292_v3, %v6294_v19  ;;  %v6305_v56 = vmax.f32 %v6241_v43, 0.0  ;;  %v6107_v24 = vadd.f32 %v6106_v49, %v6057_v7  ;;  %v12494_v3 = vld [vmem:[%s19668_s5 + $0x44] sm:$0xf]  ;;  %v11097_v19 = vld [vmem:[%s19668_s5 + $0x50] sm:$0xf0]  ;;  %v5916_v43 = vadd.f32 %v17559_v18, %v17550_v13 }
 0x861   :  { %v6016_v55 = vpop.f32.mrf.mxu3  ;;  %v12546_v13 = vld [vmem:[%s19668_s5 + $0x1e4] sm:$0xf]  ;;  %v11305_v18 = vld [vmem:[%s19668_s5 + $0x1f0] sm:$0xf0] }
 0x862   :  { %v6060_v41 = vpop.f32.mrf.mxu0  ;;  %7258 = vmatpush.bf16.msra.mxu1 %v11144_v32  ;;  %7286 = vmatpush.bf16.msra.mxu0 %v11148_v15  ;;  %v6434_v59 = vmax.f32 %v18090_v26, %v18169_v21  ;;  %v18178_v53 = vmax.f32 %v6303_v40, %v6305_v56  ;;  %v6160_v7 = vadd.f32 %v6107_v24, %v20221_v20  ;;  %v11095_v15 = vld [vmem:[%s19668_s5 + $0x40] sm:$0xf]  ;;  %v12548_v40 = vld [vmem:[%s19668_s5 + $0x1ec] sm:$0xf0] }
 0x863   :  { %v6017_v33 = vadd.f32 %v6016_v55, %v5967_v10  ;;  %v5969_v14 = vpop.f32.mrf.mxu1  ;;  %v6243_v26 = vadd.f32 %v17670_v25, %v17547_v22  ;;  %v11116_v32 = vor.u32 %v12498_v0, %v11113_v16  ;;  %v12496_v22 = vld [vmem:[%s19668_s5 + $0x4c] sm:$0xf0]  ;;  %v18230_v55 = vadd.f32 %v17670_v25, %v6173_v36  ;;  %v12490_v16 = vld [vmem:[%s19668_s5 + $0x24] sm:$0xf] }
 0x864   :  { %v6234_v4 = vadd.f32 %v17857_v6, %v6160_v7  ;;  %v20224_v7 = vld [vmem:[#allocation22_spill] sm:$0xff]  ;;  %v12492_v0 = vld [vmem:[%s19668_s5 + $0x2c] sm:$0xf0] }
 0x865   :  { %v6171_v10 = vadd.f32 %v6017_v33, %v20222_v38  ;;  %v6307_v49 = vmax.f32 %v6243_v26, 0.0  ;;  %v11081_v26 = vld [vmem:[%s19668_s5 + $0x30] sm:$0xf0]  ;;  %v11304_v38 = vor.u32 %v12548_v40, %v11303_v5  ;;  %v12542_v36 = vld [vmem:[%s19668_s5 + $0x1c4] sm:$0xf]  ;;  %v6311_v40 = vmax.f32 %v18230_v55, 0.0 }
 0x866   :  { %7259 = vmatpush.bf16.msra.mxu1 %v11128_v50  ;;  %7287 = vmatpush.bf16.msra.mxu0 %v11132_v1  ;;  %v6298_v62 = vmax.f32 %v6234_v4, 0.0  ;;  %v11096_v50 = vor.u32 %v12496_v22, %v11095_v15  ;;  %v11100_v1 = vor.u32 %v12494_v3, %v11097_v19  ;;  %v6166_v4 = vadd.f32 %v5916_v43, %v20225_v8  ;;  %v20226_v15 = vld [vmem:[#allocation62_spill] sm:$0xff]  ;;  %v12488_v3 = vld [vmem:[%s19668_s5 + $0xc] sm:$0xf0]  ;;  %v11183_v5 = vld [vmem:[%s19668_s5 + $0xe8] sm:$0xf] }
 0x867   :  { %v6245_v44 = vadd.f32 %v17685_v46, %v6171_v10  ;;  %v6109_v47 = vpop.f32.mrf.mxu2  ;;  %v11308_v10 = vor.u32 %v12546_v13, %v11305_v18  ;;  %v11084_v43 = vor.u32 %v12490_v16, %v11081_v26  ;;  %v11273_v16 = vld [vmem:[%s19668_s5 + $0x1b0] sm:$0xf0] }
 0x868   :  { %v6346_v42 = vmax.f32 %v6296_v2, %v6298_v62  ;;  %v6110_v56 = vadd.f32 %v6109_v47, %v6060_v41  ;;  %v11289_v62 = vld [vmem:[%s19668_s5 + $0x1d0] sm:$0xf0] }
 0x869   :  { %v6309_v21 = vmax.f32 %v6245_v44, 0.0  ;;  %6888 = vmatmul.bf16.vlgmr.msrb.gmra.mxu1 %v18121_v17  ;;  %6916 = vmatmul.bf16.vlgmr.msrb.gmra.mxu0 %v18121_v17  ;;  %v6018_v41 = vpop.f32.mrf.mxu3  ;;  %v11079_v17 = vld [vmem:[%s19668_s5 + $0x20] sm:$0xf]  ;;  %v11065_v47 = vld [vmem:[%s19668_s5 + $0x10] sm:$0xf0]  ;;  %v11292_v55 = vor.u32 %v12542_v36, %v11289_v62 }
 0x86a   :  { %v6062_v24 = vpop.f32.mrf.mxu0  ;;  %7260 = vmatpush.bf16.msra.mxu1 %v11112_v35  ;;  %7288 = vmatpush.bf16.msra.mxu0 %v11116_v32  ;;  %v6436_v45 = vmax.f32 %v18130_v52, %v6346_v42  ;;  %v6164_v33 = vadd.f32 %v6110_v56, %v20224_v7  ;;  %v6019_v12 = vadd.f32 %v6018_v41, %v5969_v14  ;;  %v11287_v14 = vld [vmem:[%s19668_s5 + $0x1c0] sm:$0xf]  ;;  %v12515_v56 = vld [vmem:[%s19668_s5 + $0xec] sm:$0xf]  ;;  %v11185_v41 = vld [vmem:[%s19668_s5 + $0xf8] sm:$0xf0] }
 0x86b   :  { %v18236_v20 = vmax.f32 %v6307_v49, %v6309_v21  ;;  %v5972_v52 = vpop.f32.mrf.mxu1  ;;  %v11063_v44 = vld [vmem:[%s19668_s5] sm:$0xf]  ;;  %v11080_v19 = vor.u32 %v12492_v0, %v11079_v17  ;;  %v12517_v21 = vld [vmem:[%s19668_s5 + $0xf4] sm:$0xf0]  ;;  %v11288_v18 = vor.u32 %v12544_v9, %v11287_v14  ;;  %v6240_v17 = vadd.f32 %v17822_v28, %v6166_v4  ;;  %v12538_v0 = vld [vmem:[%s19668_s5 + $0x1a4] sm:$0xf] }
 0x86c   :  { %v6238_v32 = vadd.f32 %v17857_v6, %v6164_v33  ;;  %v6175_v22 = vadd.f32 %v6019_v12, %v20226_v15  ;;  %v18262_v2 = vpack.c.bf16 %v6436_v45, %v6434_v59  ;;  %v12486_v59 = vld [vmem:[%s19668_s5 + $0x4] sm:$0xf]  ;;  %v11064_v8 = vor.u32 %v12488_v3, %v11063_v44  ;;  %v11167_v36 = vld [vmem:[%s19668_s5 + $0xc8] sm:$0xf]  ;;  %v11169_v44 = vld [vmem:[%s19668_s5 + $0xd8] sm:$0xf0] }
 0x86d   :  { %v7368_v35 = vmax.f32 %v18139_v11, %v18236_v20  ;;  %v5828_v15 = vadd.f32 %v17570_v48, %v17561_v23  ;;  %v11276_v62 = vor.u32 %v12538_v0, %v11273_v16  ;;  %v11255_v3 = vld [vmem:[%s19668_s5 + $0x180] sm:$0xf] }
 0x86e   :  { %7261 = vmatpush.bf16.msra.mxu1 %v11096_v50  ;;  %7289 = vmatpush.bf16.msra.mxu0 %v11100_v1  ;;  %v6302_v49 = vmax.f32 %v6238_v32, 0.0  ;;  %v6249_v42 = vadd.f32 %v17685_v46, %v6175_v22  ;;  %v11271_v50 = vld [vmem:[%s19668_s5 + $0x1a0] sm:$0xf]  ;;  %v12540_v1 = vld [vmem:[%s19668_s5 + $0x1ac] sm:$0xf0] }
 0x86f   :  { %6846 = vmatmul.bf16.vlgmr.msra.gmra.mxu3 %v18262_v2  ;;  %6874 = vmatmul.bf16.vlgmr.msra.gmra.mxu2 %v18262_v2  ;;  %v6111_v13 = vpop.f32.mrf.mxu2  ;;  %v12513_v32 = vld [vmem:[%s19668_s5 + $0xd4] sm:$0xf0]  ;;  %v11272_v22 = vor.u32 %v12540_v1, %v11271_v50  ;;  %v20229_v50 = vld [vmem:[#allocation34_spill] sm:$0xff] }
 0x870   :  { %7270 = vmatpush.bf16.msra.mxu3 %v11304_v38  ;;  %7298 = vmatpush.bf16.msra.mxu2 %v11308_v10  ;;  %v18302_v45 = vmax.f32 %v6300_v34, %v6302_v49  ;;  %v6313_v7 = vmax.f32 %v6249_v42, 0.0  ;;  %v6112_v33 = vadd.f32 %v6111_v13, %v6062_v24  ;;  %v11068_v38 = vor.u32 %v12486_v59, %v11065_v47  ;;  %v20227_v34 = vld [vmem:[#allocation55_spill] sm:$0xff]  ;;  %v12536_v47 = vld [vmem:[%s19668_s5 + $0x18c] sm:$0xf0] }
 0x871   :  { %v6021_v26 = vpop.f32.mrf.mxu3  ;;  %v11184_v10 = vor.u32 %v12517_v21, %v11183_v5  ;;  %v11188_v24 = vor.u32 %v12515_v56, %v11185_v41  ;;  %v12534_v5 = vld [vmem:[%s19668_s5 + $0x184] sm:$0xf]  ;;  %v6304_v49 = vmax.f32 %v6240_v17, 0.0  ;;  %v11168_v42 = vor.u32 %v12513_v32, %v11167_v36  ;;  %v11151_v21 = vld [vmem:[%s19668_s5 + $0xa8] sm:$0xf] }
 0x872   :  { %v6065_v12 = vpop.f32.mrf.mxu0  ;;  %7262 = vmatpush.bf16.msra.mxu1 %v11080_v19  ;;  %7290 = vmatpush.bf16.msra.mxu0 %v11084_v43  ;;  %v6353_v4 = vmax.f32 %v6311_v40, %v6313_v7  ;;  %v6168_v14 = vadd.f32 %v6112_v33, %v20227_v34  ;;  %v6022_v9 = vadd.f32 %v6021_v26, %v5972_v52  ;;  %v12511_v52 = vld [vmem:[%s19668_s5 + $0xcc] sm:$0xf]  ;;  %v20228_v43 = vld [vmem:[#allocation54_spill] sm:$0xff]  ;;  %v11257_v40 = vld [vmem:[%s19668_s5 + $0x190] sm:$0xf0] }
 0x873   :  { %v6251_v19 = vadd.f32 %v17670_v25, %v17565_v54  ;;  %v5921_v54 = vadd.f32 %v17589_v27, %v17568_v51  ;;  %v12509_v56 = vld [vmem:[%s19668_s5 + $0xb4] sm:$0xf0]  ;;  %v11172_v27 = vor.u32 %v12511_v52, %v11169_v44  ;;  %v11153_v41 = vld [vmem:[%s19668_s5 + $0xb8] sm:$0xf0]  ;;  %v6181_v1 = vadd.f32 %v5828_v15, %v20229_v50  ;;  %v11239_v26 = vld [vmem:[%s19668_s5 + $0x160] sm:$0xf] }
 0x874   :  { %7271 = vmatpush.bf16.msra.mxu3 %v11288_v18  ;;  %7299 = vmatpush.bf16.msra.mxu2 %v11292_v55  ;;  %v7370_v23 = vmax.f32 %v18178_v53, %v6353_v4  ;;  %v6242_v48 = vadd.f32 %v17857_v6, %v6168_v14  ;;  %v6179_v59 = vadd.f32 %v6022_v9, %v20228_v43  ;;  %v5974_v53 = vpop.f32.mrf.mxu1  ;;  %v12507_v55 = vld [vmem:[%s19668_s5 + $0xac] sm:$0xf]  ;;  %v12530_v9 = vld [vmem:[%s19668_s5 + $0x164] sm:$0xf]  ;;  %v12505_v52 = vld [vmem:[%s19668_s5 + $0x94] sm:$0xf0] }
 0x875   :  { %v11256_v20 = vor.u32 %v12536_v47, %v11255_v3  ;;  %v6315_v17 = vmax.f32 %v6251_v19, 0.0  ;;  %v11152_v34 = vor.u32 %v12509_v56, %v11151_v21  ;;  %v11156_v14 = vor.u32 %v12507_v55, %v11153_v41  ;;  %v12503_v44 = vld [vmem:[%s19668_s5 + $0x8c] sm:$0xf]  ;;  %v20232_v19 = vld [vmem:[#allocation65_spill] sm:$0xff]  ;;  %v11223_v47 = vld [vmem:[%s19668_s5 + $0x140] sm:$0xf] }
 0x876   :  { %7263 = vmatpush.bf16.msra.mxu1 %v11064_v8  ;;  %7291 = vmatpush.bf16.msra.mxu0 %v11068_v38  ;;  %v18353_v13 = vpack.c.bf16 %v7370_v23, %v7368_v35  ;;  %v6306_v18 = vmax.f32 %v6242_v48, 0.0  ;;  %v6253_v51 = vadd.f32 %v17685_v46, %v6179_v59  ;;  %v11260_v35 = vor.u32 %v12534_v5, %v11257_v40  ;;  %v20230_v38 = vld [vmem:[#allocation44_spill] sm:$0xff]  ;;  %v11137_v59 = vld [vmem:[%s19668_s5 + $0x98] sm:$0xf0] }
 0x877   :  { %v6114_v11 = vpop.f32.mrf.mxu2  ;;  %v6244_v8 = vadd.f32 %v17822_v28, %v17573_v39  ;;  %v20231_v39 = vld [vmem:[#allocation58_spill] sm:$0xff]  ;;  %v12528_v5 = vld [vmem:[%s19668_s5 + $0x14c] sm:$0xf0]  ;;  %v11140_v50 = vor.u32 %v12503_v44, %v11137_v59  ;;  %v12549_v59 = vld [vmem:[%s19668_s5 + $0x1f4] sm:$0xf0] }
 0x878   :  { %7272 = vmatpush.bf16.msra.mxu3 %v11272_v22  ;;  %7300 = vmatpush.bf16.msra.mxu2 %v11276_v62  ;;  %v18363_v7 = vmax.f32 %v6304_v49, %v6306_v18  ;;  %v6317_v33 = vmax.f32 %v6253_v51, 0.0  ;;  %v6115_v0 = vadd.f32 %v6114_v11, %v6065_v12  ;;  %v12532_v12 = vld [vmem:[%s19668_s5 + $0x16c] sm:$0xf0]  ;;  %v6255_v22 = vadd.f32 %v17670_v25, %v6181_v1  ;;  %v11135_v62 = vld [vmem:[%s19668_s5 + $0x88] sm:$0xf] }
 0x879   :  { %7264 = vmatmul.bf16.vlgmr.msra.gmra.mxu1 %v17987_v29  ;;  %7292 = vmatmul.bf16.vlgmr.msra.gmra.mxu0 %v17987_v29  ;;  %v6023_v4 = vpop.f32.mrf.mxu3  ;;  %v11240_v48 = vor.u32 %v12532_v12, %v11239_v26  ;;  %v12526_v49 = vld [vmem:[%s19668_s5 + $0x144] sm:$0xf]  ;;  %v11136_v56 = vor.u32 %v12505_v52, %v11135_v62  ;;  %v11119_v18 = vld [vmem:[%s19668_s5 + $0x68] sm:$0xf]  ;;  %v12501_v51 = vld [vmem:[%s19668_s5 + $0x74] sm:$0xf0]  ;;  %v11224_v1 = vor.u32 %v12528_v5, %v11223_v47 }
 0x87a   :  { %7312 = vmatpush.bf16.msrb.mxu1 %v11184_v10  ;;  %7340 = vmatpush.bf16.msrb.mxu0 %v11188_v24  ;;  %v6067_v16 = vpop.f32.mrf.mxu0  ;;  %v6174_v10 = vadd.f32 %v5921_v54, %v20230_v38  ;;  %v11241_v24 = vld [vmem:[%s19668_s5 + $0x170] sm:$0xf0]  ;;  %v18382_v36 = vmax.f32 %v6315_v17, %v6317_v33  ;;  %v6172_v32 = vadd.f32 %v6115_v0, %v20231_v39  ;;  %v12499_v11 = vld [vmem:[%s19668_s5 + $0x6c] sm:$0xf]  ;;  %v12524_v26 = vld [vmem:[%s19668_s5 + $0x12c] sm:$0xf0] }
 0x87b   :  { %v6024_v15 = vadd.f32 %v6023_v4, %v5974_v53  ;;  %v11244_v43 = vor.u32 %v12530_v9, %v11241_v24  ;;  %v11225_v54 = vld [vmem:[%s19668_s5 + $0x150] sm:$0xf0]  ;;  %v6308_v53 = vmax.f32 %v6244_v8, 0.0  ;;  %v6259_v38 = vadd.f32 %v17670_v25, %v17616_v58  ;;  %v11103_v58 = vld [vmem:[%s19668_s5 + $0x48] sm:$0xf] }
 0x87c   :  { %7273 = vmatpush.bf16.msra.mxu3 %v11256_v20  ;;  %7301 = vmatpush.bf16.msra.mxu2 %v11260_v35  ;;  %v6246_v3 = vadd.f32 %v17857_v6, %v6172_v32  ;;  %v18407_v40 = vadd.f32 %v17822_v28, %v6174_v10  ;;  %v5977_v55 = vpop.f32.mrf.mxu1  ;;  %v11121_v20 = vld [vmem:[%s19668_s5 + $0x78] sm:$0xf0]  ;;  %v11228_v0 = vor.u32 %v12526_v49, %v11225_v54  ;;  %v12497_v32 = vld [vmem:[%s19668_s5 + $0x54] sm:$0xf0]  ;;  %v11191_v44 = vld [vmem:[%s19668_s5 + $0x100] sm:$0xf] }
 0x87d   :  { %v6183_v23 = vadd.f32 %v6024_v15, %v20232_v19  ;;  %v12495_v15 = vld [vmem:[%s19668_s5 + $0x4c] sm:$0xf]  ;;  %v11124_v62 = vor.u32 %v12499_v11, %v11121_v20  ;;  %v11105_v52 = vld [vmem:[%s19668_s5 + $0x58] sm:$0xf0]  ;;  %v6323_v5 = vmax.f32 %v6259_v38, 0.0  ;;  %v11104_v54 = vor.u32 %v12497_v32, %v11103_v58 }
 0x87e   :  { %7313 = vmatpush.bf16.msrb.mxu1 %v11168_v42  ;;  %7341 = vmatpush.bf16.msrb.mxu0 %v11172_v27  ;;  %v6310_v42 = vmax.f32 %v6246_v3, 0.0  ;;  %v6319_v27 = vmax.f32 %v6255_v22, 0.0  ;;  %v6312_v8 = vmax.f32 %v18407_v40, 0.0  ;;  %v5833_v22 = vadd.f32 %v17636_v30, %v17603_v31  ;;  %v12520_v3 = vld [vmem:[%s19668_s5 + $0x10c] sm:$0xf0] }
 0x87f   :  { %v6257_v21 = vadd.f32 %v17685_v46, %v6183_v23  ;;  %6902 = vmatmul.bf16.vlgmr.msrb.gmra.mxu3 %v18262_v2  ;;  %6930 = vmatmul.bf16.vlgmr.msrb.gmra.mxu2 %v18262_v2  ;;  %v6116_v41 = vpop.f32.mrf.mxu2  ;;  %v11207_v2 = vld [vmem:[%s19668_s5 + $0x120] sm:$0xf]  ;;  %v12518_v30 = vld [vmem:[%s19668_s5 + $0x104] sm:$0xf]  ;;  %v11313_v47 = vld [vmem:[%s19668_s5 + $0x1f8] sm:$0xf0]  ;;  %v11192_v20 = vor.u32 %v12520_v3, %v11191_v44 }
 0x880   :  { %v18430_v35 = vmax.f32 %v6308_v53, %v6310_v42  ;;  %7274 = vmatpush.bf16.msra.mxu3 %v11240_v48  ;;  %7302 = vmatpush.bf16.msra.mxu2 %v11244_v43  ;;  %v6117_v33 = vadd.f32 %v6116_v41, %v6067_v16  ;;  %v12522_v16 = vld [vmem:[%s19668_s5 + $0x124] sm:$0xf]  ;;  %v11193_v48 = vld [vmem:[%s19668_s5 + $0x110] sm:$0xf0]  ;;  %v11311_v43 = vld [vmem:[%s19668_s5 + $0x1e8] sm:$0xf]  ;;  %v11108_v41 = vor.u32 %v12495_v15, %v11105_v52 }
 0x881   :  { %v6321_v17 = vmax.f32 %v6257_v21, 0.0  ;;  %v6026_v10 = vpop.f32.mrf.mxu3  ;;  %v11087_v53 = vld [vmem:[%s19668_s5 + $0x28] sm:$0xf]  ;;  %v12493_v42 = vld [vmem:[%s19668_s5 + $0x34] sm:$0xf0]  ;;  %v18501_v21 = vadd.f32 %v17822_v28, %v17639_v63  ;;  %v20236_v3 = vld [vmem:[#allocation60_spill] sm:$0xff] }
 0x882   :  { %7314 = vmatpush.bf16.msrb.mxu1 %v11152_v34  ;;  %7342 = vmatpush.bf16.msrb.mxu0 %v11156_v14  ;;  %v6070_v4 = vpop.f32.mrf.mxu0  ;;  %v11120_v34 = vor.u32 %v12501_v51, %v11119_v18  ;;  %v11209_v14 = vld [vmem:[%s19668_s5 + $0x130] sm:$0xf0]  ;;  %v7369_v12 = vmax.f32 %v18302_v45, %v18430_v35  ;;  %v6176_v24 = vadd.f32 %v6117_v33, %v17444_v37  ;;  %v11089_v63 = vld [vmem:[%s19668_s5 + $0x38] sm:$0xf0]  ;;  %v12644_v45 = vld [vmem:[%s19668_s5 + $0x4ec] sm:$0xf0] }
 0x883   :  { %v18449_v9 = vmax.f32 %v6319_v27, %v6321_v17  ;;  %v6027_v39 = vadd.f32 %v6026_v10, %v5977_v55  ;;  %v11208_v37 = vor.u32 %v12524_v26, %v11207_v2  ;;  %v11212_v31 = vor.u32 %v12522_v16, %v11209_v14  ;;  %v20234_v51 = vld [vmem:[#allocation64_spill] sm:$0xff]  ;;  %v12491_v17 = vld [vmem:[%s19668_s5 + $0x2c] sm:$0xf]  ;;  %v11297_v58 = vld [vmem:[%s19668_s5 + $0x1d8] sm:$0xf0] }
 0x884   :  { %v6250_v19 = vadd.f32 %v17857_v6, %v6176_v24  ;;  %7275 = vmatpush.bf16.msra.mxu3 %v11224_v1  ;;  %7303 = vmatpush.bf16.msra.mxu2 %v11228_v0  ;;  %v5926_v27 = vadd.f32 %v20234_v51, %v17631_v60  ;;  %v5979_v33 = vpop.f32.mrf.mxu1  ;;  %v11196_v60 = vor.u32 %v12518_v30, %v11193_v48  ;;  %v12545_v24 = vld [vmem:[%s19668_s5 + $0x1d4] sm:$0xf0]  ;;  %v6316_v35 = vmax.f32 %v18501_v21, 0.0 }
 0x885   :  { %v6187_v23 = vadd.f32 %v6027_v39, %v17448_v57  ;;  %v12547_v57 = vld [vmem:[%s19668_s5 + $0x1ec] sm:$0xf]  ;;  %v11312_v2 = vor.u32 %v12549_v59, %v11311_v43  ;;  %v11088_v38 = vor.u32 %v12493_v42, %v11087_v53  ;;  %v11092_v15 = vor.u32 %v12491_v17, %v11089_v63  ;;  %v12642_v43 = vld [vmem:[%s19668_s5 + $0x4e4] sm:$0xf]  ;;  %v11497_v59 = vld [vmem:[%s19668_s5 + $0x4f0] sm:$0xf0] }
 0x886   :  { %7315 = vmatpush.bf16.msrb.mxu1 %v11136_v56  ;;  %7343 = vmatpush.bf16.msrb.mxu0 %v11140_v50  ;;  %v6314_v40 = vmax.f32 %v6250_v19, 0.0  ;;  %v20233_v56 = vld [vmem:[#allocation36_spill] sm:$0xff]  ;;  %v11316_v26 = vor.u32 %v12547_v57, %v11313_v47  ;;  %v12543_v39 = vld [vmem:[%s19668_s5 + $0x1cc] sm:$0xf]  ;;  %v12638_v17 = vld [vmem:[%s19668_s5 + $0x4c4] sm:$0xf] }
 0x887   :  { %v6261_v49 = vadd.f32 %v17685_v46, %v6187_v23  ;;  %v6189_v18 = vadd.f32 %v5833_v22, %v20233_v56  ;;  %v6119_v55 = vpop.f32.mrf.mxu2  ;;  %v11071_v22 = vld [vmem:[%s19668_s5 + $0x8] sm:$0xf]  ;;  %v11073_v23 = vld [vmem:[%s19668_s5 + $0x18] sm:$0xf0]  ;;  %v11481_v63 = vld [vmem:[%s19668_s5 + $0x4d0] sm:$0xf0] }
 0x888   :  { %v6354_v50 = vmax.f32 %v6312_v8, %v6314_v40  ;;  %7276 = vmatpush.bf16.msra.mxu3 %v11208_v37  ;;  %7304 = vmatpush.bf16.msra.mxu2 %v11212_v31  ;;  %v6120_v11 = vadd.f32 %v6119_v55, %v6070_v4  ;;  %v11295_v8 = vld [vmem:[%s19668_s5 + $0x1c8] sm:$0xf]  ;;  %v12487_v37 = vld [vmem:[%s19668_s5 + $0xc] sm:$0xf]  ;;  %v11495_v31 = vld [vmem:[%s19668_s5 + $0x4e0] sm:$0xf] }
 0x889   :  { %v6325_v1 = vmax.f32 %v6261_v49, 0.0  ;;  %v6028_v0 = vpop.f32.mrf.mxu3  ;;  %v11296_v48 = vor.u32 %v12545_v24, %v11295_v8  ;;  %v11279_v49 = vld [vmem:[%s19668_s5 + $0x1a8] sm:$0xf]  ;;  %v11076_v21 = vor.u32 %v12487_v37, %v11073_v23  ;;  %v11496_v56 = vor.u32 %v12644_v45, %v11495_v31 }
 0x88a   :  { %7316 = vmatpush.bf16.msrb.mxu1 %v11120_v34  ;;  %7344 = vmatpush.bf16.msrb.mxu0 %v11124_v62  ;;  %v7371_v10 = vmax.f32 %v18363_v7, %v6354_v50  ;;  %v20235_v34 = vld [vmem:[#allocation61_spill] sm:$0xff]  ;;  %v6029_v14 = vadd.f32 %v6028_v0, %v5979_v33  ;;  %v6263_v7 = vadd.f32 %v17670_v25, %v6189_v18  ;;  %v6072_v32 = vpop.f32.mrf.mxu0  ;;  %v11479_v50 = vld [vmem:[%s19668_s5 + $0x4c0] sm:$0xf] }
 0x88b   :  { %v18516_v4 = vmax.f32 %v6323_v5, %v6325_v1  ;;  %v6180_v16 = vadd.f32 %v6120_v11, %v20235_v34  ;;  %v12489_v62 = vld [vmem:[%s19668_s5 + $0x14] sm:$0xf0]  ;;  %v11300_v5 = vor.u32 %v12543_v39, %v11297_v58  ;;  %v11281_v18 = vld [vmem:[%s19668_s5 + $0x1b8] sm:$0xf0]  ;;  %v12640_v1 = vld [vmem:[%s19668_s5 + $0x4cc] sm:$0xf0]  ;;  %v11484_v24 = vor.u32 %v12638_v17, %v11481_v63 }
 0x88c   :  { %v18541_v52 = vpack.c.bf16 %v7371_v10, %v7369_v12  ;;  %v6191_v19 = vadd.f32 %v6029_v14, %v20236_v3  ;;  %7277 = vmatpush.bf16.msra.mxu3 %v11192_v20  ;;  %v20237_v12 = vld [vmem:[#allocation37_spill] sm:$0xff]  ;;  %7305 = vmatpush.bf16.msra.mxu2 %v11196_v60  ;;  %v11072_v40 = vor.u32 %v12489_v62, %v11071_v22  ;;  %v6327_v53 = vmax.f32 %v6263_v7, 0.0  ;;  %v20238_v0 = vld [vmem:[#allocation66_spill] sm:$0xff]  ;;  %v12535_v10 = vld [vmem:[%s19668_s5 + $0x18c] sm:$0xf] }
 0x88d   :  { %v7879_v25 = vmax.f32 %v18382_v36, %v18516_v4  ;;  %v6254_v44 = vadd.f32 %v17857_v6, %v6180_v16  ;;  %v6182_v30 = vadd.f32 %v5926_v27, %v20237_v12  ;;  %v11480_v8 = vor.u32 %v12640_v1, %v11479_v50  ;;  %v11265_v34 = vld [vmem:[%s19668_s5 + $0x198] sm:$0xf0]  ;;  %v11463_v39 = vld [vmem:[%s19668_s5 + $0x4a0] sm:$0xf]  ;;  %v12636_v58 = vld [vmem:[%s19668_s5 + $0x4ac] sm:$0xf0] }
 0x88e   :  { %7317 = vmatpush.bf16.msrb.mxu1 %v11104_v54  ;;  %7345 = vmatpush.bf16.msrb.mxu0 %v11108_v41  ;;  %v6265_v47 = vadd.f32 %v17685_v46, %v6191_v19  ;;  %v12541_v54 = vld [vmem:[%s19668_s5 + $0x1b4] sm:$0xf0]  ;;  %v12539_v46 = vld [vmem:[%s19668_s5 + $0x1ac] sm:$0xf]  ;;  %v11500_v41 = vor.u32 %v12642_v43, %v11497_v59  ;;  %v11247_v3 = vld [vmem:[%s19668_s5 + $0x168] sm:$0xf]  ;;  %v11464_v31 = vor.u32 %v12636_v58, %v11463_v39 }
 0x88f   :  { %v6318_v57 = vmax.f32 %v6254_v44, 0.0  ;;  %7278 = vmatmul.bf16.vlgmr.msra.gmra.mxu3 %v18087_v61  ;;  %v6121_v42 = vpop.f32.mrf.mxu2  ;;  %7306 = vmatmul.bf16.vlgmr.msra.gmra.mxu2 %v18087_v61  ;;  %v6256_v11 = vadd.f32 %v17822_v28, %v6182_v30  ;;  %v11280_v20 = vor.u32 %v12541_v54, %v11279_v49  ;;  %v11268_v44 = vor.u32 %v12535_v10, %v11265_v34  ;;  %v12533_v19 = vld [vmem:[%s19668_s5 + $0x174] sm:$0xf0]  ;;  %v12531_v36 = vld [vmem:[%s19668_s5 + $0x16c] sm:$0xf]  ;;  %v20242_v49 = vld [vmem:[#allocation68_spill] sm:$0xff] }
 0x890   :  { %7326 = vmatpush.bf16.msrb.mxu3 %v11312_v2  ;;  %7354 = vmatpush.bf16.msrb.mxu2 %v11316_v26  ;;  %v6329_v27 = vmax.f32 %v6265_v47, 0.0  ;;  %v6122_v55 = vadd.f32 %v6121_v42, %v6072_v32  ;;  %v11284_v2 = vor.u32 %v12539_v46, %v11281_v18  ;;  %v11263_v26 = vld [vmem:[%s19668_s5 + $0x188] sm:$0xf]  ;;  %v12632_v12 = vld [vmem:[%s19668_s5 + $0x48c] sm:$0xf0]  ;;  %v11248_v30 = vor.u32 %v12533_v19, %v11247_v3  ;;  %v20239_v59 = vld [vmem:[#allocation69_spill] sm:$0xff] }
 0x891   :  { %v18578_v51 = vmax.f32 %v6316_v35, %v6318_v57  ;;  %v6320_v22 = vmax.f32 %v6256_v11, 0.0  ;;  %v11447_v35 = vld [vmem:[%s19668_s5 + $0x480] sm:$0xf]  ;;  %v11449_v43 = vld [vmem:[%s19668_s5 + $0x490] sm:$0xf0]  ;;  %v6260_v57 = vadd.f32 %v17822_v28, %v20239_v59  ;;  %v20240_v47 = vld [vmem:[#allocation67_spill] sm:$0xff] }
 0x892   :  { %7318 = vmatpush.bf16.msrb.mxu1 %v11088_v38  ;;  %7346 = vmatpush.bf16.msrb.mxu0 %v11092_v15  ;;  %v6361_v33 = vmax.f32 %v6327_v53, %v6329_v27  ;;  %v6184_v60 = vadd.f32 %v6122_v55, %v20238_v0  ;;  %v12537_v38 = vld [vmem:[%s19668_s5 + $0x194] sm:$0xf0]  ;;  %v6075_v7 = vpop.f32.mrf.mxu0  ;;  %v11465_v15 = vld [vmem:[%s19668_s5 + $0x4b0] sm:$0xf0]  ;;  %v11231_v42 = vld [vmem:[%s19668_s5 + $0x148] sm:$0xf] }
 0x893   :  { %v11264_v32 = vor.u32 %v12537_v38, %v11263_v26  ;;  %v12527_v46 = vld [vmem:[%s19668_s5 + $0x14c] sm:$0xf]  ;;  %v11233_v18 = vld [vmem:[%s19668_s5 + $0x158] sm:$0xf0]  ;;  %v12628_v50 = vld [vmem:[%s19668_s5 + $0x46c] sm:$0xf0] }
 0x894   :  { %7327 = vmatpush.bf16.msrb.mxu3 %v11296_v48  ;;  %7355 = vmatpush.bf16.msrb.mxu2 %v11300_v5  ;;  %v7881_v16 = vmax.f32 %v18449_v9, %v6361_v33  ;;  %v6258_v14 = vadd.f32 %v17857_v6, %v6184_v60  ;;  %v12634_v9 = vld [vmem:[%s19668_s5 + $0x4a4] sm:$0xf]  ;;  %v6324_v17 = vmax.f32 %v6260_v57, 0.0  ;;  %v20243_v63 = vld [vmem:[#allocation45_spill] sm:$0xff]  ;;  %v11236_v60 = vor.u32 %v12527_v46, %v11233_v18  ;;  %v12523_v34 = vld [vmem:[%s19668_s5 + $0x12c] sm:$0xf] }
 0x895   :  { %v11468_v45 = vor.u32 %v12634_v9, %v11465_v15  ;;  %v12630_v48 = vld [vmem:[%s19668_s5 + $0x484] sm:$0xf]  ;;  %v12525_v26 = vld [vmem:[%s19668_s5 + $0x134] sm:$0xf0]  ;;  %v11415_v58 = vld [vmem:[%s19668_s5 + $0x440] sm:$0xf] }
 0x896   :  { %7319 = vmatpush.bf16.msrb.mxu1 %v11072_v40  ;;  %7347 = vmatpush.bf16.msrb.mxu0 %v11076_v21  ;;  %v18625_v62 = vpack.c.bf16 %v7881_v16, %v7879_v25  ;;  %v6322_v37 = vmax.f32 %v6258_v14, 0.0  ;;  %v20241_v5 = vld [vmem:[#allocation70_spill] sm:$0xff]  ;;  %v12529_v21 = vld [vmem:[%s19668_s5 + $0x154] sm:$0xf0]  ;;  %v11452_v55 = vor.u32 %v12630_v48, %v11449_v43  ;;  %v11217_v16 = vld [vmem:[%s19668_s5 + $0x138] sm:$0xf0] }
 0x897   :  { %v6124_v23 = vpop.f32.mrf.mxu2  ;;  %v5931_v40 = vadd.f32 %v20241_v5, %v20240_v47  ;;  %v11232_v1 = vor.u32 %v12529_v21, %v11231_v42  ;;  %v12626_v11 = vld [vmem:[%s19668_s5 + $0x464] sm:$0xf]  ;;  %v11417_v15 = vld [vmem:[%s19668_s5 + $0x450] sm:$0xf0]  ;;  %v20244_v3 = vld [vmem:[#allocation63_spill] sm:$0xff] }
 0x898   :  { %7328 = vmatpush.bf16.msrb.mxu3 %v11280_v20  ;;  %7356 = vmatpush.bf16.msrb.mxu2 %v11284_v2  ;;  %v18640_v4 = vmax.f32 %v6320_v22, %v6322_v37  ;;  %v6125_v25 = vadd.f32 %v6124_v23, %v6075_v7  ;;  %v11433_v20 = vld [vmem:[%s19668_s5 + $0x470] sm:$0xf0]  ;;  %v11215_v2 = vld [vmem:[%s19668_s5 + $0x128] sm:$0xf]  ;;  %v12624_v7 = vld [vmem:[%s19668_s5 + $0x44c] sm:$0xf0]  ;;  %v11220_v23 = vor.u32 %v12523_v34, %v11217_v16 }
 0x899   :  { %7320 = vmatmul.bf16.vlgmr.msrb.gmra.mxu1 %v17987_v29  ;;  %7348 = vmatmul.bf16.vlgmr.msrb.gmra.mxu0 %v17987_v29  ;;  %v11249_v29 = vld [vmem:[%s19668_s5 + $0x178] sm:$0xf0]  ;;  %v6190_v33 = vadd.f32 %v5931_v40, %v20243_v63  ;;  %v11436_v39 = vor.u32 %v12626_v11, %v11433_v20  ;;  %v12622_v9 = vld [vmem:[%s19668_s5 + $0x444] sm:$0xf]  ;;  %v11199_v22 = vld [vmem:[%s19668_s5 + $0x108] sm:$0xf] }
 0x89a   :  { %7759 = vmatpush.bf16.msra.mxu1 %v11496_v56  ;;  %7787 = vmatpush.bf16.msra.mxu0 %v11500_v41  ;;  %v6188_v54 = vadd.f32 %v6125_v25, %v20242_v49  ;;  %v11252_v53 = vor.u32 %v12531_v36, %v11249_v29  ;;  %v11448_v56 = vor.u32 %v12632_v12, %v11447_v35  ;;  %v11431_v41 = vld [vmem:[%s19668_s5 + $0x460] sm:$0xf]  ;;  %v6077_v38 = vpop.f32.mrf.mxu0  ;;  %v12519_v36 = vld [vmem:[%s19668_s5 + $0x10c] sm:$0xf]  ;;  %v11201_v29 = vld [vmem:[%s19668_s5 + $0x118] sm:$0xf0] }
 0x89b   :  { %v11432_v10 = vor.u32 %v12628_v50, %v11431_v41  ;;  %v6264_v37 = vadd.f32 %v17822_v28, %v6190_v33  ;;  %v11416_v28 = vor.u32 %v12624_v7, %v11415_v58  ;;  %v12676_v25 = vld [vmem:[%s19668_s5 + $0x5ec] sm:$0xf0]  ;;  %v11420_v12 = vor.u32 %v12622_v9, %v11417_v15  ;;  %v11399_v48 = vld [vmem:[%s19668_s5 + $0x420] sm:$0xf]  ;;  %v11401_v57 = vld [vmem:[%s19668_s5 + $0x430] sm:$0xf0] }
 0x89c   :  { %7329 = vmatpush.bf16.msrb.mxu3 %v11264_v32  ;;  %7357 = vmatpush.bf16.msrb.mxu2 %v11268_v44  ;;  %v6262_v27 = vadd.f32 %v17857_v6, %v6188_v54  ;;  %v11216_v32 = vor.u32 %v12525_v26, %v11215_v2  ;;  %v12620_v43 = vld [vmem:[%s19668_s5 + $0x42c] sm:$0xf0]  ;;  %v11204_v40 = vor.u32 %v12519_v36, %v11201_v29  ;;  %v11607_v54 = vld [vmem:[%s19668_s5 + $0x5c0] sm:$0xf]  ;;  %v11609_v46 = vld [vmem:[%s19668_s5 + $0x5d0] sm:$0xf0] }
 0x89d   :  { %v6328_v47 = vmax.f32 %v6264_v37, 0.0  ;;  %v11400_v42 = vor.u32 %v12620_v43, %v11399_v48  ;;  %v12672_v21 = vld [vmem:[%s19668_s5 + $0x5cc] sm:$0xf0]  ;;  %v12614_v50 = vld [vmem:[%s19668_s5 + $0x404] sm:$0xf] }
 0x89e   :  { %7760 = vmatpush.bf16.msra.mxu1 %v11480_v8  ;;  %7788 = vmatpush.bf16.msra.mxu0 %v11484_v24  ;;  %v6326_v0 = vmax.f32 %v6262_v27, 0.0  ;;  %v12616_v41 = vld [vmem:[%s19668_s5 + $0x40c] sm:$0xf0]  ;;  %v11503_v11 = vld [vmem:[%s19668_s5 + $0x4e8] sm:$0xf]  ;;  %v11608_v63 = vor.u32 %v12672_v21, %v11607_v54 }
 0x89f   :  { %v6126_v8 = vpop.f32.mrf.mxu2  ;;  %v12645_v20 = vld [vmem:[%s19668_s5 + $0x4f4] sm:$0xf0]  ;;  %v12643_v33 = vld [vmem:[%s19668_s5 + $0x4ec] sm:$0xf]  ;;  %v11591_v26 = vld [vmem:[%s19668_s5 + $0x5a0] sm:$0xf] }
 0x8a0   :  { %7330 = vmatpush.bf16.msrb.mxu3 %v11248_v30  ;;  %7358 = vmatpush.bf16.msrb.mxu2 %v11252_v53  ;;  %v18697_v14 = vmax.f32 %v6324_v17, %v6326_v0  ;;  %v6127_v24 = vadd.f32 %v6126_v8, %v6077_v38  ;;  %v11625_v30 = vld [vmem:[%s19668_s5 + $0x5f0] sm:$0xf0]  ;;  %v11505_v0 = vld [vmem:[%s19668_s5 + $0x4f8] sm:$0xf0]  ;;  %v12666_v34 = vld [vmem:[%s19668_s5 + $0x5a4] sm:$0xf] }
 0x8a1   :  { %v11593_v16 = vld [vmem:[%s19668_s5 + $0x5b0] sm:$0xf0]  ;;  %v12639_v7 = vld [vmem:[%s19668_s5 + $0x4cc] sm:$0xf]  ;;  %v11575_v9 = vld [vmem:[%s19668_s5 + $0x580] sm:$0xf] }
 0x8a2   :  { %7761 = vmatpush.bf16.msra.mxu1 %v11464_v31  ;;  %7789 = vmatpush.bf16.msra.mxu0 %v11468_v45  ;;  %v7880_v44 = vmax.f32 %v18578_v51, %v18697_v14  ;;  %v6192_v19 = vadd.f32 %v6127_v24, %v20244_v3  ;;  %v12521_v31 = vld [vmem:[%s19668_s5 + $0x114] sm:$0xf0]  ;;  %v11623_v51 = vld [vmem:[%s19668_s5 + $0x5e0] sm:$0xf]  ;;  %v12674_v45 = vld [vmem:[%s19668_s5 + $0x5e4] sm:$0xf]  ;;  %v11508_v14 = vor.u32 %v12643_v33, %v11505_v0 }
 0x8a3   :  { %v11200_v59 = vor.u32 %v12521_v31, %v11199_v22  ;;  %v11624_v49 = vor.u32 %v12676_v25, %v11623_v51  ;;  %v11628_v53 = vor.u32 %v12674_v45, %v11625_v30  ;;  %v11487_v24 = vld [vmem:[%s19668_s5 + $0x4c8] sm:$0xf]  ;;  %v12664_v15 = vld [vmem:[%s19668_s5 + $0x58c] sm:$0xf0]  ;;  %v12662_v37 = vld [vmem:[%s19668_s5 + $0x584] sm:$0xf] }
 0x8a4   :  { %7331 = vmatpush.bf16.msrb.mxu3 %v11232_v1  ;;  %7359 = vmatpush.bf16.msrb.mxu2 %v11236_v60  ;;  %v6266_v35 = vadd.f32 %v17857_v6, %v6192_v19  ;;  %v12618_v6 = vld [vmem:[%s19668_s5 + $0x424] sm:$0xf]  ;;  %v11385_v1 = vld [vmem:[%s19668_s5 + $0x410] sm:$0xf0]  ;;  %v11471_v19 = vld [vmem:[%s19668_s5 + $0x4a8] sm:$0xf]  ;;  %v11576_v31 = vor.u32 %v12664_v15, %v11575_v9 }
 0x8a5   :  { %v11404_v27 = vor.u32 %v12618_v6, %v11401_v57  ;;  %v11388_v8 = vor.u32 %v12614_v50, %v11385_v1  ;;  %v12635_v36 = vld [vmem:[%s19668_s5 + $0x4ac] sm:$0xf]  ;;  %v11473_v29 = vld [vmem:[%s19668_s5 + $0x4b8] sm:$0xf0]  ;;  %v11559_v51 = vld [vmem:[%s19668_s5 + $0x560] sm:$0xf] }
 0x8a6   :  { %7762 = vmatpush.bf16.msra.mxu1 %v11448_v56  ;;  %7790 = vmatpush.bf16.msra.mxu0 %v11452_v55  ;;  %v6330_v5 = vmax.f32 %v6266_v35, 0.0  ;;  %v12670_v56 = vld [vmem:[%s19668_s5 + $0x5c4] sm:$0xf]  ;;  %v11383_v55 = vld [vmem:[%s19668_s5 + $0x400] sm:$0xf]  ;;  %v11476_v30 = vor.u32 %v12635_v36, %v11473_v29 }
 0x8a7   :  { %v11612_v60 = vor.u32 %v12670_v56, %v11609_v46  ;;  %v11384_v2 = vor.u32 %v12616_v41, %v11383_v55  ;;  %v12660_v25 = vld [vmem:[%s19668_s5 + $0x56c] sm:$0xf0]  ;;  %v12658_v35 = vld [vmem:[%s19668_s5 + $0x564] sm:$0xf]  ;;  %v11455_v48 = vld [vmem:[%s19668_s5 + $0x488] sm:$0xf] }
 0x8a8   :  { %7332 = vmatpush.bf16.msrb.mxu3 %v11216_v32  ;;  %7360 = vmatpush.bf16.msrb.mxu2 %v11220_v23  ;;  %v6362_v18 = vmax.f32 %v6328_v47, %v6330_v5  ;;  %v11489_v32 = vld [vmem:[%s19668_s5 + $0x4d8] sm:$0xf0]  ;;  %v12637_v23 = vld [vmem:[%s19668_s5 + $0x4b4] sm:$0xf0]  ;;  %v12631_v6 = vld [vmem:[%s19668_s5 + $0x48c] sm:$0xf] }
 0x8a9   :  { %v11492_v3 = vor.u32 %v12639_v7, %v11489_v32  ;;  %v11472_v45 = vor.u32 %v12637_v23, %v11471_v19  ;;  %v12633_v43 = vld [vmem:[%s19668_s5 + $0x494] sm:$0xf0]  ;;  %v11457_v57 = vld [vmem:[%s19668_s5 + $0x498] sm:$0xf0]  ;;  %v11543_v5 = vld [vmem:[%s19668_s5 + $0x540] sm:$0xf] }
 0x8aa   :  { %7763 = vmatpush.bf16.msra.mxu1 %v11432_v10  ;;  %7791 = vmatpush.bf16.msra.mxu0 %v11436_v39  ;;  %v7882_v17 = vmax.f32 %v18640_v4, %v6362_v18  ;;  %v12668_v4 = vld [vmem:[%s19668_s5 + $0x5ac] sm:$0xf0]  ;;  %v11504_v10 = vor.u32 %v12645_v20, %v11503_v11  ;;  %v12641_v39 = vld [vmem:[%s19668_s5 + $0x4d4] sm:$0xf0]  ;;  %v12654_v54 = vld [vmem:[%s19668_s5 + $0x544] sm:$0xf] }
 0x8ab   :  { %v11592_v58 = vor.u32 %v12668_v4, %v11591_v26  ;;  %v11488_v22 = vor.u32 %v12641_v39, %v11487_v24  ;;  %v11439_v21 = vld [vmem:[%s19668_s5 + $0x468] sm:$0xf]  ;;  %v12629_v56 = vld [vmem:[%s19668_s5 + $0x474] sm:$0xf0]  ;;  %v12627_v18 = vld [vmem:[%s19668_s5 + $0x46c] sm:$0xf] }
 0x8ac   :  { %7333 = vmatpush.bf16.msrb.mxu3 %v11200_v59  ;;  %7361 = vmatpush.bf16.msrb.mxu2 %v11204_v40  ;;  %v18795_v38 = vpack.c.bf16 %v7882_v17, %v7880_v44  ;;  %v11577_v44 = vld [vmem:[%s19668_s5 + $0x590] sm:$0xf0]  ;;  %v11560_v59 = vor.u32 %v12660_v25, %v11559_v51  ;;  %v12656_v40 = vld [vmem:[%s19668_s5 + $0x54c] sm:$0xf0]  ;;  %v11527_v41 = vld [vmem:[%s19668_s5 + $0x520] sm:$0xf]  ;;  %v11440_v1 = vor.u32 %v12629_v56, %v11439_v21 }
 0x8ad   :  { %v11544_v46 = vor.u32 %v12656_v40, %v11543_v5  ;;  %v12652_v50 = vld [vmem:[%s19668_s5 + $0x52c] sm:$0xf0]  ;;  %v12650_v11 = vld [vmem:[%s19668_s5 + $0x524] sm:$0xf]  ;;  %v11529_v20 = vld [vmem:[%s19668_s5 + $0x530] sm:$0xf0] }
 0x8ae   :  { %7764 = vmatpush.bf16.msra.mxu1 %v11416_v28  ;;  %7792 = vmatpush.bf16.msra.mxu0 %v11420_v12  ;;  %v11580_v28 = vor.u32 %v12662_v37, %v11577_v44  ;;  %v11561_v12 = vld [vmem:[%s19668_s5 + $0x570] sm:$0xf0]  ;;  %v12625_v33 = vld [vmem:[%s19668_s5 + $0x454] sm:$0xf0]  ;;  %v11528_v0 = vor.u32 %v12652_v50, %v11527_v41  ;;  %v11511_v26 = vld [vmem:[%s19668_s5 + $0x500] sm:$0xf]  ;;  %v11532_v4 = vor.u32 %v12650_v11, %v11529_v20 }
 0x8af   :  { %7334 = vmatmul.bf16.vlgmr.msrb.gmra.mxu3 %v18087_v61  ;;  %7362 = vmatmul.bf16.vlgmr.msrb.gmra.mxu2 %v18087_v61  ;;  %v11596_v61 = vor.u32 %v12666_v34, %v11593_v16  ;;  %v11564_v47 = vor.u32 %v12658_v35, %v11561_v12  ;;  %v11513_v34 = vld [vmem:[%s19668_s5 + $0x510] sm:$0xf0]  ;;  %v12677_v24 = vld [vmem:[%s19668_s5 + $0x5f4] sm:$0xf0]  ;;  %v12675_v39 = vld [vmem:[%s19668_s5 + $0x5ec] sm:$0xf] }
 0x8b0   :  { %7773 = vmatpush.bf16.msra.mxu3 %v11624_v49  ;;  %7801 = vmatpush.bf16.msra.mxu2 %v11628_v53  ;;  %v11456_v49 = vor.u32 %v12633_v43, %v11455_v48  ;;  %v11545_v53 = vld [vmem:[%s19668_s5 + $0x550] sm:$0xf0]  ;;  %v11633_v7 = vld [vmem:[%s19668_s5 + $0x5f8] sm:$0xf0]  ;;  %v11407_v32 = vld [vmem:[%s19668_s5 + $0x428] sm:$0xf] }
 0x8b1   :  { %v11548_v55 = vor.u32 %v12654_v54, %v11545_v53  ;;  %v12619_v15 = vld [vmem:[%s19668_s5 + $0x42c] sm:$0xf]  ;;  %v11636_v19 = vor.u32 %v12675_v39, %v11633_v7  ;;  %v11617_v29 = vld [vmem:[%s19668_s5 + $0x5d8] sm:$0xf0]  ;;  %v11391_v51 = vld [vmem:[%s19668_s5 + $0x408] sm:$0xf] }
 0x8b2   :  { %7765 = vmatpush.bf16.msra.mxu1 %v11400_v42  ;;  %7793 = vmatpush.bf16.msra.mxu0 %v11404_v27  ;;  %v11460_v42 = vor.u32 %v12631_v6, %v11457_v57  ;;  %v11441_v27 = vld [vmem:[%s19668_s5 + $0x478] sm:$0xf0]  ;;  %v12671_v36 = vld [vmem:[%s19668_s5 + $0x5cc] sm:$0xf]  ;;  %v12617_v25 = vld [vmem:[%s19668_s5 + $0x414] sm:$0xf0] }
 0x8b3   :  { %v11444_v17 = vor.u32 %v12627_v18, %v11441_v27  ;;  %v11393_v35 = vld [vmem:[%s19668_s5 + $0x418] sm:$0xf0]  ;;  %v11815_v12 = vld [vmem:[%s19668_s5 + $0x6e0] sm:$0xf]  ;;  %v12706_v43 = vld [vmem:[%s19668_s5 + $0x6e4] sm:$0xf]  ;;  %v11620_v6 = vor.u32 %v12671_v36, %v11617_v29  ;;  %v11392_v57 = vor.u32 %v12617_v25, %v11391_v51 }
 0x8b4   :  { %7774 = vmatpush.bf16.msra.mxu3 %v11608_v63  ;;  %7802 = vmatpush.bf16.msra.mxu2 %v11612_v60  ;;  %v11423_v63 = vld [vmem:[%s19668_s5 + $0x448] sm:$0xf]  ;;  %v12623_v60 = vld [vmem:[%s19668_s5 + $0x44c] sm:$0xf]  ;;  %v12669_v5 = vld [vmem:[%s19668_s5 + $0x5b4] sm:$0xf0] }
 0x8b5   :  { %v11424_v16 = vor.u32 %v12625_v33, %v11423_v63  ;;  %v12667_v54 = vld [vmem:[%s19668_s5 + $0x5ac] sm:$0xf]  ;;  %v11601_v53 = vld [vmem:[%s19668_s5 + $0x5b8] sm:$0xf0]  ;;  %v11799_v21 = vld [vmem:[%s19668_s5 + $0x6c0] sm:$0xf] }
 0x8b6   :  { %7766 = vmatpush.bf16.msra.mxu1 %v11384_v2  ;;  %7794 = vmatpush.bf16.msra.mxu0 %v11388_v8  ;;  %v11425_v2 = vld [vmem:[%s19668_s5 + $0x458] sm:$0xf0]  ;;  %v12648_v8 = vld [vmem:[%s19668_s5 + $0x50c] sm:$0xf0]  ;;  %v12702_v18 = vld [vmem:[%s19668_s5 + $0x6c4] sm:$0xf] }
 0x8b7   :  { %v11512_v9 = vor.u32 %v12648_v8, %v11511_v26  ;;  %v12704_v56 = vld [vmem:[%s19668_s5 + $0x6cc] sm:$0xf0]  ;;  %v11801_v27 = vld [vmem:[%s19668_s5 + $0x6d0] sm:$0xf0]  ;;  %v11583_v41 = vld [vmem:[%s19668_s5 + $0x588] sm:$0xf] }
 0x8b8   :  { %7775 = vmatpush.bf16.msra.mxu3 %v11592_v58  ;;  %7803 = vmatpush.bf16.msra.mxu2 %v11596_v61  ;;  %v11428_v58 = vor.u32 %v12623_v60, %v11425_v2  ;;  %v12621_v61 = vld [vmem:[%s19668_s5 + $0x434] sm:$0xf0]  ;;  %v12663_v11 = vld [vmem:[%s19668_s5 + $0x58c] sm:$0xf]  ;;  %v11585_v20 = vld [vmem:[%s19668_s5 + $0x598] sm:$0xf0] }
 0x8b9   :  { %7767 = vmatmul.bf16.vlgmr.msra.gmra.mxu1 %v18353_v13  ;;  %7795 = vmatmul.bf16.vlgmr.msra.gmra.mxu0 %v18353_v13  ;;  %v11408_v23 = vor.u32 %v12621_v61, %v11407_v32  ;;  %v12665_v50 = vld [vmem:[%s19668_s5 + $0x594] sm:$0xf0]  ;;  %v11783_v63 = vld [vmem:[%s19668_s5 + $0x6a0] sm:$0xf]  ;;  %v12700_v33 = vld [vmem:[%s19668_s5 + $0x6ac] sm:$0xf0]  ;;  %v11588_v26 = vor.u32 %v12663_v11, %v11585_v20 }
 0x8ba   :  { %7815 = vmatpush.bf16.msrb.mxu1 %v11504_v10  ;;  %7843 = vmatpush.bf16.msrb.mxu0 %v11508_v14  ;;  %v12646_v10 = vld [vmem:[%s19668_s5 + $0x504] sm:$0xf]  ;;  %v11631_v14 = vld [vmem:[%s19668_s5 + $0x5e8] sm:$0xf]  ;;  %v11785_v2 = vld [vmem:[%s19668_s5 + $0x6b0] sm:$0xf0] }
 0x8bb   :  { %v11516_v37 = vor.u32 %v12646_v10, %v11513_v34  ;;  %v11632_v44 = vor.u32 %v12677_v24, %v11631_v14  ;;  %v12698_v60 = vld [vmem:[%s19668_s5 + $0x6a4] sm:$0xf]  ;;  %v12661_v8 = vld [vmem:[%s19668_s5 + $0x574] sm:$0xf0]  ;;  %v11784_v10 = vor.u32 %v12700_v33, %v11783_v63  ;;  %v12659_v34 = vld [vmem:[%s19668_s5 + $0x56c] sm:$0xf] }
 0x8bc   :  { %7776 = vmatpush.bf16.msra.mxu3 %v11576_v31  ;;  %7804 = vmatpush.bf16.msra.mxu2 %v11580_v28  ;;  %v12673_v31 = vld [vmem:[%s19668_s5 + $0x5d4] sm:$0xf0]  ;;  %v11767_v14 = vld [vmem:[%s19668_s5 + $0x680] sm:$0xf]  ;;  %v12696_v24 = vld [vmem:[%s19668_s5 + $0x68c] sm:$0xf0] }
 0x8bd   :  { %v11769_v7 = vld [vmem:[%s19668_s5 + $0x690] sm:$0xf0]  ;;  %v11551_v61 = vld [vmem:[%s19668_s5 + $0x548] sm:$0xf]  ;;  %v12690_v29 = vld [vmem:[%s19668_s5 + $0x664] sm:$0xf] }
 0x8be   :  { %7816 = vmatpush.bf16.msrb.mxu1 %v11488_v22  ;;  %7844 = vmatpush.bf16.msrb.mxu0 %v11492_v3  ;;  %v11409_v22 = vld [vmem:[%s19668_s5 + $0x438] sm:$0xf0]  ;;  %v11615_v3 = vld [vmem:[%s19668_s5 + $0x5c8] sm:$0xf]  ;;  %v12682_v20 = vld [vmem:[%s19668_s5 + $0x624] sm:$0xf] }
 0x8bf   :  { %v11412_v28 = vor.u32 %v12619_v15, %v11409_v22  ;;  %v11616_v48 = vor.u32 %v12673_v31, %v11615_v3  ;;  %v11553_v3 = vld [vmem:[%s19668_s5 + $0x558] sm:$0xf0]  ;;  %v12692_v31 = vld [vmem:[%s19668_s5 + $0x66c] sm:$0xf0]  ;;  %v11535_v25 = vld [vmem:[%s19668_s5 + $0x528] sm:$0xf] }
 0x8c0   :  { %7777 = vmatpush.bf16.msra.mxu3 %v11560_v59  ;;  %7805 = vmatpush.bf16.msra.mxu2 %v11564_v47  ;;  %v11817_v59 = vld [vmem:[%s19668_s5 + $0x6f0] sm:$0xf0]  ;;  %v11599_v47 = vld [vmem:[%s19668_s5 + $0x5a8] sm:$0xf] }
 0x8c2   :  { %7817 = vmatpush.bf16.msrb.mxu1 %v11472_v45  ;;  %7845 = vmatpush.bf16.msrb.mxu0 %v11476_v30  ;;  %v12615_v45 = vld [vmem:[%s19668_s5 + $0x40c] sm:$0xf]  ;;  %v12708_v30 = vld [vmem:[%s19668_s5 + $0x6ec] sm:$0xf0] }
 0x8c3   :  { %v11396_v40 = vor.u32 %v12615_v45, %v11393_v35  ;;  %v12653_v45 = vld [vmem:[%s19668_s5 + $0x534] sm:$0xf0] }
 0x8c4   :  { %7778 = vmatpush.bf16.msra.mxu3 %v11544_v46  ;;  %7806 = vmatpush.bf16.msra.mxu2 %v11548_v55  ;;  %v11600_v46 = vor.u32 %v12669_v5, %v11599_v47  ;;  %v11604_v55 = vor.u32 %v12667_v54, %v11601_v53  ;;  %v11737_v47 = vld [vmem:[%s19668_s5 + $0x650] sm:$0xf0]  ;;  %v11519_v5 = vld [vmem:[%s19668_s5 + $0x508] sm:$0xf]  ;;  %v12647_v54 = vld [vmem:[%s19668_s5 + $0x50c] sm:$0xf] }
 0x8c5   :  { %v11521_v53 = vld [vmem:[%s19668_s5 + $0x518] sm:$0xf0] }
 0x8c6   :  { %7818 = vmatpush.bf16.msrb.mxu1 %v11456_v49  ;;  %7846 = vmatpush.bf16.msrb.mxu0 %v11460_v42  ;;  %v11816_v49 = vor.u32 %v12708_v30, %v11815_v12  ;;  %v11820_v42 = vor.u32 %v12706_v43, %v11817_v59  ;;  %v12651_v12 = vld [vmem:[%s19668_s5 + $0x52c] sm:$0xf]  ;;  %v11537_v30 = vld [vmem:[%s19668_s5 + $0x538] sm:$0xf0]  ;;  %v11735_v43 = vld [vmem:[%s19668_s5 + $0x640] sm:$0xf]  ;;  %v11524_v63 = vor.u32 %v12647_v54, %v11521_v53 }
 0x8c7   :  { %v12688_v59 = vld [vmem:[%s19668_s5 + $0x64c] sm:$0xf0]  ;;  %v11793_v54 = vld [vmem:[%s19668_s5 + $0x6b8] sm:$0xf0] }
 0x8c8   :  { %7779 = vmatpush.bf16.msra.mxu3 %v11528_v0  ;;  %7807 = vmatpush.bf16.msra.mxu2 %v11532_v4  ;;  %v11584_v0 = vor.u32 %v12665_v50, %v11583_v41  ;;  %v11567_v4 = vld [vmem:[%s19668_s5 + $0x568] sm:$0xf]  ;;  %v11945_v41 = vld [vmem:[%s19668_s5 + $0x7f0] sm:$0xf0]  ;;  %v11719_v50 = vld [vmem:[%s19668_s5 + $0x620] sm:$0xf] }
 0x8c9   :  { %v11568_v39 = vor.u32 %v12661_v8, %v11567_v4  ;;  %v12734_v4 = vld [vmem:[%s19668_s5 + $0x7c4] sm:$0xf]  ;;  %v11929_v8 = vld [vmem:[%s19668_s5 + $0x7d0] sm:$0xf0] }
 0x8ca   :  { %7819 = vmatpush.bf16.msrb.mxu1 %v11440_v1  ;;  %7847 = vmatpush.bf16.msrb.mxu0 %v11444_v17  ;;  %v11800_v1 = vor.u32 %v12704_v56, %v11799_v21  ;;  %v11804_v17 = vor.u32 %v12702_v18, %v11801_v27  ;;  %v11736_v56 = vor.u32 %v12688_v59, %v11735_v43  ;;  %v12740_v18 = vld [vmem:[%s19668_s5 + $0x7ec] sm:$0xf0]  ;;  %v12738_v27 = vld [vmem:[%s19668_s5 + $0x7e4] sm:$0xf] }
 0x8cb   :  { %v12726_v59 = vld [vmem:[%s19668_s5 + $0x784] sm:$0xf] }
 0x8cc   :  { %7780 = vmatpush.bf16.msra.mxu3 %v11512_v9  ;;  %7808 = vmatpush.bf16.msra.mxu2 %v11516_v37  ;;  %v12657_v9 = vld [vmem:[%s19668_s5 + $0x554] sm:$0xf0]  ;;  %v11768_v37 = vor.u32 %v12696_v24, %v11767_v14  ;;  %v11705_v14 = vld [vmem:[%s19668_s5 + $0x610] sm:$0xf0]  ;;  %v11823_v24 = vld [vmem:[%s19668_s5 + $0x6e8] sm:$0xf] }
 0x8cd   :  { %v11552_v36 = vor.u32 %v12657_v9, %v11551_v61 }
 0x8ce   :  { %7820 = vmatpush.bf16.msrb.mxu1 %v11424_v16  ;;  %7848 = vmatpush.bf16.msrb.mxu0 %v11428_v58  ;;  %v11569_v16 = vld [vmem:[%s19668_s5 + $0x578] sm:$0xf0]  ;;  %v12694_v58 = vld [vmem:[%s19668_s5 + $0x684] sm:$0xf] }
 0x8cf   :  { %7781 = vmatmul.bf16.vlgmr.msra.gmra.mxu3 %v18541_v52  ;;  %7809 = vmatmul.bf16.vlgmr.msra.gmra.mxu2 %v18541_v52  ;;  %v11572_v32 = vor.u32 %v12659_v34, %v11569_v16  ;;  %v11703_v34 = vld [vmem:[%s19668_s5 + $0x600] sm:$0xf]  ;;  %v12680_v16 = vld [vmem:[%s19668_s5 + $0x60c] sm:$0xf0] }
 0x8d0   :  { %7829 = vmatpush.bf16.msrb.mxu3 %v11632_v44  ;;  %7857 = vmatpush.bf16.msrb.mxu2 %v11636_v19  ;;  %v12655_v44 = vld [vmem:[%s19668_s5 + $0x54c] sm:$0xf]  ;;  %v11772_v19 = vor.u32 %v12694_v58, %v11769_v7 }
 0x8d1   :  { %v11556_v51 = vor.u32 %v12655_v44, %v11553_v3  ;;  %v12707_v7 = vld [vmem:[%s19668_s5 + $0x6ec] sm:$0xf]  ;;  %v11704_v44 = vor.u32 %v12680_v16, %v11703_v34  ;;  %v11911_v3 = vld [vmem:[%s19668_s5 + $0x7a0] sm:$0xf]  ;;  %v12718_v16 = vld [vmem:[%s19668_s5 + $0x744] sm:$0xf] }
 0x8d2   :  { %7821 = vmatpush.bf16.msrb.mxu1 %v11408_v23  ;;  %7849 = vmatpush.bf16.msrb.mxu0 %v11412_v28  ;;  %v11751_v23 = vld [vmem:[%s19668_s5 + $0x660] sm:$0xf]  ;;  %v11753_v28 = vld [vmem:[%s19668_s5 + $0x670] sm:$0xf0] }
 0x8d3   :  { %v11752_v35 = vor.u32 %v12692_v31, %v11751_v23 }
 0x8d4   :  { %7830 = vmatpush.bf16.msrb.mxu3 %v11616_v48  ;;  %7858 = vmatpush.bf16.msrb.mxu2 %v11620_v6  ;;  %v11756_v48 = vor.u32 %v12690_v29, %v11753_v28  ;;  %v11536_v6 = vor.u32 %v12653_v45, %v11535_v25  ;;  %v11913_v29 = vld [vmem:[%s19668_s5 + $0x7b0] sm:$0xf0]  ;;  %v12705_v25 = vld [vmem:[%s19668_s5 + $0x6d4] sm:$0xf0] }
 0x8d6   :  { %7822 = vmatpush.bf16.msrb.mxu1 %v11392_v57  ;;  %7850 = vmatpush.bf16.msrb.mxu0 %v11396_v40  ;;  %v19069_v15 = vpop.f32.mrf.mxu1  ;;  %v19071_v22 = vpop.f32.mrf.mxu0  ;;  %v12686_v57 = vld [vmem:[%s19668_s5 + $0x644] sm:$0xf]  ;;  %v11540_v40 = vor.u32 %v12651_v12, %v11537_v30  ;;  %v11809_v12 = vld [vmem:[%s19668_s5 + $0x6d8] sm:$0xf0]  ;;  %v11895_v30 = vld [vmem:[%s19668_s5 + $0x780] sm:$0xf] }
 0x8d8   :  { %7831 = vmatpush.bf16.msrb.mxu3 %v11600_v46  ;;  %7859 = vmatpush.bf16.msrb.mxu2 %v11604_v55  ;;  %v11943_v46 = vld [vmem:[%s19668_s5 + $0x7e0] sm:$0xf]  ;;  %v11740_v55 = vor.u32 %v12686_v57, %v11737_v47  ;;  %v11791_v47 = vld [vmem:[%s19668_s5 + $0x6a8] sm:$0xf] }
 0x8d9   :  { %7823 = vmatmul.bf16.vlgmr.msrb.gmra.mxu1 %v18353_v13  ;;  %7851 = vmatmul.bf16.vlgmr.msrb.gmra.mxu0 %v18353_v13  ;;  %v11788_v13 = vor.u32 %v12698_v60, %v11785_v2  ;;  %v11944_v33 = vor.u32 %v12740_v18, %v11943_v46  ;;  %v11948_v60 = vor.u32 %v12738_v27, %v11945_v41  ;;  %v11879_v18 = vld [vmem:[%s19668_s5 + $0x760] sm:$0xf]  ;;  %v12724_v27 = vld [vmem:[%s19668_s5 + $0x76c] sm:$0xf0]  ;;  %v12722_v41 = vld [vmem:[%s19668_s5 + $0x764] sm:$0xf] }
 0x8da   :  { %8270 = vmatpush.bf16.msra.mxu1 %v11816_v49  ;;  %8298 = vmatpush.bf16.msra.mxu0 %v11820_v42  ;;  %v12649_v49 = vld [vmem:[%s19668_s5 + $0x514] sm:$0xf0] }
 0x8db   :  { %v11520_v11 = vor.u32 %v12649_v49, %v11519_v5  ;;  %v12701_v5 = vld [vmem:[%s19668_s5 + $0x6b4] sm:$0xf0]  ;;  %v12699_v49 = vld [vmem:[%s19668_s5 + $0x6ac] sm:$0xf] }
 0x8dc   :  { %7832 = vmatpush.bf16.msrb.mxu3 %v11584_v0  ;;  %7860 = vmatpush.bf16.msrb.mxu2 %v11588_v26  ;;  %v11927_v0 = vld [vmem:[%s19668_s5 + $0x7c0] sm:$0xf]  ;;  %v12736_v26 = vld [vmem:[%s19668_s5 + $0x7cc] sm:$0xf0] }
 0x8dd   :  { %v11928_v58 = vor.u32 %v12736_v26, %v11927_v0  ;;  %v11863_v26 = vld [vmem:[%s19668_s5 + $0x740] sm:$0xf] }
 0x8de   :  { %8271 = vmatpush.bf16.msra.mxu1 %v11800_v1  ;;  %8299 = vmatpush.bf16.msra.mxu0 %v11804_v17  ;;  %v19127_v42 = vpop.f32.mrf.mxu1  ;;  %v19129_v21 = vpop.f32.mrf.mxu0  ;;  %v12684_v1 = vld [vmem:[%s19668_s5 + $0x62c] sm:$0xf0]  ;;  %v11721_v17 = vld [vmem:[%s19668_s5 + $0x630] sm:$0xf0] }
 0x8df   :  { %v11720_v2 = vor.u32 %v12684_v1, %v11719_v50  ;;  %v11881_v50 = vld [vmem:[%s19668_s5 + $0x770] sm:$0xf0]  ;;  %v11796_v1 = vor.u32 %v12699_v49, %v11793_v54  ;;  %v11951_v49 = vld [vmem:[%s19668_s5 + $0x7e8] sm:$0xf]  ;;  %v12741_v54 = vld [vmem:[%s19668_s5 + $0x7f4] sm:$0xf0] }
 0x8e0   :  { %7833 = vmatpush.bf16.msrb.mxu3 %v11568_v39  ;;  %7861 = vmatpush.bf16.msrb.mxu2 %v11572_v32  ;;  %v12709_v39 = vld [vmem:[%s19668_s5 + $0x6f4] sm:$0xf0]  ;;  %v11825_v32 = vld [vmem:[%s19668_s5 + $0x6f8] sm:$0xf0] }
 0x8e1   :  { %v11824_v31 = vor.u32 %v12709_v39, %v11823_v24  ;;  %v11828_v28 = vor.u32 %v12707_v7, %v11825_v32  ;;  %v11759_v24 = vld [vmem:[%s19668_s5 + $0x668] sm:$0xf]  ;;  %v12691_v39 = vld [vmem:[%s19668_s5 + $0x66c] sm:$0xf] }
 0x8e2   :  { %8272 = vmatpush.bf16.msra.mxu1 %v11784_v10  ;;  %8300 = vmatpush.bf16.msra.mxu0 %v11788_v13  ;;  %v11724_v10 = vor.u32 %v12682_v20, %v11721_v17  ;;  %v12678_v13 = vld [vmem:[%s19668_s5 + $0x604] sm:$0xf]  ;;  %v12697_v20 = vld [vmem:[%s19668_s5 + $0x694] sm:$0xf0]  ;;  %v11880_v17 = vor.u32 %v12724_v27, %v11879_v18  ;;  %v11727_v18 = vld [vmem:[%s19668_s5 + $0x628] sm:$0xf] }
 0x8e3   :  { %v11708_v23 = vor.u32 %v12678_v13, %v11705_v14  ;;  %v11865_v13 = vld [vmem:[%s19668_s5 + $0x750] sm:$0xf0]  ;;  %v12685_v27 = vld [vmem:[%s19668_s5 + $0x634] sm:$0xf0] }
 0x8e4   :  { %7834 = vmatpush.bf16.msrb.mxu3 %v11552_v36  ;;  %7862 = vmatpush.bf16.msrb.mxu2 %v11556_v51  ;;  %v12730_v36 = vld [vmem:[%s19668_s5 + $0x7a4] sm:$0xf]  ;;  %v11807_v51 = vld [vmem:[%s19668_s5 + $0x6c8] sm:$0xf] }
 0x8e5   :  { %v11808_v43 = vor.u32 %v12705_v25, %v11807_v51  ;;  %v11743_v51 = vld [vmem:[%s19668_s5 + $0x648] sm:$0xf]  ;;  %v12689_v25 = vld [vmem:[%s19668_s5 + $0x654] sm:$0xf0] }
 0x8e6   :  { %8273 = vmatpush.bf16.msra.mxu1 %v11768_v37  ;;  %8301 = vmatpush.bf16.msra.mxu0 %v11772_v19  ;;  %v19191_v61 = vpop.f32.mrf.mxu1  ;;  %v19193_v9 = vpop.f32.mrf.mxu0  ;;  %v11932_v37 = vor.u32 %v12734_v4, %v11929_v8  ;;  %v12732_v19 = vld [vmem:[%s19668_s5 + $0x7ac] sm:$0xf0] }
 0x8e7   :  { %v11912_v45 = vor.u32 %v12732_v19, %v11911_v3  ;;  %v12720_v4 = vld [vmem:[%s19668_s5 + $0x74c] sm:$0xf0] }
 0x8e8   :  { %7835 = vmatpush.bf16.msrb.mxu3 %v11536_v6  ;;  %7863 = vmatpush.bf16.msrb.mxu2 %v11540_v40  ;;  %v11897_v6 = vld [vmem:[%s19668_s5 + $0x790] sm:$0xf0]  ;;  %v12716_v3 = vld [vmem:[%s19668_s5 + $0x72c] sm:$0xf0] }
 0x8e9   :  { %v11900_v46 = vor.u32 %v12726_v59, %v11897_v6  ;;  %v12712_v59 = vld [vmem:[%s19668_s5 + $0x70c] sm:$0xf0]  ;;  %v12710_v6 = vld [vmem:[%s19668_s5 + $0x704] sm:$0xf] }
 0x8ea   :  { %8274 = vmatpush.bf16.msra.mxu1 %v11752_v35  ;;  %8302 = vmatpush.bf16.msra.mxu0 %v11756_v48  ;;  %v12703_v35 = vld [vmem:[%s19668_s5 + $0x6cc] sm:$0xf]  ;;  %v12728_v48 = vld [vmem:[%s19668_s5 + $0x78c] sm:$0xf0] }
 0x8eb   :  { %v11812_v57 = vor.u32 %v12703_v35, %v11809_v12  ;;  %v11896_v40 = vor.u32 %v12728_v48, %v11895_v30  ;;  %v12687_v35 = vld [vmem:[%s19668_s5 + $0x64c] sm:$0xf]  ;;  %v11745_v12 = vld [vmem:[%s19668_s5 + $0x658] sm:$0xf0] }
 0x8ec   :  { %7836 = vmatpush.bf16.msrb.mxu3 %v11520_v11  ;;  %7864 = vmatpush.bf16.msrb.mxu2 %v11524_v63  ;;  %v11775_v11 = vld [vmem:[%s19668_s5 + $0x688] sm:$0xf]  ;;  %v12695_v63 = vld [vmem:[%s19668_s5 + $0x68c] sm:$0xf] }
 0x8ed   :  { %v11776_v34 = vor.u32 %v12697_v20, %v11775_v11  ;;  %v11952_v11 = vor.u32 %v12741_v54, %v11951_v49 }
 0x8ee   :  { %8275 = vmatpush.bf16.msra.mxu1 %v11736_v56  ;;  %8303 = vmatpush.bf16.msra.mxu0 %v11740_v55  ;;  %v19247_v53 = vpop.f32.mrf.mxu1  ;;  %v19249_v56 = vpop.f32.mrf.mxu0  ;;  %v11792_v55 = vor.u32 %v12701_v5, %v11791_v47 }
 0x8ef   :  { %7837 = vmatmul.bf16.vlgmr.msrb.gmra.mxu3 %v18541_v52  ;;  %7865 = vmatmul.bf16.vlgmr.msrb.gmra.mxu2 %v18541_v52  ;;  %v11916_v52 = vor.u32 %v12730_v36, %v11913_v29  ;;  %v12714_v36 = vld [vmem:[%s19668_s5 + $0x724] sm:$0xf]  ;;  %v11849_v29 = vld [vmem:[%s19668_s5 + $0x730] sm:$0xf0] }
 0x8f0   :  { %8284 = vmatpush.bf16.msra.mxu3 %v11944_v33  ;;  %8312 = vmatpush.bf16.msra.mxu2 %v11948_v60  ;;  %v11777_v33 = vld [vmem:[%s19668_s5 + $0x698] sm:$0xf0] }
 0x8f1   :  { %v11780_v14 = vor.u32 %v12695_v63, %v11777_v33  ;;  %v11935_v63 = vld [vmem:[%s19668_s5 + $0x7c8] sm:$0xf]  ;;  %v12737_v33 = vld [vmem:[%s19668_s5 + $0x7d4] sm:$0xf0] }
 0x8f2   :  { %8276 = vmatpush.bf16.msra.mxu1 %v11720_v2  ;;  %8304 = vmatpush.bf16.msra.mxu0 %v11724_v10  ;;  %v6847_v0 = vpop.f32.mrf.mxu3  ;;  %v6875_v60 = vpop.f32.mrf.mxu2  ;;  %v11884_v2 = vor.u32 %v12722_v41, %v11881_v50  ;;  %v12683_v41 = vld [vmem:[%s19668_s5 + $0x62c] sm:$0xf]  ;;  %v11729_v50 = vld [vmem:[%s19668_s5 + $0x638] sm:$0xf0] }
 0x8f3   :  { %v6848_v8 = vadd.f32 %v6847_v0, %v19069_v15  ;;  %v6876_v10 = vadd.f32 %v6875_v60, %v19071_v22  ;;  %v12693_v15 = vld [vmem:[%s19668_s5 + $0x674] sm:$0xf0]  ;;  %v11864_v22 = vor.u32 %v12720_v4, %v11863_v26  ;;  %v12735_v0 = vld [vmem:[%s19668_s5 + $0x7cc] sm:$0xf]  ;;  %v11732_v60 = vor.u32 %v12683_v41, %v11729_v50  ;;  %v11711_v26 = vld [vmem:[%s19668_s5 + $0x608] sm:$0xf] }
 0x8f4   :  { %8285 = vmatpush.bf16.msra.mxu3 %v11928_v58  ;;  %8313 = vmatpush.bf16.msra.mxu2 %v11932_v37  ;;  %v11761_v58 = vld [vmem:[%s19668_s5 + $0x678] sm:$0xf0]  ;;  %v11868_v37 = vor.u32 %v12718_v16, %v11865_v13  ;;  %v12681_v4 = vld [vmem:[%s19668_s5 + $0x614] sm:$0xf0] }
 0x8f6   :  { %8277 = vmatpush.bf16.msra.mxu1 %v11704_v44  ;;  %8305 = vmatpush.bf16.msra.mxu0 %v11708_v23  ;;  %v7265_v7 = vpop.f32.mrf.mxu1  ;;  %v7293_v32 = vpop.f32.mrf.mxu0  ;;  %v11847_v44 = vld [vmem:[%s19668_s5 + $0x720] sm:$0xf] }
 0x8f7   :  { %v19307_v19 = vadd.f32 %v7265_v7, %v6848_v8  ;;  %v19309_v23 = vadd.f32 %v7293_v32, %v6876_v10  ;;  %v12679_v8 = vld [vmem:[%s19668_s5 + $0x60c] sm:$0xf]  ;;  %v11713_v10 = vld [vmem:[%s19668_s5 + $0x618] sm:$0xf0] }
 0x8f8   :  { %8286 = vmatpush.bf16.msra.mxu3 %v11912_v45  ;;  %8314 = vmatpush.bf16.msra.mxu2 %v11916_v52  ;;  %v11848_v45 = vor.u32 %v12716_v3, %v11847_v44  ;;  %v11831_v52 = vld [vmem:[%s19668_s5 + $0x700] sm:$0xf]  ;;  %v11716_v7 = vor.u32 %v12679_v8, %v11713_v10  ;;  %v12731_v32 = vld [vmem:[%s19668_s5 + $0x7ac] sm:$0xf]  ;;  %v12729_v3 = vld [vmem:[%s19668_s5 + $0x794] sm:$0xf0] }
 0x8f9   :  { %8278 = vmatmul.bf16.vlgmr.msra.gmra.mxu1 %v18625_v62  ;;  %8306 = vmatmul.bf16.vlgmr.msra.gmra.mxu0 %v18625_v62 }
 0x8fa   :  { %8326 = vmatpush.bf16.msrb.mxu1 %v11824_v31  ;;  %8354 = vmatpush.bf16.msrb.mxu0 %v11828_v28  ;;  %v11760_v31 = vor.u32 %v12693_v15, %v11759_v24  ;;  %v11764_v28 = vor.u32 %v12691_v39, %v11761_v58  ;;  %v6849_v30 = vpop.f32.mrf.mxu3  ;;  %v6877_v48 = vpop.f32.mrf.mxu2  ;;  %v11712_v24 = vor.u32 %v12681_v4, %v11711_v26  ;;  %v11919_v15 = vld [vmem:[%s19668_s5 + $0x7a8] sm:$0xf] }
 0x8fb   :  { %v19342_v47 = vadd.f32 %v6849_v30, %v19127_v42  ;;  %v19345_v5 = vadd.f32 %v6877_v48, %v19129_v21  ;;  %v11748_v42 = vor.u32 %v12687_v35, %v11745_v12  ;;  %v11953_v21 = vld [vmem:[%s19668_s5 + $0x7f8] sm:$0xf0]  ;;  %v11887_v35 = vld [vmem:[%s19668_s5 + $0x768] sm:$0xf]  ;;  %v12725_v12 = vld [vmem:[%s19668_s5 + $0x774] sm:$0xf0] }
 0x8fc   :  { %8287 = vmatpush.bf16.msra.mxu3 %v11896_v40  ;;  %8315 = vmatpush.bf16.msra.mxu2 %v11900_v46  ;;  %v11744_v40 = vor.u32 %v12689_v25, %v11743_v51  ;;  %v12739_v46 = vld [vmem:[%s19668_s5 + $0x7ec] sm:$0xf] }
 0x8fd   :  { %v11956_v20 = vor.u32 %v12739_v46, %v11953_v21  ;;  %v11855_v21 = vld [vmem:[%s19668_s5 + $0x728] sm:$0xf] }
 0x8fe   :  { %8327 = vmatpush.bf16.msrb.mxu1 %v11808_v43  ;;  %8355 = vmatpush.bf16.msrb.mxu0 %v11812_v57  ;;  %v11852_v43 = vor.u32 %v12714_v36, %v11849_v29  ;;  %v11833_v57 = vld [vmem:[%s19668_s5 + $0x710] sm:$0xf0]  ;;  %v11905_v36 = vld [vmem:[%s19668_s5 + $0x798] sm:$0xf0]  ;;  %v19423_v29 = vpop.f32.mrf.mxu1 }
 0x900   :  { %8288 = vmatpush.bf16.msra.mxu3 %v11880_v17  ;;  %8316 = vmatpush.bf16.msra.mxu2 %v11884_v2  ;;  %v11728_v17 = vor.u32 %v12685_v27, %v11727_v18  ;;  %v11937_v2 = vld [vmem:[%s19668_s5 + $0x7d8] sm:$0xf0]  ;;  %v12717_v18 = vld [vmem:[%s19668_s5 + $0x734] sm:$0xf0] }
 0x902   :  { %8328 = vmatpush.bf16.msrb.mxu1 %v11792_v55  ;;  %8356 = vmatpush.bf16.msrb.mxu0 %v11796_v1  ;;  %v11832_v55 = vor.u32 %v12712_v59, %v11831_v52  ;;  %v11836_v1 = vor.u32 %v12710_v6, %v11833_v57  ;;  %v6903_v16 = vpop.f32.mrf.mxu3  ;;  %v6931_v13 = vpop.f32.mrf.mxu2  ;;  %v11888_v59 = vor.u32 %v12725_v12, %v11887_v35  ;;  %v11871_v57 = vld [vmem:[%s19668_s5 + $0x748] sm:$0xf]  ;;  %v12745_v35 = vld [vmem:[%s19671_s7 + $0x18] sm:$0xff] }
 0x903   :  { %v6904_v39 = vadd.f32 %v6903_v16, %v19191_v61  ;;  %v6932_v58 = vadd.f32 %v6931_v13, %v19193_v9  ;;  %v11903_v9 = vld [vmem:[%s19668_s5 + $0x788] sm:$0xf]  ;;  %v19433_v52 = vpop.f32.mrf.mxu0  ;;  %v12753_v12 = vld [vmem:[%s19671_s7 + $0x58] sm:$0xff] }
 0x904   :  { %8289 = vmatpush.bf16.msra.mxu3 %v11864_v22  ;;  %8317 = vmatpush.bf16.msra.mxu2 %v11868_v37  ;;  %v12733_v22 = vld [vmem:[%s19668_s5 + $0x7b4] sm:$0xf0]  ;;  %v11921_v37 = vld [vmem:[%s19668_s5 + $0x7b8] sm:$0xf0] }
 0x905   :  { %v11920_v44 = vor.u32 %v12733_v22, %v11919_v15  ;;  %v11924_v61 = vor.u32 %v12731_v32, %v11921_v37  ;;  %v12757_v37 = vld [vmem:[%s19671_s7 + $0x78] sm:$0xff] }
 0x906   :  { %8329 = vmatpush.bf16.msrb.mxu1 %v11776_v34  ;;  %8357 = vmatpush.bf16.msrb.mxu0 %v11780_v14  ;;  %v11936_v34 = vor.u32 %v12737_v33, %v11935_v63  ;;  %v11940_v14 = vor.u32 %v12735_v0, %v11937_v2  ;;  %v11856_v63 = vor.u32 %v12717_v18, %v11855_v21  ;;  %v11839_v33 = vld [vmem:[%s19668_s5 + $0x708] sm:$0xf]  ;;  %v12713_v0 = vld [vmem:[%s19668_s5 + $0x714] sm:$0xf0]  ;;  %v12742_v21 = vld [vmem:[%s19671_s7] sm:$0xff] }
 0x907   :  { %v11840_v2 = vor.u32 %v12713_v0, %v11839_v33  ;;  %v12750_v18 = vld [vmem:[%s19671_s7 + $0x40] sm:$0xff] }
 0x908   :  { %8290 = vmatpush.bf16.msra.mxu3 %v11848_v45  ;;  %8318 = vmatpush.bf16.msra.mxu2 %v11852_v43  ;;  %v11889_v43 = vld [vmem:[%s19668_s5 + $0x778] sm:$0xf0] }
 0x90a   :  { %8330 = vmatpush.bf16.msrb.mxu1 %v11760_v31  ;;  %8358 = vmatpush.bf16.msrb.mxu0 %v11764_v28  ;;  %v12727_v31 = vld [vmem:[%s19668_s5 + $0x78c] sm:$0xf]  ;;  %v11904_v28 = vor.u32 %v12729_v3, %v11903_v9  ;;  %v6905_v51 = vpop.f32.mrf.mxu3  ;;  %v6933_v25 = vpop.f32.mrf.mxu2 }
 0x90b   :  { %v11908_v45 = vor.u32 %v12727_v31, %v11905_v36  ;;  %v6906_v30 = vadd.f32 %v6905_v51, %v19247_v53  ;;  %v6934_v48 = vadd.f32 %v6933_v25, %v19249_v56  ;;  %v12721_v53 = vld [vmem:[%s19668_s5 + $0x754] sm:$0xf0]  ;;  %v12719_v56 = vld [vmem:[%s19668_s5 + $0x74c] sm:$0xf]  ;;  %v12746_v25 = vld [vmem:[%s19671_s7 + $0x20] sm:$0xff] }
 0x90c   :  { %8291 = vmatpush.bf16.msra.mxu3 %v11832_v55  ;;  %8319 = vmatpush.bf16.msra.mxu2 %v11836_v1  ;;  %v11872_v49 = vor.u32 %v12721_v53, %v11871_v57  ;;  %v12715_v1 = vld [vmem:[%s19668_s5 + $0x72c] sm:$0xf] }
 0x90d   :  { %v12747_v9 = vld [vmem:[%s19671_s7 + $0x28] sm:$0xff] }
 0x90e   :  { %8331 = vmatpush.bf16.msrb.mxu1 %v11744_v40  ;;  %8359 = vmatpush.bf16.msrb.mxu0 %v11748_v42  ;;  %v11873_v40 = vld [vmem:[%s19668_s5 + $0x758] sm:$0xf0]  ;;  %v12755_v3 = vld [vmem:[%s19671_s7 + $0x68] sm:$0xff] }
 0x90f   :  { %8292 = vmatmul.bf16.vlgmr.msra.gmra.mxu3 %v18795_v38  ;;  %8320 = vmatmul.bf16.vlgmr.msra.gmra.mxu2 %v18795_v38  ;;  %v11876_v42 = vor.u32 %v12719_v56, %v11873_v40  ;;  %v12743_v57 = vld [vmem:[%s19671_s7 + $0x8] sm:$0xff]  ;;  %v8482_v40 = vld [vmem:[%s19671_s7 + $0xf8] sm:$0x3] }
 0x910   :  { %8340 = vmatpush.bf16.msrb.mxu3 %v11952_v11  ;;  %8368 = vmatpush.bf16.msrb.mxu2 %v11956_v20  ;;  %v11857_v11 = vld [vmem:[%s19668_s5 + $0x738] sm:$0xf0]  ;;  %v12751_v53 = vld [vmem:[%s19671_s7 + $0x48] sm:$0xff] }
 0x912   :  { %8332 = vmatpush.bf16.msrb.mxu1 %v11728_v17  ;;  %8360 = vmatpush.bf16.msrb.mxu0 %v11732_v60  ;;  %v7279_v54 = vpop.f32.mrf.mxu3  ;;  %v7307_v55 = vpop.f32.mrf.mxu2  ;;  %v12711_v60 = vld [vmem:[%s19668_s5 + $0x70c] sm:$0xf] }
 0x913   :  { %v19462_v27 = vadd.f32 %v7279_v54, %v19307_v19  ;;  %v19471_v20 = vadd.f32 %v7307_v55, %v19309_v23  ;;  %v11860_v19 = vor.u32 %v12715_v1, %v11857_v11  ;;  %v11841_v23 = vld [vmem:[%s19668_s5 + $0x718] sm:$0xf0]  ;;  %v8612_v54 = vunpack.c.l.b16 %v8482_v40  ;;  %v12764_v1 = vld [vmem:[%s19671_s7 + $0xb0] sm:$0xff]  ;;  %v12758_v40 = vld [vmem:[%s19671_s7 + $0x80] sm:$0xff] }
 0x914   :  { %8341 = vmatpush.bf16.msrb.mxu3 %v11936_v34  ;;  %8369 = vmatpush.bf16.msrb.mxu2 %v11940_v14  ;;  %v11844_v4 = vor.u32 %v12711_v60, %v11841_v23  ;;  %v12772_v11 = vld [vmem:[%s19671_s7 + $0xf0] sm:$0xff]  ;;  %v12762_v23 = vld [vmem:[%s19671_s7 + $0xa0] sm:$0xff] }
 0x915   :  { %v8644_v55 = vpack.c.b16 %v8612_v54, %v8612_v54  ;;  %v12766_v54 = vld [vmem:[%s19671_s7 + $0xc0] sm:$0xff] }
 0x916   :  { %8333 = vmatpush.bf16.msrb.mxu1 %v11712_v24  ;;  %8361 = vmatpush.bf16.msrb.mxu0 %v11716_v7  ;;  %v7321_v46 = vpop.f32.mrf.mxu1  ;;  %v7349_v50 = vpop.f32.mrf.mxu0 }
 0x917   :  { %v7322_v41 = vadd.f32 %v7321_v46, %v6904_v39  ;;  %v7350_v17 = vadd.f32 %v7349_v50, %v6932_v58  ;;  %v8682_v50 = vsel %vm8680_vm2, %v8644_v55, 0 }
 0x918   :  { %8342 = vmatpush.bf16.msrb.mxu3 %v11920_v44  ;;  %8370 = vmatpush.bf16.msrb.mxu2 %v11924_v61  ;;  %v12748_v44 = vld [vmem:[%s19671_s7 + $0x30] sm:$0xff] }
 0x919   :  { %8334 = vmatmul.bf16.vlgmr.msrb.gmra.mxu1 %v18625_v62  ;;  %8362 = vmatmul.bf16.vlgmr.msrb.gmra.mxu0 %v18625_v62  ;;  %v12723_v62 = vld [vmem:[%s19668_s5 + $0x76c] sm:$0xf]  ;;  %v12756_v61 = vld [vmem:[%s19671_s7 + $0x70] sm:$0xff] }
 0x91a   :  { %v11892_v6 = vor.u32 %v12723_v62, %v11889_v43  ;;  %v19487_v16 = vpop.f32.mrf.mxu3  ;;  %v19489_v13 = vpop.f32.mrf.mxu2 }
 0x91c   :  { %8343 = vmatpush.bf16.msrb.mxu3 %v11904_v28  ;;  %8371 = vmatpush.bf16.msrb.mxu2 %v11908_v45  ;;  %v12754_v45 = vld [vmem:[%s19671_s7 + $0x60] sm:$0xff] }
 0x91e   :  { %v7323_v26 = vpop.f32.mrf.mxu1  ;;  %v7351_v10 = vpop.f32.mrf.mxu0 }
 0x91f   :  { %v7324_v8 = vadd.f32 %v7323_v26, %v6906_v30  ;;  %v7352_v34 = vadd.f32 %v7351_v10, %v6934_v48  ;;  %v12761_v10 = vld [vmem:[%s19671_s7 + $0x98] sm:$0xff] }
 0x920   :  { %8344 = vmatpush.bf16.msrb.mxu3 %v11888_v59  ;;  %8372 = vmatpush.bf16.msrb.mxu2 %v11892_v6  ;;  %v12744_v59 = vld [vmem:[%s19671_s7 + $0x10] sm:$0xff] }
 0x921   :  { %v12752_v6 = vld [vmem:[%s19671_s7 + $0x50] sm:$0xff] }
 0x924   :  { %8345 = vmatpush.bf16.msrb.mxu3 %v11872_v49  ;;  %8373 = vmatpush.bf16.msrb.mxu2 %v11876_v42 }
 0x928   :  { %8346 = vmatpush.bf16.msrb.mxu3 %v11856_v63  ;;  %8374 = vmatpush.bf16.msrb.mxu2 %v11860_v19  ;;  %v12763_v63 = vld [vmem:[%s19671_s7 + $0xa8] sm:$0xff] }
 0x929   :  { %v12771_v19 = vld [vmem:[%s19671_s7 + $0xe8] sm:$0xff] }
 0x92c   :  { %8347 = vmatpush.bf16.msrb.mxu3 %v11840_v2  ;;  %8375 = vmatpush.bf16.msrb.mxu2 %v11844_v4  ;;  %v12770_v2 = vld [vmem:[%s19671_s7 + $0xe0] sm:$0xff] }
 0x92f   :  { %8348 = vmatmul.bf16.vlgmr.msrb.gmra.mxu3 %v18795_v38  ;;  %8376 = vmatmul.bf16.vlgmr.msrb.gmra.mxu2 %v18795_v38  ;;  %v12749_v38 = vld [vmem:[%s19671_s7 + $0x38] sm:$0xff] }
 0x930   :  { %8684 = vmatpush.bf16.msra.mxu1 %v12749_v38  ;;  %8698 = vmatpush.bf16.msra.mxu3 %v12757_v37  ;;  %v19603_v38 = vld [vmem:[%s19672_s6] sm:$0xf] }
 0x931   :  { %8726 = vmatpush.bf16.msra.mxu2 %v8682_v50 }
 0x932   :  { %v7335_v14 = vpop.f32.mrf.mxu3  ;;  %v7363_v15 = vpop.f32.mrf.mxu2 }
 0x933   :  { %v19491_v24 = vadd.f32 %v7335_v14, %v7322_v41  ;;  %v19493_v22 = vadd.f32 %v7363_v15, %v7350_v17  ;;  %v12765_v41 = vld [vmem:[%s19671_s7 + $0xb8] sm:$0xff] }
 0x934   :  { %8685 = vmatpush.bf16.msra.mxu1 %v12748_v44  ;;  %8699 = vmatpush.bf16.msra.mxu3 %v12756_v61  ;;  %v12760_v44 = vld [vmem:[%s19671_s7 + $0x90] sm:$0xff] }
 0x935   :  { %8712 = vmatpush.bf16.msra.mxu0 %v12765_v41  ;;  %8727 = vmatpush.bf16.msra.mxu2 %v12772_v11  ;;  %v12768_v61 = vld [vmem:[%s19671_s7 + $0xd0] sm:$0xff] }
 0x936   :  { %v7768_v31 = vpop.f32.mrf.mxu1  ;;  %v19517_v36 = vpop.f32.mrf.mxu0 }
 0x938   :  { %8686 = vmatpush.bf16.msra.mxu1 %v12747_v9  ;;  %8700 = vmatpush.bf16.msra.mxu3 %v12755_v3  ;;  %v7268_v9 = vadd.f32 %v19423_v29, %v19342_v47 }
 0x939   :  { %8713 = vmatpush.bf16.msra.mxu0 %v12764_v1  ;;  %8728 = vmatpush.bf16.msra.mxu2 %v12771_v19 }
 0x93a   :  { %v7337_v39 = vpop.f32.mrf.mxu3  ;;  %v7365_v7 = vpop.f32.mrf.mxu2 }
 0x93b   :  { %v19495_v58 = vadd.f32 %v7337_v39, %v7324_v8  ;;  %v19497_v32 = vadd.f32 %v7365_v7, %v7352_v34  ;;  %v12769_v34 = vld [vmem:[%s19671_s7 + $0xd8] sm:$0xff] }
 0x93c   :  { %8687 = vmatpush.bf16.msra.mxu1 %v12746_v25  ;;  %8701 = vmatpush.bf16.msra.mxu3 %v12754_v45  ;;  %v7282_v25 = vadd.f32 %v19487_v16, %v7268_v9 }
 0x93d   :  { %8714 = vmatpush.bf16.msra.mxu0 %v12763_v63  ;;  %8729 = vmatpush.bf16.msra.mxu2 %v12770_v2 }
 0x93e   :  { %v19531_v30 = vpop.f32.mrf.mxu1  ;;  %v19533_v48 = vpop.f32.mrf.mxu0 }
 0x940   :  { %8688 = vmatpush.bf16.msra.mxu1 %v12745_v35  ;;  %8702 = vmatpush.bf16.msra.mxu3 %v12753_v12  ;;  %v8392_v35 = vperm.slane %v19603_v38, 0  ;;  %v8393_v12 = vperm.slane %v19603_v38, 1 }
 0x941   :  { %8715 = vmatpush.bf16.msra.mxu0 %v12762_v23  ;;  %8730 = vmatpush.bf16.msra.mxu2 %v12769_v34 }
 0x944   :  { %8689 = vmatpush.bf16.msra.mxu1 %v12744_v59  ;;  %8703 = vmatpush.bf16.msra.mxu3 %v12752_v6 }
 0x945   :  { %8716 = vmatpush.bf16.msra.mxu0 %v12761_v10  ;;  %8731 = vmatpush.bf16.msra.mxu2 %v12768_v61  ;;  %v8395_v61 = vperm.slane %v19603_v38, 3 }
 0x948   :  { %8690 = vmatpush.bf16.msra.mxu1 %v12743_v57  ;;  %8704 = vmatpush.bf16.msra.mxu3 %v12751_v53 }
 0x949   :  { %8717 = vmatpush.bf16.msra.mxu0 %v12760_v44  ;;  %v8394_v44 = vperm.slane %v19603_v38, 2 }
 0x94c   :  { %8691 = vmatpush.bf16.msra.mxu1 %v12742_v21  ;;  %8705 = vmatpush.bf16.msra.mxu3 %v12750_v18 }
 0x952   :  { %v7782_v28 = vpop.f32.mrf.mxu3  ;;  %v7810_v51 = vpop.f32.mrf.mxu2 }
 0x953   :  { %v7783_v14 = vadd.f32 %v7782_v28, %v7768_v31  ;;  %v7811_v39 = vadd.f32 %v7810_v51, %v19517_v36  ;;  %v7296_v36 = vadd.f32 %v19433_v52, %v19345_v5  ;;  %v12759_v5 = vld [vmem:[%s19671_s7 + $0x88] sm:$0xff] }
 0x954   :  { %v12767_v52 = vld [vmem:[%s19671_s7 + $0xc8] sm:$0xff]  ;;  %8718 = vmatpush.bf16.msra.mxu0 %v12759_v5 }
 0x955   :  { %v7871_v3 = vadd.f32 %v7783_v14, %v19462_v27  ;;  %v7872_v28 = vadd.f32 %v7811_v39, %v19471_v20  ;;  %v7310_v47 = vadd.f32 %v19489_v13, %v7296_v36  ;;  %8732 = vmatpush.bf16.msra.mxu2 %v12767_v52 }
 0x956   :  { %v19547_v56 = vpop.f32.mrf.mxu1  ;;  %v19552_v49 = vpop.f32.mrf.mxu0 }
 0x958   :  { %8719 = vmatpush.bf16.msra.mxu0 %v12758_v40 }
 0x959   :  { %8733 = vmatpush.bf16.msra.mxu2 %v12766_v54 }
 0x95a   :  { %v7784_v62 = vpop.f32.mrf.mxu3  ;;  %v7812_v43 = vpop.f32.mrf.mxu2 }
 0x95b   :  { %v7785_v31 = vadd.f32 %v7784_v62, %v19531_v30  ;;  %v7813_v51 = vadd.f32 %v7812_v43, %v19533_v48 }
 0x95d   :  { %v7875_v20 = vadd.f32 %v7785_v31, %v7282_v25  ;;  %v7876_v43 = vadd.f32 %v7813_v51, %v7310_v47 }
 0x95e   :  { %v19573_v17 = vpop.f32.mrf.mxu1  ;;  %v19581_v33 = vpop.f32.mrf.mxu0 }
 0x972   :  { %v19554_v46 = vpop.f32.mrf.mxu3  ;;  %v19556_v42 = vpop.f32.mrf.mxu2 }
 0x976   :  { %v8279_v26 = vpop.f32.mrf.mxu1  ;;  %v8307_v4 = vpop.f32.mrf.mxu0 }
 0x97a   :  { %v19583_v0 = vpop.f32.mrf.mxu3  ;;  %v19585_v60 = vpop.f32.mrf.mxu2 }
 0x97e   :  { %v8281_v29 = vpop.f32.mrf.mxu1  ;;  %v8309_v16 = vpop.f32.mrf.mxu0 }
 0x992   :  { %v8293_v8 = vpop.f32.mrf.mxu3  ;;  %v8321_v15 = vpop.f32.mrf.mxu2 }
 0x993   :  { %v8294_v7 = vadd.f32 %v8293_v8, %v8279_v26  ;;  %v8322_v37 = vadd.f32 %v8321_v15, %v8307_v4  ;;  %v7839_v26 = vadd.f32 %v19554_v46, %v19547_v56  ;;  %v7867_v8 = vadd.f32 %v19556_v42, %v19552_v49 }
 0x994   :  { %v7841_v15 = vadd.f32 %v19583_v0, %v19573_v17 }
 0x995   :  { %v8382_v45 = vadd.f32 %v8294_v7, %v7871_v3  ;;  %v8383_v27 = vadd.f32 %v8322_v37, %v7872_v28  ;;  %v7873_v14 = vadd.f32 %v7839_v26, %v19491_v24  ;;  %v7874_v39 = vadd.f32 %v7867_v8, %v19493_v22 }
 0x996   :  { %v8335_v19 = vpop.f32.mrf.mxu1  ;;  %v8363_v23 = vpop.f32.mrf.mxu0  ;;  %v7869_v7 = vadd.f32 %v19585_v60, %v19581_v33  ;;  %v7877_v42 = vadd.f32 %v7841_v15, %v19495_v58 }
 0x997   :  { %v8400_v13 = vadd.f32 %v8392_v35, %v8382_v45  ;;  %v8401_v57 = vadd.f32 %v8393_v12, %v8383_v27 }
 0x998   :  { %v7878_v17 = vadd.f32 %v7869_v7, %v19497_v32  ;;  %v12773_v32 = vld [vmem:[%s19670_s8] ss:$0 sm:$0xff] }
 0x999   :  { %v8408_v55 = vmax.f32 %v8400_v13, 0.0  ;;  %v8409_v50 = vmax.f32 %v8401_v57, 0.0 }
 0x99a   :  { %v8295_v30 = vpop.f32.mrf.mxu3  ;;  %v8323_v62 = vpop.f32.mrf.mxu2 }
 0x99b   :  { %v8296_v48 = vadd.f32 %v8295_v30, %v8281_v29  ;;  %v8324_v59 = vadd.f32 %v8323_v62, %v8309_v16 }
 0x99d   :  { %v8386_v6 = vadd.f32 %v8296_v48, %v7875_v20  ;;  %v8387_v53 = vadd.f32 %v8324_v59, %v7876_v43 }
 0x99e   :  { %v8337_v56 = vpop.f32.mrf.mxu1  ;;  %v8365_v9 = vpop.f32.mrf.mxu0 }
 0x99f   :  { %v8404_v21 = vadd.f32 %v8392_v35, %v8386_v6  ;;  %v8405_v18 = vadd.f32 %v8393_v12, %v8387_v53 }
 0x9a1   :  { %v8412_v41 = vmax.f32 %v8404_v21, 0.0  ;;  %v8413_v1 = vmax.f32 %v8405_v18, 0.0 }
 0x9a3   :  { %v8416_v11 = vpack.c.bf16 %v8412_v41, %v8408_v55  ;;  %v8417_v63 = vpack.c.bf16 %v8413_v1, %v8409_v50 }
 0x9a5   :  { %8692 = vmatmul.bf16.vlgmr.msra.gmra.mxu1 %v8416_v11  ;;  %8706 = vmatmul.bf16.vlgmr.msra.gmra.mxu3 %v8417_v63 }
 0x9b2   :  { %v8349_v2 = vpop.f32.mrf.mxu3  ;;  %v8377_v4 = vpop.f32.mrf.mxu2 }
 0x9b3   :  { %v8350_v10 = vadd.f32 %v8349_v2, %v8335_v19  ;;  %v8378_v34 = vadd.f32 %v8377_v4, %v8363_v23 }
 0x9b5   :  { %v8384_v37 = vadd.f32 %v8350_v10, %v7873_v14  ;;  %v8385_v46 = vadd.f32 %v8378_v34, %v7874_v39 }
 0x9b7   :  { %v8402_v22 = vadd.f32 %v8394_v44, %v8384_v37  ;;  %v8403_v36 = vadd.f32 %v8395_v61, %v8385_v46 }
 0x9b9   :  { %v8410_v51 = vmax.f32 %v8402_v22, 0.0  ;;  %v8411_v45 = vmax.f32 %v8403_v36, 0.0 }
 0x9ba   :  { %v8351_v49 = vpop.f32.mrf.mxu3  ;;  %v8379_v3 = vpop.f32.mrf.mxu2 }
 0x9bb   :  { %v8352_v24 = vadd.f32 %v8351_v49, %v8337_v56  ;;  %v8380_v0 = vadd.f32 %v8379_v3, %v8365_v9 }
 0x9bd   :  { %v8388_v31 = vadd.f32 %v8352_v24, %v7877_v42  ;;  %v8389_v33 = vadd.f32 %v8380_v0, %v7878_v17 }
 0x9bf   :  { %v8406_v60 = vadd.f32 %v8394_v44, %v8388_v31  ;;  %v8407_v28 = vadd.f32 %v8395_v61, %v8389_v33 }
 0x9c1   :  { %v8414_v25 = vmax.f32 %v8406_v60, 0.0  ;;  %v8415_v35 = vmax.f32 %v8407_v28, 0.0 }
 0x9c3   :  { %v8418_v38 = vpack.c.bf16 %v8414_v25, %v8410_v51  ;;  %v8419_v47 = vpack.c.bf16 %v8415_v35, %v8411_v45 }
 0x9c5   :  { %8720 = vmatmul.bf16.vlgmr.msra.gmra.mxu0 %v8418_v38  ;;  %12081 = vmatmul.msk.bf16.vlgmr.msra.gmra.mxu2 %vm8676_vm3, %v8419_v47 }
 0xa22   :  { %v8693_v58 = vpop.f32.mrf.mxu1 }
 0xa23   :  { %v8694_v12 = vadd.f32 %v12773_v32, %v8693_v58 }
 0xa28   :  { %v8707_v29 = vpop.f32.mrf.mxu3 }
 0xa29   :  { %v8708_v30 = vadd.f32 %v8707_v29, %v8694_v12 }
 0xa2a   :  { %v8695_v52 = vpop.f32.mrf.mxu1 }
 0xa2b   :  { %v8696_v62 = vadd.f32 %v12773_v32, %v8695_v52 }
 0xa30   :  { %v8709_v48 = vpop.f32.mrf.mxu3 }
 0xa31   :  { %v8710_v13 = vadd.f32 %v8709_v48, %v8696_v62 }
 0xa42   :  { %v8721_v27 = vpop.f32.mrf.mxu0 }
 0xa43   :  { %v8722_v5 = vadd.f32 %v8721_v27, %v8708_v30 }
 0xa48   :  { %v8735_v20 = vpop.f32.mrf.mxu2 }
 0xa49   :  { %v8736_v16 = vadd.f32 %v8735_v20, %v8722_v5 }
 0xa4a   :  { %v8723_v59 = vpop.f32.mrf.mxu0 }
 0xa4b   :  { %v8741_v43 = vsel %vm8740_vm4, %v8736_v16, -inf  ;;  %v8724_v6 = vadd.f32 %v8723_v59, %v8710_v13 }
 0xa4c   :  { %8742 = vmax.xlane.f32.xlu0 %v8741_v43 }
 0xa50   :  { %v8737_v57 = vpop.f32.mrf.mxu2 }
 0xa51   :  { %v8738_v53 = vadd.f32 %v8737_v57, %v8724_v6 }
 0xa53   :  { %v8744_v40 = vsel %vm8740_vm4, %v8738_v53, -inf }
 0xa54   :  { %8745 = vmax.xlane.f32.xlu0 %v8744_v40 }
 0xabf   :  { %v8743_v54 = vpop.xlane.xlu0 %8742 }
 0xac0   :  { %v8747_v21 = vsub.f32 %v8736_v16, %v8743_v54 }
 0xac2   :  { %v8749_v18 = vmul.f32 1.442695, %v8747_v21 }
 0xac4   :  { %12774 = vpow2.f32 %v8749_v18 }
 0xac7   :  { %v8746_v55 = vpop.xlane.xlu0 %8745 }
 0xac8   :  { %v8748_v41 = vsub.f32 %v8738_v53, %v8746_v55 }
 0xaca   :  { %v12775_v50 = vpop.eup %12774  ;;  %v8751_v1 = vmul.f32 1.442695, %v8748_v41 }
 0xacb   :  { %v8753_v11 = vsel %vm8740_vm4, %v12775_v50, 0.0 }
 0xacc   :  { %12776 = vpow2.f32 %v8751_v1  ;;  %8754 = vadd.xlane.f32.xlu1 %v8753_v11 }
 0xad2   :  { %v12777_v63 = vpop.eup %12776 }
 0xad3   :  { %v8756_v19 = vsel %vm8740_vm4, %v12777_v63, 0.0 }
 0xad4   :  { %8757 = vadd.xlane.f32.xlu1 %v8756_v19 }
 0xb3f   :  { %v8755_v23 = vpop.xlane.xlu1 %8754 }
 0xb40   :  { %12778 = vlog2.f32 %v8755_v23 }
 0xb46   :  { %v12779_v2 = vpop.eup %12778 }
 0xb47   :  { %v8760_v26 = vmul.f32 0.6931472, %v12779_v2  ;;  %v8758_v4 = vpop.xlane.xlu1 %8757 }
 0xb48   :  { %12780 = vlog2.f32 %v8758_v4 }
 0xb49   :  { %v8763_v8 = vadd.f32 %v8760_v26, %v8743_v54 }
 0xb4b   :  { %v8765_v10 = vsub.f32 %v8736_v16, %v8763_v8 }
 0xb4d   :  { %8767 = vst.msk [vmem:[%s19673_s9] sm:$0xff] %vm8740_vm4, %v8765_v10 }
 0xb4e   :  { %v12781_v34 = vpop.eup %12780 }
 0xb4f   :  { %v8762_v14 = vmul.f32 0.6931472, %v12781_v34 }
 0xb51   :  { %v8764_v15 = vadd.f32 %v8762_v14, %v8746_v55 }
 0xb53   :  { %v8766_v39 = vsub.f32 %v8738_v53, %v8764_v15 }
 0xb55   :  { %8768 = vst.msk [vmem:[%s19673_s9 + $0x8] sm:$0xff] %vm8740_vm4, %v8766_v39 }

</bundles_post_ra>
